<compile_context>
chip_gen: v5e
topology: v5e:2x2
jax: 0.10.0
libtpu: 0.0.40
codegen_flags: <defaults>
</compile_context>

<pallas_src>
import jax
import jax.numpy as jnp
import numpy as np
from jax.experimental import pallas as pl
from jax.experimental.pallas import tpu as pltpu


def bilinear_fusion_kernel(
    v1_ref, v2_ref,            # (bt, d1) f32, (bt, d2) f32
    gw_ref, gb_ref,            # packed gate weights (d1+d2, 3*(d1+d2)) bf16 / biases (1, 3*(d1+d2)) f32
    r1_ref, r2_ref,            # selection matrices (d1+d2, d1*d2) bf16
    we1_ref, be1_ref,          # encoder1: (mm1, mm1) bf16, (1, mm1) f32
    we2a_ref, be2a_ref,        # encoder2a: (mm1, mm1) bf16, (1, mm1) f32
    we2b_ref, be2b_ref,        # encoder2b: (mm1, mm2) bf16, (1, mm2) f32
    out_ref,                   # (bt, mm2) f32
):
    f32 = jnp.float32
    bf16 = jnp.bfloat16

    def mm(x, w_bf16):
        # bf16 x bf16 MXU matmul with f32 accumulation.
        return jnp.dot(x.astype(bf16), w_bf16, preferred_element_type=f32)

    d1 = v1_ref.shape[1]
    d2 = v2_ref.shape[1]
    s1 = 2 * d1 + 2 * d2       # stage-1 packed output width: [h1 | z1 | z2 | h2]

    v1 = v1_ref[...]
    v2 = v2_ref[...]

    # ---- stage 1: all four gate linears in one fused matmul pair ------------
    #   columns of gw[:, :s1]: [wh1|wz1a|wz2a| 0 ] (rows :d1, from v1)
    #                          [ 0 |wz1b|wz2b|wh2] (rows d1:, from v2)
    g_pre = mm(v1, gw_ref[:d1, :s1]) + mm(v2, gw_ref[d1:, :s1]) + gb_ref[:, :s1]
    h1 = jax.nn.relu(g_pre[:, :d1])
    z1 = g_pre[:, d1:2 * d1]
    z2 = g_pre[:, 2 * d1:2 * d1 + d2]
    h2 = jax.nn.relu(g_pre[:, 2 * d1 + d2:])

    g1 = jax.nn.sigmoid(z1) * h1
    g2 = jax.nn.sigmoid(z2) * h2

    # ---- stage 2: o = [o1 | o2] via block-diagonal packed wo1 / wo2 ---------
    #   columns of gw[:, s1:]: [wo1| 0 ] (rows :d1) / [ 0 |wo2] (rows d1:)
    o = jax.nn.relu(mm(g1, gw_ref[:d1, s1:]) + mm(g2, gw_ref[d1:, s1:])
                    + gb_ref[:, s1:])

    # ---- gated fusion: o12[b, i*d2 + j] = o1[b, i] * o2[b, j] ---------------
    # Two selection-matrix matmuls on the MXU (exact: R entries are 0/1 and
    # each column has a single nonzero, so the f32 accumulation is exact).
    o12 = mm(o, r1_ref[...]) * mm(o, r2_ref[...])

    # ---- encoder1 / encoder2 (dropout = identity at inference) --------------
    e1 = jax.nn.relu(mm(o12, we1_ref[...]) + be1_ref[...])
    e2 = jax.nn.relu(mm(e1, we2a_ref[...]) + be2a_ref[...])
    out_ref[...] = jax.nn.relu(mm(e2, we2b_ref[...]) + be2b_ref[...])


def _pack_gate_params(p, dim1, dim2):
    """Pack the 16 tiny gate weights/biases into one weight slab + one bias slab.

    gw columns: [h1 | z1 | z2 | h2 | o1 | o2] (widths d1,d1,d2,d2,d1,d2)
    gw rows:    [:d1]  = contributions from v1 (or the gated g1 for o1)
                [d1:]  = contributions from v2 (or the gated g2 for o2)
    """
    f32 = jnp.float32
    z12 = jnp.zeros((dim1, dim2), f32)
    z21 = jnp.zeros((dim2, dim1), f32)
    top = jnp.concatenate(
        [p["wh1"], p["wz1"][:dim1], p["wz2"][:dim1], z12, p["wo1"], z12], axis=1)
    bot = jnp.concatenate(
        [z21, p["wz1"][dim1:], p["wz2"][dim1:], p["wh2"], z21, p["wo2"]], axis=1)
    gw = jnp.concatenate([top, bot], axis=0).astype(jnp.bfloat16)   # (d1+d2, 3*(d1+d2))
    gb = jnp.concatenate(
        [p["bh1"], p["bz1"], p["bz2"], p["bh2"], p["bo1"], p["bo2"]], axis=1)  # f32
    return gw, gb


def _selection_matrices(dim1, dim2):
    """R1/R2 such that for o = [o1 | o2]:  (o @ R1)[:,k] = o1[:, k//dim2],
    (o @ R2)[:,k] = o2[:, k % dim2].  Entries are exact 0/1 (bf16-safe)."""
    d12 = dim1 * dim2
    k = np.arange(d12)
    r1 = np.zeros((dim1 + dim2, d12), np.float32)
    r2 = np.zeros((dim1 + dim2, d12), np.float32)
    r1[k // dim2, k] = 1.0
    r2[dim1 + (k % dim2), k] = 1.0
    return jnp.asarray(r1, jnp.bfloat16), jnp.asarray(r2, jnp.bfloat16)


def bilinear_fusion(vec1, vec2, p, *, block_batch=8):
    b, dim1 = vec1.shape
    dim2 = vec2.shape[1]
    mmhid2 = p["we2b"].shape[1]
    assert b % block_batch == 0 and block_batch % 8 == 0, (b, block_batch)

    gw, gb = _pack_gate_params(p, dim1, dim2)
    r1, r2 = _selection_matrices(dim1, dim2)
    we1 = p["we1"].astype(jnp.bfloat16)
    we2a = p["we2a"].astype(jnp.bfloat16)
    we2b = p["we2b"].astype(jnp.bfloat16)

    ordered = (vec1, vec2, gw, gb, r1, r2,
               we1, p["be1"], we2a, p["be2a"], we2b, p["be2b"])

    batch_map = lambda i: (i, 0)
    const_map = lambda i: (0, 0)

    def resident(x):  # full-array block, constant index -> DMA'd once, VMEM-resident
        return pl.BlockSpec(x.shape, const_map)

    in_specs = [
        pl.BlockSpec((block_batch, dim1), batch_map),
        pl.BlockSpec((block_batch, dim2), batch_map),
        resident(gw), resident(gb), resident(r1), resident(r2),
        resident(we1), resident(p["be1"]),
        resident(we2a), resident(p["be2a"]),
        resident(we2b), resident(p["be2b"]),
    ]

    return pl.pallas_call(
        bilinear_fusion_kernel,
        out_shape=jax.ShapeDtypeStruct((b, mmhid2), jnp.float32),
        grid_spec=pltpu.PrefetchScalarGridSpec(
            num_scalar_prefetch=0,
            grid=(b // block_batch,),
            in_specs=in_specs,
            out_specs=pl.BlockSpec((block_batch, mmhid2), batch_map),
        ),
        compiler_params=pltpu.CompilerParams(
            dimension_semantics=("parallel",),
            vmem_limit_bytes=32 * 1024 * 1024,
        ),
    )(*ordered)


def bilinear_fusion_reference(vec1, vec2, p):
    """Pure-JAX reference mirroring the kernel's precision choice:
    bf16 matmul operands, f32 accumulation (so the check can stay tight)."""
    f32, bf16 = jnp.float32, jnp.bfloat16

    def mm(x, w):
        return jnp.dot(x.astype(bf16), w.astype(bf16), preferred_element_type=f32)

    v12 = jnp.concatenate([vec1, vec2], axis=1)
    h1 = jax.nn.relu(mm(vec1, p["wh1"]) + p["bh1"])
    z1 = mm(v12, p["wz1"]) + p["bz1"]
    o1 = jax.nn.relu(mm(jax.nn.sigmoid(z1) * h1, p["wo1"]) + p["bo1"])
    h2 = jax.nn.relu(mm(vec2, p["wh2"]) + p["bh2"])
    z2 = mm(v12, p["wz2"]) + p["bz2"]
    o2 = jax.nn.relu(mm(jax.nn.sigmoid(z2) * h2, p["wo2"]) + p["bo2"])
    # outer product at the same bf16 operand precision the kernel uses
    o1b = o1.astype(bf16).astype(f32)
    o2b = o2.astype(bf16).astype(f32)
    o12 = (o1b[:, :, None] * o2b[:, None, :]).reshape(vec1.shape[0], -1)
    e1 = jax.nn.relu(mm(o12, p["we1"]) + p["be1"])
    e2 = jax.nn.relu(mm(e1, p["we2a"]) + p["be2a"])
    return jax.nn.relu(mm(e2, p["we2b"]) + p["be2b"])


def init_params(key, dim1, dim2, mmhid1, mmhid2):
    names_shapes = [
        ("wh1", (dim1, dim1)), ("bh1", (1, dim1)),
        ("wz1", (dim1 + dim2, dim1)), ("bz1", (1, dim1)),
        ("wo1", (dim1, dim1)), ("bo1", (1, dim1)),
        ("wh2", (dim2, dim2)), ("bh2", (1, dim2)),
        ("wz2", (dim1 + dim2, dim2)), ("bz2", (1, dim2)),
        ("wo2", (dim2, dim2)), ("bo2", (1, dim2)),
        ("we1", (mmhid1, mmhid1)), ("be1", (1, mmhid1)),
        ("we2a", (mmhid1, mmhid1)), ("be2a", (1, mmhid1)),
        ("we2b", (mmhid1, mmhid2)), ("be2b", (1, mmhid2)),
    ]
    keys = jax.random.split(key, len(names_shapes))
    params = {}
    for (name, shape), k in zip(names_shapes, keys):
        params[name] = jax.random.normal(k, shape, jnp.float32) * 0.05
    return params


if __name__ == "__main__":
    B = 16                      # batch, tiled by the grid in blocks of 8
    DIM1 = DIM2 = 32
    MMHID1 = DIM1 * DIM2        # 1024 — required by the forward's flattened outer product
    MMHID2 = 16

    root = jax.random.PRNGKey(0)
    k_v1, k_v2, k_p = jax.random.split(root, 3)
    vec1 = jax.random.normal(k_v1, (B, DIM1), jnp.float32)
    vec2 = jax.random.normal(k_v2, (B, DIM2), jnp.float32)
    params = init_params(k_p, DIM1, DIM2, MMHID1, MMHID2)

    out = jax.block_until_ready(bilinear_fusion(vec1, vec2, params, block_batch=8))
    ref = jax.block_until_ready(bilinear_fusion_reference(vec1, vec2, params))

    assert out.shape == (B, MMHID2), out.shape
    # Kernel and reference use identical (bf16 in, f32 accum) matmul precision;
    # residual diffs are accumulation-order / transcendental-impl noise.
    np.testing.assert_allclose(np.asarray(out), np.asarray(ref), rtol=1e-3, atol=1e-3)

    print("KERNEL_OK")
</pallas_src>

<mosaic_0001>
module attributes {stable_mosaic.version = 11 : i64} {
  func.func @bilinear_fusion_kernel(%arg0: i32, %arg1: memref<8x32xf32, #tpu.memory_space<vmem>>, %arg2: memref<8x32xf32, #tpu.memory_space<vmem>>, %arg3: memref<64x192xbf16, #tpu.memory_space<vmem>>, %arg4: memref<1x192xf32, #tpu.memory_space<vmem>>, %arg5: memref<64x1024xbf16, #tpu.memory_space<vmem>>, %arg6: memref<64x1024xbf16, #tpu.memory_space<vmem>>, %arg7: memref<1024x1024xbf16, #tpu.memory_space<vmem>>, %arg8: memref<1x1024xf32, #tpu.memory_space<vmem>>, %arg9: memref<1024x1024xbf16, #tpu.memory_space<vmem>>, %arg10: memref<1x1024xf32, #tpu.memory_space<vmem>>, %arg11: memref<1024x16xbf16, #tpu.memory_space<vmem>>, %arg12: memref<1x16xf32, #tpu.memory_space<vmem>>, %arg13: memref<8x16xf32, #tpu.memory_space<vmem>>) attributes {dimension_semantics = [#tpu.dimension_semantics<parallel>], iteration_bounds = array<i64: 2>, scalar_prefetch = 0 : i64, scratch_operands = 0 : i64, tpu.core_type = #tpu.core_type<tc>, window_params = [{transform_indices = @transform_0, window_bounds = array<i64: 8, 32>}, {transform_indices = @transform_1, window_bounds = array<i64: 8, 32>}, {pipeline_mode = #tpu.pipeline_mode<synchronous>, transform_indices = @transform_2, window_bounds = array<i64: 64, 192>}, {pipeline_mode = #tpu.pipeline_mode<synchronous>, transform_indices = @transform_3, window_bounds = array<i64: 1, 192>}, {pipeline_mode = #tpu.pipeline_mode<synchronous>, transform_indices = @transform_4, window_bounds = array<i64: 64, 1024>}, {pipeline_mode = #tpu.pipeline_mode<synchronous>, transform_indices = @transform_5, window_bounds = array<i64: 64, 1024>}, {pipeline_mode = #tpu.pipeline_mode<synchronous>, transform_indices = @transform_6, window_bounds = array<i64: 1024, 1024>}, {pipeline_mode = #tpu.pipeline_mode<synchronous>, transform_indices = @transform_7, window_bounds = array<i64: 1, 1024>}, {pipeline_mode = #tpu.pipeline_mode<synchronous>, transform_indices = @transform_8, window_bounds = array<i64: 1024, 1024>}, {pipeline_mode = #tpu.pipeline_mode<synchronous>, transform_indices = @transform_9, window_bounds = array<i64: 1, 1024>}, {pipeline_mode = #tpu.pipeline_mode<synchronous>, transform_indices = @transform_10, window_bounds = array<i64: 1024, 16>}, {pipeline_mode = #tpu.pipeline_mode<synchronous>, transform_indices = @transform_11, window_bounds = array<i64: 1, 16>}, {transform_indices = @transform_12, window_bounds = array<i64: 8, 16>}]} {
    %c0 = arith.constant 0 : index
    %c0_0 = arith.constant 0 : index
    %0 = vector.load %arg1[%c0, %c0_0] : memref<8x32xf32, #tpu.memory_space<vmem>>, vector<8x32xf32>
    %c0_1 = arith.constant 0 : index
    %c0_2 = arith.constant 0 : index
    %1 = vector.load %arg2[%c0_1, %c0_2] : memref<8x32xf32, #tpu.memory_space<vmem>>, vector<8x32xf32>
    %c0_3 = arith.constant 0 : index
    %c0_4 = arith.constant 0 : index
    %2 = vector.load %arg3[%c0_3, %c0_4] : memref<64x192xbf16, #tpu.memory_space<vmem>>, vector<32x128xbf16>
    %3 = arith.truncf %0 : vector<8x32xf32> to vector<8x32xbf16>
    %cst = arith.constant dense<0.000000e+00> : vector<8x128xf32>
    %4 = tpu.matmul %3, %2, %cst {dimension_numbers = #tpu.dot_dimension_numbers<[1], [0], [0], [1], [0, 0, 1, 1], [], []>} : vector<8x32xbf16>, vector<32x128xbf16>, vector<8x128xf32> -> vector<8x128xf32>
    %c32 = arith.constant 32 : index
    %c0_5 = arith.constant 0 : index
    %5 = vector.load %arg3[%c32, %c0_5] : memref<64x192xbf16, #tpu.memory_space<vmem>>, vector<32x128xbf16>
    %6 = arith.truncf %1 : vector<8x32xf32> to vector<8x32xbf16>
    %cst_6 = arith.constant dense<0.000000e+00> : vector<8x128xf32>
    %7 = tpu.matmul %6, %5, %cst_6 {dimension_numbers = #tpu.dot_dimension_numbers<[1], [0], [0], [1], [0, 0, 1, 1], [], []>} : vector<8x32xbf16>, vector<32x128xbf16>, vector<8x128xf32> -> vector<8x128xf32>
    %8 = arith.addf %4, %7 : vector<8x128xf32>
    %c0_7 = arith.constant 0 : index
    %c0_8 = arith.constant 0 : index
    %9 = vector.load %arg4[%c0_7, %c0_8] : memref<1x192xf32, #tpu.memory_space<vmem>>, vector<1x128xf32>
    %10 = vector.broadcast %9 : vector<1x128xf32> to vector<8x128xf32>
    %11 = arith.addf %8, %10 : vector<8x128xf32>
    %12 = vector.extract_strided_slice %11 {offsets = [0, 0], sizes = [8, 32], strides = [1, 1]} : vector<8x128xf32> to vector<8x32xf32>
    %cst_9 = arith.constant 0.000000e+00 : f32
    %13 = vector.broadcast %cst_9 : f32 to vector<8x32xf32>
    %14 = arith.maximumf %12, %13 : vector<8x32xf32>
    %15 = vector.extract_strided_slice %11 {offsets = [0, 32], sizes = [8, 32], strides = [1, 1]} : vector<8x128xf32> to vector<8x32xf32>
    %16 = vector.extract_strided_slice %11 {offsets = [0, 64], sizes = [8, 32], strides = [1, 1]} : vector<8x128xf32> to vector<8x32xf32>
    %17 = vector.extract_strided_slice %11 {offsets = [0, 96], sizes = [8, 32], strides = [1, 1]} : vector<8x128xf32> to vector<8x32xf32>
    %cst_10 = arith.constant 0.000000e+00 : f32
    %18 = vector.broadcast %cst_10 : f32 to vector<8x32xf32>
    %19 = arith.maximumf %17, %18 : vector<8x32xf32>
    %20 = arith.negf %15 : vector<8x32xf32>
    %21 = math.exp %20 : vector<8x32xf32>
    %cst_11 = arith.constant 1.000000e+00 : f32
    %22 = vector.broadcast %cst_11 : f32 to vector<8x32xf32>
    %23 = arith.addf %22, %21 : vector<8x32xf32>
    %24 = arith.divf %22, %23 : vector<8x32xf32>
    %25 = arith.mulf %24, %14 : vector<8x32xf32>
    %26 = arith.negf %16 : vector<8x32xf32>
    %27 = math.exp %26 : vector<8x32xf32>
    %cst_12 = arith.constant 1.000000e+00 : f32
    %28 = vector.broadcast %cst_12 : f32 to vector<8x32xf32>
    %29 = arith.addf %28, %27 : vector<8x32xf32>
    %30 = arith.divf %28, %29 : vector<8x32xf32>
    %31 = arith.mulf %30, %19 : vector<8x32xf32>
    %c0_13 = arith.constant 0 : index
    %c128 = arith.constant 128 : index
    %32 = vector.load %arg3[%c0_13, %c128] : memref<64x192xbf16, #tpu.memory_space<vmem>>, vector<32x64xbf16>
    %33 = arith.truncf %25 : vector<8x32xf32> to vector<8x32xbf16>
    %cst_14 = arith.constant dense<0.000000e+00> : vector<8x64xf32>
    %34 = tpu.matmul %33, %32, %cst_14 {dimension_numbers = #tpu.dot_dimension_numbers<[1], [0], [0], [1], [0, 0, 1, 1], [], []>} : vector<8x32xbf16>, vector<32x64xbf16>, vector<8x64xf32> -> vector<8x64xf32>
    %c32_15 = arith.constant 32 : index
    %c128_16 = arith.constant 128 : index
    %35 = vector.load %arg3[%c32_15, %c128_16] : memref<64x192xbf16, #tpu.memory_space<vmem>>, vector<32x64xbf16>
    %36 = arith.truncf %31 : vector<8x32xf32> to vector<8x32xbf16>
    %cst_17 = arith.constant dense<0.000000e+00> : vector<8x64xf32>
    %37 = tpu.matmul %36, %35, %cst_17 {dimension_numbers = #tpu.dot_dimension_numbers<[1], [0], [0], [1], [0, 0, 1, 1], [], []>} : vector<8x32xbf16>, vector<32x64xbf16>, vector<8x64xf32> -> vector<8x64xf32>
    %38 = arith.addf %34, %37 : vector<8x64xf32>
    %c0_18 = arith.constant 0 : index
    %c128_19 = arith.constant 128 : index
    %39 = vector.load %arg4[%c0_18, %c128_19] : memref<1x192xf32, #tpu.memory_space<vmem>>, vector<1x64xf32>
    %40 = vector.broadcast %39 : vector<1x64xf32> to vector<8x64xf32>
    %41 = arith.addf %38, %40 : vector<8x64xf32>
    %cst_20 = arith.constant 0.000000e+00 : f32
    %42 = vector.broadcast %cst_20 : f32 to vector<8x64xf32>
    %43 = arith.maximumf %41, %42 : vector<8x64xf32>
    %c0_21 = arith.constant 0 : index
    %c0_22 = arith.constant 0 : index
    %44 = vector.load %arg5[%c0_21, %c0_22] : memref<64x1024xbf16, #tpu.memory_space<vmem>>, vector<64x1024xbf16>
    %45 = arith.truncf %43 : vector<8x64xf32> to vector<8x64xbf16>
    %cst_23 = arith.constant dense<0.000000e+00> : vector<8x1024xf32>
    %46 = tpu.matmul %45, %44, %cst_23 {dimension_numbers = #tpu.dot_dimension_numbers<[1], [0], [0], [1], [0, 0, 1, 1], [], []>} : vector<8x64xbf16>, vector<64x1024xbf16>, vector<8x1024xf32> -> vector<8x1024xf32>
    %c0_24 = arith.constant 0 : index
    %c0_25 = arith.constant 0 : index
    %47 = vector.load %arg6[%c0_24, %c0_25] : memref<64x1024xbf16, #tpu.memory_space<vmem>>, vector<64x1024xbf16>
    %48 = arith.truncf %43 : vector<8x64xf32> to vector<8x64xbf16>
    %cst_26 = arith.constant dense<0.000000e+00> : vector<8x1024xf32>
    %49 = tpu.matmul %48, %47, %cst_26 {dimension_numbers = #tpu.dot_dimension_numbers<[1], [0], [0], [1], [0, 0, 1, 1], [], []>} : vector<8x64xbf16>, vector<64x1024xbf16>, vector<8x1024xf32> -> vector<8x1024xf32>
    %50 = arith.mulf %46, %49 : vector<8x1024xf32>
    %c0_27 = arith.constant 0 : index
    %c0_28 = arith.constant 0 : index
    %51 = vector.load %arg7[%c0_27, %c0_28] : memref<1024x1024xbf16, #tpu.memory_space<vmem>>, vector<1024x1024xbf16>
    %52 = arith.truncf %50 : vector<8x1024xf32> to vector<8x1024xbf16>
    %cst_29 = arith.constant dense<0.000000e+00> : vector<8x1024xf32>
    %53 = tpu.matmul %52, %51, %cst_29 {dimension_numbers = #tpu.dot_dimension_numbers<[1], [0], [0], [1], [0, 0, 1, 1], [], []>} : vector<8x1024xbf16>, vector<1024x1024xbf16>, vector<8x1024xf32> -> vector<8x1024xf32>
    %c0_30 = arith.constant 0 : index
    %c0_31 = arith.constant 0 : index
    %54 = vector.load %arg8[%c0_30, %c0_31] : memref<1x1024xf32, #tpu.memory_space<vmem>>, vector<1x1024xf32>
    %55 = vector.broadcast %54 : vector<1x1024xf32> to vector<8x1024xf32>
    %56 = arith.addf %53, %55 : vector<8x1024xf32>
    %cst_32 = arith.constant 0.000000e+00 : f32
    %57 = vector.broadcast %cst_32 : f32 to vector<8x1024xf32>
    %58 = arith.maximumf %56, %57 : vector<8x1024xf32>
    %c0_33 = arith.constant 0 : index
    %c0_34 = arith.constant 0 : index
    %59 = vector.load %arg9[%c0_33, %c0_34] : memref<1024x1024xbf16, #tpu.memory_space<vmem>>, vector<1024x1024xbf16>
    %60 = arith.truncf %58 : vector<8x1024xf32> to vector<8x1024xbf16>
    %cst_35 = arith.constant dense<0.000000e+00> : vector<8x1024xf32>
    %61 = tpu.matmul %60, %59, %cst_35 {dimension_numbers = #tpu.dot_dimension_numbers<[1], [0], [0], [1], [0, 0, 1, 1], [], []>} : vector<8x1024xbf16>, vector<1024x1024xbf16>, vector<8x1024xf32> -> vector<8x1024xf32>
    %c0_36 = arith.constant 0 : index
    %c0_37 = arith.constant 0 : index
    %62 = vector.load %arg10[%c0_36, %c0_37] : memref<1x1024xf32, #tpu.memory_space<vmem>>, vector<1x1024xf32>
    %63 = vector.broadcast %62 : vector<1x1024xf32> to vector<8x1024xf32>
    %64 = arith.addf %61, %63 : vector<8x1024xf32>
    %cst_38 = arith.constant 0.000000e+00 : f32
    %65 = vector.broadcast %cst_38 : f32 to vector<8x1024xf32>
    %66 = arith.maximumf %64, %65 : vector<8x1024xf32>
    %c0_39 = arith.constant 0 : index
    %c0_40 = arith.constant 0 : index
    %67 = vector.load %arg11[%c0_39, %c0_40] : memref<1024x16xbf16, #tpu.memory_space<vmem>>, vector<1024x16xbf16>
    %68 = arith.truncf %66 : vector<8x1024xf32> to vector<8x1024xbf16>
    %cst_41 = arith.constant dense<0.000000e+00> : vector<8x16xf32>
    %69 = tpu.matmul %68, %67, %cst_41 {dimension_numbers = #tpu.dot_dimension_numbers<[1], [0], [0], [1], [0, 0, 1, 1], [], []>} : vector<8x1024xbf16>, vector<1024x16xbf16>, vector<8x16xf32> -> vector<8x16xf32>
    %c0_42 = arith.constant 0 : index
    %c0_43 = arith.constant 0 : index
    %70 = vector.load %arg12[%c0_42, %c0_43] : memref<1x16xf32, #tpu.memory_space<vmem>>, vector<1x16xf32>
    %71 = vector.broadcast %70 : vector<1x16xf32> to vector<8x16xf32>
    %72 = arith.addf %69, %71 : vector<8x16xf32>
    %cst_44 = arith.constant 0.000000e+00 : f32
    %73 = vector.broadcast %cst_44 : f32 to vector<8x16xf32>
    %74 = arith.maximumf %72, %73 : vector<8x16xf32>
    %c0_45 = arith.constant 0 : index
    %c0_46 = arith.constant 0 : index
    %75 = vector.load %arg13[%c0_45, %c0_46] : memref<8x16xf32, #tpu.memory_space<vmem>>, vector<8x16xf32>
    tpu.vector_store %arg13[%c0_45, %c0_46], %74 {strides = array<i32>} : memref<8x16xf32, #tpu.memory_space<vmem>>, vector<8x16xf32>,
    return
  }
  func.func @transform_0(%arg0: i32) -> (i32, i32) {
    %c0_i32 = arith.constant 0 : i32
    %c0_i32_0 = arith.constant 0 : i32
    return %arg0, %c0_i32 : i32, i32
  }
  func.func @transform_1(%arg0: i32) -> (i32, i32) {
    %c0_i32 = arith.constant 0 : i32
    %c0_i32_0 = arith.constant 0 : i32
    return %arg0, %c0_i32 : i32, i32
  }
  func.func @transform_2(%arg0: i32) -> (i32, i32) {
    %c0_i32 = arith.constant 0 : i32
    %c0_i32_0 = arith.constant 0 : i32
    %c0_i32_1 = arith.constant 0 : i32
    return %c0_i32, %c0_i32_0 : i32, i32
  }
  func.func @transform_3(%arg0: i32) -> (i32, i32) {
    %c0_i32 = arith.constant 0 : i32
    %c0_i32_0 = arith.constant 0 : i32
    %c0_i32_1 = arith.constant 0 : i32
    return %c0_i32, %c0_i32_0 : i32, i32
  }
  func.func @transform_4(%arg0: i32) -> (i32, i32) {
    %c0_i32 = arith.constant 0 : i32
    %c0_i32_0 = arith.constant 0 : i32
    %c0_i32_1 = arith.constant 0 : i32
    return %c0_i32, %c0_i32_0 : i32, i32
  }
  func.func @transform_5(%arg0: i32) -> (i32, i32) {
    %c0_i32 = arith.constant 0 : i32
    %c0_i32_0 = arith.constant 0 : i32
    %c0_i32_1 = arith.constant 0 : i32
    return %c0_i32, %c0_i32_0 : i32, i32
  }
  func.func @transform_6(%arg0: i32) -> (i32, i32) {
    %c0_i32 = arith.constant 0 : i32
    %c0_i32_0 = arith.constant 0 : i32
    %c0_i32_1 = arith.constant 0 : i32
    return %c0_i32, %c0_i32_0 : i32, i32
  }
  func.func @transform_7(%arg0: i32) -> (i32, i32) {
    %c0_i32 = arith.constant 0 : i32
    %c0_i32_0 = arith.constant 0 : i32
    %c0_i32_1 = arith.constant 0 : i32
    return %c0_i32, %c0_i32_0 : i32, i32
  }
  func.func @transform_8(%arg0: i32) -> (i32, i32) {
    %c0_i32 = arith.constant 0 : i32
    %c0_i32_0 = arith.constant 0 : i32
    %c0_i32_1 = arith.constant 0 : i32
    return %c0_i32, %c0_i32_0 : i32, i32
  }
  func.func @transform_9(%arg0: i32) -> (i32, i32) {
    %c0_i32 = arith.constant 0 : i32
    %c0_i32_0 = arith.constant 0 : i32
    %c0_i32_1 = arith.constant 0 : i32
    return %c0_i32, %c0_i32_0 : i32, i32
  }
  func.func @transform_10(%arg0: i32) -> (i32, i32) {
    %c0_i32 = arith.constant 0 : i32
    %c0_i32_0 = arith.constant 0 : i32
    %c0_i32_1 = arith.constant 0 : i32
    return %c0_i32, %c0_i32_0 : i32, i32
  }
  func.func @transform_11(%arg0: i32) -> (i32, i32) {
    %c0_i32 = arith.constant 0 : i32
    %c0_i32_0 = arith.constant 0 : i32
    %c0_i32_1 = arith.constant 0 : i32
    return %c0_i32, %c0_i32_0 : i32, i32
  }
  func.func @transform_12(%arg0: i32) -> (i32, i32) {
    %c0_i32 = arith.constant 0 : i32
    %c0_i32_0 = arith.constant 0 : i32
    return %arg0, %c0_i32 : i32, i32
  }
}

</mosaic_0001>

<bundles_post_ra>
// kernel: tpu_custom_call.1
= control target key start
LH: loop header
LB: loop body
LE: loop exit
PB: predicated region body
PF: predicated region fallthrough
CT: control target
= control target key end

     0   :  { %s17467_s0 = inlined_call_operand.hbm [shape: f32[16,32], index: 0, kind: input, shape index: {}]   ;;  %s17468_s1 = inlined_call_operand.hbm [shape: f32[16,32], index: 1, kind: input, shape index: {}]   ;;  %s17469_s2 = inlined_call_operand.hbm [shape: bf16[64,192], index: 2, kind: input, shape index: {}]   ;;  %s17470_s3 = inlined_call_operand.hbm [shape: f32[1,192], index: 3, kind: input, shape index: {}]   ;;  %s17471_s4 = inlined_call_operand.hbm [shape: bf16[64,1024], index: 4, kind: input, shape index: {}]   ;;  %s17472_s5 = inlined_call_operand.hbm [shape: bf16[64,1024], index: 5, kind: input, shape index: {}]   ;;  %s17473_s6 = inlined_call_operand.hbm [shape: bf16[1024,1024], index: 6, kind: input, shape index: {}]   ;;  %s17474_s7 = inlined_call_operand.hbm [shape: f32[1,1024], index: 7, kind: input, shape index: {}]   ;;  %s17475_s8 = inlined_call_operand.hbm [shape: bf16[1024,1024], index: 8, kind: input, shape index: {}]   ;;  %s17476_s9 = inlined_call_operand.hbm [shape: f32[1,1024], index: 9, kind: input, shape index: {}]   ;;  %s17477_s10 = inlined_call_operand.vmem [shape: bf16[1024,16], index: 10, kind: input, shape index: {}]   ;;  %s17478_s11 = inlined_call_operand.hbm [shape: f32[1,16], index: 11, kind: input, shape index: {}]   ;;  %s17479_s12 = inlined_call_operand.hbm [shape: f32[16,16], index: 12, kind: output, shape index: {}]  }
   0x1   :  { %17483 = sst [smem:[#allocation30_spill]] %s17469_s2 }
   0x2   :  { %17484 = sst [smem:[#allocation31_spill]] %s17470_s3 }
   0x3   :  { %17485 = sst [smem:[#allocation32_spill]] %s17471_s4 }
   0x4   :  { %17486 = sst [smem:[#allocation33_spill]] %s17472_s5 }
   0x5   :  { %17487 = sst [smem:[#allocation34_spill]] %s17473_s6 }
   0x6   :  { %17488 = sst [smem:[#allocation35_spill]] %s17474_s7 }
   0x7   :  { %17489 = sst [smem:[#allocation36_spill]] %s17475_s8 }
   0x8   :  { %17490 = sst [smem:[#allocation37_spill]] %s17476_s9 }
   0x9   :  { %17491 = sst [smem:[#allocation38_spill]] %s17477_s10 }
   0xa   :  { %17492 = sst [smem:[#allocation39_spill]] %s17479_s12 }
   0xb   :  { %17 = vsyncpa [#allocation3], 0 }
   0xc   :  { %19 = vsyncpa [#allocation3 + $0x1], 0 }
   0xd   :  { %20 = vsyncpa [#allocation6], 0 }
   0xe   :  { %22 = vsyncpa [#allocation6 + $0x1], 0 }
   0xf   :  { %23 = vsyncpa [#allocation9], 0 }
  0x10   :  { %24 = vsyncpa [#allocation12], 0 }
  0x11   :  { %25 = vsyncpa [#allocation15], 0 }
  0x12   :  { %26 = vsyncpa [#allocation18], 0 }
  0x13   :  { %27 = vsyncpa [#allocation4], 0 }
  0x14   :  { %29 = vsyncpa [#allocation4 + $0x1], 0  ;;  %s16617_s21 = smov 0   ;;  %s16619_s22 = smov 0  }
  0x15   :  { %s16621_s23 = smov 0   ;;  %s16623_s24 = smov 0  }
  0x16 LB: > { %s17493_s2 = sld [smem:[#allocation30_spill]]  ;;  %s16641_s28 = sadd.s32 4294967295, %s16534_s24   ;;  %s16534_s24 = sphi %s16623_s24, %s17516_s24   ;;  %s16530_s23 = sphi %s16621_s23, %s17515_s23   ;;  %s16526_s22 = sphi %s16619_s22, %s17514_s22   ;;  %s16522_s21 = sphi %s16617_s21, %s17513_s21  }
  0x17   : > { %p10099_p0 = scmp.ge.s32.totalorder %s16534_s24, 1  ;;  %p56_p1 = scmp.eq.s32.totalorder %s16641_s28, 0 }
  0x18   : > { %p328_p2 = scmp.lt.s32.totalorder %s16534_s24, 3  ;;  %s16536_s30 = smov [#allocation7]  }
  0x19   : > { %s341_s13 = sshll.u32 %s16536_s30, 4  ;;  %s17496_s3 = sld [smem:[#allocation31_spill]]  ;;  %s342_s13 = int_to_ptr.vmem [resolvable:$true] %s341_s13 }
  0x1a   : > { %p16646_p3 = pnand %p10099_p0, %p328_p2  ;;  %s16537_s18 = smov [#allocation8]  }
  0x1b   : > { %s356_s19 = sshll.u32 %s16537_s18, 4  ;;  %s16538_s20 = smov 128   ;;  %s357_s19 = int_to_ptr.vmem [resolvable:$true] %s356_s19 }
  0x1c   : > { %s339_s27 = sshll.u32 %s17493_s2, 4  ;;  %p15994_p4 = pneg %p16646_p3  ;;  %s340_s27 = int_to_ptr.hbm [resolvable:$true] %s339_s27 }
  0x1d   : > { %s17494_s29 = scalar_select %p16646_p3, 1, 0 }
  0x1e   : > { %p16658_p6 = pnand %p15994_p4, %p56_p1  ;;  %s16539_s25 = smov 8  }
  0x1f   : > { %17495 = sst [smem:[#allocation29_spill]] %s17494_s29  ;;  %s354_s16 = sshll.u32 %s17496_s3, 4  ;;  %s355_s16 = int_to_ptr.hbm [resolvable:$true] %s354_s16 }
  0x20   : > { %15997 = dma.hbm_to_vmem [thread:$0]  (!%p16658_p6), %s340_s27, 1024, %s342_s13, [#allocation6], %s16538_s20, %s16538_s20, %s16539_s25  }
  0x21   : > { %16000 = dma.hbm_to_vmem [thread:$0]  (!%p16658_p6), %s355_s16, 32, %s357_s19, [#allocation9]  }
  0x22   : > { %s17498_s5 = sld [smem:[#allocation33_spill]]  ;;  %s16540_s15 = smov [#allocation11]  }
  0x23   : > { %s381_s2 = sshll.u32 %s16540_s15, 4  ;;  %s17499_s7 = sld [smem:[#allocation35_spill]]  ;;  %s382_s2 = int_to_ptr.vmem [resolvable:$true] %s381_s2 }
  0x24   : > { %s16541_s10 = smov 512   ;;  %s16542_s29 = smov 32  }
  0x25   : > { %s16543_s27 = smov [#allocation14]   ;;  %s17500_s9 = sld [smem:[#allocation37_spill]] }
  0x26   : > { %s410_s13 = sshll.u32 %s16543_s27, 4  ;;  %s17501_s4 = sld [smem:[#allocation32_spill]]  ;;  %s411_s13 = int_to_ptr.vmem [resolvable:$true] %s410_s13 }
  0x27   : > { %s16544_s26 = smov [#allocation17]   ;;  %s17502_s6 = sld [smem:[#allocation34_spill]] }
  0x28   : > { %s379_s14 = sshll.u32 %s17498_s5, 4  ;;  %s436_s30 = sshll.u32 %s16544_s26, 4  ;;  %s380_s14 = int_to_ptr.hbm [resolvable:$true] %s379_s14  ;;  %s437_s30 = int_to_ptr.vmem [resolvable:$true] %s436_s30 }
  0x29   : > { %s408_s18 = sshll.u32 %s17499_s7, 4  ;;  %s17503_s8 = sld [smem:[#allocation36_spill]]  ;;  %s409_s18 = int_to_ptr.hbm [resolvable:$true] %s408_s18 }
  0x2a   : > { %16006 = dma.hbm_to_vmem [thread:$0]  (!%p16658_p6), %s380_s14, 4096, %s382_s2, [#allocation12], %s16541_s10, %s16541_s10, %s16542_s29  }
  0x2b   : > { %s434_s20 = sshll.u32 %s17500_s9, 4  ;;  %s16545_s2 = smov [#allocation10]   ;;  %s435_s20 = int_to_ptr.hbm [resolvable:$true] %s434_s20 }
  0x2c   : > { %16012 = dma.hbm_to_vmem [thread:$0]  (!%p16658_p6), %s409_s18, 128, %s411_s13, [#allocation15]  }
  0x2d   : > { %s365_s25 = sshll.u32 %s17501_s4, 4  ;;  %s367_s14 = sshll.u32 %s16545_s2, 4  ;;  %s366_s25 = int_to_ptr.hbm [resolvable:$true] %s365_s25  ;;  %s368_s14 = int_to_ptr.vmem [resolvable:$true] %s367_s14 }
  0x2e   : > { %16018 = dma.hbm_to_vmem [thread:$0]  (!%p16658_p6), %s435_s20, 128, %s437_s30, [#allocation18]  }
  0x2f   : > { %s393_s16 = sshll.u32 %s17502_s6, 4  ;;  %s419_s19 = sshll.u32 %s17503_s8, 4  ;;  %s394_s16 = int_to_ptr.hbm [resolvable:$true] %s393_s16  ;;  %s420_s19 = int_to_ptr.hbm [resolvable:$true] %s419_s19 }
  0x30   : > { %16003 = dma.hbm_to_vmem [thread:$0]  (!%p16658_p6), %s366_s25, 4096, %s368_s14, [#allocation9], %s16541_s10, %s16541_s10, %s16542_s29  }
  0x31   : > { %s16546_s20 = smov [#allocation13]   ;;  %s16547_s12 = smov [#allocation16]  }
  0x32   : > { %s395_s3 = sshll.u32 %s16546_s20, 4  ;;  %s421_s25 = sshll.u32 %s16547_s12, 4  ;;  %s396_s3 = int_to_ptr.vmem [resolvable:$true] %s395_s3  ;;  %s422_s25 = int_to_ptr.vmem [resolvable:$true] %s421_s25 }
  0x33   : > { %16009 = dma.hbm_to_vmem [thread:$0]  (!%p16658_p6), %s394_s16, 65536, %s396_s3, [#allocation12], %s16541_s10, %s16541_s10, %s16542_s29  }
  0x34   : > { %s449_s2 = sshll.u32 %s17478_s11, 4  ;;  %s16548_s14 = smov [#allocation19]   ;;  %s450_s2 = int_to_ptr.hbm [resolvable:$true] %s449_s2 }
  0x35   : > { %16015 = dma.hbm_to_vmem [thread:$0]  (!%p16658_p6), %s420_s19, 65536, %s422_s25, [#allocation15], %s16541_s10, %s16541_s10, %s16542_s29  }
  0x36   : > { %s451_s15 = sshll.u32 %s16548_s14, 4  ;;  %s10098_s27 = sadd.s32 4294967294, %s16534_s24   ;;  %s452_s15 = int_to_ptr.vmem [resolvable:$true] %s451_s15 }
  0x37   : > { %16021 = dma.hbm_to_vmem [thread:$0]  (!%p16658_p6), %s450_s2, 16, %s452_s15, [#allocation18]  }
  0x38   : > { %s16715_s16 = sadd.s32 1, %s16534_s24   ;;  %s42_s18 = sadd.s32 1, %s16530_s23 }
  0x39   : > { %s39_s13 = ssub.s32 %s16534_s24, %s16715_s16  ;;  %p49_p7 = scmp.ne.s32.totalorder %s16530_s23, %s16526_s22 }
  0x3a   : > { %p40_p8 = scmp.eq.s32.totalorder %s39_s13, 0  ;;  %p50_p9 = scmp.eq.s32.totalorder %s16534_s24, 0 }
  0x3b   : > { %p55_p10 = scmp.ne.s32.totalorder %s16526_s22, %s16522_s21  ;;  %p315_p11 = scmp.eq.s32.totalorder %s16641_s28, 1 }
  0x3c   : > { %s16727_s10 = scalar_select %p40_p8, %s16530_s23, %s42_s18  }
  0x3d   : > { %p16729_p12 = por %p50_p9, %p49_p7  ;;  %p16735_p13 = por %p56_p1, %p55_p10 }
  0x3e   : > { %p16739_p0 = por %p315_p11, %p49_p7  ;;  %p321_p2 = scmp.eq.s32.totalorder %s10098_s27, 1 }
  0x3f   : > { %p16042_p4 = scmp.lt.s32.totalorder %s16534_s24, 2  ;;  %s462_s20 = sand.u32 1, %s16530_s23  }
  0x40   : > { %p16745_p6 = por %p321_p2, %p55_p10  ;;  %s10110_s12 = sshll.u32 %s462_s20, 3 }
  0x41   : > { %s10111_s25 = sshll.u32 %s16534_s24, 3  ;;  %s466_s15 = scalar_lea.vmem [#allocation2], %s10110_s12 }
  0x42   : > { %s470_s2 = scalar_lea.hbm %s17467_s0, %s10111_s25  ;;  %s474_s18 = sshll.u32 %s466_s15, 4  ;;  %s475_s18 = int_to_ptr.vmem [resolvable:$true] %s474_s18 }
  0x43   : > { %s472_s14 = sshll.u32 %s470_s2, 4  ;;  %p16755_p7 = pnand %p16042_p4, %p16729_p12  ;;  %s473_s14 = int_to_ptr.hbm [resolvable:$true] %s472_s14 }
  0x44   : > { %s489_s5 = scalar_lea.hbm %s17468_s1, %s10111_s25  ;;  %s481_s6 = sand.u32 1, %s16534_s24  }
  0x45   : > { %s463_s7 = scalar_lea.sflag [#allocation3], %s462_s20  ;;  %s16384_s26 = sshra.s32 %s473_s14, 4  ;;  %s16385_s26 = int_to_ptr.hbm [resolvable:$true] %s16384_s26 }
  0x46   : > { %s16386_s30 = scalar_lea.hbm %s16385_s26, 8  ;;  %p16388_p9 = pneg %p16755_p7 }
  0x47   : > { %p16387_p8 = scmp.ne.s32.totalorder %s16385_s26, %s16386_s30  ;;  %s16391_s15 = scalar_lea.hbm %s17467_s0, 16 }
  0x48   : > { %p16392_p12 = scmp.lt.s32.totalorder %s16385_s26, %s17467_s0  ;;  %p16393_p2 = scmp.lt.s32.totalorder %s16391_s15, %s16386_s30 }
  0x49   : > { %p16389_p10 = pnand %p16388_p9, %p16387_p8 }
  0x4a   : > { %p16394_p4 = por %p16393_p2, %p16392_p12 }
  0x4b   : > { %p16390_p11 = pneg %p16389_p10 }
  0x4d   : > { %p16395_p5 = pnand %p16394_p4, %p16390_p11 }
  0x4f   : > { %16398 = shalt.err (!%p16395_p5)
}
  0x50   : > { %16025 = dma.hbm_to_vmem [thread:$0]  (!%p16755_p7), %s473_s14, 128, %s475_s18, %s463_s7  }
  0x51   : > { %s491_s20 = sshll.u32 %s489_s5, 4  ;;  %s485_s25 = scalar_lea.vmem [#allocation5], %s10110_s12  ;;  %s492_s20 = int_to_ptr.hbm [resolvable:$true] %s491_s20 }
  0x52   : > { %s493_s8 = sshll.u32 %s485_s25, 4  ;;  %s482_s9 = scalar_lea.sflag [#allocation6], %s481_s6  ;;  %s494_s8 = int_to_ptr.vmem [resolvable:$true] %s493_s8 }
  0x53   : > { %s16414_s29 = sshra.s32 %s492_s20, 4  ;;  %s16421_s15 = scalar_lea.hbm %s17468_s1, 16  ;;  %s16415_s29 = int_to_ptr.hbm [resolvable:$true] %s16414_s29 }
  0x54   : > { %s16416_s2 = scalar_lea.hbm %s16415_s29, 8  ;;  %p16422_p5 = scmp.lt.s32.totalorder %s16415_s29, %s17468_s1 }
  0x55   : > { %p16417_p8 = scmp.ne.s32.totalorder %s16415_s29, %s16416_s2  ;;  %p16423_p11 = scmp.lt.s32.totalorder %s16421_s15, %s16416_s2 }
  0x57   : > { %p16419_p10 = pnand %p16417_p8, %p16388_p9  ;;  %p16424_p2 = por %p16423_p11, %p16422_p5 }
  0x59   : > { %p16420_p12 = pneg %p16419_p10 }
  0x5b   : > { %p16425_p4 = pnand %p16424_p2, %p16420_p12 }
  0x5d   : > { %16428 = shalt.err (!%p16425_p4)
}
  0x5e   : > { %16028 = dma.hbm_to_vmem [thread:$0]  (!%p16755_p7), %s492_s20, 128, %s494_s8, %s482_s9  }
  0x5f   : > { %502 = sbr.rel (%p16646_p3) target bundleno = 2326 (0x916), region = 68  ;;  %s16790_s6 = sand.u32 (!%p16646_p3), 1, %s16526_s22  }
  0x60   : > { %s16793_s12 = sshll.u32 (!%p16646_p3), %s16790_s6, 3  ;;  %s505_s14 = scalar_lea.sflag (!%p16646_p3), [#allocation3], %s16790_s6 }
  0x61   : > { %s508_s18 = scalar_lea.vmem (!%p16646_p3), [#allocation2], %s16793_s12 }
  0x64   : > { %16489 = dma.done.wait (%p16735_p13), %s505_s14, 128  }
  0x65   : > { %16491 = vsyncadd (%p16735_p13), %s505_s14, 4294967168  ;;  %s514_s8 = sand.u32 1, %s16641_s28   ;;  %s518_s27 = scalar_lea.vmem [#allocation5], %s16793_s12 }
  0x66   : > { %s515_s9 = scalar_lea.sflag [#allocation6], %s514_s8 }
  0x67   : > { %16493 = dma.done.wait (%p16735_p13), %s515_s9, 128  }
  0x68   : > { %16495 = vsyncadd (%p16735_p13), %s515_s9, 4294967168 }
  0x69   : > { %16497 = dma.done.wait (%p56_p1), [#allocation6], 1024  }
  0x6a   : > { %16499 = vsyncadd (%p56_p1), [#allocation6], 4294966272 }
  0x6b   : > { %16501 = dma.done.wait (%p56_p1), [#allocation9], 4128  }
  0x6c   : > { %16503 = vsyncadd (%p56_p1), [#allocation9], 4294963168 }
  0x6d   : > { %16505 = dma.done.wait (%p56_p1), [#allocation12], 69632  }
  0x6e   : > { %16507 = vsyncadd (%p56_p1), [#allocation12], 4294897664 }
  0x6f   : > { %16509 = dma.done.wait (%p56_p1), [#allocation15], 65664  }
  0x70   : > { %16511 = vsyncadd (%p56_p1), [#allocation15], 4294901632 }
  0x71   : > { %16513 = dma.done.wait (%p56_p1), [#allocation18], 144  }
  0x72   : > { %16515 = vsyncadd (%p56_p1), [#allocation18], 4294967152  ;;  %v10133_v0 = vld [vmem:[#allocation7 + $0x30] sm:$0xf]  ;;  %v14795_v1 = vld [vmem:[#allocation7 + $0x34] sm:$0xf0] }
  0x73   : > { %v10142_v2 = vld [vmem:[#allocation7 + $0x10] sm:$0xf]  ;;  %v10134_v3 = vor.u32 %v14795_v1, %v10133_v0  ;;  %v14793_v4 = vld [vmem:[#allocation7 + $0x14] sm:$0xf0]  ;;  %v10129_v5 = vld [vmem:[#allocation7 + $0x20] sm:$0xf] }
  0x74   : > { %v14794_v6 = vld [vmem:[#allocation7 + $0x24] sm:$0xf0]  ;;  %v10143_v7 = vor.u32 %v14793_v4, %v10142_v2  ;;  %v10138_v8 = vld [vmem:[#allocation7] sm:$0xf]  ;;  %v612_v11 = vld [vmem:[%s518_s27] sm:$0xff]  ;;  %vm635_vm0 = vcmask 261120  }
  0x75   : > { %v14792_v9 = vld [vmem:[#allocation7 + $0x4] sm:$0xf0]  ;;  %645 = vmatpush.bf16.msra.mxu0 %v10134_v3  ;;  %v10130_v10 = vor.u32 %v14794_v6, %v10129_v5  ;;  %v622_v14 = vpack.c.bf16 %v612_v11, %v612_v11  ;;  %v16101_v17 = vld [vmem:[#allocation8] ss:$0 sm:$0xff]  ;;  %s16549_s17 = smov 32   ;;  %s16550_s13 = smov 96  }
  0x76   : > { %673 = vmatpush.bf16.msra.mxu1 %v10143_v7  ;;  %v10139_v12 = vor.u32 %v14792_v9, %v10138_v8  ;;  %v611_v13 = vld [vmem:[%s508_s18] sm:$0xff]  ;;  %v10152_v29 = vld [vmem:[#allocation7 + $0x34] sm:$0xf]  ;;  %v14799_v30 = vld [vmem:[#allocation7 + $0x38] sm:$0xf0]  ;;  %s16551_s20 = smov 64  }
  0x77   : > { %v617_v15 = vpack.c.bf16 %v611_v13, %v611_v13  ;;  %v10148_v31 = vld [vmem:[#allocation7 + $0x24] sm:$0xf]  ;;  %v10153_v32 = vor.u32 %v14799_v30, %v10152_v29  ;;  %v14798_v33 = vld [vmem:[#allocation7 + $0x28] sm:$0xf0]  ;;  %v10161_v49 = vld [vmem:[#allocation7 + $0x14] sm:$0xf] }
  0x78   : > { %v10149_v34 = vor.u32 %v14798_v33, %v10148_v31  ;;  %v14797_v50 = vld [vmem:[#allocation7 + $0x18] sm:$0xf0]  ;;  %v10157_v52 = vld [vmem:[#allocation7 + $0x4] sm:$0xf]  ;;  %v14796_v53 = vld [vmem:[#allocation7 + $0x8] sm:$0xf0] }
  0x79   : > { %646 = vmatpush.bf16.msra.mxu0 %v10130_v10  ;;  %748 = vmatpush.bf16.msra.mxu2 %v10153_v32  ;;  %v10162_v51 = vor.u32 %v14797_v50, %v10161_v49  ;;  %v10158_v54 = vor.u32 %v14796_v53, %v10157_v52  ;;  %v10262_v57 = vld [vmem:[#allocation10 + $0xc0] sm:$0xf]  ;;  %v14824_v59 = vld [vmem:[#allocation10 + $0xc4] sm:$0xf]  ;;  %v10270_v62 = vld [vmem:[#allocation10 + $0xc8] sm:$0xf] }
  0x7a   : > { %674 = vmatpush.bf16.msra.mxu1 %v10139_v12  ;;  %v14828_v58 = vld [vmem:[#allocation10 + $0xdc] sm:$0xf0]  ;;  %v10264_v61 = vld [vmem:[#allocation10 + $0xe0] sm:$0xf0]  ;;  %v14829_v63 = vld [vmem:[#allocation10 + $0xe4] sm:$0xf0] }
  0x7b   : > { %779 = vmatpush.bf16.msra.mxu3 %v10162_v51  ;;  %v10263_v60 = vor.u32 %v14828_v58, %v10262_v57  ;;  %v10267_v0 = vor.u32 %v14824_v59, %v10264_v61  ;;  %v10271_v1 = vor.u32 %v14829_v63, %v10270_v62  ;;  %v14825_v2 = vld [vmem:[#allocation10 + $0xcc] sm:$0xf]  ;;  %v10230_v4 = vld [vmem:[#allocation10 + $0x80] sm:$0xf]  ;;  %v14816_v7 = vld [vmem:[#allocation10 + $0x84] sm:$0xf] }
  0x7c   : > { %10135 = vmatmul.msk.bf16.vlgmr.msra.gmra.mxu0 %vm635_vm0, %v622_v14  ;;  %v10272_v3 = vld [vmem:[#allocation10 + $0xe8] sm:$0xf0]  ;;  %v14820_v6 = vld [vmem:[#allocation10 + $0x9c] sm:$0xf0]  ;;  %v10232_v8 = vld [vmem:[#allocation10 + $0xa0] sm:$0xf0] }
  0x7d   : > { %10144 = vmatmul.msk.bf16.vlgmr.msra.gmra.mxu1 %vm635_vm0, %v617_v15  ;;  %749 = vmatpush.bf16.msra.mxu2 %v10149_v34  ;;  %v10275_v5 = vor.u32 %v14825_v2, %v10272_v3  ;;  %v10231_v9 = vor.u32 %v14820_v6, %v10230_v4  ;;  %v10235_v10 = vor.u32 %v14816_v7, %v10232_v8  ;;  %v10238_v11 = vld [vmem:[#allocation10 + $0x88] sm:$0xf]  ;;  %v14817_v13 = vld [vmem:[#allocation10 + $0x8c] sm:$0xf]  ;;  %v10166_v29 = vld [vmem:[#allocation10] sm:$0xf] }
  0x7e   : > { %993 = vmatpush.bf16.msrb.mxu0 %v10263_v60  ;;  %1006 = vmatpush.bf16.msrb.mxu1 %v10267_v0  ;;  %v14821_v12 = vld [vmem:[#allocation10 + $0xa4] sm:$0xf0]  ;;  %v10240_v15 = vld [vmem:[#allocation10 + $0xa8] sm:$0xf0]  ;;  %v14804_v30 = vld [vmem:[#allocation10 + $0x1c] sm:$0xf0] }
  0x7f   : > { %780 = vmatpush.bf16.msra.mxu3 %v10158_v54  ;;  %v10239_v14 = vor.u32 %v14821_v12, %v10238_v11  ;;  %v14800_v31 = vld [vmem:[#allocation10 + $0x4] sm:$0xf]  ;;  %v10167_v32 = vor.u32 %v14804_v30, %v10166_v29  ;;  %v10174_v34 = vld [vmem:[#allocation10 + $0x8] sm:$0xf]  ;;  %v14827_v49 = vld [vmem:[#allocation10 + $0xdc] sm:$0xf] }
  0x80   : > { %v10168_v33 = vld [vmem:[#allocation10 + $0x20] sm:$0xf0]  ;;  %v10288_v50 = vld [vmem:[#allocation10 + $0xf8] sm:$0xf0]  ;;  %v10246_v53 = vld [vmem:[#allocation10 + $0x90] sm:$0xf] }
  0x81   : > { %1019 = vmatpush.bf16.msrb.mxu2 %v10271_v1  ;;  %v10291_v52 = vor.u32 %v14827_v49, %v10288_v50  ;;  %v14822_v54 = vld [vmem:[#allocation10 + $0xac] sm:$0xf0]  ;;  %v10248_v57 = vld [vmem:[#allocation10 + $0xb0] sm:$0xf0]  ;;  %v10254_v58 = vld [vmem:[#allocation10 + $0x98] sm:$0xf] }
  0x82   : > { %994 = vmatpush.bf16.msrb.mxu0 %v10231_v9  ;;  %1007 = vmatpush.bf16.msrb.mxu1 %v10235_v10  ;;  %v14823_v59 = vld [vmem:[#allocation10 + $0xb4] sm:$0xf0]  ;;  %v14819_v62 = vld [vmem:[#allocation10 + $0x9c] sm:$0xf]  ;;  %v10214_v0 = vld [vmem:[#allocation10 + $0x50] sm:$0xf] }
  0x83   : > { %1032 = vmatpush.bf16.msrb.mxu3 %v10275_v5  ;;  %v10255_v61 = vor.u32 %v14823_v59, %v10254_v58  ;;  %v10256_v63 = vld [vmem:[#allocation10 + $0xb8] sm:$0xf0]  ;;  %v14814_v2 = vld [vmem:[#allocation10 + $0x6c] sm:$0xf0]  ;;  %v14810_v3 = vld [vmem:[#allocation10 + $0x54] sm:$0xf] }
  0x84   : > { %v10259_v1 = vor.u32 %v14819_v62, %v10256_v63  ;;  %v10216_v4 = vld [vmem:[#allocation10 + $0x70] sm:$0xf0]  ;;  %v10215_v5 = vor.u32 %v14814_v2, %v10214_v0  ;;  %v10222_v6 = vld [vmem:[#allocation10 + $0x58] sm:$0xf]  ;;  %v14811_v8 = vld [vmem:[#allocation10 + $0x5c] sm:$0xf] }
  0x85   : > { %1020 = vmatpush.bf16.msrb.mxu2 %v10239_v14  ;;  %v14815_v7 = vld [vmem:[#allocation10 + $0x74] sm:$0xf0]  ;;  %v10219_v9 = vor.u32 %v14810_v3, %v10216_v4  ;;  %v10224_v10 = vld [vmem:[#allocation10 + $0x78] sm:$0xf0]  ;;  %v10182_v11 = vld [vmem:[#allocation10 + $0x10] sm:$0xf] }
  0x86   : > { %v14806_v12 = vld [vmem:[#allocation10 + $0x2c] sm:$0xf0]  ;;  %v10227_v14 = vor.u32 %v14811_v8, %v10224_v10  ;;  %vm985_vm5 = vcmask 523264   ;;  %v10368_v49 = vld [vmem:[#allocation11 + $0xa0] sm:$0xf0]  ;;  %s17510_s2 = sld [smem:[#allocation38_spill]] }
  0x87   : > { %v10374_v50 = vld [vmem:[#allocation11 + $0x88] sm:$0xf]  ;;  %v14841_v0 = vld [vmem:[#allocation11 + $0x4c] sm:$0xf]  ;;  %v10302_v4 = vld [vmem:[#allocation11] sm:$0xf] }
  0x88   : > { %v10342_v62 = vld [vmem:[#allocation11 + $0x48] sm:$0xf]  ;;  %v14832_v8 = vld [vmem:[#allocation11 + $0x4] sm:$0xf]  ;;  %s14789_s25 = sshll.u32 %s16641_s28, 3  ;;  %s17511_s30 = sld [smem:[#allocation39_spill]] }
  0x89   : > { %v14845_v63 = vld [vmem:[#allocation11 + $0x64] sm:$0xf0]  ;;  %s609_s4 = scalar_lea.vmem [#allocation20], %s16793_s12  ;;  %vm9902_vm6 = vcmask 130048   ;;  %s9905_s14 = scalar_lea.sflag [#allocation4], %s16790_s6 }
  0x8a   : > { %v10310_v10 = vld [vmem:[#allocation11 + $0x8] sm:$0xf]  ;;  %s9917_s7 = sshll.u32 %s609_s4, 4  ;;  %s9918_s7 = int_to_ptr.vmem [resolvable:$true] %s9917_s7 }
  0x8e   : > { %s9915_s15 = scalar_lea.hbm %s17511_s30, %s14789_s25  ;;  %s16464_s12 = scalar_lea.hbm %s17511_s30, 16 }
  0x8f   : > { %s9919_s5 = sshll.u32 %s9915_s15, 4  ;;  %s9920_s5 = int_to_ptr.hbm [resolvable:$true] %s9919_s5 }
  0x90   : > { %s16458_s18 = sshra.s32 %s9920_s5, 4  ;;  %s16459_s18 = int_to_ptr.hbm [resolvable:$true] %s16458_s18 }
  0x91   : > { %s16460_s28 = scalar_lea.hbm %s16459_s18, 8  ;;  %p16465_p7 = scmp.lt.s32.totalorder %s16459_s18, %s17511_s30 }
  0x92   : > { %p16461_p1 = scmp.ne.s32.totalorder %s16459_s18, %s16460_s28  ;;  %p16466_p9 = scmp.lt.s32.totalorder %s16464_s12, %s16460_s28 }
  0x94   : > { %p16462_p3 = pnand %p16461_p1, %p16739_p0  ;;  %p16467_p8 = por %p16466_p9, %p16465_p7 }
  0x96   : > { %p16463_p13 = pneg %p16462_p3 }
  0x98   : > { %p16468_p10 = pnand %p16467_p8, %p16463_p13 }
  0xf9   : > { %v648_v16 = vpop.f32.mrf.mxu0 }
  0xfa   : > { %v676_v18 = vpop.f32.mrf.mxu1 }
  0xfb   : > { %v677_v19 = vadd.f32 %v676_v18, %v648_v16  ;;  %v10243_v16 = vor.u32 %v14817_v13, %v10240_v15  ;;  %v14812_v18 = vld [vmem:[#allocation10 + $0x5c] sm:$0xf0]  ;;  %v10223_v13 = vor.u32 %v14815_v7, %v10222_v6  ;;  %v14802_v15 = vld [vmem:[#allocation10 + $0x14] sm:$0xf]  ;;  %v10343_v6 = vor.u32 %v14845_v63, %v10342_v62  ;;  %v10328_v62 = vld [vmem:[#allocation11 + $0x38] sm:$0xf0] }
  0xfd   : > { %v684_v20 = vadd.f32 %v16101_v17, %v677_v19  ;;  %v10198_v17 = vld [vmem:[#allocation10 + $0x40] sm:$0xf]  ;;  %v14808_v19 = vld [vmem:[#allocation10 + $0x44] sm:$0xf]  ;;  %1033 = vmatpush.bf16.msrb.mxu3 %v10243_v16  ;;  %v10184_v16 = vld [vmem:[#allocation10 + $0x30] sm:$0xf0] }
  0xff   : > { %v685_v21 = vmax.f32 %v684_v20, 0.0  ;;  %v10145_v24 = vmul.f32 -1.442695, %v684_v20  ;;  %v10199_v20 = vor.u32 %v14812_v18, %v10198_v17  ;;  %v10190_v17 = vld [vmem:[#allocation10 + $0x18] sm:$0xf] }
 0x100   : > { %v14807_v18 = vld [vmem:[#allocation10 + $0x34] sm:$0xf0] }
 0x101   : > { %706 = vrot.lane.b32.xlu0 %v685_v21, %s16549_s17  ;;  %v650_v22 = vpop.f32.mrf.mxu0  ;;  %16104 = vpow2.f32 %v10145_v24  ;;  %995 = vmatpush.bf16.msrb.mxu0 %v10199_v20  ;;  %v10192_v20 = vld [vmem:[#allocation10 + $0x38] sm:$0xf0] }
 0x102   : > { %v678_v23 = vpop.f32.mrf.mxu1  ;;  %v10206_v22 = vld [vmem:[#allocation10 + $0x48] sm:$0xf] }
 0x103   : > { %v14813_v23 = vld [vmem:[#allocation10 + $0x64] sm:$0xf0] }
 0x105   : > { %996 = vmatpush.bf16.msrb.mxu0 %v10167_v32  ;;  %v14860_v32 = vld [vmem:[#allocation11 + $0xdc] sm:$0xf0] }
 0x107   : > { %v16105_v25 = vpop.eup %16104 }
 0x108   : > { %v689_v26 = vadd.f32 1.0, %v16105_v25  ;;  %v10207_v25 = vor.u32 %v14813_v23, %v10206_v22  ;;  %v10187_v22 = vor.u32 %v14802_v15, %v10184_v16  ;;  %v10191_v23 = vor.u32 %v14807_v18, %v10190_v17  ;;  %v10414_v16 = vld [vmem:[#allocation11 + $0xd0] sm:$0xf] }
 0x109   : > { %710 = vrot.lane.b32.xlu0 %v685_v21, %s16550_s13  ;;  %v10200_v21 = vld [vmem:[#allocation10 + $0x60] sm:$0xf0]  ;;  %v14862_v17 = vld [vmem:[#allocation11 + $0xec] sm:$0xf0] }
 0x10a   : > { %16106 = vrcp.f32 %v689_v26  ;;  %v701_v39 = vand.u32 2147483648, %v689_v26  ;;  %vm695_vm2 = vweird.f32 %v689_v26  ;;  %v699_v40 = vand.u32 2147483647, %v689_v26  ;;  %1021 = vmatpush.bf16.msrb.mxu2 %v10207_v25 }
 0x10b   : > { %v10203_v24 = vor.u32 %v14808_v19, %v10200_v21  ;;  %v14803_v19 = vld [vmem:[#allocation10 + $0x1c] sm:$0xf]  ;;  %v10183_v21 = vor.u32 %v14806_v12, %v10182_v11  ;;  %v14837_v11 = vld [vmem:[#allocation11 + $0x24] sm:$0xf0]  ;;  %v14833_v12 = vld [vmem:[#allocation11 + $0xc] sm:$0xf] }
 0x10c   : > { %v702_v42 = vor.u32 1.1754944e-38, %v701_v39  ;;  %vm700_vm4 = vcmp.eq.f32.partialorder %v699_v40, 8.507059e+37  ;;  %v10176_v39 = vld [vmem:[#allocation10 + $0x28] sm:$0xf0]  ;;  %v10311_v18 = vor.u32 %v14837_v11, %v10310_v10  ;;  %v15116_v10 = vld [vmem:[#allocation13 + $0x7dc] sm:$0xf0] }
 0x10d   : > { %1008 = vmatpush.bf16.msrb.mxu1 %v10203_v24  ;;  %v10195_v24 = vor.u32 %v14803_v19, %v10192_v20  ;;  %v14858_v20 = vld [vmem:[#allocation11 + $0xd4] sm:$0xf] }
 0x110   : > { %v16107_v27 = vpop.eup %16106 }
 0x111   : > { %v691_v28 = vmul.f32 %v16107_v27, %v689_v26  ;;  %vm696_vm1 = vweird.f32 %v16107_v27  ;;  %v14809_v26 = vld [vmem:[#allocation10 + $0x4c] sm:$0xf] }
 0x112   : > { %vm697_vm3 = vmor %vm695_vm2, %vm696_vm1 }
 0x113   : > { %v692_v35 = vsub.f32 1.0, %v691_v28 }
 0x115   : > { %v693_v36 = vmul.f32 %v16107_v27, %v692_v35  ;;  %v14805_v35 = vld [vmem:[#allocation10 + $0x24] sm:$0xf0] }
 0x117   : > { %v694_v38 = vadd.f32 %v16107_v27, %v693_v36  ;;  %v10171_v36 = vor.u32 %v14800_v31, %v10168_v33  ;;  %v10398_v31 = vld [vmem:[#allocation11 + $0xc0] sm:$0xf]  ;;  %v14856_v33 = vld [vmem:[#allocation11 + $0xc4] sm:$0xf] }
 0x119   : > { %v698_v41 = vsel %vm697_vm3, %v16107_v27, %v694_v38  ;;  %v10208_v27 = vld [vmem:[#allocation10 + $0x68] sm:$0xf0]  ;;  %1009 = vmatpush.bf16.msrb.mxu1 %v10171_v36  ;;  %v14861_v36 = vld [vmem:[#allocation11 + $0xe4] sm:$0xf0] }
 0x11a   : > { %v703_v43 = vsel %vm700_vm4, %v702_v42, %v698_v41  ;;  %v10211_v28 = vor.u32 %v14809_v26, %v10208_v27  ;;  %v14801_v38 = vld [vmem:[#allocation10 + $0xc] sm:$0xf]  ;;  %v10278_v41 = vld [vmem:[#allocation10 + $0xd0] sm:$0xf]  ;;  %v16102_v26 = vld [vmem:[#allocation8 + $0x1] ss:$0 sm:$0xff] }
 0x11b   : > { %v10179_v40 = vor.u32 %v14801_v38, %v10176_v39  ;;  %v14830_v42 = vld [vmem:[#allocation10 + $0xec] sm:$0xf0]  ;;  %v14857_v38 = vld [vmem:[#allocation11 + $0xcc] sm:$0xf] }
 0x11c   : > { %1034 = vmatpush.bf16.msrb.mxu3 %v10211_v28  ;;  %v10408_v39 = vld [vmem:[#allocation11 + $0xe8] sm:$0xf0] }
 0x120   : > { %1035 = vmatpush.bf16.msrb.mxu3 %v10179_v40 }
 0x173   : > { %v707_v37 = vpop.permute.xlu0 %706 }
 0x174   : > { %v709_v47 = vmul.f32 %v707_v37, %v703_v43  ;;  %v10175_v37 = vor.u32 %v14805_v35, %v10174_v34  ;;  %v10400_v34 = vld [vmem:[#allocation11 + $0xe0] sm:$0xf0]  ;;  %v10406_v35 = vld [vmem:[#allocation11 + $0xc8] sm:$0xf] }
 0x176   : > { %v718_v48 = vpack.c.bf16 %v709_v47, %v709_v47  ;;  %1022 = vmatpush.bf16.msrb.mxu2 %v10175_v37 }
 0x17b   : > { %v711_v44 = vpop.permute.xlu0 %710 }
 0x17c   : > { %v713_v45 = vmul.f32 %v711_v44, %v703_v43  ;;  %v10279_v43 = vor.u32 %v14830_v42, %v10278_v41  ;;  %v14826_v44 = vld [vmem:[#allocation10 + $0xd4] sm:$0xf]  ;;  %v10399_v41 = vor.u32 %v14860_v32, %v10398_v31  ;;  %v10403_v42 = vor.u32 %v14856_v33, %v10400_v34  ;;  %v10390_v34 = vld [vmem:[#allocation11 + $0x98] sm:$0xf] }
 0x17d   : > { %v14850_v32 = vld [vmem:[#allocation11 + $0x94] sm:$0xf] }
 0x17e   : > { %v723_v46 = vpack.c.bf16 %v713_v45, %v713_v45  ;;  %v10280_v45 = vld [vmem:[#allocation10 + $0xf0] sm:$0xf0]  ;;  %1045 = vmatpush.bf16.msra.mxu0 %v10279_v43  ;;  %v10366_v43 = vld [vmem:[#allocation11 + $0x80] sm:$0xf] }
 0x17f   : > { %v10283_v47 = vor.u32 %v14826_v44, %v10280_v45  ;;  %v14852_v44 = vld [vmem:[#allocation11 + $0x9c] sm:$0xf0]  ;;  %v10384_v33 = vld [vmem:[#allocation11 + $0xb0] sm:$0xf0] }
 0x180   : > { %725 = vrot.lane.b32.xlu1 %v723_v46, %s16551_s20  ;;  %v10286_v46 = vld [vmem:[#allocation10 + $0xd8] sm:$0xf] }
 0x181   : > { %1058 = vmatpush.bf16.msra.mxu1 %v10283_v47  ;;  %v10411_v47 = vor.u32 %v14857_v38, %v10408_v39  ;;  %v10387_v39 = vor.u32 %v14850_v32, %v10384_v33  ;;  %v15036_v32 = vld [vmem:[#allocation13 + $0x55c] sm:$0xf0] }
 0x182   : > { %v11366_v33 = vld [vmem:[#allocation13 + $0x740] sm:$0xf] }
 0x188   : > { %756 = vrot.lane.b32.xlu1 %v718_v48, %s16550_s13  ;;  %v14831_v48 = vld [vmem:[#allocation10 + $0xf4] sm:$0xf0] }
 0x189   : > { %v10287_v51 = vor.u32 %v14831_v48, %v10286_v46  ;;  %v10407_v46 = vor.u32 %v14861_v36, %v10406_v35  ;;  %v14848_v48 = vld [vmem:[#allocation11 + $0x84] sm:$0xf]  ;;  %v14855_v35 = vld [vmem:[#allocation11 + $0xb4] sm:$0xf0]  ;;  %v14851_v36 = vld [vmem:[#allocation11 + $0x9c] sm:$0xf] }
 0x1f2   : > { %v726_v55 = vpop.permute.xlu1 %725 }
 0x1f3   : > { %10154 = vmatmul.msk.bf16.vlgmr.msra.gmra.mxu2 %vm635_vm0, %v726_v55  ;;  %v14818_v55 = vld [vmem:[#allocation10 + $0x94] sm:$0xf] }
 0x1f4   : > { %1071 = vmatpush.bf16.msra.mxu2 %v10287_v51  ;;  %v10251_v60 = vor.u32 %v14818_v55, %v10248_v57  ;;  %v14853_v51 = vld [vmem:[#allocation11 + $0xa4] sm:$0xf0]  ;;  %v10371_v55 = vor.u32 %v14848_v48, %v10368_v49  ;;  %v14844_v57 = vld [vmem:[#allocation11 + $0x5c] sm:$0xf0]  ;;  %v14847_v48 = vld [vmem:[#allocation11 + $0x74] sm:$0xf0] }
 0x1f5   : > { %v10375_v58 = vor.u32 %v14853_v51, %v10374_v50  ;;  %v14843_v49 = vld [vmem:[#allocation11 + $0x5c] sm:$0xf] }
 0x1f6   : > { %1059 = vmatpush.bf16.msra.mxu1 %v10251_v60  ;;  %v14840_v60 = vld [vmem:[#allocation11 + $0x44] sm:$0xf]  ;;  %v10360_v50 = vld [vmem:[#allocation11 + $0x78] sm:$0xf0] }
 0x1f8   : > { %1072 = vmatpush.bf16.msra.mxu2 %v10255_v61  ;;  %v10336_v61 = vld [vmem:[#allocation11 + $0x60] sm:$0xf0] }
 0x1f9   : > { %v10339_v3 = vor.u32 %v14840_v60, %v10336_v61  ;;  %v14839_v60 = vld [vmem:[#allocation11 + $0x34] sm:$0xf0]  ;;  %v14835_v61 = vld [vmem:[#allocation11 + $0x1c] sm:$0xf] }
 0x1fa   : > { %v757_v56 = vpop.permute.xlu1 %756  ;;  %1060 = vmatpush.bf16.msra.mxu1 %v10219_v9  ;;  %v10304_v9 = vld [vmem:[#allocation11 + $0x20] sm:$0xf0] }
 0x1fb   : > { %10163 = vmatmul.msk.bf16.vlgmr.msra.gmra.mxu3 %vm635_vm0, %v757_v56  ;;  %v10247_v56 = vor.u32 %v14822_v54, %v10246_v53  ;;  %v10376_v53 = vld [vmem:[#allocation11 + $0xa8] sm:$0xf0]  ;;  %v10367_v54 = vor.u32 %v14852_v44, %v10366_v43  ;;  %v10307_v15 = vor.u32 %v14832_v8, %v10304_v9  ;;  %v10391_v43 = vor.u32 %v14855_v35, %v10390_v34  ;;  %v15052_v8 = vld [vmem:[#allocation13 + $0x5dc] sm:$0xf0] }
 0x1fc   : > { %1084 = vmatpush.bf16.msra.mxu3 %v10291_v52  ;;  %1073 = vmatpush.bf16.msra.mxu2 %v10223_v13  ;;  %v14849_v52 = vld [vmem:[#allocation11 + $0x8c] sm:$0xf]  ;;  %v11430_v9 = vld [vmem:[#allocation13 + $0x7c0] sm:$0xf] }
 0x1fd   : > { %1046 = vmatpush.bf16.msra.mxu0 %v10247_v56  ;;  %v10334_v56 = vld [vmem:[#allocation11 + $0x40] sm:$0xf]  ;;  %v10379_v59 = vor.u32 %v14849_v52, %v10376_v53  ;;  %v10312_v13 = vld [vmem:[#allocation11 + $0x28] sm:$0xf0]  ;;  %v10318_v53 = vld [vmem:[#allocation11 + $0x10] sm:$0xf] }
 0x1fe   : > { %1061 = vmatpush.bf16.msra.mxu1 %v10187_v22  ;;  %v10335_v2 = vor.u32 %v14844_v57, %v10334_v56  ;;  %v10315_v19 = vor.u32 %v14833_v12, %v10312_v13  ;;  %v10422_v22 = vld [vmem:[#allocation11 + $0xd8] sm:$0xf]  ;;  %v10363_v56 = vor.u32 %v14843_v49, %v10360_v50  ;;  %v14834_v57 = vld [vmem:[#allocation11 + $0x14] sm:$0xf]  ;;  %v10630_v13 = vld [vmem:[#allocation13 + $0x180] sm:$0xf] }
 0x1ff   : > { %v15100_v34 = vld [vmem:[#allocation13 + $0x75c] sm:$0xf0] }
 0x200   : > { %1085 = vmatpush.bf16.msra.mxu3 %v10259_v1  ;;  %1074 = vmatpush.bf16.msra.mxu2 %v10191_v23  ;;  %v10344_v1 = vld [vmem:[#allocation11 + $0x68] sm:$0xf0]  ;;  %v14863_v23 = vld [vmem:[#allocation11 + $0xf4] sm:$0xf0]  ;;  %v10534_v50 = vld [vmem:[#allocation13 + $0xc0] sm:$0xf] }
 0x201   : > { %1047 = vmatpush.bf16.msra.mxu0 %v10215_v5  ;;  %v14836_v5 = vld [vmem:[#allocation11 + $0x1c] sm:$0xf0]  ;;  %v10347_v7 = vor.u32 %v14841_v0, %v10344_v1 }
 0x202   : > { %v10662_v1 = vld [vmem:[#allocation13 + $0x1c0] sm:$0xf] }
 0x204   : > { %1086 = vmatpush.bf16.msra.mxu3 %v10227_v14  ;;  %v10303_v14 = vor.u32 %v14836_v5, %v10302_v4  ;;  %v10331_v4 = vor.u32 %v14835_v61, %v10328_v62  ;;  %v10918_v5 = vld [vmem:[#allocation13 + $0x3c0] sm:$0xf] }
 0x205   : > { %1048 = vmatpush.bf16.msra.mxu0 %v10183_v21  ;;  %v10416_v21 = vld [vmem:[#allocation11 + $0xf0] sm:$0xf0]  ;;  %v14948_v61 = vld [vmem:[#allocation13 + $0x29c] sm:$0xf0] }
 0x208   : > { %1087 = vmatpush.bf16.msra.mxu3 %v10195_v24  ;;  %v14859_v24 = vld [vmem:[#allocation11 + $0xdc] sm:$0xf] }
 0x276   : > { %v751_v25 = vpop.f32.mrf.mxu2 }
 0x27e   : > { %v753_v27 = vpop.f32.mrf.mxu2  ;;  %v782_v28 = vpop.f32.mrf.mxu3 }
 0x27f   : > { %v783_v29 = vadd.f32 %v782_v28, %v751_v25  ;;  %v10424_v25 = vld [vmem:[#allocation11 + $0xf8] sm:$0xf0]  ;;  %v10419_v27 = vor.u32 %v14858_v20, %v10416_v21  ;;  %v10382_v28 = vld [vmem:[#allocation11 + $0x90] sm:$0xf]  ;;  %v15044_v20 = vld [vmem:[#allocation13 + $0x59c] sm:$0xf0] }
 0x280   : > { %v10427_v31 = vor.u32 %v14859_v24, %v10424_v25  ;;  %v11398_v21 = vld [vmem:[#allocation13 + $0x780] sm:$0xf] }
 0x281   : > { %v790_v30 = vadd.f32 %v16102_v26, %v783_v29  ;;  %v10415_v26 = vor.u32 %v14862_v17, %v10414_v16  ;;  %v14854_v29 = vld [vmem:[#allocation11 + $0xac] sm:$0xf0]  ;;  %v14980_v16 = vld [vmem:[#allocation13 + $0x39c] sm:$0xf0] }
 0x282   : > { %v10383_v38 = vor.u32 %v14854_v29, %v10382_v28  ;;  %v10598_v25 = vld [vmem:[#allocation13 + $0x140] sm:$0xf] }
 0x283   : > { %v791_v37 = vmax.f32 %v790_v30, 0.0  ;;  %v10423_v30 = vor.u32 %v14863_v23, %v10422_v22  ;;  %v15108_v22 = vld [vmem:[#allocation13 + $0x79c] sm:$0xf0] }
 0x284   : > { %v14972_v28 = vld [vmem:[#allocation13 + $0x35c] sm:$0xf0] }
 0x285   : > { %v16835_v40 = vpack.c.bf16 %v791_v37, %v791_v37  ;;  %v10392_v37 = vld [vmem:[#allocation11 + $0xb8] sm:$0xf0] }
 0x286   : > { %v784_v45 = vpop.f32.mrf.mxu3  ;;  %v10395_v44 = vor.u32 %v14851_v36, %v10392_v37  ;;  %v10566_v37 = vld [vmem:[#allocation13 + $0x100] sm:$0xf] }
 0x287   : > { %10292 = vmatmul.msk.bf16.vlgmr.msrb.gmra.mxu0 %vm985_vm5, %v16835_v40  ;;  %10293 = vmatmul.msk.bf16.vlgmr.msrb.gmra.mxu1 %vm985_vm5, %v16835_v40  ;;  %v14842_v45 = vld [vmem:[#allocation11 + $0x54] sm:$0xf] }
 0x288   : > { %10294 = vmatmul.msk.bf16.vlgmr.msrb.gmra.mxu2 %vm985_vm5, %v16835_v40  ;;  %10295 = vmatmul.msk.bf16.vlgmr.msrb.gmra.mxu3 %vm985_vm5, %v16835_v40 }
 0x289   : > { %1289 = vmatpush.bf16.msrb.mxu0 %v10399_v41  ;;  %1302 = vmatpush.bf16.msrb.mxu1 %v10403_v42  ;;  %v10350_v41 = vld [vmem:[#allocation11 + $0x50] sm:$0xf] }
 0x28a   : > { %1315 = vmatpush.bf16.msrb.mxu2 %v10407_v46  ;;  %1328 = vmatpush.bf16.msrb.mxu3 %v10411_v47  ;;  %v14846_v42 = vld [vmem:[#allocation11 + $0x6c] sm:$0xf0]  ;;  %v10352_v46 = vld [vmem:[#allocation11 + $0x70] sm:$0xf0]  ;;  %v10358_v47 = vld [vmem:[#allocation11 + $0x58] sm:$0xf] }
 0x28b   : > { %v10351_v51 = vor.u32 %v14846_v42, %v10350_v41  ;;  %v10355_v52 = vor.u32 %v14842_v45, %v10352_v46  ;;  %v14964_v41 = vld [vmem:[#allocation13 + $0x31c] sm:$0xf0] }
 0x28c   : > { %v15028_v45 = vld [vmem:[#allocation13 + $0x51c] sm:$0xf0] }
 0x28d   : > { %1290 = vmatpush.bf16.msrb.mxu0 %v10367_v54  ;;  %1303 = vmatpush.bf16.msrb.mxu1 %v10371_v55  ;;  %v14838_v54 = vld [vmem:[#allocation11 + $0x2c] sm:$0xf0]  ;;  %v10359_v55 = vor.u32 %v14847_v48, %v10358_v47  ;;  %v11334_v46 = vld [vmem:[#allocation13 + $0x700] sm:$0xf] }
 0x28e   : > { %1316 = vmatpush.bf16.msrb.mxu2 %v10375_v58  ;;  %1329 = vmatpush.bf16.msrb.mxu3 %v10379_v59  ;;  %v10320_v58 = vld [vmem:[#allocation11 + $0x30] sm:$0xf0]  ;;  %v10326_v59 = vld [vmem:[#allocation11 + $0x18] sm:$0xf]  ;;  %v10319_v63 = vor.u32 %v14838_v54, %v10318_v53  ;;  %v15092_v47 = vld [vmem:[#allocation13 + $0x71c] sm:$0xf0] }
 0x28f   : > { %v10323_v0 = vor.u32 %v14834_v57, %v10320_v58  ;;  %v14956_v53 = vld [vmem:[#allocation13 + $0x2dc] sm:$0xf0] }
 0x290   : > { %v10502_v58 = vld [vmem:[#allocation13 + $0x80] sm:$0xf] }
 0x291   : > { %1291 = vmatpush.bf16.msrb.mxu0 %v10335_v2  ;;  %1304 = vmatpush.bf16.msrb.mxu1 %v10339_v3  ;;  %v14924_v2 = vld [vmem:[#allocation13 + $0x1dc] sm:$0xf0]  ;;  %v10327_v3 = vor.u32 %v14839_v60, %v10326_v59 }
 0x292   : > { %1317 = vmatpush.bf16.msrb.mxu2 %v10343_v6  ;;  %1330 = vmatpush.bf16.msrb.mxu3 %v10347_v7  ;;  %v14988_v6 = vld [vmem:[#allocation13 + $0x3dc] sm:$0xf0]  ;;  %v10663_v11 = vor.u32 %v14924_v2, %v10662_v1 }
 0x293   : > { %v11174_v7 = vld [vmem:[#allocation13 + $0x5c0] sm:$0xf]  ;;  %v10919_v12 = vor.u32 %v14988_v6, %v10918_v5 }
 0x294   : > { %v11175_v17 = vor.u32 %v15052_v8, %v11174_v7  ;;  %v14884_v59 = vld [vmem:[#allocation13 + $0x9c] sm:$0xf0] }
 0x295   : > { %1292 = vmatpush.bf16.msrb.mxu0 %v10303_v14  ;;  %1305 = vmatpush.bf16.msrb.mxu1 %v10307_v15  ;;  %v14916_v14 = vld [vmem:[#allocation13 + $0x19c] sm:$0xf0]  ;;  %v10503_v62 = vor.u32 %v14884_v59, %v10502_v58 }
 0x296   : > { %1318 = vmatpush.bf16.msrb.mxu2 %v10311_v18  ;;  %1331 = vmatpush.bf16.msrb.mxu3 %v10315_v19  ;;  %v10886_v15 = vld [vmem:[#allocation13 + $0x380] sm:$0xf]  ;;  %v11431_v18 = vor.u32 %v15116_v10, %v11430_v9  ;;  %v10631_v23 = vor.u32 %v14916_v14, %v10630_v13 }
 0x297   : > { %10296 = vmatmul.msk.bf16.vlgmr.msra.gmra.mxu0 %vm985_vm5, %v16835_v40  ;;  %10297 = vmatmul.msk.bf16.vlgmr.msra.gmra.mxu1 %vm985_vm5, %v16835_v40  ;;  %v11142_v19 = vld [vmem:[#allocation13 + $0x580] sm:$0xf]  ;;  %v10887_v24 = vor.u32 %v14980_v16, %v10886_v15 }
 0x298   : > { %10298 = vmatmul.msk.bf16.vlgmr.msra.gmra.mxu2 %vm985_vm5, %v16835_v40  ;;  %10299 = vmatmul.msk.bf16.vlgmr.msra.gmra.mxu3 %vm985_vm5, %v16835_v40  ;;  %v11143_v29 = vor.u32 %v15044_v20, %v11142_v19  ;;  %v10758_v60 = vld [vmem:[#allocation13 + $0x280] sm:$0xf] }
 0x299   : > { %1341 = vmatpush.bf16.msra.mxu0 %v10415_v26  ;;  %1354 = vmatpush.bf16.msra.mxu1 %v10419_v27  ;;  %v14908_v26 = vld [vmem:[#allocation13 + $0x15c] sm:$0xf0] }
 0x29a   : > { %1367 = vmatpush.bf16.msra.mxu2 %v10423_v30  ;;  %1380 = vmatpush.bf16.msra.mxu3 %v10427_v31  ;;  %v10854_v27 = vld [vmem:[#allocation13 + $0x340] sm:$0xf]  ;;  %v11399_v30 = vor.u32 %v15108_v22, %v11398_v21  ;;  %v10599_v35 = vor.u32 %v14908_v26, %v10598_v25 }
 0x29b   : > { %v11110_v31 = vld [vmem:[#allocation13 + $0x540] sm:$0xf]  ;;  %v10855_v36 = vor.u32 %v14972_v28, %v10854_v27 }
 0x29c   : > { %v11111_v42 = vor.u32 %v15036_v32, %v11110_v31  ;;  %v15020_v1 = vld [vmem:[#allocation13 + $0x4dc] sm:$0xf0] }
 0x29d   : > { %1342 = vmatpush.bf16.msra.mxu0 %v10383_v38  ;;  %1355 = vmatpush.bf16.msra.mxu1 %v10387_v39  ;;  %v14900_v38 = vld [vmem:[#allocation13 + $0x11c] sm:$0xf0] }
 0x29e   : > { %1368 = vmatpush.bf16.msra.mxu2 %v10391_v43  ;;  %1381 = vmatpush.bf16.msra.mxu3 %v10395_v44  ;;  %v10822_v39 = vld [vmem:[#allocation13 + $0x300] sm:$0xf]  ;;  %v11367_v43 = vor.u32 %v15100_v34, %v11366_v33  ;;  %v10567_v48 = vor.u32 %v14900_v38, %v10566_v37 }
 0x29f   : > { %v11078_v44 = vld [vmem:[#allocation13 + $0x500] sm:$0xf]  ;;  %v10823_v49 = vor.u32 %v14964_v41, %v10822_v39 }
 0x2a0   : > { %v11079_v54 = vor.u32 %v15028_v45, %v11078_v44  ;;  %v11302_v2 = vld [vmem:[#allocation13 + $0x6c0] sm:$0xf] }
 0x2a1   : > { %1343 = vmatpush.bf16.msra.mxu0 %v10351_v51  ;;  %1356 = vmatpush.bf16.msra.mxu1 %v10355_v52  ;;  %v14892_v51 = vld [vmem:[#allocation13 + $0xdc] sm:$0xf0] }
 0x2a2   : > { %1369 = vmatpush.bf16.msra.mxu2 %v10359_v55  ;;  %1382 = vmatpush.bf16.msra.mxu3 %v10363_v56  ;;  %v10790_v52 = vld [vmem:[#allocation13 + $0x2c0] sm:$0xf]  ;;  %v11335_v55 = vor.u32 %v15092_v47, %v11334_v46  ;;  %v10535_v56 = vor.u32 %v14892_v51, %v10534_v50 }
 0x2a3   : > { %v10791_v57 = vor.u32 %v14956_v53, %v10790_v52  ;;  %v10470_v5 = vld [vmem:[#allocation13 + $0x40] sm:$0xf] }
 0x2a4   : > { %v14876_v6 = vld [vmem:[#allocation13 + $0x5c] sm:$0xf0] }
 0x2a5   : > { %1344 = vmatpush.bf16.msra.mxu0 %v10319_v63  ;;  %1357 = vmatpush.bf16.msra.mxu1 %v10323_v0  ;;  %v10759_v63 = vor.u32 %v14948_v61, %v10758_v60  ;;  %v11046_v0 = vld [vmem:[#allocation13 + $0x4c0] sm:$0xf]  ;;  %v10471_v8 = vor.u32 %v14876_v6, %v10470_v5 }
 0x2a6   : > { %1370 = vmatpush.bf16.msra.mxu2 %v10327_v3  ;;  %1383 = vmatpush.bf16.msra.mxu3 %v10331_v4  ;;  %v11047_v3 = vor.u32 %v15020_v1, %v11046_v0  ;;  %v15084_v4 = vld [vmem:[#allocation13 + $0x6dc] sm:$0xf0] }
 0x2a7   : > { %10428 = vmatmul.msk.bf16.vlgmr.msrb.gmra.mxu0 %vm985_vm5, %v16835_v40  ;;  %10429 = vmatmul.msk.bf16.vlgmr.msrb.gmra.mxu1 %vm985_vm5, %v16835_v40  ;;  %v11303_v7 = vor.u32 %v15084_v4, %v11302_v2  ;;  %v10726_v9 = vld [vmem:[#allocation13 + $0x240] sm:$0xf] }
 0x2a8   : > { %10430 = vmatmul.msk.bf16.vlgmr.msrb.gmra.mxu2 %vm985_vm5, %v16835_v40  ;;  %10431 = vmatmul.msk.bf16.vlgmr.msrb.gmra.mxu3 %vm985_vm5, %v16835_v40  ;;  %v14940_v10 = vld [vmem:[#allocation13 + $0x25c] sm:$0xf0] }
 0x2a9   : > { %4495 = vmatpush.bf16.msrb.mxu0 %v10663_v11  ;;  %4508 = vmatpush.bf16.msrb.mxu1 %v10919_v12  ;;  %v11014_v11 = vld [vmem:[#allocation13 + $0x480] sm:$0xf] }
 0x2aa   : > { %4521 = vmatpush.bf16.msrb.mxu2 %v11175_v17  ;;  %4534 = vmatpush.bf16.msrb.mxu3 %v11431_v18  ;;  %v15012_v12 = vld [vmem:[#allocation13 + $0x49c] sm:$0xf0] }
 0x2ab   : > { %v11270_v13 = vld [vmem:[#allocation13 + $0x680] sm:$0xf]  ;;  %v11015_v15 = vor.u32 %v15012_v12, %v11014_v11 }
 0x2ac   : > { %v15076_v14 = vld [vmem:[#allocation13 + $0x69c] sm:$0xf0] }
 0x2ad   : > { %4496 = vmatpush.bf16.msrb.mxu0 %v10631_v23  ;;  %4509 = vmatpush.bf16.msrb.mxu1 %v10887_v24  ;;  %v11271_v16 = vor.u32 %v15076_v14, %v11270_v13  ;;  %v10438_v17 = vld [vmem:[#allocation13] sm:$0xf] }
 0x2ae   : > { %4522 = vmatpush.bf16.msrb.mxu2 %v11143_v29  ;;  %4535 = vmatpush.bf16.msrb.mxu3 %v11399_v30  ;;  %v14868_v18 = vld [vmem:[#allocation13 + $0x1c] sm:$0xf0] }
 0x2af   : > { %v10694_v19 = vld [vmem:[#allocation13 + $0x200] sm:$0xf]  ;;  %v10439_v20 = vor.u32 %v14868_v18, %v10438_v17 }
 0x2b0   : > { %v14932_v21 = vld [vmem:[#allocation13 + $0x21c] sm:$0xf0] }
 0x2b1   : > { %4497 = vmatpush.bf16.msrb.mxu0 %v10599_v35  ;;  %4510 = vmatpush.bf16.msrb.mxu1 %v10855_v36  ;;  %v11686_v22 = vld [vmem:[#allocation13 + $0x9c0] sm:$0xf]  ;;  %v10695_v24 = vor.u32 %v14932_v21, %v10694_v19 }
 0x2b2   : > { %4523 = vmatpush.bf16.msrb.mxu2 %v11111_v42  ;;  %4536 = vmatpush.bf16.msrb.mxu3 %v11367_v43  ;;  %v15180_v23 = vld [vmem:[#allocation13 + $0x9dc] sm:$0xf0] }
 0x2b3   : > { %v11687_v25 = vor.u32 %v15180_v23, %v11686_v22  ;;  %v11942_v26 = vld [vmem:[#allocation13 + $0xbc0] sm:$0xf] }
 0x2b4   : > { %v15244_v27 = vld [vmem:[#allocation13 + $0xbdc] sm:$0xf0] }
 0x2b5   : > { %4498 = vmatpush.bf16.msrb.mxu0 %v10567_v48  ;;  %4511 = vmatpush.bf16.msrb.mxu1 %v10823_v49  ;;  %v10982_v28 = vld [vmem:[#allocation13 + $0x440] sm:$0xf]  ;;  %v11943_v29 = vor.u32 %v15244_v27, %v11942_v26 }
 0x2b6   : > { %4524 = vmatpush.bf16.msrb.mxu2 %v11079_v54  ;;  %4537 = vmatpush.bf16.msrb.mxu3 %v11335_v55  ;;  %v15004_v30 = vld [vmem:[#allocation13 + $0x45c] sm:$0xf0] }
 0x2b7   : > { %10432 = vmatmul.msk.bf16.vlgmr.msra.gmra.mxu0 %vm985_vm5, %v16835_v40  ;;  %10433 = vmatmul.msk.bf16.vlgmr.msra.gmra.mxu1 %vm985_vm5, %v16835_v40  ;;  %v11238_v31 = vld [vmem:[#allocation13 + $0x640] sm:$0xf]  ;;  %v10983_v33 = vor.u32 %v15004_v30, %v10982_v28 }
 0x2b8   : > { %10434 = vmatmul.msk.bf16.vlgmr.msra.gmra.mxu2 %vm985_vm5, %v16835_v40  ;;  %10435 = vmatmul.msk.bf16.vlgmr.msra.gmra.mxu3 %vm985_vm5, %v16835_v40  ;;  %v10727_v40 = vor.u32 %v14940_v10, %v10726_v9  ;;  %v15068_v32 = vld [vmem:[#allocation13 + $0x65c] sm:$0xf0] }
 0x2b9   : > { %4499 = vmatpush.bf16.msrb.mxu0 %v10535_v56  ;;  %4512 = vmatpush.bf16.msrb.mxu1 %v10791_v57  ;;  %v11239_v34 = vor.u32 %v15068_v32, %v11238_v31  ;;  %v11654_v35 = vld [vmem:[#allocation13 + $0x980] sm:$0xf] }
 0x2ba   : > { %4525 = vmatpush.bf16.msrb.mxu2 %v11047_v3  ;;  %4538 = vmatpush.bf16.msrb.mxu3 %v11303_v7  ;;  %v15172_v36 = vld [vmem:[#allocation13 + $0x99c] sm:$0xf0] }
 0x2bb   : > { %v11910_v37 = vld [vmem:[#allocation13 + $0xb80] sm:$0xf]  ;;  %v11655_v38 = vor.u32 %v15172_v36, %v11654_v35 }
 0x2bc   : > { %v15236_v39 = vld [vmem:[#allocation13 + $0xb9c] sm:$0xf0] }
 0x2bd   : > { %4500 = vmatpush.bf16.msrb.mxu0 %v10503_v62  ;;  %4513 = vmatpush.bf16.msrb.mxu1 %v10759_v63  ;;  %v10950_v41 = vld [vmem:[#allocation13 + $0x400] sm:$0xf]  ;;  %v11911_v43 = vor.u32 %v15236_v39, %v11910_v37 }
 0x2be   : > { %4526 = vmatpush.bf16.msrb.mxu2 %v11015_v15  ;;  %4539 = vmatpush.bf16.msrb.mxu3 %v11271_v16  ;;  %v14996_v42 = vld [vmem:[#allocation13 + $0x41c] sm:$0xf0] }
 0x2bf   : > { %v10951_v44 = vor.u32 %v14996_v42, %v10950_v41  ;;  %v11206_v45 = vld [vmem:[#allocation13 + $0x600] sm:$0xf] }
 0x2c0   : > { %v15060_v46 = vld [vmem:[#allocation13 + $0x61c] sm:$0xf0] }
 0x2c1   : > { %4501 = vmatpush.bf16.msrb.mxu0 %v10471_v8  ;;  %4514 = vmatpush.bf16.msrb.mxu1 %v10727_v40  ;;  %v11207_v47 = vor.u32 %v15060_v46, %v11206_v45  ;;  %v12198_v48 = vld [vmem:[#allocation13 + $0xdc0] sm:$0xf] }
 0x2c2   : > { %4527 = vmatpush.bf16.msrb.mxu2 %v10983_v33  ;;  %4540 = vmatpush.bf16.msrb.mxu3 %v11239_v34  ;;  %v15308_v49 = vld [vmem:[#allocation13 + $0xddc] sm:$0xf0] }
 0x2c3   : > { %v12454_v50 = vld [vmem:[#allocation13 + $0xfc0] sm:$0xf]  ;;  %v12199_v51 = vor.u32 %v15308_v49, %v12198_v48 }
 0x2c4   : > { %v15372_v52 = vld [vmem:[#allocation13 + $0xfdc] sm:$0xf0] }
 0x2c5   : > { %4502 = vmatpush.bf16.msrb.mxu0 %v10439_v20  ;;  %4515 = vmatpush.bf16.msrb.mxu1 %v10695_v24  ;;  %v12455_v53 = vor.u32 %v15372_v52, %v12454_v50  ;;  %v11622_v54 = vld [vmem:[#allocation13 + $0x940] sm:$0xf] }
 0x2c6   : > { %v15164_v55 = vld [vmem:[#allocation13 + $0x95c] sm:$0xf0]  ;;  %4528 = vmatpush.bf16.msrb.mxu2 %v10951_v44  ;;  %4541 = vmatpush.bf16.msrb.mxu3 %v11207_v47 }
 0x2c7   : > { %v11878_v56 = vld [vmem:[#allocation13 + $0xb40] sm:$0xf]  ;;  %v11623_v57 = vor.u32 %v15164_v55, %v11622_v54 }
 0x2c8   : > { %v15228_v58 = vld [vmem:[#allocation13 + $0xb5c] sm:$0xf0] }
 0x2c9   : > { %4547 = vmatpush.bf16.msra.mxu0 %v11687_v25  ;;  %4560 = vmatpush.bf16.msra.mxu1 %v11943_v29  ;;  %v11879_v59 = vor.u32 %v15228_v58, %v11878_v56  ;;  %v12166_v60 = vld [vmem:[#allocation13 + $0xd80] sm:$0xf] }
 0x2ca   : > { %4573 = vmatpush.bf16.msra.mxu2 %v12199_v51  ;;  %4586 = vmatpush.bf16.msra.mxu3 %v12455_v53  ;;  %v15300_v61 = vld [vmem:[#allocation13 + $0xd9c] sm:$0xf0] }
 0x2cb   : > { %v12422_v62 = vld [vmem:[#allocation13 + $0xf80] sm:$0xf]  ;;  %v12167_v63 = vor.u32 %v15300_v61, %v12166_v60 }
 0x2cc   : > { %v15364_v0 = vld [vmem:[#allocation13 + $0xf9c] sm:$0xf0] }
 0x2cd   : > { %4548 = vmatpush.bf16.msra.mxu0 %v11655_v38  ;;  %4561 = vmatpush.bf16.msra.mxu1 %v11911_v43  ;;  %v11590_v1 = vld [vmem:[#allocation13 + $0x900] sm:$0xf]  ;;  %v12423_v3 = vor.u32 %v15364_v0, %v12422_v62 }
 0x2ce   : > { %v15156_v2 = vld [vmem:[#allocation13 + $0x91c] sm:$0xf0]  ;;  %4574 = vmatpush.bf16.msra.mxu2 %v12167_v63 }
 0x2cf   : > { %v11591_v4 = vor.u32 %v15156_v2, %v11590_v1  ;;  %v11846_v5 = vld [vmem:[#allocation13 + $0xb00] sm:$0xf]  ;;  %4587 = vmatpush.bf16.msra.mxu3 %v12423_v3 }
 0x2d0   : > { %v15220_v6 = vld [vmem:[#allocation13 + $0xb1c] sm:$0xf0] }
 0x2d1   : > { %4549 = vmatpush.bf16.msra.mxu0 %v11623_v57  ;;  %4562 = vmatpush.bf16.msra.mxu1 %v11879_v59  ;;  %v11847_v7 = vor.u32 %v15220_v6, %v11846_v5  ;;  %v12134_v8 = vld [vmem:[#allocation13 + $0xd40] sm:$0xf] }
 0x2d2   : > { %v15292_v9 = vld [vmem:[#allocation13 + $0xd5c] sm:$0xf0] }
 0x2d3   : > { %v12390_v10 = vld [vmem:[#allocation13 + $0xf40] sm:$0xf]  ;;  %v12135_v11 = vor.u32 %v15292_v9, %v12134_v8 }
 0x2d4   : > { %v15356_v40 = vld [vmem:[#allocation13 + $0xf5c] sm:$0xf0] }
 0x2d5   : > { %4550 = vmatpush.bf16.msra.mxu0 %v11591_v4  ;;  %4563 = vmatpush.bf16.msra.mxu1 %v11847_v7  ;;  %v12391_v12 = vor.u32 %v15356_v40, %v12390_v10  ;;  %v11558_v13 = vld [vmem:[#allocation13 + $0x8c0] sm:$0xf] }
 0x2d6   : > { %v15148_v14 = vld [vmem:[#allocation13 + $0x8dc] sm:$0xf0]  ;;  %4575 = vmatpush.bf16.msra.mxu2 %v12135_v11 }
 0x2d7   : > { %v11814_v15 = vld [vmem:[#allocation13 + $0xac0] sm:$0xf]  ;;  %v11559_v16 = vor.u32 %v15148_v14, %v11558_v13  ;;  %4588 = vmatpush.bf16.msra.mxu3 %v12391_v12 }
 0x2d8   : > { %v15212_v17 = vld [vmem:[#allocation13 + $0xadc] sm:$0xf0] }
 0x2d9   : > { %v11815_v18 = vor.u32 %v15212_v17, %v11814_v15  ;;  %v12102_v19 = vld [vmem:[#allocation13 + $0xd00] sm:$0xf]  ;;  %4551 = vmatpush.bf16.msra.mxu0 %v11559_v16  ;;  %v14920_v17 = vld [vmem:[#allocation13 + $0x1c4] sm:$0xf] }
 0x2da   : > { %v15284_v20 = vld [vmem:[#allocation13 + $0xd1c] sm:$0xf0] }
 0x2db   : > { %v12358_v21 = vld [vmem:[#allocation13 + $0xf00] sm:$0xf]  ;;  %v12103_v22 = vor.u32 %v15284_v20, %v12102_v19  ;;  %4564 = vmatpush.bf16.msra.mxu1 %v11815_v18  ;;  %v10664_v20 = vld [vmem:[#allocation13 + $0x1e0] sm:$0xf0] }
 0x2dc   : > { %v15348_v23 = vld [vmem:[#allocation13 + $0xf1c] sm:$0xf0] }
 0x2dd   : > { %v11526_v24 = vld [vmem:[#allocation13 + $0x880] sm:$0xf]  ;;  %v12359_v26 = vor.u32 %v15348_v23, %v12358_v21  ;;  %4576 = vmatpush.bf16.msra.mxu2 %v12103_v22  ;;  %v14984_v21 = vld [vmem:[#allocation13 + $0x3c4] sm:$0xf] }
 0x2de   : > { %v15140_v25 = vld [vmem:[#allocation13 + $0x89c] sm:$0xf0]  ;;  %v10920_v22 = vld [vmem:[#allocation13 + $0x3e0] sm:$0xf0] }
 0x2df   : > { %v11527_v27 = vor.u32 %v15140_v25, %v11526_v24  ;;  %v11782_v28 = vld [vmem:[#allocation13 + $0xa80] sm:$0xf]  ;;  %4589 = vmatpush.bf16.msra.mxu3 %v12359_v26 }
 0x2e0   : > { %v15204_v29 = vld [vmem:[#allocation13 + $0xa9c] sm:$0xf0] }
 0x2e1   : > { %v11783_v30 = vor.u32 %v15204_v29, %v11782_v28  ;;  %v12070_v31 = vld [vmem:[#allocation13 + $0xcc0] sm:$0xf]  ;;  %4552 = vmatpush.bf16.msra.mxu0 %v11527_v27  ;;  %v10667_v27 = vor.u32 %v14920_v17, %v10664_v20  ;;  %v10923_v28 = vor.u32 %v14984_v21, %v10920_v22  ;;  %v14912_v29 = vld [vmem:[#allocation13 + $0x184] sm:$0xf] }
 0x2e2   : > { %v15276_v32 = vld [vmem:[#allocation13 + $0xcdc] sm:$0xf0]  ;;  %v14952_v20 = vld [vmem:[#allocation13 + $0x2c4] sm:$0xf] }
 0x2e3   : > { %v12326_v33 = vld [vmem:[#allocation13 + $0xec0] sm:$0xf]  ;;  %v12071_v34 = vor.u32 %v15276_v32, %v12070_v31  ;;  %4565 = vmatpush.bf16.msra.mxu1 %v11783_v30  ;;  %v10632_v32 = vld [vmem:[#allocation13 + $0x1a0] sm:$0xf0] }
 0x2e4   : > { %v15340_v35 = vld [vmem:[#allocation13 + $0xedc] sm:$0xf0]  ;;  %v10792_v21 = vld [vmem:[#allocation13 + $0x2e0] sm:$0xf0] }
 0x2e5   : > { %v12327_v36 = vor.u32 %v15340_v35, %v12326_v33  ;;  %v11494_v37 = vld [vmem:[#allocation13 + $0x840] sm:$0xf]  ;;  %4577 = vmatpush.bf16.msra.mxu2 %v12071_v34  ;;  %v14976_v33 = vld [vmem:[#allocation13 + $0x384] sm:$0xf] }
 0x2e6   : > { %v15132_v38 = vld [vmem:[#allocation13 + $0x85c] sm:$0xf0]  ;;  %v10888_v34 = vld [vmem:[#allocation13 + $0x3a0] sm:$0xf0] }
 0x2e7   : > { %v11750_v39 = vld [vmem:[#allocation13 + $0xa40] sm:$0xf]  ;;  %v11495_v41 = vor.u32 %v15132_v38, %v11494_v37  ;;  %4590 = vmatpush.bf16.msra.mxu3 %v12327_v36  ;;  %v15048_v35 = vld [vmem:[#allocation13 + $0x5c4] sm:$0xf]  ;;  %v10635_v38 = vor.u32 %v14912_v29, %v10632_v32 }
 0x2e8   : > { %v15196_v42 = vld [vmem:[#allocation13 + $0xa5c] sm:$0xf0]  ;;  %v11176_v36 = vld [vmem:[#allocation13 + $0x5e0] sm:$0xf0] }
 0x2e9   : > { %v11751_v45 = vor.u32 %v15196_v42, %v11750_v39  ;;  %v12038_v46 = vld [vmem:[#allocation13 + $0xc80] sm:$0xf]  ;;  %4553 = vmatpush.bf16.msra.mxu0 %v11495_v41  ;;  %v15112_v37 = vld [vmem:[#allocation13 + $0x7c4] sm:$0xf]  ;;  %v10891_v39 = vor.u32 %v14976_v33, %v10888_v34  ;;  %v10795_v34 = vor.u32 %v14952_v20, %v10792_v21 }
 0x2ea   : > { %v15268_v47 = vld [vmem:[#allocation13 + $0xc9c] sm:$0xf0]  ;;  %v11432_v41 = vld [vmem:[#allocation13 + $0x7e0] sm:$0xf0] }
 0x2eb   : > { %v12294_v48 = vld [vmem:[#allocation13 + $0xe80] sm:$0xf]  ;;  %v12039_v49 = vor.u32 %v15268_v47, %v12038_v46  ;;  %4566 = vmatpush.bf16.msra.mxu1 %v11751_v45  ;;  %v14904_v42 = vld [vmem:[#allocation13 + $0x144] sm:$0xf] }
 0x2ec   : > { %v15332_v50 = vld [vmem:[#allocation13 + $0xe9c] sm:$0xf0]  ;;  %v14968_v46 = vld [vmem:[#allocation13 + $0x344] sm:$0xf] }
 0x2ed   : > { %v12295_v51 = vor.u32 %v15332_v50, %v12294_v48  ;;  %v11462_v52 = vld [vmem:[#allocation13 + $0x800] sm:$0xf]  ;;  %4578 = vmatpush.bf16.msra.mxu2 %v12039_v49  ;;  %v10856_v47 = vld [vmem:[#allocation13 + $0x360] sm:$0xf0] }
 0x2ee   : > { %v15124_v53 = vld [vmem:[#allocation13 + $0x81c] sm:$0xf0] }
 0x2ef   : > { %v11718_v54 = vld [vmem:[#allocation13 + $0xa00] sm:$0xf]  ;;  %v11463_v55 = vor.u32 %v15124_v53, %v11462_v52  ;;  %4591 = vmatpush.bf16.msra.mxu3 %v12295_v51  ;;  %v11179_v52 = vor.u32 %v15048_v35, %v11176_v36  ;;  %v11435_v53 = vor.u32 %v15112_v37, %v11432_v41  ;;  %v14880_v35 = vld [vmem:[#allocation13 + $0x84] sm:$0xf] }
 0x2f0   : > { %v15188_v56 = vld [vmem:[#allocation13 + $0xa1c] sm:$0xf0]  ;;  %v10504_v36 = vld [vmem:[#allocation13 + $0xa0] sm:$0xf0] }
 0x2f1   : > { %v11719_v57 = vor.u32 %v15188_v56, %v11718_v54  ;;  %v12006_v58 = vld [vmem:[#allocation13 + $0xc40] sm:$0xf]  ;;  %4554 = vmatpush.bf16.msra.mxu0 %v11463_v55  ;;  %v15040_v55 = vld [vmem:[#allocation13 + $0x584] sm:$0xf] }
 0x2f2   : > { %v15260_v59 = vld [vmem:[#allocation13 + $0xc5c] sm:$0xf0]  ;;  %v11144_v56 = vld [vmem:[#allocation13 + $0x5a0] sm:$0xf0] }
 0x2f3   : > { %v12262_v60 = vld [vmem:[#allocation13 + $0xe40] sm:$0xf]  ;;  %4567 = vmatpush.bf16.msra.mxu1 %v11719_v57  ;;  %v12007_v62 = vor.u32 %v15260_v59, %v12006_v58  ;;  %v10859_v59 = vor.u32 %v14968_v46, %v10856_v47  ;;  %v14944_v37 = vld [vmem:[#allocation13 + $0x284] sm:$0xf]  ;;  %v10507_v46 = vor.u32 %v14880_v35, %v10504_v36 }
 0x2f4   : > { %v15324_v61 = vld [vmem:[#allocation13 + $0xe5c] sm:$0xf0]  ;;  %v11048_v41 = vld [vmem:[#allocation13 + $0x4e0] sm:$0xf0] }
 0x2f5   : > { %v12263_v63 = vor.u32 %v15324_v61, %v12262_v60  ;;  %4579 = vmatpush.bf16.msra.mxu2 %v12007_v62  ;;  %v11974_v4 = vld [vmem:[#allocation13 + $0xc00] sm:$0xf]  ;;  %v15104_v60 = vld [vmem:[#allocation13 + $0x784] sm:$0xf] }
 0x2f6   : > { %v15252_v5 = vld [vmem:[#allocation13 + $0xc1c] sm:$0xf0]  ;;  %v11400_v61 = vld [vmem:[#allocation13 + $0x7a0] sm:$0xf0] }
 0x2f7   : > { %4592 = vmatpush.bf16.msra.mxu3 %v12263_v63  ;;  %v11975_v6 = vor.u32 %v15252_v5, %v11974_v4  ;;  %v12230_v7 = vld [vmem:[#allocation13 + $0xe00] sm:$0xf]  ;;  %v14896_v62 = vld [vmem:[#allocation13 + $0x104] sm:$0xf] }
 0x2f8   : > { %v15316_v8 = vld [vmem:[#allocation13 + $0xe1c] sm:$0xf0]  ;;  %v10568_v63 = vld [vmem:[#allocation13 + $0x120] sm:$0xf0] }
 0x2f9   : > { %v12231_v9 = vor.u32 %v15316_v8, %v12230_v7  ;;  %4580 = vmatpush.bf16.msra.mxu2 %v11975_v6  ;;  %v15032_v4 = vld [vmem:[#allocation13 + $0x544] sm:$0xf]  ;;  %v10571_v6 = vor.u32 %v14896_v62, %v10568_v63 }
 0x2fa   : > { %v11112_v5 = vld [vmem:[#allocation13 + $0x560] sm:$0xf0] }
 0x2fb   : > { %4593 = vmatpush.bf16.msra.mxu3 %v12231_v9  ;;  %v15096_v8 = vld [vmem:[#allocation13 + $0x744] sm:$0xf] }
 0x2fc   : > { %v11368_v9 = vld [vmem:[#allocation13 + $0x760] sm:$0xf0] }
 0x2fd   : > { %v11016_v63 = vld [vmem:[#allocation13 + $0x4a0] sm:$0xf0] }
 0x2fe   : > { %v14992_v35 = vld [vmem:[#allocation13 + $0x404] sm:$0xf] }
 0x2ff   : > { %v10952_v36 = vld [vmem:[#allocation13 + $0x420] sm:$0xf0] }
 0x304   : > { %v998_v43 = vpop.f32.mrf.mxu0  ;;  %v1011_v44 = vpop.f32.mrf.mxu1 }
 0x30b   : > { %v1024_v0 = vpop.f32.mrf.mxu2  ;;  %v1037_v1 = vpop.f32.mrf.mxu3 }
 0x30c   : > { %v1000_v2 = vpop.f32.mrf.mxu0  ;;  %v1013_v3 = vpop.f32.mrf.mxu1 }
 0x30d   : > { %v11147_v2 = vor.u32 %v15040_v55, %v11144_v56  ;;  %v11403_v3 = vor.u32 %v15104_v60, %v11400_v61  ;;  %v10728_v55 = vld [vmem:[#allocation13 + $0x260] sm:$0xf0] }
 0x30e   : > { %v15008_v60 = vld [vmem:[#allocation13 + $0x484] sm:$0xf] }
 0x313   : > { %v1026_v10 = vpop.f32.mrf.mxu2  ;;  %v1039_v11 = vpop.f32.mrf.mxu3 }
 0x314   : > { %v16869_v40 = vpop.f32.mrf.mxu0  ;;  %v16871_v12 = vpop.f32.mrf.mxu1 }
 0x31b   : > { %v16873_v13 = vpop.f32.mrf.mxu2  ;;  %v16875_v14 = vpop.f32.mrf.mxu3 }
 0x31c   : > { %v1052_v15 = vpop.f32.mrf.mxu0  ;;  %v1065_v16 = vpop.f32.mrf.mxu1 }
 0x31d   : > { %v14888_v15 = vld [vmem:[#allocation13 + $0xc4] sm:$0xf] }
 0x323   : > { %v1078_v18 = vpop.f32.mrf.mxu2  ;;  %v1091_v19 = vpop.f32.mrf.mxu3 }
 0x324   : > { %v1294_v23 = vpop.f32.mrf.mxu0  ;;  %v1307_v24 = vpop.f32.mrf.mxu1  ;;  %v11115_v18 = vor.u32 %v15032_v4, %v11112_v5  ;;  %v10536_v19 = vld [vmem:[#allocation13 + $0xe0] sm:$0xf0] }
 0x325   : > { %v1389_v25 = vmul.f32 %v1294_v23, %v998_v43  ;;  %v1390_v26 = vmul.f32 %v1307_v24, %v1011_v44  ;;  %v10600_v43 = vld [vmem:[#allocation13 + $0x160] sm:$0xf0]  ;;  %v11371_v24 = vor.u32 %v15096_v8, %v11368_v9  ;;  %v10539_v33 = vor.u32 %v14888_v15, %v10536_v19 }
 0x326   : > { %v10603_v54 = vor.u32 %v14904_v42, %v10600_v43  ;;  %v15080_v42 = vld [vmem:[#allocation13 + $0x6c4] sm:$0xf]  ;;  %v11019_v8 = vor.u32 %v15008_v60, %v11016_v63 }
 0x327   : > { %v16877_v30 = vpack.c.bf16 %v1389_v25, %v1389_v25  ;;  %v16879_v31 = vpack.c.bf16 %v1390_v26, %v1390_v26  ;;  %v15024_v25 = vld [vmem:[#allocation13 + $0x504] sm:$0xf] }
 0x328   : > { %v11080_v26 = vld [vmem:[#allocation13 + $0x520] sm:$0xf0] }
 0x329   : > { %4503 = vmatmul.bf16.vlgmr.msrb.gmra.mxu0 %v16877_v30  ;;  %4516 = vmatmul.bf16.vlgmr.msrb.gmra.mxu1 %v16879_v31  ;;  %v11304_v43 = vld [vmem:[#allocation13 + $0x6e0] sm:$0xf0] }
 0x32a   : > { %4599 = vmatpush.bf16.msrb.mxu0 %v10667_v27  ;;  %4612 = vmatpush.bf16.msrb.mxu1 %v10923_v28  ;;  %v15088_v27 = vld [vmem:[#allocation13 + $0x704] sm:$0xf] }
 0x32b   : > { %v1320_v44 = vpop.f32.mrf.mxu2  ;;  %v1333_v45 = vpop.f32.mrf.mxu3  ;;  %v11336_v28 = vld [vmem:[#allocation13 + $0x720] sm:$0xf0] }
 0x32c   : > { %v1391_v48 = vmul.f32 %v1320_v44, %v1024_v0  ;;  %v1392_v49 = vmul.f32 %v1333_v45, %v1037_v1  ;;  %v1296_v50 = vpop.f32.mrf.mxu0  ;;  %v1309_v51 = vpop.f32.mrf.mxu1  ;;  %v14960_v0 = vld [vmem:[#allocation13 + $0x304] sm:$0xf] }
 0x32d   : > { %v10824_v1 = vld [vmem:[#allocation13 + $0x320] sm:$0xf0] }
 0x32e   : > { %v16883_v57 = vpack.c.bf16 %v1391_v48, %v1391_v48  ;;  %v16885_v58 = vpack.c.bf16 %v1392_v49, %v1392_v49  ;;  %4600 = vmatpush.bf16.msrb.mxu0 %v10635_v38  ;;  %4613 = vmatpush.bf16.msrb.mxu1 %v10891_v39  ;;  %v10827_v7 = vor.u32 %v14960_v0, %v10824_v1  ;;  %v10760_v38 = vld [vmem:[#allocation13 + $0x2a0] sm:$0xf0] }
 0x32f   : > { %v15016_v39 = vld [vmem:[#allocation13 + $0x4c4] sm:$0xf]  ;;  %v10763_v47 = vor.u32 %v14944_v37, %v10760_v38 }
 0x330   : > { %4529 = vmatmul.bf16.vlgmr.msrb.gmra.mxu2 %v16883_v57  ;;  %4542 = vmatmul.bf16.vlgmr.msrb.gmra.mxu3 %v16885_v58  ;;  %v14872_v48 = vld [vmem:[#allocation13 + $0x44] sm:$0xf]  ;;  %v11051_v56 = vor.u32 %v15016_v39, %v11048_v41 }
 0x331   : > { %4625 = vmatpush.bf16.msrb.mxu2 %v11179_v52  ;;  %4638 = vmatpush.bf16.msrb.mxu3 %v11435_v53  ;;  %v10472_v53 = vld [vmem:[#allocation13 + $0x60] sm:$0xf0] }
 0x332   : > { %4601 = vmatpush.bf16.msrb.mxu0 %v10603_v54  ;;  %4614 = vmatpush.bf16.msrb.mxu1 %v10859_v59  ;;  %v14936_v54 = vld [vmem:[#allocation13 + $0x244] sm:$0xf]  ;;  %v11307_v59 = vor.u32 %v15080_v42, %v11304_v43 }
 0x333   : > { %v1322_v10 = vpop.f32.mrf.mxu2  ;;  %v1335_v11 = vpop.f32.mrf.mxu3  ;;  %v15072_v0 = vld [vmem:[#allocation13 + $0x684] sm:$0xf] }
 0x334   : > { %v1346_v16 = vpop.f32.mrf.mxu0  ;;  %v1359_v17 = vpop.f32.mrf.mxu1  ;;  %v11272_v1 = vld [vmem:[#allocation13 + $0x6a0] sm:$0xf0] }
 0x335   : > { %4626 = vmatpush.bf16.msrb.mxu2 %v11147_v2  ;;  %4639 = vmatpush.bf16.msrb.mxu3 %v11403_v3  ;;  %v1393_v22 = vmul.f32 %v1346_v16, %v16869_v40  ;;  %v1394_v23 = vmul.f32 %v1359_v17, %v16871_v12  ;;  %v11083_v40 = vor.u32 %v15024_v25, %v11080_v26  ;;  %v14864_v2 = vld [vmem:[#allocation13 + $0x4] sm:$0xf] }
 0x336   : > { %4602 = vmatpush.bf16.msrb.mxu0 %v10571_v6  ;;  %4615 = vmatpush.bf16.msrb.mxu1 %v10827_v7  ;;  %v11339_v12 = vor.u32 %v15088_v27, %v11336_v28  ;;  %v10440_v3 = vld [vmem:[#allocation13 + $0x20] sm:$0xf0]  ;;  %v11275_v9 = vor.u32 %v15072_v0, %v11272_v1 }
 0x337   : > { %v16891_v29 = vpack.c.bf16 %v1393_v22, %v1393_v22  ;;  %v16893_v32 = vpack.c.bf16 %v1394_v23, %v1394_v23  ;;  %v14928_v4 = vld [vmem:[#allocation13 + $0x204] sm:$0xf]  ;;  %v10443_v21 = vor.u32 %v14864_v2, %v10440_v3 }
 0x338   : > { %v10696_v5 = vld [vmem:[#allocation13 + $0x220] sm:$0xf0] }
 0x339   : > { %4627 = vmatpush.bf16.msrb.mxu2 %v11115_v18  ;;  %4640 = vmatpush.bf16.msrb.mxu3 %v11371_v24  ;;  %v15176_v6 = vld [vmem:[#allocation13 + $0x9c4] sm:$0xf]  ;;  %v10699_v22 = vor.u32 %v14928_v4, %v10696_v5 }
 0x33a   : > { %4555 = vmatmul.bf16.vlgmr.msra.gmra.mxu0 %v16891_v29  ;;  %4568 = vmatmul.bf16.vlgmr.msra.gmra.mxu1 %v16893_v32  ;;  %v11688_v7 = vld [vmem:[#allocation13 + $0x9e0] sm:$0xf0] }
 0x33b   : > { %4603 = vmatpush.bf16.msrb.mxu0 %v10539_v33  ;;  %4616 = vmatpush.bf16.msrb.mxu1 %v10795_v34  ;;  %v1372_v44 = vpop.f32.mrf.mxu2  ;;  %v1385_v45 = vpop.f32.mrf.mxu3  ;;  %v15240_v10 = vld [vmem:[#allocation13 + $0xbc4] sm:$0xf]  ;;  %v11691_v23 = vor.u32 %v15176_v6, %v11688_v7 }
 0x33c   : > { %v1395_v49 = vmul.f32 %v1372_v44, %v16873_v13  ;;  %v1396_v50 = vmul.f32 %v1385_v45, %v16875_v14  ;;  %v1348_v51 = vpop.f32.mrf.mxu0  ;;  %v1361_v52 = vpop.f32.mrf.mxu1  ;;  %v10475_v13 = vor.u32 %v14872_v48, %v10472_v53  ;;  %v10731_v14 = vor.u32 %v14936_v54, %v10728_v55  ;;  %v11944_v11 = vld [vmem:[#allocation13 + $0xbe0] sm:$0xf0] }
 0x33d   : > { %4628 = vmatpush.bf16.msrb.mxu2 %v11083_v40  ;;  %4641 = vmatpush.bf16.msrb.mxu3 %v11339_v12  ;;  %v15000_v15 = vld [vmem:[#allocation13 + $0x444] sm:$0xf]  ;;  %v11947_v24 = vor.u32 %v15240_v10, %v11944_v11  ;;  %v10955_v45 = vor.u32 %v14992_v35, %v10952_v36 }
 0x33e   : > { %v16899_v61 = vpack.c.bf16 %v1395_v49, %v1395_v49  ;;  %v16901_v62 = vpack.c.bf16 %v1396_v50, %v1396_v50  ;;  %v10984_v16 = vld [vmem:[#allocation13 + $0x460] sm:$0xf0] }
 0x33f   : > { %4604 = vmatpush.bf16.msrb.mxu0 %v10507_v46  ;;  %4617 = vmatpush.bf16.msrb.mxu1 %v10763_v47  ;;  %v15064_v17 = vld [vmem:[#allocation13 + $0x644] sm:$0xf]  ;;  %v10987_v28 = vor.u32 %v15000_v15, %v10984_v16 }
 0x340   : > { %4581 = vmatmul.bf16.vlgmr.msra.gmra.mxu2 %v16899_v61  ;;  %4594 = vmatmul.bf16.vlgmr.msra.gmra.mxu3 %v16901_v62  ;;  %v11240_v18 = vld [vmem:[#allocation13 + $0x660] sm:$0xf0] }
 0x341   : > { %4629 = vmatpush.bf16.msrb.mxu2 %v11051_v56  ;;  %4642 = vmatpush.bf16.msrb.mxu3 %v11307_v59  ;;  %v15168_v25 = vld [vmem:[#allocation13 + $0x984] sm:$0xf]  ;;  %v11243_v33 = vor.u32 %v15064_v17, %v11240_v18 }
 0x342   : > { %v11656_v26 = vld [vmem:[#allocation13 + $0x9a0] sm:$0xf0] }
 0x343   : > { %4605 = vmatpush.bf16.msrb.mxu0 %v10475_v13  ;;  %4618 = vmatpush.bf16.msrb.mxu1 %v10731_v14  ;;  %v1374_v19 = vpop.f32.mrf.mxu2  ;;  %v1387_v20 = vpop.f32.mrf.mxu3  ;;  %v15232_v27 = vld [vmem:[#allocation13 + $0xb84] sm:$0xf]  ;;  %v11659_v42 = vor.u32 %v15168_v25, %v11656_v26 }
 0x344   : > { %v11912_v34 = vld [vmem:[#allocation13 + $0xba0] sm:$0xf0] }
 0x345   : > { %4630 = vmatpush.bf16.msrb.mxu2 %v11019_v8  ;;  %4643 = vmatpush.bf16.msrb.mxu3 %v11275_v9  ;;  %v15056_v37 = vld [vmem:[#allocation13 + $0x604] sm:$0xf]  ;;  %v11915_v43 = vor.u32 %v15232_v27, %v11912_v34 }
 0x346   : > { %v11208_v38 = vld [vmem:[#allocation13 + $0x620] sm:$0xf0] }
 0x347   : > { %v15304_v40 = vld [vmem:[#allocation13 + $0xdc4] sm:$0xf]  ;;  %4606 = vmatpush.bf16.msrb.mxu0 %v10443_v21  ;;  %4619 = vmatpush.bf16.msrb.mxu1 %v10699_v22  ;;  %v11211_v46 = vor.u32 %v15056_v37, %v11208_v38 }
 0x348   : > { %v12200_v12 = vld [vmem:[#allocation13 + $0xde0] sm:$0xf0] }
 0x349   : > { %v15368_v39 = vld [vmem:[#allocation13 + $0xfc4] sm:$0xf]  ;;  %4631 = vmatpush.bf16.msrb.mxu2 %v10987_v28  ;;  %4644 = vmatpush.bf16.msrb.mxu3 %v11243_v33  ;;  %v12203_v50 = vor.u32 %v15304_v40, %v12200_v12 }
 0x34a   : > { %v12456_v41 = vld [vmem:[#allocation13 + $0xfe0] sm:$0xf0]  ;;  %4607 = vmatmul.bf16.vlgmr.msrb.gmra.mxu0 %v16877_v30  ;;  %4620 = vmatmul.bf16.vlgmr.msrb.gmra.mxu1 %v16879_v31 }
 0x34b   : > { %4651 = vmatpush.bf16.msra.mxu0 %v11691_v23  ;;  %4664 = vmatpush.bf16.msra.mxu1 %v11947_v24  ;;  %v15160_v44 = vld [vmem:[#allocation13 + $0x944] sm:$0xf]  ;;  %v12459_v51 = vor.u32 %v15368_v39, %v12456_v41 }
 0x34c   : > { %v11624_v47 = vld [vmem:[#allocation13 + $0x960] sm:$0xf0] }
 0x34d   : > { %v15224_v48 = vld [vmem:[#allocation13 + $0xb44] sm:$0xf]  ;;  %v11627_v56 = vor.u32 %v15160_v44, %v11624_v47  ;;  %4632 = vmatpush.bf16.msrb.mxu2 %v10955_v45  ;;  %4645 = vmatpush.bf16.msrb.mxu3 %v11211_v46 }
 0x34e   : > { %v11880_v49 = vld [vmem:[#allocation13 + $0xb60] sm:$0xf0] }
 0x34f   : > { %v15296_v52 = vld [vmem:[#allocation13 + $0xd84] sm:$0xf]  ;;  %4652 = vmatpush.bf16.msra.mxu0 %v11659_v42  ;;  %4665 = vmatpush.bf16.msra.mxu1 %v11915_v43  ;;  %v11883_v59 = vor.u32 %v15224_v48, %v11880_v49 }
 0x350   : > { %v12168_v53 = vld [vmem:[#allocation13 + $0xda0] sm:$0xf0]  ;;  %4633 = vmatmul.bf16.vlgmr.msrb.gmra.mxu2 %v16883_v57  ;;  %4646 = vmatmul.bf16.vlgmr.msrb.gmra.mxu3 %v16885_v58 }
 0x351   : > { %v15360_v54 = vld [vmem:[#allocation13 + $0xf84] sm:$0xf]  ;;  %4677 = vmatpush.bf16.msra.mxu2 %v12203_v50  ;;  %4690 = vmatpush.bf16.msra.mxu3 %v12459_v51  ;;  %v12171_v13 = vor.u32 %v15296_v52, %v12168_v53 }
 0x352   : > { %v12424_v55 = vld [vmem:[#allocation13 + $0xfa0] sm:$0xf0] }
 0x353   : > { %v15152_v60 = vld [vmem:[#allocation13 + $0x904] sm:$0xf]  ;;  %v12427_v14 = vor.u32 %v15360_v54, %v12424_v55  ;;  %4653 = vmatpush.bf16.msra.mxu0 %v11627_v56  ;;  %4666 = vmatpush.bf16.msra.mxu1 %v11883_v59  ;;  %v10670_v54 = vld [vmem:[#allocation13 + $0x1c8] sm:$0xf] }
 0x354   : > { %v11592_v63 = vld [vmem:[#allocation13 + $0x920] sm:$0xf0]  ;;  %v14925_v55 = vld [vmem:[#allocation13 + $0x1e4] sm:$0xf0] }
 0x355   : > { %v15216_v0 = vld [vmem:[#allocation13 + $0xb04] sm:$0xf]  ;;  %v11595_v6 = vor.u32 %v15152_v60, %v11592_v63  ;;  %4678 = vmatpush.bf16.msra.mxu2 %v12171_v13  ;;  %4691 = vmatpush.bf16.msra.mxu3 %v12427_v14  ;;  %v10926_v60 = vld [vmem:[#allocation13 + $0x3c8] sm:$0xf] }
 0x356   : > { %v11848_v1 = vld [vmem:[#allocation13 + $0xb20] sm:$0xf0]  ;;  %v14989_v63 = vld [vmem:[#allocation13 + $0x3e4] sm:$0xf0] }
 0x357   : > { %v15288_v2 = vld [vmem:[#allocation13 + $0xd44] sm:$0xf]  ;;  %v11851_v7 = vor.u32 %v15216_v0, %v11848_v1  ;;  %4654 = vmatpush.bf16.msra.mxu0 %v11595_v6  ;;  %v10638_v6 = vld [vmem:[#allocation13 + $0x188] sm:$0xf] }
 0x358   : > { %v12136_v3 = vld [vmem:[#allocation13 + $0xd60] sm:$0xf0] }
 0x359   : > { %v15352_v4 = vld [vmem:[#allocation13 + $0xf44] sm:$0xf]  ;;  %v12139_v15 = vor.u32 %v15288_v2, %v12136_v3  ;;  %4667 = vmatpush.bf16.msra.mxu1 %v11851_v7  ;;  %v14917_v7 = vld [vmem:[#allocation13 + $0x1a4] sm:$0xf0] }
 0x35a   : > { %v12392_v5 = vld [vmem:[#allocation13 + $0xf60] sm:$0xf0] }
 0x35b   : > { %v15144_v8 = vld [vmem:[#allocation13 + $0x8c4] sm:$0xf]  ;;  %v12395_v16 = vor.u32 %v15352_v4, %v12392_v5  ;;  %4679 = vmatpush.bf16.msra.mxu2 %v12139_v15  ;;  %v10671_v4 = vor.u32 %v14925_v55, %v10670_v54  ;;  %v10927_v5 = vor.u32 %v14989_v63, %v10926_v60  ;;  %v10542_v54 = vld [vmem:[#allocation13 + $0xc8] sm:$0xf] }
 0x35c   : > { %v11560_v9 = vld [vmem:[#allocation13 + $0x8e0] sm:$0xf0]  ;;  %v14893_v55 = vld [vmem:[#allocation13 + $0xe4] sm:$0xf0] }
 0x35d   : > { %v15208_v10 = vld [vmem:[#allocation13 + $0xac4] sm:$0xf]  ;;  %v11563_v21 = vor.u32 %v15144_v8, %v11560_v9  ;;  %4692 = vmatpush.bf16.msra.mxu3 %v12395_v16  ;;  %v10894_v8 = vld [vmem:[#allocation13 + $0x388] sm:$0xf] }
 0x35e   : > { %v11816_v11 = vld [vmem:[#allocation13 + $0xae0] sm:$0xf0]  ;;  %v10798_v60 = vld [vmem:[#allocation13 + $0x2c8] sm:$0xf] }
 0x35f   : > { %v15280_v17 = vld [vmem:[#allocation13 + $0xd04] sm:$0xf]  ;;  %v11819_v22 = vor.u32 %v15208_v10, %v11816_v11  ;;  %4655 = vmatpush.bf16.msra.mxu0 %v11563_v21  ;;  %v14981_v11 = vld [vmem:[#allocation13 + $0x3a4] sm:$0xf0] }
 0x360   : > { %v12104_v18 = vld [vmem:[#allocation13 + $0xd20] sm:$0xf0]  ;;  %v11438_v21 = vld [vmem:[#allocation13 + $0x7c8] sm:$0xf] }
 0x361   : > { %v15344_v19 = vld [vmem:[#allocation13 + $0xf04] sm:$0xf]  ;;  %v12107_v27 = vor.u32 %v15280_v17, %v12104_v18  ;;  %4668 = vmatpush.bf16.msra.mxu1 %v11819_v22  ;;  %v15117_v22 = vld [vmem:[#allocation13 + $0x7e4] sm:$0xf0] }
 0x362   : > { %v12360_v20 = vld [vmem:[#allocation13 + $0xf20] sm:$0xf0]  ;;  %v14957_v63 = vld [vmem:[#allocation13 + $0x2e4] sm:$0xf0] }
 0x363   : > { %v15136_v23 = vld [vmem:[#allocation13 + $0x884] sm:$0xf]  ;;  %v12363_v28 = vor.u32 %v15344_v19, %v12360_v20  ;;  %4680 = vmatpush.bf16.msra.mxu2 %v12107_v27  ;;  %v11182_v19 = vld [vmem:[#allocation13 + $0x5c8] sm:$0xf] }
 0x364   : > { %v11528_v24 = vld [vmem:[#allocation13 + $0x8a0] sm:$0xf0]  ;;  %v15053_v20 = vld [vmem:[#allocation13 + $0x5e4] sm:$0xf0] }
 0x365   : > { %v15200_v25 = vld [vmem:[#allocation13 + $0xa84] sm:$0xf]  ;;  %v11531_v37 = vor.u32 %v15136_v23, %v11528_v24  ;;  %4693 = vmatpush.bf16.msra.mxu3 %v12363_v28  ;;  %v10639_v23 = vor.u32 %v14917_v7, %v10638_v6  ;;  %v10895_v24 = vor.u32 %v14981_v11, %v10894_v8  ;;  %v10606_v27 = vld [vmem:[#allocation13 + $0x148] sm:$0xf] }
 0x366   : > { %v11784_v26 = vld [vmem:[#allocation13 + $0xaa0] sm:$0xf0]  ;;  %v14909_v28 = vld [vmem:[#allocation13 + $0x164] sm:$0xf0] }
 0x367   : > { %v15272_v33 = vld [vmem:[#allocation13 + $0xcc4] sm:$0xf]  ;;  %v11787_v38 = vor.u32 %v15200_v25, %v11784_v26  ;;  %4656 = vmatpush.bf16.msra.mxu0 %v11531_v37  ;;  %v11150_v37 = vld [vmem:[#allocation13 + $0x588] sm:$0xf] }
 0x368   : > { %v12072_v34 = vld [vmem:[#allocation13 + $0xce0] sm:$0xf0]  ;;  %v10766_v8 = vld [vmem:[#allocation13 + $0x288] sm:$0xf] }
 0x369   : > { %v15336_v35 = vld [vmem:[#allocation13 + $0xec4] sm:$0xf]  ;;  %v12075_v42 = vor.u32 %v15272_v33, %v12072_v34  ;;  %4669 = vmatpush.bf16.msra.mxu1 %v11787_v38  ;;  %v11183_v33 = vor.u32 %v15053_v20, %v11182_v19  ;;  %v11439_v34 = vor.u32 %v15117_v22, %v11438_v21  ;;  %v15045_v38 = vld [vmem:[#allocation13 + $0x5a4] sm:$0xf0] }
 0x36a   : > { %v12328_v36 = vld [vmem:[#allocation13 + $0xee0] sm:$0xf0]  ;;  %v15021_v11 = vld [vmem:[#allocation13 + $0x4e4] sm:$0xf0] }
 0x36b   : > { %v15128_v40 = vld [vmem:[#allocation13 + $0x844] sm:$0xf]  ;;  %v12331_v43 = vor.u32 %v15336_v35, %v12328_v36  ;;  %4681 = vmatpush.bf16.msra.mxu2 %v12075_v42  ;;  %v10862_v35 = vld [vmem:[#allocation13 + $0x348] sm:$0xf] }
 0x36c   : > { %v11496_v12 = vld [vmem:[#allocation13 + $0x860] sm:$0xf0]  ;;  %v14973_v36 = vld [vmem:[#allocation13 + $0x364] sm:$0xf0] }
 0x36d   : > { %v15192_v39 = vld [vmem:[#allocation13 + $0xa44] sm:$0xf]  ;;  %v11499_v48 = vor.u32 %v15128_v40, %v11496_v12  ;;  %4694 = vmatpush.bf16.msra.mxu3 %v12331_v43  ;;  %v11406_v40 = vld [vmem:[#allocation13 + $0x788] sm:$0xf] }
 0x36e   : > { %v11752_v41 = vld [vmem:[#allocation13 + $0xa60] sm:$0xf0]  ;;  %v15109_v12 = vld [vmem:[#allocation13 + $0x7a4] sm:$0xf0] }
 0x36f   : > { %v15264_v44 = vld [vmem:[#allocation13 + $0xc84] sm:$0xf]  ;;  %v11755_v49 = vor.u32 %v15192_v39, %v11752_v41  ;;  %4657 = vmatpush.bf16.msra.mxu0 %v11499_v48  ;;  %v10607_v39 = vor.u32 %v14909_v28, %v10606_v27  ;;  %v10863_v41 = vor.u32 %v14973_v36, %v10862_v35  ;;  %v10574_v42 = vld [vmem:[#allocation13 + $0x108] sm:$0xf] }
 0x370   : > { %v12040_v45 = vld [vmem:[#allocation13 + $0xca0] sm:$0xf0]  ;;  %v14901_v43 = vld [vmem:[#allocation13 + $0x124] sm:$0xf0] }
 0x371   : > { %v15328_v46 = vld [vmem:[#allocation13 + $0xe84] sm:$0xf]  ;;  %v12043_v56 = vor.u32 %v15264_v44, %v12040_v45  ;;  %4670 = vmatpush.bf16.msra.mxu1 %v11755_v49  ;;  %v11151_v44 = vor.u32 %v15045_v38, %v11150_v37  ;;  %v11407_v45 = vor.u32 %v15109_v12, %v11406_v40  ;;  %v11118_v48 = vld [vmem:[#allocation13 + $0x548] sm:$0xf] }
 0x372   : > { %v12296_v47 = vld [vmem:[#allocation13 + $0xea0] sm:$0xf0]  ;;  %v15037_v49 = vld [vmem:[#allocation13 + $0x564] sm:$0xf0] }
 0x373   : > { %v15120_v50 = vld [vmem:[#allocation13 + $0x804] sm:$0xf]  ;;  %v12299_v59 = vor.u32 %v15328_v46, %v12296_v47  ;;  %4682 = vmatpush.bf16.msra.mxu2 %v12043_v56  ;;  %v10830_v46 = vld [vmem:[#allocation13 + $0x308] sm:$0xf]  ;;  %v11119_v56 = vor.u32 %v15037_v49, %v11118_v48 }
 0x374   : > { %v11464_v51 = vld [vmem:[#allocation13 + $0x820] sm:$0xf0]  ;;  %v14965_v47 = vld [vmem:[#allocation13 + $0x324] sm:$0xf0] }
 0x375   : > { %v15184_v52 = vld [vmem:[#allocation13 + $0xa04] sm:$0xf]  ;;  %v11467_v2 = vor.u32 %v15120_v50, %v11464_v51  ;;  %4695 = vmatpush.bf16.msra.mxu3 %v12299_v59  ;;  %v11374_v50 = vld [vmem:[#allocation13 + $0x748] sm:$0xf] }
 0x376   : > { %v11720_v53 = vld [vmem:[#allocation13 + $0xa20] sm:$0xf0]  ;;  %v15101_v51 = vld [vmem:[#allocation13 + $0x764] sm:$0xf0] }
 0x377   : > { %v15256_v0 = vld [vmem:[#allocation13 + $0xc44] sm:$0xf]  ;;  %v11723_v3 = vor.u32 %v15184_v52, %v11720_v53  ;;  %4658 = vmatpush.bf16.msra.mxu0 %v11467_v2  ;;  %v10575_v52 = vor.u32 %v14901_v43, %v10574_v42  ;;  %v10831_v53 = vor.u32 %v14965_v47, %v10830_v46  ;;  %v11375_v59 = vor.u32 %v15101_v51, %v11374_v50  ;;  %v10478_v19 = vld [vmem:[#allocation13 + $0x48] sm:$0xf] }
 0x378   : > { %v12008_v1 = vld [vmem:[#allocation13 + $0xc60] sm:$0xf0]  ;;  %v10543_v2 = vor.u32 %v14893_v55, %v10542_v54  ;;  %v14877_v20 = vld [vmem:[#allocation13 + $0x64] sm:$0xf0] }
 0x379   : > { %v15320_v13 = vld [vmem:[#allocation13 + $0xe44] sm:$0xf]  ;;  %v12011_v9 = vor.u32 %v15256_v0, %v12008_v1  ;;  %4671 = vmatpush.bf16.msra.mxu1 %v11723_v3  ;;  %v11086_v0 = vld [vmem:[#allocation13 + $0x508] sm:$0xf]  ;;  %v10799_v3 = vor.u32 %v14957_v63, %v10798_v60 }
 0x37a   : > { %v12264_v14 = vld [vmem:[#allocation13 + $0xe60] sm:$0xf0]  ;;  %4659 = vmatmul.bf16.vlgmr.msra.gmra.mxu0 %v16891_v29  ;;  %v15029_v1 = vld [vmem:[#allocation13 + $0x524] sm:$0xf0] }
 0x37b   : > { %v12267_v10 = vor.u32 %v15320_v13, %v12264_v14  ;;  %v15248_v15 = vld [vmem:[#allocation13 + $0xc04] sm:$0xf]  ;;  %4703 = vmatpush.bf16.msrb.mxu0 %v10671_v4  ;;  %4683 = vmatpush.bf16.msra.mxu2 %v12011_v9  ;;  %v11342_v13 = vld [vmem:[#allocation13 + $0x708] sm:$0xf]  ;;  %v11087_v6 = vor.u32 %v15029_v1, %v11086_v0 }
 0x37c   : > { %v11976_v16 = vld [vmem:[#allocation13 + $0xc20] sm:$0xf0]  ;;  %4672 = vmatmul.bf16.vlgmr.msra.gmra.mxu1 %v16893_v32  ;;  %v15093_v14 = vld [vmem:[#allocation13 + $0x724] sm:$0xf0] }
 0x37d   : > { %v15312_v17 = vld [vmem:[#allocation13 + $0xe04] sm:$0xf]  ;;  %4716 = vmatpush.bf16.msrb.mxu1 %v10927_v5  ;;  %4696 = vmatpush.bf16.msra.mxu3 %v12267_v10  ;;  %v11979_v25 = vor.u32 %v15248_v15, %v11976_v16  ;;  %v10510_v4 = vld [vmem:[#allocation13 + $0x88] sm:$0xf]  ;;  %v11343_v7 = vor.u32 %v15093_v14, %v11342_v13 }
 0x37e   : > { %v12232_v18 = vld [vmem:[#allocation13 + $0xe20] sm:$0xf0]  ;;  %v14885_v5 = vld [vmem:[#allocation13 + $0xa4] sm:$0xf0] }
 0x37f   : > { %v12235_v26 = vor.u32 %v15312_v17, %v12232_v18  ;;  %4704 = vmatpush.bf16.msrb.mxu0 %v10639_v23  ;;  %4684 = vmatpush.bf16.msra.mxu2 %v11979_v25  ;;  %v14949_v9 = vld [vmem:[#allocation13 + $0x2a4] sm:$0xf0]  ;;  %v10511_v17 = vor.u32 %v14885_v5, %v10510_v4 }
 0x380   : > { %v11054_v10 = vld [vmem:[#allocation13 + $0x4c8] sm:$0xf]  ;;  %v10767_v18 = vor.u32 %v14949_v9, %v10766_v8 }
 0x381   : > { %4717 = vmatpush.bf16.msrb.mxu1 %v10895_v24  ;;  %4697 = vmatpush.bf16.msra.mxu3 %v12235_v26  ;;  %v11310_v15 = vld [vmem:[#allocation13 + $0x6c8] sm:$0xf]  ;;  %v11055_v21 = vor.u32 %v15021_v11, %v11054_v10 }
 0x382   : > { %4685 = vmatmul.bf16.vlgmr.msra.gmra.mxu2 %v16899_v61  ;;  %v15085_v16 = vld [vmem:[#allocation13 + $0x6e4] sm:$0xf0] }
 0x383   : > { %4729 = vmatpush.bf16.msrb.mxu2 %v11183_v33  ;;  %4705 = vmatpush.bf16.msrb.mxu0 %v10607_v39  ;;  %v11311_v22 = vor.u32 %v15085_v16, %v11310_v15  ;;  %v10734_v23 = vld [vmem:[#allocation13 + $0x248] sm:$0xf]  ;;  %v10479_v33 = vor.u32 %v14877_v20, %v10478_v19 }
 0x384   : > { %4698 = vmatmul.bf16.vlgmr.msra.gmra.mxu3 %v16901_v62  ;;  %v14941_v24 = vld [vmem:[#allocation13 + $0x264] sm:$0xf0] }
 0x385   : > { %4742 = vmatpush.bf16.msrb.mxu3 %v11439_v34  ;;  %4718 = vmatpush.bf16.msrb.mxu1 %v10863_v41  ;;  %v11022_v25 = vld [vmem:[#allocation13 + $0x488] sm:$0xf]  ;;  %v10735_v34 = vor.u32 %v14941_v24, %v10734_v23 }
 0x386   : > { %v15013_v26 = vld [vmem:[#allocation13 + $0x4a4] sm:$0xf0] }
 0x387   : > { %4730 = vmatpush.bf16.msrb.mxu2 %v11151_v44  ;;  %4706 = vmatpush.bf16.msrb.mxu0 %v10575_v52  ;;  %v11278_v27 = vld [vmem:[#allocation13 + $0x688] sm:$0xf]  ;;  %v11023_v38 = vor.u32 %v15013_v26, %v11022_v25 }
 0x388   : > { %v15077_v28 = vld [vmem:[#allocation13 + $0x6a4] sm:$0xf0] }
 0x389   : > { %4743 = vmatpush.bf16.msrb.mxu3 %v11407_v45  ;;  %4719 = vmatpush.bf16.msrb.mxu1 %v10831_v53  ;;  %v10446_v35 = vld [vmem:[#allocation13 + $0x8] sm:$0xf]  ;;  %v11279_v40 = vor.u32 %v15077_v28, %v11278_v27 }
 0x38a   : > { %v14869_v36 = vld [vmem:[#allocation13 + $0x24] sm:$0xf0] }
 0x38b   : > { %4731 = vmatpush.bf16.msrb.mxu2 %v11119_v56  ;;  %4707 = vmatpush.bf16.msrb.mxu0 %v10543_v2  ;;  %v10702_v37 = vld [vmem:[#allocation13 + $0x208] sm:$0xf]  ;;  %v10447_v48 = vor.u32 %v14869_v36, %v10446_v35 }
 0x38c   : > { %v14933_v12 = vld [vmem:[#allocation13 + $0x224] sm:$0xf0] }
 0x38d   : > { %4744 = vmatpush.bf16.msrb.mxu3 %v11375_v59  ;;  %4720 = vmatpush.bf16.msrb.mxu1 %v10799_v3  ;;  %v11694_v39 = vld [vmem:[#allocation13 + $0x9c8] sm:$0xf]  ;;  %v10703_v49 = vor.u32 %v14933_v12, %v10702_v37 }
 0x38e   : > { %v15181_v41 = vld [vmem:[#allocation13 + $0x9e4] sm:$0xf0] }
 0x38f   : > { %4732 = vmatpush.bf16.msrb.mxu2 %v11087_v6  ;;  %4708 = vmatpush.bf16.msrb.mxu0 %v10511_v17  ;;  %v11950_v42 = vld [vmem:[#allocation13 + $0xbc8] sm:$0xf]  ;;  %v11695_v50 = vor.u32 %v15181_v41, %v11694_v39 }
 0x390   : > { %v15245_v43 = vld [vmem:[#allocation13 + $0xbe4] sm:$0xf0] }
 0x391   : > { %4745 = vmatpush.bf16.msrb.mxu3 %v11343_v7  ;;  %4721 = vmatpush.bf16.msrb.mxu1 %v10767_v18  ;;  %v10990_v44 = vld [vmem:[#allocation13 + $0x448] sm:$0xf]  ;;  %v11951_v51 = vor.u32 %v15245_v43, %v11950_v42 }
 0x392   : > { %v15005_v45 = vld [vmem:[#allocation13 + $0x464] sm:$0xf0] }
 0x393   : > { %4733 = vmatpush.bf16.msrb.mxu2 %v11055_v21  ;;  %v11246_v46 = vld [vmem:[#allocation13 + $0x648] sm:$0xf]  ;;  %4709 = vmatpush.bf16.msrb.mxu0 %v10479_v33  ;;  %v10991_v55 = vor.u32 %v15005_v45, %v10990_v44 }
 0x394   : > { %v15069_v47 = vld [vmem:[#allocation13 + $0x664] sm:$0xf0] }
 0x395   : > { %4746 = vmatpush.bf16.msrb.mxu3 %v11311_v22  ;;  %4722 = vmatpush.bf16.msrb.mxu1 %v10735_v34  ;;  %v11662_v52 = vld [vmem:[#allocation13 + $0x988] sm:$0xf]  ;;  %v11247_v56 = vor.u32 %v15069_v47, %v11246_v46 }
 0x396   : > { %v15173_v53 = vld [vmem:[#allocation13 + $0x9a4] sm:$0xf0] }
 0x397   : > { %4734 = vmatpush.bf16.msrb.mxu2 %v11023_v38  ;;  %v11918_v54 = vld [vmem:[#allocation13 + $0xb88] sm:$0xf]  ;;  %4710 = vmatpush.bf16.msrb.mxu0 %v10447_v48  ;;  %v11663_v4 = vor.u32 %v15173_v53, %v11662_v52 }
 0x398   : > { %v15237_v59 = vld [vmem:[#allocation13 + $0xba4] sm:$0xf0] }
 0x399   : > { %4747 = vmatpush.bf16.msrb.mxu3 %v11279_v40  ;;  %v10958_v60 = vld [vmem:[#allocation13 + $0x408] sm:$0xf]  ;;  %4723 = vmatpush.bf16.msrb.mxu1 %v10703_v49  ;;  %v11919_v5 = vor.u32 %v15237_v59, %v11918_v54 }
 0x39a   : > { %v14997_v63 = vld [vmem:[#allocation13 + $0x424] sm:$0xf0]  ;;  %4711 = vmatmul.bf16.vlgmr.msrb.gmra.mxu0 %v16877_v30 }
 0x39b   : > { %v11214_v0 = vld [vmem:[#allocation13 + $0x608] sm:$0xf]  ;;  %4755 = vmatpush.bf16.msra.mxu0 %v11695_v50  ;;  %4735 = vmatpush.bf16.msrb.mxu2 %v10991_v55  ;;  %v10959_v6 = vor.u32 %v14997_v63, %v10958_v60 }
 0x39c   : > { %v15061_v1 = vld [vmem:[#allocation13 + $0x624] sm:$0xf0]  ;;  %4724 = vmatmul.bf16.vlgmr.msrb.gmra.mxu1 %v16879_v31 }
 0x39d   : > { %v12206_v13 = vld [vmem:[#allocation13 + $0xdc8] sm:$0xf]  ;;  %4768 = vmatpush.bf16.msra.mxu1 %v11951_v51  ;;  %4748 = vmatpush.bf16.msrb.mxu3 %v11247_v56  ;;  %v11215_v7 = vor.u32 %v15061_v1, %v11214_v0 }
 0x39e   : > { %v15309_v14 = vld [vmem:[#allocation13 + $0xde4] sm:$0xf0] }
 0x39f   : > { %v12462_v2 = vld [vmem:[#allocation13 + $0xfc8] sm:$0xf]  ;;  %v12207_v10 = vor.u32 %v15309_v14, %v12206_v13  ;;  %4756 = vmatpush.bf16.msra.mxu0 %v11663_v4  ;;  %4736 = vmatpush.bf16.msrb.mxu2 %v10959_v6 }
 0x3a0   : > { %v15373_v3 = vld [vmem:[#allocation13 + $0xfe4] sm:$0xf0] }
 0x3a1   : > { %v11630_v8 = vld [vmem:[#allocation13 + $0x948] sm:$0xf]  ;;  %v12463_v11 = vor.u32 %v15373_v3, %v12462_v2  ;;  %4769 = vmatpush.bf16.msra.mxu1 %v11919_v5  ;;  %4749 = vmatpush.bf16.msrb.mxu3 %v11215_v7 }
 0x3a2   : > { %v15165_v9 = vld [vmem:[#allocation13 + $0x964] sm:$0xf0]  ;;  %4737 = vmatmul.bf16.vlgmr.msrb.gmra.mxu2 %v16883_v57 }
 0x3a3   : > { %v11886_v15 = vld [vmem:[#allocation13 + $0xb48] sm:$0xf]  ;;  %v11631_v21 = vor.u32 %v15165_v9, %v11630_v8  ;;  %4781 = vmatpush.bf16.msra.mxu2 %v12207_v10 }
 0x3a4   : > { %v15229_v16 = vld [vmem:[#allocation13 + $0xb64] sm:$0xf0]  ;;  %4750 = vmatmul.bf16.vlgmr.msrb.gmra.mxu3 %v16885_v58 }
 0x3a5   : > { %v12174_v17 = vld [vmem:[#allocation13 + $0xd88] sm:$0xf]  ;;  %v11887_v22 = vor.u32 %v15229_v16, %v11886_v15  ;;  %4794 = vmatpush.bf16.msra.mxu3 %v12463_v11  ;;  %4757 = vmatpush.bf16.msra.mxu0 %v11631_v21  ;;  %v14921_v21 = vld [vmem:[#allocation13 + $0x1cc] sm:$0xf] }
 0x3a6   : > { %v15301_v18 = vld [vmem:[#allocation13 + $0xda4] sm:$0xf0] }
 0x3a7   : > { %v12430_v19 = vld [vmem:[#allocation13 + $0xf88] sm:$0xf]  ;;  %v12175_v25 = vor.u32 %v15301_v18, %v12174_v17  ;;  %4770 = vmatpush.bf16.msra.mxu1 %v11887_v22  ;;  %v10672_v22 = vld [vmem:[#allocation13 + $0x1e8] sm:$0xf0] }
 0x3a8   : > { %v15365_v20 = vld [vmem:[#allocation13 + $0xfa4] sm:$0xf0] }
 0x3a9   : > { %v11598_v23 = vld [vmem:[#allocation13 + $0x908] sm:$0xf]  ;;  %v12431_v26 = vor.u32 %v15365_v20, %v12430_v19  ;;  %4782 = vmatpush.bf16.msra.mxu2 %v12175_v25 }
 0x3aa   : > { %v15157_v24 = vld [vmem:[#allocation13 + $0x924] sm:$0xf0] }
 0x3ab   : > { %v11854_v27 = vld [vmem:[#allocation13 + $0xb08] sm:$0xf]  ;;  %v11599_v37 = vor.u32 %v15157_v24, %v11598_v23  ;;  %4795 = vmatpush.bf16.msra.mxu3 %v12431_v26  ;;  %v14985_v23 = vld [vmem:[#allocation13 + $0x3cc] sm:$0xf] }
 0x3ac   : > { %v15221_v28 = vld [vmem:[#allocation13 + $0xb24] sm:$0xf0]  ;;  %v10928_v24 = vld [vmem:[#allocation13 + $0x3e8] sm:$0xf0] }
 0x3ad   : > { %v12142_v33 = vld [vmem:[#allocation13 + $0xd48] sm:$0xf]  ;;  %v11855_v38 = vor.u32 %v15221_v28, %v11854_v27  ;;  %4758 = vmatpush.bf16.msra.mxu0 %v11599_v37  ;;  %v10931_v37 = vor.u32 %v14985_v23, %v10928_v24 }
 0x3ae   : > { %v15293_v34 = vld [vmem:[#allocation13 + $0xd64] sm:$0xf0] }
 0x3af   : > { %v12398_v35 = vld [vmem:[#allocation13 + $0xf48] sm:$0xf]  ;;  %v12143_v39 = vor.u32 %v15293_v34, %v12142_v33  ;;  %4771 = vmatpush.bf16.msra.mxu1 %v11855_v38  ;;  %v10640_v38 = vld [vmem:[#allocation13 + $0x1a8] sm:$0xf0] }
 0x3b0   : > { %v15357_v36 = vld [vmem:[#allocation13 + $0xf64] sm:$0xf0] }
 0x3b1   : > { %v11566_v40 = vld [vmem:[#allocation13 + $0x8c8] sm:$0xf]  ;;  %v12399_v41 = vor.u32 %v15357_v36, %v12398_v35  ;;  %4783 = vmatpush.bf16.msra.mxu2 %v12143_v39  ;;  %v14913_v35 = vld [vmem:[#allocation13 + $0x18c] sm:$0xf]  ;;  %v10675_v36 = vor.u32 %v14921_v21, %v10672_v22 }
 0x3b2   : > { %v15149_v12 = vld [vmem:[#allocation13 + $0x8e4] sm:$0xf0]  ;;  %v11376_v21 = vld [vmem:[#allocation13 + $0x768] sm:$0xf0] }
 0x3b3   : > { %v11822_v42 = vld [vmem:[#allocation13 + $0xac8] sm:$0xf]  ;;  %v11567_v48 = vor.u32 %v15149_v12, %v11566_v40  ;;  %4796 = vmatpush.bf16.msra.mxu3 %v12399_v41  ;;  %v14977_v40 = vld [vmem:[#allocation13 + $0x38c] sm:$0xf] }
 0x3b4   : > { %v15213_v43 = vld [vmem:[#allocation13 + $0xae4] sm:$0xf0]  ;;  %v10896_v12 = vld [vmem:[#allocation13 + $0x3a8] sm:$0xf0] }
 0x3b5   : > { %v12110_v44 = vld [vmem:[#allocation13 + $0xd08] sm:$0xf]  ;;  %v11823_v49 = vor.u32 %v15213_v43, %v11822_v42  ;;  %4759 = vmatpush.bf16.msra.mxu0 %v11567_v48  ;;  %v15113_v48 = vld [vmem:[#allocation13 + $0x7cc] sm:$0xf] }
 0x3b6   : > { %v15285_v45 = vld [vmem:[#allocation13 + $0xd24] sm:$0xf0] }
 0x3b7   : > { %v12366_v46 = vld [vmem:[#allocation13 + $0xf08] sm:$0xf]  ;;  %v12111_v52 = vor.u32 %v15285_v45, %v12110_v44  ;;  %4772 = vmatpush.bf16.msra.mxu1 %v11823_v49  ;;  %v11440_v49 = vld [vmem:[#allocation13 + $0x7e8] sm:$0xf0] }
 0x3b8   : > { %v15349_v47 = vld [vmem:[#allocation13 + $0xf24] sm:$0xf0] }
 0x3b9   : > { %v11534_v50 = vld [vmem:[#allocation13 + $0x888] sm:$0xf]  ;;  %v12367_v53 = vor.u32 %v15349_v47, %v12366_v46  ;;  %4784 = vmatpush.bf16.msra.mxu2 %v12111_v52  ;;  %v15049_v46 = vld [vmem:[#allocation13 + $0x5cc] sm:$0xf]  ;;  %v10899_v52 = vor.u32 %v14977_v40, %v10896_v12 }
 0x3ba   : > { %v15141_v51 = vld [vmem:[#allocation13 + $0x8a4] sm:$0xf0]  ;;  %v11184_v47 = vld [vmem:[#allocation13 + $0x5e8] sm:$0xf0] }
 0x3bb   : > { %v11790_v54 = vld [vmem:[#allocation13 + $0xa88] sm:$0xf]  ;;  %v11535_v0 = vor.u32 %v15141_v51, %v11534_v50  ;;  %4797 = vmatpush.bf16.msra.mxu3 %v12367_v53  ;;  %v16917_v50 = vld [vmem:[#allocation14] sm:$0xff]  ;;  %v10643_v51 = vor.u32 %v14913_v35, %v10640_v38  ;;  %v15025_v35 = vld [vmem:[#allocation13 + $0x50c] sm:$0xf] }
 0x3bc   : > { %v15205_v55 = vld [vmem:[#allocation13 + $0xaa4] sm:$0xf0]  ;;  %v11344_v38 = vld [vmem:[#allocation13 + $0x728] sm:$0xf0] }
 0x3bd   : > { %v12078_v56 = vld [vmem:[#allocation13 + $0xcc8] sm:$0xf]  ;;  %v11791_v1 = vor.u32 %v15205_v55, %v11790_v54  ;;  %4760 = vmatpush.bf16.msra.mxu0 %v11535_v0  ;;  %v14905_v55 = vld [vmem:[#allocation13 + $0x14c] sm:$0xf] }
 0x3be   : > { %v15277_v59 = vld [vmem:[#allocation13 + $0xce4] sm:$0xf0]  ;;  %v10864_v0 = vld [vmem:[#allocation13 + $0x368] sm:$0xf0] }
 0x3bf   : > { %v12334_v60 = vld [vmem:[#allocation13 + $0xec8] sm:$0xf]  ;;  %v12079_v2 = vor.u32 %v15277_v59, %v12078_v56  ;;  %4773 = vmatpush.bf16.msra.mxu1 %v11791_v1  ;;  %v10608_v56 = vld [vmem:[#allocation13 + $0x168] sm:$0xf0]  ;;  %v1919_v1 = vperm.slane %v16917_v50, 0 }
 0x3c0   : > { %v15341_v63 = vld [vmem:[#allocation13 + $0xee4] sm:$0xf0]  ;;  %v14969_v59 = vld [vmem:[#allocation13 + $0x34c] sm:$0xf] }
 0x3c1   : > { %v11502_v13 = vld [vmem:[#allocation13 + $0x848] sm:$0xf]  ;;  %v12335_v3 = vor.u32 %v15341_v63, %v12334_v60  ;;  %4785 = vmatpush.bf16.msra.mxu2 %v12079_v2  ;;  %v11187_v60 = vor.u32 %v15049_v46, %v11184_v47  ;;  %v11443_v63 = vor.u32 %v15113_v48, %v11440_v49  ;;  %v15105_v2 = vld [vmem:[#allocation13 + $0x78c] sm:$0xf] }
 0x3c2   : > { %v15133_v14 = vld [vmem:[#allocation13 + $0x864] sm:$0xf0]  ;;  %v14945_v46 = vld [vmem:[#allocation13 + $0x28c] sm:$0xf] }
 0x3c3   : > { %v11758_v4 = vld [vmem:[#allocation13 + $0xa48] sm:$0xf]  ;;  %v11503_v10 = vor.u32 %v15133_v14, %v11502_v13  ;;  %4798 = vmatpush.bf16.msra.mxu3 %v12335_v3  ;;  %v15041_v13 = vld [vmem:[#allocation13 + $0x58c] sm:$0xf] }
 0x3c4   : > { %v15197_v5 = vld [vmem:[#allocation13 + $0xa64] sm:$0xf0]  ;;  %v11152_v14 = vld [vmem:[#allocation13 + $0x5a8] sm:$0xf0] }
 0x3c5   : > { %v12046_v6 = vld [vmem:[#allocation13 + $0xc88] sm:$0xf]  ;;  %v11759_v11 = vor.u32 %v15197_v5, %v11758_v4  ;;  %4761 = vmatpush.bf16.msra.mxu0 %v11503_v10  ;;  %v11408_v3 = vld [vmem:[#allocation13 + $0x7a8] sm:$0xf0]  ;;  %v10611_v4 = vor.u32 %v14905_v55, %v10608_v56  ;;  %v10867_v5 = vor.u32 %v14969_v59, %v10864_v0  ;;  %v4530_v59 = vpop.f32.mrf.mxu2 }
 0x3c6   : > { %v15269_v7 = vld [vmem:[#allocation13 + $0xca4] sm:$0xf0]  ;;  %v10768_v47 = vld [vmem:[#allocation13 + $0x2a8] sm:$0xf0] }
 0x3c7   : > { %v12302_v8 = vld [vmem:[#allocation13 + $0xe88] sm:$0xf]  ;;  %v12047_v18 = vor.u32 %v15269_v7, %v12046_v6  ;;  %4774 = vmatpush.bf16.msra.mxu1 %v11759_v11  ;;  %v4504_v6 = vpop.f32.mrf.mxu0  ;;  %v4517_v7 = vpop.f32.mrf.mxu1  ;;  %v11155_v11 = vor.u32 %v15041_v13, %v11152_v14  ;;  %v15017_v48 = vld [vmem:[#allocation13 + $0x4cc] sm:$0xf] }
 0x3c8   : > { %v15333_v9 = vld [vmem:[#allocation13 + $0xea4] sm:$0xf0]  ;;  %v4505_v10 = vadd.f32 %v4504_v6, %v1919_v1  ;;  %v11056_v49 = vld [vmem:[#allocation13 + $0x4e8] sm:$0xf0] }
 0x3c9   : > { %v11470_v15 = vld [vmem:[#allocation13 + $0x808] sm:$0xf]  ;;  %v12303_v19 = vor.u32 %v15333_v9, %v12302_v8  ;;  %4786 = vmatpush.bf16.msra.mxu2 %v12047_v18  ;;  %v14897_v8 = vld [vmem:[#allocation13 + $0x10c] sm:$0xf] }
 0x3ca   : > { %v15125_v16 = vld [vmem:[#allocation13 + $0x824] sm:$0xf0]  ;;  %v10576_v9 = vld [vmem:[#allocation13 + $0x128] sm:$0xf0]  ;;  %v4518_v22 = vadd.f32 %v4517_v7, %v4505_v10 }
 0x3cb   : > { %v11726_v17 = vld [vmem:[#allocation13 + $0xa08] sm:$0xf]  ;;  %v11471_v33 = vor.u32 %v15125_v16, %v11470_v15  ;;  %4799 = vmatpush.bf16.msra.mxu3 %v12303_v19  ;;  %v11411_v15 = vor.u32 %v15105_v2, %v11408_v3  ;;  %v14961_v16 = vld [vmem:[#allocation13 + $0x30c] sm:$0xf]  ;;  %v10579_v23 = vor.u32 %v14897_v8, %v10576_v9 }
 0x3cc   : > { %v15189_v20 = vld [vmem:[#allocation13 + $0xa24] sm:$0xf0]  ;;  %v15033_v18 = vld [vmem:[#allocation13 + $0x54c] sm:$0xf]  ;;  %v4531_v2 = vadd.f32 %v4530_v59, %v4518_v22 }
 0x3cd   : > { %v12014_v25 = vld [vmem:[#allocation13 + $0xc48] sm:$0xf]  ;;  %v11727_v34 = vor.u32 %v15189_v20, %v11726_v17  ;;  %4762 = vmatpush.bf16.msra.mxu0 %v11471_v33  ;;  %v10832_v17 = vld [vmem:[#allocation13 + $0x328] sm:$0xf0] }
 0x3ce   : > { %v15261_v26 = vld [vmem:[#allocation13 + $0xc64] sm:$0xf0]  ;;  %v11120_v19 = vld [vmem:[#allocation13 + $0x568] sm:$0xf0]  ;;  %v10835_v24 = vor.u32 %v14961_v16, %v10832_v17 }
 0x3cf   : > { %v12270_v27 = vld [vmem:[#allocation13 + $0xe48] sm:$0xf]  ;;  %v12015_v39 = vor.u32 %v15261_v26, %v12014_v25  ;;  %4775 = vmatpush.bf16.msra.mxu1 %v11727_v34  ;;  %v15097_v20 = vld [vmem:[#allocation13 + $0x74c] sm:$0xf] }
 0x3d0   : > { %v15325_v28 = vld [vmem:[#allocation13 + $0xe64] sm:$0xf0]  ;;  %4763 = vmatmul.bf16.vlgmr.msra.gmra.mxu0 %v16891_v29  ;;  %v14889_v25 = vld [vmem:[#allocation13 + $0xcc] sm:$0xf] }
 0x3d1   : > { %v12271_v41 = vor.u32 %v15325_v28, %v12270_v27  ;;  %v11982_v42 = vld [vmem:[#allocation13 + $0xc08] sm:$0xf]  ;;  %4807 = vmatpush.bf16.msrb.mxu0 %v10675_v36  ;;  %4787 = vmatpush.bf16.msra.mxu2 %v12015_v39  ;;  %v10544_v26 = vld [vmem:[#allocation13 + $0xe8] sm:$0xf0]  ;;  %v11123_v27 = vor.u32 %v15033_v18, %v11120_v19  ;;  %v11379_v28 = vor.u32 %v15097_v20, %v11376_v21  ;;  %v4506_v39 = vpop.f32.mrf.mxu0 }
 0x3d2   : > { %v15253_v43 = vld [vmem:[#allocation13 + $0xc24] sm:$0xf0]  ;;  %4776 = vmatmul.bf16.vlgmr.msra.gmra.mxu1 %v16893_v32  ;;  %v14953_v33 = vld [vmem:[#allocation13 + $0x2cc] sm:$0xf]  ;;  %v10547_v40 = vor.u32 %v14889_v25, %v10544_v26 }
 0x3d3   : > { %v12238_v44 = vld [vmem:[#allocation13 + $0xe08] sm:$0xf]  ;;  %4820 = vmatpush.bf16.msrb.mxu1 %v10931_v37  ;;  %4800 = vmatpush.bf16.msra.mxu3 %v12271_v41  ;;  %v11983_v53 = vor.u32 %v15253_v43, %v11982_v42  ;;  %v10800_v34 = vld [vmem:[#allocation13 + $0x2e8] sm:$0xf0]  ;;  %v4519_v41 = vpop.f32.mrf.mxu1 }
 0x3d4   : > { %v15317_v45 = vld [vmem:[#allocation13 + $0xe24] sm:$0xf0]  ;;  %v11088_v36 = vld [vmem:[#allocation13 + $0x528] sm:$0xf0]  ;;  %v10803_v12 = vor.u32 %v14953_v33, %v10800_v34 }
 0x3d5   : > { %v12239_v54 = vor.u32 %v15317_v45, %v12238_v44  ;;  %4808 = vmatpush.bf16.msrb.mxu0 %v10643_v51  ;;  %4788 = vmatpush.bf16.msra.mxu2 %v11983_v53  ;;  %v15089_v37 = vld [vmem:[#allocation13 + $0x70c] sm:$0xf]  ;;  %v11091_v44 = vor.u32 %v15025_v35, %v11088_v36  ;;  %v4532_v36 = vpop.f32.mrf.mxu2 }
 0x3d6   : > { %v14881_v42 = vld [vmem:[#allocation13 + $0x8c] sm:$0xf]  ;;  %v11347_v45 = vor.u32 %v15089_v37, %v11344_v38 }
 0x3d7   : > { %4821 = vmatpush.bf16.msrb.mxu1 %v10899_v52  ;;  %4801 = vmatpush.bf16.msra.mxu3 %v12239_v54  ;;  %v10512_v43 = vld [vmem:[#allocation13 + $0xa8] sm:$0xf0]  ;;  %v10771_v54 = vor.u32 %v14945_v46, %v10768_v47 }
 0x3d8   : > { %4789 = vmatmul.bf16.vlgmr.msra.gmra.mxu2 %v16899_v61  ;;  %v15081_v51 = vld [vmem:[#allocation13 + $0x6cc] sm:$0xf]  ;;  %v10515_v53 = vor.u32 %v14881_v42, %v10512_v43 }
 0x3d9   : > { %4833 = vmatpush.bf16.msrb.mxu2 %v11187_v60  ;;  %4809 = vmatpush.bf16.msrb.mxu0 %v10611_v4  ;;  %v11312_v52 = vld [vmem:[#allocation13 + $0x6e8] sm:$0xf0]  ;;  %v4543_v60 = vpop.f32.mrf.mxu3 }
 0x3da   : > { %4802 = vmatmul.bf16.vlgmr.msra.gmra.mxu3 %v16901_v62  ;;  %v14873_v55 = vld [vmem:[#allocation13 + $0x4c] sm:$0xf]  ;;  %v11315_v0 = vor.u32 %v15081_v51, %v11312_v52  ;;  %v4544_v6 = vadd.f32 %v4543_v60, %v4531_v2 }
 0x3db   : > { %4846 = vmatpush.bf16.msrb.mxu3 %v11443_v63  ;;  %4822 = vmatpush.bf16.msrb.mxu1 %v10867_v5  ;;  %v10480_v56 = vld [vmem:[#allocation13 + $0x68] sm:$0xf0]  ;;  %v11059_v63 = vor.u32 %v15017_v48, %v11056_v49  ;;  %v4569_v16 = vpop.f32.mrf.mxu1 }
 0x3dc   : > { %v14937_v1 = vld [vmem:[#allocation13 + $0x24c] sm:$0xf]  ;;  %v10483_v7 = vor.u32 %v14873_v55, %v10480_v56 }
 0x3dd   : > { %4834 = vmatpush.bf16.msrb.mxu2 %v11155_v11  ;;  %4810 = vmatpush.bf16.msrb.mxu0 %v10579_v23  ;;  %v10736_v13 = vld [vmem:[#allocation13 + $0x268] sm:$0xf0] }
 0x3de   : > { %v15009_v14 = vld [vmem:[#allocation13 + $0x48c] sm:$0xf]  ;;  %v10739_v8 = vor.u32 %v14937_v1, %v10736_v13 }
 0x3df   : > { %4847 = vmatpush.bf16.msrb.mxu3 %v11411_v15  ;;  %4823 = vmatpush.bf16.msrb.mxu1 %v10835_v24  ;;  %v11024_v3 = vld [vmem:[#allocation13 + $0x4a8] sm:$0xf0]  ;;  %v4556_v15 = vpop.f32.mrf.mxu0 }
 0x3e0   : > { %v15073_v4 = vld [vmem:[#allocation13 + $0x68c] sm:$0xf]  ;;  %v11027_v17 = vor.u32 %v15009_v14, %v11024_v3  ;;  %v4557_v22 = vadd.f32 %v4556_v15, %v4544_v6 }
 0x3e1   : > { %4835 = vmatpush.bf16.msrb.mxu2 %v11123_v27  ;;  %4811 = vmatpush.bf16.msrb.mxu0 %v10547_v40  ;;  %v11280_v5 = vld [vmem:[#allocation13 + $0x6a8] sm:$0xf0]  ;;  %v4545_v37 = vpop.f32.mrf.mxu3 }
 0x3e2   : > { %v14865_v9 = vld [vmem:[#allocation13 + $0xc] sm:$0xf]  ;;  %v11283_v18 = vor.u32 %v15073_v4, %v11280_v5  ;;  %v4570_v33 = vadd.f32 %v4569_v16, %v4557_v22  ;;  %v1920_v16 = vperm.slane %v16917_v50, 1 }
 0x3e3   : > { %4848 = vmatpush.bf16.msrb.mxu3 %v11379_v28  ;;  %4824 = vmatpush.bf16.msrb.mxu1 %v10803_v12  ;;  %v10448_v10 = vld [vmem:[#allocation13 + $0x28] sm:$0xf0]  ;;  %v4571_v55 = vpop.f32.mrf.mxu1 }
 0x3e4   : > { %v14929_v11 = vld [vmem:[#allocation13 + $0x20c] sm:$0xf]  ;;  %v10451_v34 = vor.u32 %v14865_v9, %v10448_v10 }
 0x3e5   : > { %4836 = vmatpush.bf16.msrb.mxu2 %v11091_v44  ;;  %4812 = vmatpush.bf16.msrb.mxu0 %v10515_v53  ;;  %v10704_v19 = vld [vmem:[#allocation13 + $0x228] sm:$0xf0] }
 0x3e6   : > { %v15177_v20 = vld [vmem:[#allocation13 + $0x9cc] sm:$0xf]  ;;  %v10707_v35 = vor.u32 %v14929_v11, %v10704_v19 }
 0x3e7   : > { %4849 = vmatpush.bf16.msrb.mxu3 %v11347_v45  ;;  %4825 = vmatpush.bf16.msrb.mxu1 %v10771_v54  ;;  %v11696_v21 = vld [vmem:[#allocation13 + $0x9e8] sm:$0xf0]  ;;  %v4558_v54 = vpop.f32.mrf.mxu0 }
 0x3e8   : > { %v15241_v23 = vld [vmem:[#allocation13 + $0xbcc] sm:$0xf]  ;;  %v11699_v38 = vor.u32 %v15177_v20, %v11696_v21 }
 0x3e9   : > { %4837 = vmatpush.bf16.msrb.mxu2 %v11059_v63  ;;  %v11952_v24 = vld [vmem:[#allocation13 + $0xbe8] sm:$0xf0]  ;;  %4813 = vmatpush.bf16.msrb.mxu0 %v10483_v7  ;;  %v4595_v9 = vpop.f32.mrf.mxu3 }
 0x3ea   : > { %v15001_v25 = vld [vmem:[#allocation13 + $0x44c] sm:$0xf]  ;;  %v11955_v40 = vor.u32 %v15241_v23, %v11952_v24 }
 0x3eb   : > { %4850 = vmatpush.bf16.msrb.mxu3 %v11315_v0  ;;  %v10992_v26 = vld [vmem:[#allocation13 + $0x468] sm:$0xf0]  ;;  %4826 = vmatpush.bf16.msrb.mxu1 %v10739_v8  ;;  %v4582_v8 = vpop.f32.mrf.mxu2 }
 0x3ec   : > { %v15065_v27 = vld [vmem:[#allocation13 + $0x64c] sm:$0xf]  ;;  %v10995_v42 = vor.u32 %v15001_v25, %v10992_v26  ;;  %v4583_v10 = vadd.f32 %v4582_v8, %v4570_v33  ;;  %v4621_v33 = vpop.f32.mrf.mxu1 }
 0x3ed   : > { %v11248_v28 = vld [vmem:[#allocation13 + $0x668] sm:$0xf0]  ;;  %4838 = vmatpush.bf16.msrb.mxu2 %v11027_v17  ;;  %4814 = vmatpush.bf16.msrb.mxu0 %v10451_v34 }
 0x3ee   : > { %v15169_v12 = vld [vmem:[#allocation13 + $0x98c] sm:$0xf]  ;;  %v11251_v43 = vor.u32 %v15065_v27, %v11248_v28  ;;  %v16927_v24 = vadd.f32 %v4595_v9, %v4583_v10 }
 0x3ef   : > { %4851 = vmatpush.bf16.msrb.mxu3 %v11283_v18  ;;  %v11664_v39 = vld [vmem:[#allocation13 + $0x9a8] sm:$0xf0]  ;;  %4827 = vmatpush.bf16.msrb.mxu1 %v10707_v35  ;;  %v4608_v28 = vpop.f32.mrf.mxu0 }
 0x3f0   : > { %v15233_v41 = vld [vmem:[#allocation13 + $0xb8c] sm:$0xf]  ;;  %v11667_v56 = vor.u32 %v15169_v12, %v11664_v39  ;;  %4815 = vmatmul.bf16.vlgmr.msrb.gmra.mxu0 %v16877_v30  ;;  %v4609_v34 = vadd.f32 %v4608_v28, %v1920_v16 }
 0x3f1   : > { %v11920_v44 = vld [vmem:[#allocation13 + $0xba8] sm:$0xf0]  ;;  %4859 = vmatpush.bf16.msra.mxu0 %v11699_v38  ;;  %4839 = vmatpush.bf16.msrb.mxu2 %v10995_v42 }
 0x3f2   : > { %v14993_v45 = vld [vmem:[#allocation13 + $0x40c] sm:$0xf]  ;;  %v11923_v59 = vor.u32 %v15233_v41, %v11920_v44  ;;  %4828 = vmatmul.bf16.vlgmr.msrb.gmra.mxu1 %v16879_v31 }
 0x3f3   : > { %v10960_v46 = vld [vmem:[#allocation13 + $0x428] sm:$0xf0]  ;;  %4872 = vmatpush.bf16.msra.mxu1 %v11955_v40  ;;  %4852 = vmatpush.bf16.msrb.mxu3 %v11251_v43  ;;  %v4622_v43 = vadd.f32 %v4621_v33, %v4609_v34  ;;  %v10678_v33 = vld [vmem:[#allocation13 + $0x1d0] sm:$0xf] }
 0x3f4   : > { %v15057_v47 = vld [vmem:[#allocation13 + $0x60c] sm:$0xf]  ;;  %v10963_v60 = vor.u32 %v14993_v45, %v10960_v46  ;;  %v14926_v34 = vld [vmem:[#allocation13 + $0x1ec] sm:$0xf0] }
 0x3f5   : > { %v11216_v48 = vld [vmem:[#allocation13 + $0x628] sm:$0xf0]  ;;  %4860 = vmatpush.bf16.msra.mxu0 %v11667_v56 }
 0x3f6   : > { %v15305_v49 = vld [vmem:[#allocation13 + $0xdcc] sm:$0xf]  ;;  %v11219_v63 = vor.u32 %v15057_v47, %v11216_v48  ;;  %4840 = vmatpush.bf16.msrb.mxu2 %v10963_v60  ;;  %v4584_v47 = vpop.f32.mrf.mxu2  ;;  %v4597_v48 = vpop.f32.mrf.mxu3 }
 0x3f7   : > { %v12208_v51 = vld [vmem:[#allocation13 + $0xde8] sm:$0xf0]  ;;  %4873 = vmatpush.bf16.msra.mxu1 %v11923_v59  ;;  %v10902_v47 = vld [vmem:[#allocation13 + $0x390] sm:$0xf] }
 0x3f8   : > { %v15369_v52 = vld [vmem:[#allocation13 + $0xfcc] sm:$0xf]  ;;  %v12211_v13 = vor.u32 %v15305_v49, %v12208_v51  ;;  %4853 = vmatpush.bf16.msrb.mxu3 %v11219_v63 }
 0x3f9   : > { %v12464_v53 = vld [vmem:[#allocation13 + $0xfe8] sm:$0xf0]  ;;  %4841 = vmatmul.bf16.vlgmr.msrb.gmra.mxu2 %v16883_v57 }
 0x3fa   : > { %v15161_v0 = vld [vmem:[#allocation13 + $0x94c] sm:$0xf]  ;;  %v12467_v14 = vor.u32 %v15369_v52, %v12464_v53  ;;  %4885 = vmatpush.bf16.msra.mxu2 %v12211_v13  ;;  %v4610_v13 = vpop.f32.mrf.mxu0 }
 0x3fb   : > { %v11632_v1 = vld [vmem:[#allocation13 + $0x968] sm:$0xf0]  ;;  %4854 = vmatmul.bf16.vlgmr.msrb.gmra.mxu3 %v16885_v58 }
 0x3fc   : > { %v15225_v2 = vld [vmem:[#allocation13 + $0xb4c] sm:$0xf]  ;;  %v11635_v11 = vor.u32 %v15161_v0, %v11632_v1  ;;  %4898 = vmatpush.bf16.msra.mxu3 %v12467_v14  ;;  %v4623_v14 = vpop.f32.mrf.mxu1 }
 0x3fd   : > { %v11888_v3 = vld [vmem:[#allocation13 + $0xb68] sm:$0xf0] }
 0x3fe   : > { %v15297_v4 = vld [vmem:[#allocation13 + $0xd8c] sm:$0xf]  ;;  %v11891_v15 = vor.u32 %v15225_v2, %v11888_v3  ;;  %4861 = vmatpush.bf16.msra.mxu0 %v11635_v11 }
 0x3ff   : > { %v12176_v5 = vld [vmem:[#allocation13 + $0xda8] sm:$0xf0] }
 0x400   : > { %v15361_v6 = vld [vmem:[#allocation13 + $0xf8c] sm:$0xf]  ;;  %v12179_v19 = vor.u32 %v15297_v4, %v12176_v5  ;;  %4874 = vmatpush.bf16.msra.mxu1 %v11891_v15 }
 0x401   : > { %v12432_v7 = vld [vmem:[#allocation13 + $0xfa8] sm:$0xf0] }
 0x402   : > { %v15153_v17 = vld [vmem:[#allocation13 + $0x90c] sm:$0xf]  ;;  %v12435_v20 = vor.u32 %v15361_v6, %v12432_v7  ;;  %4886 = vmatpush.bf16.msra.mxu2 %v12179_v19 }
 0x403   : > { %v11600_v18 = vld [vmem:[#allocation13 + $0x928] sm:$0xf0] }
 0x404   : > { %v15217_v21 = vld [vmem:[#allocation13 + $0xb0c] sm:$0xf]  ;;  %v11603_v35 = vor.u32 %v15153_v17, %v11600_v18  ;;  %4899 = vmatpush.bf16.msra.mxu3 %v12435_v20  ;;  %v4634_v17 = vpop.f32.mrf.mxu2  ;;  %v4647_v18 = vpop.f32.mrf.mxu3 }
 0x405   : > { %v11856_v22 = vld [vmem:[#allocation13 + $0xb28] sm:$0xf0] }
 0x406   : > { %v15289_v23 = vld [vmem:[#allocation13 + $0xd4c] sm:$0xf]  ;;  %v11859_v36 = vor.u32 %v15217_v21, %v11856_v22  ;;  %4862 = vmatpush.bf16.msra.mxu0 %v11603_v35  ;;  %v10934_v35 = vld [vmem:[#allocation13 + $0x3d0] sm:$0xf] }
 0x407   : > { %v12144_v25 = vld [vmem:[#allocation13 + $0xd68] sm:$0xf0] }
 0x408   : > { %v15353_v26 = vld [vmem:[#allocation13 + $0xf4c] sm:$0xf]  ;;  %v12147_v40 = vor.u32 %v15289_v23, %v12144_v25  ;;  %4875 = vmatpush.bf16.msra.mxu1 %v11859_v36  ;;  %v4635_v25 = vadd.f32 %v4634_v17, %v4622_v43  ;;  %v14990_v36 = vld [vmem:[#allocation13 + $0x3ec] sm:$0xf0]  ;;  %v10679_v43 = vor.u32 %v14926_v34, %v10678_v33 }
 0x409   : > { %v12400_v27 = vld [vmem:[#allocation13 + $0xf68] sm:$0xf0]  ;;  %v15038_v33 = vld [vmem:[#allocation13 + $0x56c] sm:$0xf0] }
 0x40a   : > { %v15145_v37 = vld [vmem:[#allocation13 + $0x8cc] sm:$0xf]  ;;  %v12403_v12 = vor.u32 %v15353_v26, %v12400_v27  ;;  %4887 = vmatpush.bf16.msra.mxu2 %v12147_v40  ;;  %v11382_v34 = vld [vmem:[#allocation13 + $0x750] sm:$0xf] }
 0x40b   : > { %v11568_v38 = vld [vmem:[#allocation13 + $0x8e8] sm:$0xf0] }
 0x40c   : > { %v15209_v39 = vld [vmem:[#allocation13 + $0xacc] sm:$0xf]  ;;  %v11571_v49 = vor.u32 %v15145_v37, %v11568_v38  ;;  %4900 = vmatpush.bf16.msra.mxu3 %v12403_v12  ;;  %v16931_v38 = vadd.f32 %v4647_v18, %v4635_v25  ;;  %v14966_v25 = vld [vmem:[#allocation13 + $0x32c] sm:$0xf0] }
 0x40d   : > { %v11824_v41 = vld [vmem:[#allocation13 + $0xae8] sm:$0xf0] }
 0x40e   : > { %v15281_v42 = vld [vmem:[#allocation13 + $0xd0c] sm:$0xf]  ;;  %v11827_v51 = vor.u32 %v15209_v39, %v11824_v41  ;;  %4863 = vmatpush.bf16.msra.mxu0 %v11571_v49 }
 0x40f   : > { %v12112_v44 = vld [vmem:[#allocation13 + $0xd28] sm:$0xf0] }
 0x410   : > { %v15345_v45 = vld [vmem:[#allocation13 + $0xf0c] sm:$0xf]  ;;  %v12115_v54 = vor.u32 %v15281_v42, %v12112_v44  ;;  %4876 = vmatpush.bf16.msra.mxu1 %v11827_v51  ;;  %v10935_v44 = vor.u32 %v14990_v36, %v10934_v35  ;;  %v14982_v51 = vld [vmem:[#allocation13 + $0x3ac] sm:$0xf0] }
 0x411   : > { %v12368_v46 = vld [vmem:[#allocation13 + $0xf28] sm:$0xf0]  ;;  %v10903_v14 = vor.u32 %v14982_v51, %v10902_v47  ;;  %v15102_v35 = vld [vmem:[#allocation13 + $0x76c] sm:$0xf0] }
 0x412   : > { %v15137_v52 = vld [vmem:[#allocation13 + $0x88c] sm:$0xf]  ;;  %v12371_v55 = vor.u32 %v15345_v45, %v12368_v46  ;;  %4888 = vmatpush.bf16.msra.mxu2 %v12115_v54  ;;  %v10646_v45 = vld [vmem:[#allocation13 + $0x190] sm:$0xf] }
 0x413   : > { %v11536_v53 = vld [vmem:[#allocation13 + $0x8a8] sm:$0xf0]  ;;  %v14918_v46 = vld [vmem:[#allocation13 + $0x1ac] sm:$0xf0] }
 0x414   : > { %v15201_v56 = vld [vmem:[#allocation13 + $0xa8c] sm:$0xf]  ;;  %v11539_v2 = vor.u32 %v15137_v52, %v11536_v53  ;;  %4901 = vmatpush.bf16.msra.mxu3 %v12371_v55  ;;  %v10647_v13 = vor.u32 %v14918_v46, %v10646_v45  ;;  %v14958_v45 = vld [vmem:[#allocation13 + $0x2ec] sm:$0xf0] }
 0x415   : > { %v11792_v59 = vld [vmem:[#allocation13 + $0xaa8] sm:$0xf0]  ;;  %v11094_v46 = vld [vmem:[#allocation13 + $0x510] sm:$0xf] }
 0x416   : > { %v15273_v60 = vld [vmem:[#allocation13 + $0xccc] sm:$0xf]  ;;  %v11795_v3 = vor.u32 %v15201_v56, %v11792_v59  ;;  %4864 = vmatpush.bf16.msra.mxu0 %v11539_v2  ;;  %v11190_v56 = vld [vmem:[#allocation13 + $0x5d0] sm:$0xf]  ;;  %v4636_v59 = vpop.f32.mrf.mxu2 }
 0x417   : > { %v12080_v63 = vld [vmem:[#allocation13 + $0xce8] sm:$0xf0]  ;;  %v15030_v47 = vld [vmem:[#allocation13 + $0x52c] sm:$0xf0] }
 0x418   : > { %v15337_v0 = vld [vmem:[#allocation13 + $0xecc] sm:$0xf]  ;;  %v12083_v6 = vor.u32 %v15273_v60, %v12080_v63  ;;  %4877 = vmatpush.bf16.msra.mxu1 %v11795_v3  ;;  %v4649_v60 = vpop.f32.mrf.mxu3  ;;  %v15054_v63 = vld [vmem:[#allocation13 + $0x5ec] sm:$0xf0] }
 0x419   : > { %v12336_v1 = vld [vmem:[#allocation13 + $0xee8] sm:$0xf0]  ;;  %v14950_v59 = vld [vmem:[#allocation13 + $0x2ac] sm:$0xf0] }
 0x41a   : > { %v15129_v4 = vld [vmem:[#allocation13 + $0x84c] sm:$0xf]  ;;  %v12339_v7 = vor.u32 %v15337_v0, %v12336_v1  ;;  %4889 = vmatpush.bf16.msra.mxu2 %v12083_v6  ;;  %v11446_v0 = vld [vmem:[#allocation13 + $0x7d0] sm:$0xf]  ;;  %v11191_v6 = vor.u32 %v15054_v63, %v11190_v56 }
 0x41b   : > { %v11504_v5 = vld [vmem:[#allocation13 + $0x868] sm:$0xf0]  ;;  %v15118_v1 = vld [vmem:[#allocation13 + $0x7ec] sm:$0xf0] }
 0x41c   : > { %v15193_v8 = vld [vmem:[#allocation13 + $0xa4c] sm:$0xf]  ;;  %v11507_v19 = vor.u32 %v15129_v4, %v11504_v5  ;;  %4902 = vmatpush.bf16.msra.mxu3 %v12339_v7  ;;  %v10614_v4 = vld [vmem:[#allocation13 + $0x150] sm:$0xf]  ;;  %v11447_v7 = vor.u32 %v15118_v1, %v11446_v0 }
 0x41d   : > { %v11760_v9 = vld [vmem:[#allocation13 + $0xa68] sm:$0xf0]  ;;  %v14910_v5 = vld [vmem:[#allocation13 + $0x16c] sm:$0xf0] }
 0x41e   : > { %v15265_v10 = vld [vmem:[#allocation13 + $0xc8c] sm:$0xf]  ;;  %v11763_v20 = vor.u32 %v15193_v8, %v11760_v9  ;;  %4865 = vmatpush.bf16.msra.mxu0 %v11507_v19  ;;  %v10870_v8 = vld [vmem:[#allocation13 + $0x350] sm:$0xf]  ;;  %v10615_v17 = vor.u32 %v14910_v5, %v10614_v4 }
 0x41f   : > { %v12048_v11 = vld [vmem:[#allocation13 + $0xca8] sm:$0xf0]  ;;  %v14974_v9 = vld [vmem:[#allocation13 + $0x36c] sm:$0xf0] }
 0x420   : > { %v15329_v15 = vld [vmem:[#allocation13 + $0xe8c] sm:$0xf]  ;;  %v12051_v26 = vor.u32 %v15265_v10, %v12048_v11  ;;  %4878 = vmatpush.bf16.msra.mxu1 %v11763_v20  ;;  %v11158_v10 = vld [vmem:[#allocation13 + $0x590] sm:$0xf]  ;;  %v10871_v18 = vor.u32 %v14974_v9, %v10870_v8 }
 0x421   : > { %v12304_v16 = vld [vmem:[#allocation13 + $0xea8] sm:$0xf0]  ;;  %v15046_v11 = vld [vmem:[#allocation13 + $0x5ac] sm:$0xf0] }
 0x422   : > { %v15121_v21 = vld [vmem:[#allocation13 + $0x80c] sm:$0xf]  ;;  %v12307_v27 = vor.u32 %v15329_v15, %v12304_v16  ;;  %4890 = vmatpush.bf16.msra.mxu2 %v12051_v26  ;;  %v11414_v15 = vld [vmem:[#allocation13 + $0x790] sm:$0xf] }
 0x423   : > { %v11472_v22 = vld [vmem:[#allocation13 + $0x828] sm:$0xf0]  ;;  %v15110_v16 = vld [vmem:[#allocation13 + $0x7ac] sm:$0xf0] }
 0x424   : > { %v15185_v23 = vld [vmem:[#allocation13 + $0xa0c] sm:$0xf]  ;;  %v11475_v41 = vor.u32 %v15121_v21, %v11472_v22  ;;  %4903 = vmatpush.bf16.msra.mxu3 %v12307_v27  ;;  %v10582_v19 = vld [vmem:[#allocation13 + $0x110] sm:$0xf]  ;;  %v11159_v21 = vor.u32 %v15046_v11, %v11158_v10  ;;  %v11415_v22 = vor.u32 %v15110_v16, %v11414_v15  ;;  %v4660_v27 = vpop.f32.mrf.mxu0  ;;  %v4686_v11 = vpop.f32.mrf.mxu2 }
 0x425   : > { %v11728_v28 = vld [vmem:[#allocation13 + $0xa28] sm:$0xf0]  ;;  %v14902_v20 = vld [vmem:[#allocation13 + $0x12c] sm:$0xf0]  ;;  %v4661_v36 = vadd.f32 %v4660_v27, %v16931_v38  ;;  %v4699_v15 = vpop.f32.mrf.mxu3 }
 0x426   : > { %v15257_v37 = vld [vmem:[#allocation13 + $0xc4c] sm:$0xf]  ;;  %v11731_v42 = vor.u32 %v15185_v23, %v11728_v28  ;;  %4866 = vmatpush.bf16.msra.mxu0 %v11475_v41  ;;  %v10838_v23 = vld [vmem:[#allocation13 + $0x310] sm:$0xf]  ;;  %v4673_v28 = vpop.f32.mrf.mxu1 }
 0x427   : > { %v12016_v40 = vld [vmem:[#allocation13 + $0xc68] sm:$0xf0]  ;;  %v11126_v26 = vld [vmem:[#allocation13 + $0x550] sm:$0xf]  ;;  %v4674_v41 = vadd.f32 %v4673_v28, %v4661_v36 }
 0x428   : > { %v15321_v12 = vld [vmem:[#allocation13 + $0xe4c] sm:$0xf]  ;;  %v12019_v48 = vor.u32 %v15257_v37, %v12016_v40  ;;  %4879 = vmatpush.bf16.msra.mxu1 %v11731_v42  ;;  %v10583_v37 = vor.u32 %v14902_v20, %v10582_v19  ;;  %v10839_v40 = vor.u32 %v14966_v25, %v10838_v23  ;;  %v11127_v42 = vor.u32 %v15038_v33, %v11126_v26  ;;  %v10774_v56 = vld [vmem:[#allocation13 + $0x290] sm:$0xf] }
 0x429   : > { %v12272_v39 = vld [vmem:[#allocation13 + $0xe68] sm:$0xf0]  ;;  %4867 = vmatmul.bf16.vlgmr.msra.gmra.mxu0 %v16891_v29  ;;  %v11062_v60 = vld [vmem:[#allocation13 + $0x4d0] sm:$0xf]  ;;  %v4687_v19 = vadd.f32 %v4686_v11, %v4674_v41 }
 0x42a   : > { %v12275_v49 = vor.u32 %v15321_v12, %v12272_v39  ;;  %v15249_v52 = vld [vmem:[#allocation13 + $0xc0c] sm:$0xf]  ;;  %4911 = vmatpush.bf16.msrb.mxu0 %v10679_v43  ;;  %4891 = vmatpush.bf16.msra.mxu2 %v12019_v48  ;;  %v10550_v12 = vld [vmem:[#allocation13 + $0xd0] sm:$0xf]  ;;  %v11383_v43 = vor.u32 %v15102_v35, %v11382_v34 }
 0x42b   : > { %v11984_v53 = vld [vmem:[#allocation13 + $0xc28] sm:$0xf0]  ;;  %4880 = vmatmul.bf16.vlgmr.msra.gmra.mxu1 %v16893_v32  ;;  %v14894_v39 = vld [vmem:[#allocation13 + $0xec] sm:$0xf0]  ;;  %v16938_v26 = vadd.f32 %v4699_v15, %v4687_v19 }
 0x42c   : > { %v15313_v54 = vld [vmem:[#allocation13 + $0xe0c] sm:$0xf]  ;;  %4924 = vmatpush.bf16.msrb.mxu1 %v10935_v44  ;;  %4904 = vmatpush.bf16.msra.mxu3 %v12275_v49  ;;  %v11987_v2 = vor.u32 %v15249_v52, %v11984_v53  ;;  %v10806_v44 = vld [vmem:[#allocation13 + $0x2d0] sm:$0xf]  ;;  %v10551_v38 = vor.u32 %v14894_v39, %v10550_v12  ;;  %v4662_v63 = vpop.f32.mrf.mxu0 }
 0x42d   : > { %v12240_v55 = vld [vmem:[#allocation13 + $0xe28] sm:$0xf0]  ;;  %v11350_v48 = vld [vmem:[#allocation13 + $0x710] sm:$0xf]  ;;  %v10807_v51 = vor.u32 %v14958_v45, %v10806_v44 }
 0x42e   : > { %v12243_v3 = vor.u32 %v15313_v54, %v12240_v55  ;;  %4912 = vmatpush.bf16.msrb.mxu0 %v10647_v13  ;;  %4892 = vmatpush.bf16.msra.mxu2 %v11987_v2  ;;  %v15094_v49 = vld [vmem:[#allocation13 + $0x72c] sm:$0xf0]  ;;  %v11095_v54 = vor.u32 %v15030_v47, %v11094_v46  ;;  %v4675_v0 = vpop.f32.mrf.mxu1 }
 0x42f   : > { %v10518_v52 = vld [vmem:[#allocation13 + $0x90] sm:$0xf]  ;;  %v11351_v55 = vor.u32 %v15094_v49, %v11350_v48 }
 0x430   : > { %4925 = vmatpush.bf16.msrb.mxu1 %v10903_v14  ;;  %4905 = vmatpush.bf16.msra.mxu3 %v12243_v3  ;;  %v14886_v53 = vld [vmem:[#allocation13 + $0xac] sm:$0xf0]  ;;  %v10775_v3 = vor.u32 %v14950_v59, %v10774_v56 }
 0x431   : > { %4893 = vmatmul.bf16.vlgmr.msra.gmra.mxu2 %v16899_v61  ;;  %v15022_v1 = vld [vmem:[#allocation13 + $0x4ec] sm:$0xf0]  ;;  %v10519_v2 = vor.u32 %v14886_v53, %v10518_v52  ;;  %v4701_v52 = vpop.f32.mrf.mxu3 }
 0x432   : > { %4937 = vmatpush.bf16.msrb.mxu2 %v11191_v6  ;;  %4913 = vmatpush.bf16.msrb.mxu0 %v10615_v17  ;;  %v11318_v13 = vld [vmem:[#allocation13 + $0x6d0] sm:$0xf]  ;;  %v11063_v6 = vor.u32 %v15022_v1, %v11062_v60 }
 0x433   : > { %4906 = vmatmul.bf16.vlgmr.msra.gmra.mxu3 %v16901_v62  ;;  %v15086_v14 = vld [vmem:[#allocation13 + $0x6ec] sm:$0xf0] }
 0x434   : > { %4950 = vmatpush.bf16.msrb.mxu3 %v11447_v7  ;;  %4926 = vmatpush.bf16.msrb.mxu1 %v10871_v18  ;;  %v10486_v4 = vld [vmem:[#allocation13 + $0x50] sm:$0xf]  ;;  %v11319_v7 = vor.u32 %v15086_v14, %v11318_v13 }
 0x435   : > { %v14878_v5 = vld [vmem:[#allocation13 + $0x6c] sm:$0xf0] }
 0x436   : > { %4938 = vmatpush.bf16.msrb.mxu2 %v11159_v21  ;;  %4914 = vmatpush.bf16.msrb.mxu0 %v10583_v37  ;;  %v10742_v8 = vld [vmem:[#allocation13 + $0x250] sm:$0xf]  ;;  %v10487_v20 = vor.u32 %v14878_v5, %v10486_v4 }
 0x437   : > { %v14942_v9 = vld [vmem:[#allocation13 + $0x26c] sm:$0xf0] }
 0x438   : > { %4951 = vmatpush.bf16.msrb.mxu3 %v11415_v22  ;;  %4927 = vmatpush.bf16.msrb.mxu1 %v10839_v40  ;;  %v11030_v10 = vld [vmem:[#allocation13 + $0x490] sm:$0xf]  ;;  %v10743_v21 = vor.u32 %v14942_v9, %v10742_v8 }
 0x439   : > { %v15014_v16 = vld [vmem:[#allocation13 + $0x4ac] sm:$0xf0] }
 0x43a   : > { %4939 = vmatpush.bf16.msrb.mxu2 %v11127_v42  ;;  %4915 = vmatpush.bf16.msrb.mxu0 %v10551_v38  ;;  %v11286_v17 = vld [vmem:[#allocation13 + $0x690] sm:$0xf]  ;;  %v11031_v27 = vor.u32 %v15014_v16, %v11030_v10 }
 0x43b   : > { %v15078_v18 = vld [vmem:[#allocation13 + $0x6ac] sm:$0xf0] }
 0x43c   : > { %4952 = vmatpush.bf16.msrb.mxu3 %v11383_v43  ;;  %4928 = vmatpush.bf16.msrb.mxu1 %v10807_v51  ;;  %v10454_v22 = vld [vmem:[#allocation13 + $0x10] sm:$0xf]  ;;  %v11287_v28 = vor.u32 %v15078_v18, %v11286_v17  ;;  %v4688_v51 = vpop.f32.mrf.mxu2  ;;  %v1921_v17 = vperm.slane %v16917_v50, 2 }
 0x43d   : > { %v14870_v23 = vld [vmem:[#allocation13 + $0x2c] sm:$0xf0] }
 0x43e   : > { %4940 = vmatpush.bf16.msrb.mxu2 %v11095_v54  ;;  %4916 = vmatpush.bf16.msrb.mxu0 %v10519_v2  ;;  %v10710_v25 = vld [vmem:[#allocation13 + $0x210] sm:$0xf]  ;;  %v10455_v42 = vor.u32 %v14870_v23, %v10454_v22 }
 0x43f   : > { %v14934_v33 = vld [vmem:[#allocation13 + $0x22c] sm:$0xf0] }
 0x440   : > { %4953 = vmatpush.bf16.msrb.mxu3 %v11351_v55  ;;  %4929 = vmatpush.bf16.msrb.mxu1 %v10775_v3  ;;  %v11702_v34 = vld [vmem:[#allocation13 + $0x9d0] sm:$0xf]  ;;  %v10711_v43 = vor.u32 %v14934_v33, %v10710_v25  ;;  %v4712_v33 = vpop.f32.mrf.mxu0 }
 0x441   : > { %v15182_v35 = vld [vmem:[#allocation13 + $0x9ec] sm:$0xf0]  ;;  %v4713_v50 = vadd.f32 %v4712_v33, %v1921_v17 }
 0x442   : > { %4941 = vmatpush.bf16.msrb.mxu2 %v11063_v6  ;;  %v11958_v36 = vld [vmem:[#allocation13 + $0xbd0] sm:$0xf]  ;;  %4917 = vmatpush.bf16.msrb.mxu0 %v10487_v20  ;;  %v11703_v44 = vor.u32 %v15182_v35, %v11702_v34  ;;  %v4725_v34 = vpop.f32.mrf.mxu1 }
 0x443   : > { %v15246_v37 = vld [vmem:[#allocation13 + $0xbec] sm:$0xf0] }
 0x444   : > { %4954 = vmatpush.bf16.msrb.mxu3 %v11319_v7  ;;  %v10998_v40 = vld [vmem:[#allocation13 + $0x450] sm:$0xf]  ;;  %4930 = vmatpush.bf16.msrb.mxu1 %v10743_v21  ;;  %v11959_v45 = vor.u32 %v15246_v37, %v11958_v36 }
 0x445   : > { %v15006_v12 = vld [vmem:[#allocation13 + $0x46c] sm:$0xf0] }
 0x446   : > { %v11254_v39 = vld [vmem:[#allocation13 + $0x650] sm:$0xf]  ;;  %4942 = vmatpush.bf16.msrb.mxu2 %v11031_v27  ;;  %v10999_v49 = vor.u32 %v15006_v12, %v10998_v40  ;;  %4918 = vmatpush.bf16.msrb.mxu0 %v10455_v42  ;;  %v4726_v42 = vadd.f32 %v4725_v34, %v4713_v50  ;;  %v14986_v50 = vld [vmem:[#allocation13 + $0x3d4] sm:$0xf] }
 0x447   : > { %v15070_v41 = vld [vmem:[#allocation13 + $0x66c] sm:$0xf0] }
 0x448   : > { %4955 = vmatpush.bf16.msrb.mxu3 %v11287_v28  ;;  %v11670_v46 = vld [vmem:[#allocation13 + $0x990] sm:$0xf]  ;;  %v11255_v38 = vor.u32 %v15070_v41, %v11254_v39  ;;  %4931 = vmatpush.bf16.msrb.mxu1 %v10711_v43 }
 0x449   : > { %v15174_v47 = vld [vmem:[#allocation13 + $0x9ac] sm:$0xf0]  ;;  %4919 = vmatmul.bf16.vlgmr.msrb.gmra.mxu0 %v16877_v30 }
 0x44a   : > { %v11926_v48 = vld [vmem:[#allocation13 + $0xb90] sm:$0xf]  ;;  %4963 = vmatpush.bf16.msra.mxu0 %v11703_v44  ;;  %v11671_v13 = vor.u32 %v15174_v47, %v11670_v46  ;;  %4943 = vmatpush.bf16.msrb.mxu2 %v10999_v49 }
 0x44b   : > { %v15238_v53 = vld [vmem:[#allocation13 + $0xbac] sm:$0xf0]  ;;  %4932 = vmatmul.bf16.vlgmr.msrb.gmra.mxu1 %v16879_v31 }
 0x44c   : > { %v10966_v54 = vld [vmem:[#allocation13 + $0x410] sm:$0xf]  ;;  %4976 = vmatpush.bf16.msra.mxu1 %v11959_v45  ;;  %v11927_v14 = vor.u32 %v15238_v53, %v11926_v48  ;;  %4956 = vmatpush.bf16.msrb.mxu3 %v11255_v38 }
 0x44d   : > { %v14998_v55 = vld [vmem:[#allocation13 + $0x42c] sm:$0xf0] }
 0x44e   : > { %v11222_v56 = vld [vmem:[#allocation13 + $0x610] sm:$0xf]  ;;  %v10967_v2 = vor.u32 %v14998_v55, %v10966_v54  ;;  %4964 = vmatpush.bf16.msra.mxu0 %v11671_v13 }
 0x44f   : > { %v15062_v59 = vld [vmem:[#allocation13 + $0x62c] sm:$0xf0] }
 0x450   : > { %v12214_v60 = vld [vmem:[#allocation13 + $0xdd0] sm:$0xf]  ;;  %v11223_v3 = vor.u32 %v15062_v59, %v11222_v56  ;;  %4977 = vmatpush.bf16.msra.mxu1 %v11927_v14  ;;  %4944 = vmatpush.bf16.msrb.mxu2 %v10967_v2 }
 0x451   : > { %v15310_v63 = vld [vmem:[#allocation13 + $0xdec] sm:$0xf0] }
 0x452   : > { %v12470_v0 = vld [vmem:[#allocation13 + $0xfd0] sm:$0xf]  ;;  %v12215_v6 = vor.u32 %v15310_v63, %v12214_v60  ;;  %4957 = vmatpush.bf16.msrb.mxu3 %v11223_v3 }
 0x453   : > { %v15374_v1 = vld [vmem:[#allocation13 + $0xfec] sm:$0xf0]  ;;  %4945 = vmatmul.bf16.vlgmr.msrb.gmra.mxu2 %v16883_v57 }
 0x454   : > { %v11638_v4 = vld [vmem:[#allocation13 + $0x950] sm:$0xf]  ;;  %v12471_v7 = vor.u32 %v15374_v1, %v12470_v0  ;;  %4989 = vmatpush.bf16.msra.mxu2 %v12215_v6  ;;  %v4714_v0 = vpop.f32.mrf.mxu0  ;;  %v4727_v1 = vpop.f32.mrf.mxu1 }
 0x455   : > { %v15166_v5 = vld [vmem:[#allocation13 + $0x96c] sm:$0xf0]  ;;  %4958 = vmatmul.bf16.vlgmr.msrb.gmra.mxu3 %v16885_v58  ;;  %v11192_v0 = vld [vmem:[#allocation13 + $0x5f0] sm:$0xf0] }
 0x456   : > { %v11894_v8 = vld [vmem:[#allocation13 + $0xb50] sm:$0xf]  ;;  %v11639_v18 = vor.u32 %v15166_v5, %v11638_v4  ;;  %5002 = vmatpush.bf16.msra.mxu3 %v12471_v7  ;;  %v15114_v1 = vld [vmem:[#allocation13 + $0x7d4] sm:$0xf] }
 0x457   : > { %v15230_v9 = vld [vmem:[#allocation13 + $0xb6c] sm:$0xf0] }
 0x458   : > { %v12182_v10 = vld [vmem:[#allocation13 + $0xd90] sm:$0xf]  ;;  %v11895_v19 = vor.u32 %v15230_v9, %v11894_v8  ;;  %4965 = vmatpush.bf16.msra.mxu0 %v11639_v18 }
 0x459   : > { %v15302_v11 = vld [vmem:[#allocation13 + $0xdac] sm:$0xf0] }
 0x45a   : > { %v12438_v15 = vld [vmem:[#allocation13 + $0xf90] sm:$0xf]  ;;  %v12183_v22 = vor.u32 %v15302_v11, %v12182_v10  ;;  %4978 = vmatpush.bf16.msra.mxu1 %v11895_v19 }
 0x45b   : > { %v15366_v16 = vld [vmem:[#allocation13 + $0xfac] sm:$0xf0] }
 0x45c   : > { %v11606_v20 = vld [vmem:[#allocation13 + $0x910] sm:$0xf]  ;;  %v12439_v23 = vor.u32 %v15366_v16, %v12438_v15  ;;  %4990 = vmatpush.bf16.msra.mxu2 %v12183_v22  ;;  %v4738_v15 = vpop.f32.mrf.mxu2  ;;  %v4751_v16 = vpop.f32.mrf.mxu3 }
 0x45d   : > { %v15158_v21 = vld [vmem:[#allocation13 + $0x92c] sm:$0xf0] }
 0x45e   : > { %v11862_v25 = vld [vmem:[#allocation13 + $0xb10] sm:$0xf]  ;;  %v11607_v40 = vor.u32 %v15158_v21, %v11606_v20  ;;  %5003 = vmatpush.bf16.msra.mxu3 %v12439_v23  ;;  %v4739_v20 = vadd.f32 %v4738_v15, %v4726_v42  ;;  %v11160_v15 = vld [vmem:[#allocation13 + $0x5b0] sm:$0xf0] }
 0x45f   : > { %v15222_v27 = vld [vmem:[#allocation13 + $0xb2c] sm:$0xf0] }
 0x460   : > { %v12150_v28 = vld [vmem:[#allocation13 + $0xd50] sm:$0xf]  ;;  %v11863_v12 = vor.u32 %v15222_v27, %v11862_v25  ;;  %4966 = vmatpush.bf16.msra.mxu0 %v11607_v40  ;;  %v10936_v40 = vld [vmem:[#allocation13 + $0x3f0] sm:$0xf0] }
 0x461   : > { %v15294_v35 = vld [vmem:[#allocation13 + $0xd6c] sm:$0xf0] }
 0x462   : > { %v12406_v36 = vld [vmem:[#allocation13 + $0xf50] sm:$0xf]  ;;  %v12151_v43 = vor.u32 %v15294_v35, %v12150_v28  ;;  %4979 = vmatpush.bf16.msra.mxu1 %v11863_v12  ;;  %v16945_v28 = vadd.f32 %v4751_v16, %v4739_v20  ;;  %v15106_v16 = vld [vmem:[#allocation13 + $0x794] sm:$0xf] }
 0x463   : > { %v15358_v37 = vld [vmem:[#allocation13 + $0xf6c] sm:$0xf0]  ;;  %v14898_v20 = vld [vmem:[#allocation13 + $0x114] sm:$0xf] }
 0x464   : > { %v11574_v39 = vld [vmem:[#allocation13 + $0x8d0] sm:$0xf]  ;;  %v12407_v44 = vor.u32 %v15358_v37, %v12406_v36  ;;  %4991 = vmatpush.bf16.msra.mxu2 %v12151_v43  ;;  %v14922_v36 = vld [vmem:[#allocation13 + $0x1d4] sm:$0xf] }
 0x465   : > { %v15150_v41 = vld [vmem:[#allocation13 + $0x8ec] sm:$0xf0]  ;;  %v10680_v37 = vld [vmem:[#allocation13 + $0x1f0] sm:$0xf0] }
 0x466   : > { %v11830_v45 = vld [vmem:[#allocation13 + $0xad0] sm:$0xf]  ;;  %v11575_v51 = vor.u32 %v15150_v41, %v11574_v39  ;;  %5004 = vmatpush.bf16.msra.mxu3 %v12407_v44 }
 0x467   : > { %v15214_v46 = vld [vmem:[#allocation13 + $0xaec] sm:$0xf0] }
 0x468   : > { %v12118_v47 = vld [vmem:[#allocation13 + $0xd10] sm:$0xf]  ;;  %v11831_v52 = vor.u32 %v15214_v46, %v11830_v45  ;;  %4967 = vmatpush.bf16.msra.mxu0 %v11575_v51  ;;  %v10683_v45 = vor.u32 %v14922_v36, %v10680_v37  ;;  %v10939_v46 = vor.u32 %v14986_v50, %v10936_v40  ;;  %v11128_v36 = vld [vmem:[#allocation13 + $0x570] sm:$0xf0] }
 0x469   : > { %v15286_v48 = vld [vmem:[#allocation13 + $0xd2c] sm:$0xf0]  ;;  %v15098_v37 = vld [vmem:[#allocation13 + $0x754] sm:$0xf] }
 0x46a   : > { %v12374_v49 = vld [vmem:[#allocation13 + $0xf10] sm:$0xf]  ;;  %v12119_v55 = vor.u32 %v15286_v48, %v12118_v47  ;;  %4980 = vmatpush.bf16.msra.mxu1 %v11831_v52  ;;  %v14914_v47 = vld [vmem:[#allocation13 + $0x194] sm:$0xf]  ;;  %v4740_v52 = vpop.f32.mrf.mxu2 }
 0x46b   : > { %v15350_v38 = vld [vmem:[#allocation13 + $0xf2c] sm:$0xf0]  ;;  %v10648_v48 = vld [vmem:[#allocation13 + $0x1b0] sm:$0xf0] }
 0x46c   : > { %v11542_v53 = vld [vmem:[#allocation13 + $0x890] sm:$0xf]  ;;  %v12375_v56 = vor.u32 %v15350_v38, %v12374_v49  ;;  %4992 = vmatpush.bf16.msra.mxu2 %v12119_v55  ;;  %v14978_v49 = vld [vmem:[#allocation13 + $0x394] sm:$0xf] }
 0x46d   : > { %v15142_v54 = vld [vmem:[#allocation13 + $0x8ac] sm:$0xf0]  ;;  %v11384_v50 = vld [vmem:[#allocation13 + $0x770] sm:$0xf0] }
 0x46e   : > { %v11798_v59 = vld [vmem:[#allocation13 + $0xa90] sm:$0xf]  ;;  %v11543_v3 = vor.u32 %v15142_v54, %v11542_v53  ;;  %5005 = vmatpush.bf16.msra.mxu3 %v12375_v56  ;;  %v4753_v53 = vpop.f32.mrf.mxu3  ;;  %v10904_v54 = vld [vmem:[#allocation13 + $0x3b0] sm:$0xf0] }
 0x46f   : > { %v15206_v60 = vld [vmem:[#allocation13 + $0xaac] sm:$0xf0]  ;;  %v14882_v53 = vld [vmem:[#allocation13 + $0x94] sm:$0xf] }
 0x470   : > { %v12086_v63 = vld [vmem:[#allocation13 + $0xcd0] sm:$0xf]  ;;  %v11799_v4 = vor.u32 %v15206_v60, %v11798_v59  ;;  %4968 = vmatpush.bf16.msra.mxu0 %v11543_v3 }
 0x471   : > { %v15278_v13 = vld [vmem:[#allocation13 + $0xcec] sm:$0xf0] }
 0x472   : > { %v12342_v14 = vld [vmem:[#allocation13 + $0xed0] sm:$0xf]  ;;  %v12087_v7 = vor.u32 %v15278_v13, %v12086_v63  ;;  %4981 = vmatpush.bf16.msra.mxu1 %v11799_v4  ;;  %v15050_v63 = vld [vmem:[#allocation13 + $0x5d4] sm:$0xf] }
 0x473   : > { %v15342_v2 = vld [vmem:[#allocation13 + $0xeec] sm:$0xf0]  ;;  %v11448_v13 = vld [vmem:[#allocation13 + $0x7f0] sm:$0xf0] }
 0x474   : > { %v11510_v5 = vld [vmem:[#allocation13 + $0x850] sm:$0xf]  ;;  %v12343_v8 = vor.u32 %v15342_v2, %v12342_v14  ;;  %4993 = vmatpush.bf16.msra.mxu2 %v12087_v7  ;;  %v10651_v14 = vor.u32 %v14914_v47, %v10648_v48  ;;  %v10907_v2 = vor.u32 %v14978_v49, %v10904_v54  ;;  %v11195_v7 = vor.u32 %v15050_v63, %v11192_v0  ;;  %v10808_v47 = vld [vmem:[#allocation13 + $0x2f0] sm:$0xf0] }
 0x475   : > { %v15134_v6 = vld [vmem:[#allocation13 + $0x86c] sm:$0xf0]  ;;  %v15026_v48 = vld [vmem:[#allocation13 + $0x514] sm:$0xf] }
 0x476   : > { %v11766_v9 = vld [vmem:[#allocation13 + $0xa50] sm:$0xf]  ;;  %v11511_v21 = vor.u32 %v15134_v6, %v11510_v5  ;;  %5006 = vmatpush.bf16.msra.mxu3 %v12343_v8  ;;  %v14906_v5 = vld [vmem:[#allocation13 + $0x154] sm:$0xf]  ;;  %v11451_v8 = vor.u32 %v15114_v1, %v11448_v13 }
 0x477   : > { %v15198_v10 = vld [vmem:[#allocation13 + $0xa6c] sm:$0xf0]  ;;  %v10616_v6 = vld [vmem:[#allocation13 + $0x170] sm:$0xf0] }
 0x478   : > { %v12054_v11 = vld [vmem:[#allocation13 + $0xc90] sm:$0xf]  ;;  %v11767_v22 = vor.u32 %v15198_v10, %v11766_v9  ;;  %4969 = vmatpush.bf16.msra.mxu0 %v11511_v21  ;;  %v14970_v9 = vld [vmem:[#allocation13 + $0x354] sm:$0xf] }
 0x479   : > { %v15270_v17 = vld [vmem:[#allocation13 + $0xcac] sm:$0xf0]  ;;  %v10872_v10 = vld [vmem:[#allocation13 + $0x370] sm:$0xf0] }
 0x47a   : > { %v12310_v18 = vld [vmem:[#allocation13 + $0xe90] sm:$0xf]  ;;  %v12055_v33 = vor.u32 %v15270_v17, %v12054_v11  ;;  %4982 = vmatpush.bf16.msra.mxu1 %v11767_v22  ;;  %v15042_v11 = vld [vmem:[#allocation13 + $0x594] sm:$0xf] }
 0x47b   : > { %v15334_v19 = vld [vmem:[#allocation13 + $0xeac] sm:$0xf0]  ;;  %v11416_v17 = vld [vmem:[#allocation13 + $0x7b0] sm:$0xf0]  ;;  %v11163_v22 = vor.u32 %v15042_v11, %v11160_v15  ;;  %v4790_v15 = vpop.f32.mrf.mxu2 }
 0x47c   : > { %v11478_v23 = vld [vmem:[#allocation13 + $0x810] sm:$0xf]  ;;  %v12311_v34 = vor.u32 %v15334_v19, %v12310_v18  ;;  %4994 = vmatpush.bf16.msra.mxu2 %v12055_v33  ;;  %v10619_v18 = vor.u32 %v14906_v5, %v10616_v6  ;;  %v10875_v19 = vor.u32 %v14970_v9, %v10872_v10  ;;  %v10584_v21 = vld [vmem:[#allocation13 + $0x130] sm:$0xf0] }
 0x47d   : > { %v15126_v25 = vld [vmem:[#allocation13 + $0x82c] sm:$0xf0]  ;;  %v15034_v33 = vld [vmem:[#allocation13 + $0x554] sm:$0xf] }
 0x47e   : > { %v11734_v27 = vld [vmem:[#allocation13 + $0xa10] sm:$0xf]  ;;  %v11479_v43 = vor.u32 %v15126_v25, %v11478_v23  ;;  %5007 = vmatpush.bf16.msra.mxu3 %v12311_v34  ;;  %v11419_v23 = vor.u32 %v15106_v16, %v11416_v17  ;;  %v14962_v25 = vld [vmem:[#allocation13 + $0x314] sm:$0xf]  ;;  %v4764_v34 = vpop.f32.mrf.mxu0  ;;  %v4803_v16 = vpop.f32.mrf.mxu3 }
 0x47f   : > { %v15190_v35 = vld [vmem:[#allocation13 + $0xa2c] sm:$0xf0]  ;;  %v4765_v40 = vadd.f32 %v4764_v34, %v16945_v28  ;;  %v11096_v49 = vld [vmem:[#allocation13 + $0x530] sm:$0xf0] }
 0x480   : > { %v12022_v12 = vld [vmem:[#allocation13 + $0xc50] sm:$0xf]  ;;  %v11735_v44 = vor.u32 %v15190_v35, %v11734_v27  ;;  %4970 = vmatpush.bf16.msra.mxu0 %v11479_v43  ;;  %v10840_v27 = vld [vmem:[#allocation13 + $0x330] sm:$0xf0]  ;;  %v4777_v35 = vpop.f32.mrf.mxu1 }
 0x481   : > { %v15262_v39 = vld [vmem:[#allocation13 + $0xc6c] sm:$0xf0]  ;;  %v4778_v43 = vadd.f32 %v4777_v35, %v4765_v40  ;;  %v10520_v54 = vld [vmem:[#allocation13 + $0xb0] sm:$0xf0] }
 0x482   : > { %v12278_v41 = vld [vmem:[#allocation13 + $0xe50] sm:$0xf]  ;;  %v12023_v38 = vor.u32 %v15262_v39, %v12022_v12  ;;  %4983 = vmatpush.bf16.msra.mxu1 %v11735_v44  ;;  %v10587_v12 = vor.u32 %v14898_v20, %v10584_v21  ;;  %v10843_v39 = vor.u32 %v14962_v25, %v10840_v27  ;;  %v11131_v44 = vor.u32 %v15034_v33, %v11128_v36  ;;  %v15018_v63 = vld [vmem:[#allocation13 + $0x4d4] sm:$0xf] }
 0x483   : > { %v15326_v42 = vld [vmem:[#allocation13 + $0xe6c] sm:$0xf0]  ;;  %4971 = vmatmul.bf16.vlgmr.msra.gmra.mxu0 %v16891_v29  ;;  %v11064_v13 = vld [vmem:[#allocation13 + $0x4f0] sm:$0xf0]  ;;  %v4791_v20 = vadd.f32 %v4790_v15, %v4778_v43 }
 0x484   : > { %v12279_v51 = vor.u32 %v15326_v42, %v12278_v41  ;;  %v11990_v55 = vld [vmem:[#allocation13 + $0xc10] sm:$0xf]  ;;  %5015 = vmatpush.bf16.msrb.mxu0 %v10683_v45  ;;  %4995 = vmatpush.bf16.msra.mxu2 %v12023_v38  ;;  %v14890_v41 = vld [vmem:[#allocation13 + $0xd4] sm:$0xf]  ;;  %v11387_v45 = vor.u32 %v15098_v37, %v11384_v50 }
 0x485   : > { %v15254_v56 = vld [vmem:[#allocation13 + $0xc2c] sm:$0xf0]  ;;  %4984 = vmatmul.bf16.vlgmr.msra.gmra.mxu1 %v16893_v32  ;;  %v10552_v42 = vld [vmem:[#allocation13 + $0xf0] sm:$0xf0]  ;;  %v16952_v33 = vadd.f32 %v4803_v16, %v4791_v20 }
 0x486   : > { %v12246_v59 = vld [vmem:[#allocation13 + $0xe10] sm:$0xf]  ;;  %5028 = vmatpush.bf16.msrb.mxu1 %v10939_v46  ;;  %5008 = vmatpush.bf16.msra.mxu3 %v12279_v51  ;;  %v11991_v3 = vor.u32 %v15254_v56, %v11990_v55  ;;  %v14954_v46 = vld [vmem:[#allocation13 + $0x2d4] sm:$0xf]  ;;  %v10555_v28 = vor.u32 %v14890_v41, %v10552_v42  ;;  %v11099_v55 = vor.u32 %v15026_v48, %v11096_v49  ;;  %v4766_v0 = vpop.f32.mrf.mxu0 }
 0x487   : > { %v15318_v60 = vld [vmem:[#allocation13 + $0xe2c] sm:$0xf0]  ;;  %v15090_v38 = vld [vmem:[#allocation13 + $0x714] sm:$0xf]  ;;  %v10811_v52 = vor.u32 %v14954_v46, %v10808_v47 }
 0x488   : > { %v12247_v4 = vor.u32 %v15318_v60, %v12246_v59  ;;  %5016 = vmatpush.bf16.msrb.mxu0 %v10651_v14  ;;  %4996 = vmatpush.bf16.msra.mxu2 %v11991_v3  ;;  %v11352_v51 = vld [vmem:[#allocation13 + $0x730] sm:$0xf0]  ;;  %v4779_v1 = vpop.f32.mrf.mxu1  ;;  %v10523_v3 = vor.u32 %v14882_v53, %v10520_v54  ;;  %v4805_v53 = vpop.f32.mrf.mxu3 }
 0x489   : > { %v11355_v56 = vor.u32 %v15090_v38, %v11352_v51  ;;  %v14946_v59 = vld [vmem:[#allocation13 + $0x294] sm:$0xf] }
 0x48a   : > { %5029 = vmatpush.bf16.msrb.mxu1 %v10907_v2  ;;  %5009 = vmatpush.bf16.msra.mxu3 %v12247_v4  ;;  %v10776_v60 = vld [vmem:[#allocation13 + $0x2b0] sm:$0xf0] }
 0x48b   : > { %4997 = vmatmul.bf16.vlgmr.msra.gmra.mxu2 %v16899_v61  ;;  %v15082_v14 = vld [vmem:[#allocation13 + $0x6d4] sm:$0xf]  ;;  %v10779_v4 = vor.u32 %v14946_v59, %v10776_v60 }
 0x48c   : > { %5041 = vmatpush.bf16.msrb.mxu2 %v11195_v7  ;;  %5017 = vmatpush.bf16.msrb.mxu0 %v10619_v18  ;;  %v11320_v2 = vld [vmem:[#allocation13 + $0x6f0] sm:$0xf0]  ;;  %v11067_v7 = vor.u32 %v15018_v63, %v11064_v13 }
 0x48d   : > { %5010 = vmatmul.bf16.vlgmr.msra.gmra.mxu3 %v16901_v62  ;;  %v14874_v5 = vld [vmem:[#allocation13 + $0x54] sm:$0xf] }
 0x48e   : > { %5054 = vmatpush.bf16.msrb.mxu3 %v11451_v8  ;;  %5030 = vmatpush.bf16.msrb.mxu1 %v10875_v19  ;;  %v10488_v6 = vld [vmem:[#allocation13 + $0x70] sm:$0xf0]  ;;  %v11323_v8 = vor.u32 %v15082_v14, %v11320_v2 }
 0x48f   : > { %v14938_v9 = vld [vmem:[#allocation13 + $0x254] sm:$0xf]  ;;  %v10491_v21 = vor.u32 %v14874_v5, %v10488_v6 }
 0x490   : > { %5042 = vmatpush.bf16.msrb.mxu2 %v11163_v22  ;;  %5018 = vmatpush.bf16.msrb.mxu0 %v10587_v12  ;;  %v10744_v10 = vld [vmem:[#allocation13 + $0x270] sm:$0xf0] }
 0x491   : > { %v15010_v11 = vld [vmem:[#allocation13 + $0x494] sm:$0xf]  ;;  %v10747_v22 = vor.u32 %v14938_v9, %v10744_v10 }
 0x492   : > { %5055 = vmatpush.bf16.msrb.mxu3 %v11419_v23  ;;  %5031 = vmatpush.bf16.msrb.mxu1 %v10843_v39  ;;  %v11032_v17 = vld [vmem:[#allocation13 + $0x4b0] sm:$0xf0] }
 0x493   : > { %v15074_v18 = vld [vmem:[#allocation13 + $0x694] sm:$0xf]  ;;  %v11035_v34 = vor.u32 %v15010_v11, %v11032_v17 }
 0x494   : > { %5043 = vmatpush.bf16.msrb.mxu2 %v11131_v44  ;;  %5019 = vmatpush.bf16.msrb.mxu0 %v10555_v28  ;;  %v11288_v19 = vld [vmem:[#allocation13 + $0x6b0] sm:$0xf0] }
 0x495   : > { %v14866_v23 = vld [vmem:[#allocation13 + $0x14] sm:$0xf]  ;;  %v11291_v35 = vor.u32 %v15074_v18, %v11288_v19  ;;  %v16956_v18 = vld [vmem:[#allocation14] sm:$0xff] }
 0x496   : > { %5056 = vmatpush.bf16.msrb.mxu3 %v11387_v45  ;;  %5032 = vmatpush.bf16.msrb.mxu1 %v10811_v52  ;;  %v10456_v25 = vld [vmem:[#allocation13 + $0x30] sm:$0xf0]  ;;  %v4792_v52 = vpop.f32.mrf.mxu2  ;;  %v1922_v19 = vperm.slane %v16956_v18, 3 }
 0x497   : > { %v14930_v27 = vld [vmem:[#allocation13 + $0x214] sm:$0xf]  ;;  %v10459_v44 = vor.u32 %v14866_v23, %v10456_v25 }
 0x498   : > { %5044 = vmatpush.bf16.msrb.mxu2 %v11099_v55  ;;  %5020 = vmatpush.bf16.msrb.mxu0 %v10523_v3  ;;  %v10712_v36 = vld [vmem:[#allocation13 + $0x230] sm:$0xf0] }
 0x499   : > { %v15178_v37 = vld [vmem:[#allocation13 + $0x9d4] sm:$0xf]  ;;  %v10715_v45 = vor.u32 %v14930_v27, %v10712_v36 }
 0x49a   : > { %5057 = vmatpush.bf16.msrb.mxu3 %v11355_v56  ;;  %5033 = vmatpush.bf16.msrb.mxu1 %v10779_v4  ;;  %v11704_v50 = vld [vmem:[#allocation13 + $0x9f0] sm:$0xf0] }
 0x49b   : > { %v15242_v40 = vld [vmem:[#allocation13 + $0xbd4] sm:$0xf]  ;;  %v11707_v46 = vor.u32 %v15178_v37, %v11704_v50  ;;  %v4816_v37 = vpop.f32.mrf.mxu0  ;;  %v4829_v50 = vpop.f32.mrf.mxu1 }
 0x49c   : > { %5045 = vmatpush.bf16.msrb.mxu2 %v11067_v7  ;;  %v11960_v12 = vld [vmem:[#allocation13 + $0xbf0] sm:$0xf0]  ;;  %5021 = vmatpush.bf16.msrb.mxu0 %v10491_v21 }
 0x49d   : > { %v15002_v39 = vld [vmem:[#allocation13 + $0x454] sm:$0xf]  ;;  %v11963_v47 = vor.u32 %v15242_v40, %v11960_v12 }
 0x49e   : > { %5058 = vmatpush.bf16.msrb.mxu3 %v11323_v8  ;;  %v11000_v41 = vld [vmem:[#allocation13 + $0x470] sm:$0xf0]  ;;  %5034 = vmatpush.bf16.msrb.mxu1 %v10747_v22 }
 0x49f   : > { %v15066_v42 = vld [vmem:[#allocation13 + $0x654] sm:$0xf]  ;;  %v11003_v51 = vor.u32 %v15002_v39, %v11000_v41  ;;  %v4817_v41 = vadd.f32 %v4816_v37, %v1922_v19  ;;  %v4842_v19 = vpop.f32.mrf.mxu2 }
 0x4a0   : > { %v11256_v43 = vld [vmem:[#allocation13 + $0x670] sm:$0xf0]  ;;  %5046 = vmatpush.bf16.msrb.mxu2 %v11035_v34  ;;  %5022 = vmatpush.bf16.msrb.mxu0 %v10459_v44 }
 0x4a1   : > { %v15170_v48 = vld [vmem:[#allocation13 + $0x994] sm:$0xf]  ;;  %v11259_v28 = vor.u32 %v15066_v42, %v11256_v43 }
 0x4a2   : > { %5059 = vmatpush.bf16.msrb.mxu3 %v11291_v35  ;;  %v11672_v49 = vld [vmem:[#allocation13 + $0x9b0] sm:$0xf0]  ;;  %5035 = vmatpush.bf16.msrb.mxu1 %v10715_v45 }
 0x4a3   : > { %v15234_v38 = vld [vmem:[#allocation13 + $0xb94] sm:$0xf]  ;;  %v11675_v14 = vor.u32 %v15170_v48, %v11672_v49  ;;  %5023 = vmatmul.bf16.vlgmr.msrb.gmra.mxu0 %v16877_v30 }
 0x4a4   : > { %v11928_v54 = vld [vmem:[#allocation13 + $0xbb0] sm:$0xf0]  ;;  %5067 = vmatpush.bf16.msra.mxu0 %v11707_v46  ;;  %5047 = vmatpush.bf16.msrb.mxu2 %v11003_v51  ;;  %v4830_v46 = vadd.f32 %v4829_v50, %v4817_v41  ;;  %v10686_v41 = vld [vmem:[#allocation13 + $0x1d8] sm:$0xf] }
 0x4a5   : > { %v14994_v55 = vld [vmem:[#allocation13 + $0x414] sm:$0xf]  ;;  %v11931_v2 = vor.u32 %v15234_v38, %v11928_v54  ;;  %5036 = vmatmul.bf16.vlgmr.msrb.gmra.mxu1 %v16879_v31 }
 0x4a6   : > { %v10968_v56 = vld [vmem:[#allocation13 + $0x430] sm:$0xf0]  ;;  %5080 = vmatpush.bf16.msra.mxu1 %v11963_v47  ;;  %5060 = vmatpush.bf16.msrb.mxu3 %v11259_v28 }
 0x4a7   : > { %v15058_v59 = vld [vmem:[#allocation13 + $0x614] sm:$0xf]  ;;  %v10971_v3 = vor.u32 %v14994_v55, %v10968_v56 }
 0x4a8   : > { %v11224_v60 = vld [vmem:[#allocation13 + $0x630] sm:$0xf0]  ;;  %5068 = vmatpush.bf16.msra.mxu0 %v11675_v14  ;;  %v4818_v14 = vpop.f32.mrf.mxu0 }
 0x4a9   : > { %v15306_v63 = vld [vmem:[#allocation13 + $0xdd4] sm:$0xf]  ;;  %v11227_v4 = vor.u32 %v15058_v59, %v11224_v60  ;;  %5048 = vmatpush.bf16.msrb.mxu2 %v10971_v3 }
 0x4aa   : > { %v12216_v0 = vld [vmem:[#allocation13 + $0xdf0] sm:$0xf0]  ;;  %5081 = vmatpush.bf16.msra.mxu1 %v11931_v2  ;;  %v4831_v2 = vpop.f32.mrf.mxu1 }
 0x4ab   : > { %v15370_v1 = vld [vmem:[#allocation13 + $0xfd4] sm:$0xf]  ;;  %v12219_v7 = vor.u32 %v15306_v63, %v12216_v0  ;;  %5061 = vmatpush.bf16.msrb.mxu3 %v11227_v4  ;;  %v11198_v2 = vld [vmem:[#allocation13 + $0x5d8] sm:$0xf] }
 0x4ac   : > { %v12472_v13 = vld [vmem:[#allocation13 + $0xff0] sm:$0xf0]  ;;  %5049 = vmatmul.bf16.vlgmr.msrb.gmra.mxu2 %v16883_v57 }
 0x4ad   : > { %v15162_v5 = vld [vmem:[#allocation13 + $0x954] sm:$0xf]  ;;  %v12475_v8 = vor.u32 %v15370_v1, %v12472_v13  ;;  %5093 = vmatpush.bf16.msra.mxu2 %v12219_v7 }
 0x4ae   : > { %v11640_v6 = vld [vmem:[#allocation13 + $0x970] sm:$0xf0]  ;;  %5062 = vmatmul.bf16.vlgmr.msrb.gmra.mxu3 %v16885_v58 }
 0x4af   : > { %v15226_v9 = vld [vmem:[#allocation13 + $0xb54] sm:$0xf]  ;;  %v11643_v20 = vor.u32 %v15162_v5, %v11640_v6  ;;  %5106 = vmatpush.bf16.msra.mxu3 %v12475_v8 }
 0x4b0   : > { %v11896_v10 = vld [vmem:[#allocation13 + $0xb70] sm:$0xf0] }
 0x4b1   : > { %v15298_v11 = vld [vmem:[#allocation13 + $0xd94] sm:$0xf]  ;;  %v11899_v21 = vor.u32 %v15226_v9, %v11896_v10  ;;  %5069 = vmatpush.bf16.msra.mxu0 %v11643_v20  ;;  %v4855_v20 = vpop.f32.mrf.mxu3 }
 0x4b2   : > { %v12184_v15 = vld [vmem:[#allocation13 + $0xdb0] sm:$0xf0] }
 0x4b3   : > { %v15362_v16 = vld [vmem:[#allocation13 + $0xf94] sm:$0xf]  ;;  %v12187_v25 = vor.u32 %v15298_v11, %v12184_v15  ;;  %5082 = vmatpush.bf16.msra.mxu1 %v11899_v21 }
 0x4b4   : > { %v12440_v17 = vld [vmem:[#allocation13 + $0xfb0] sm:$0xf0] }
 0x4b5   : > { %v15154_v22 = vld [vmem:[#allocation13 + $0x914] sm:$0xf]  ;;  %v12443_v27 = vor.u32 %v15362_v16, %v12440_v17  ;;  %5094 = vmatpush.bf16.msra.mxu2 %v12187_v25  ;;  %v4843_v25 = vadd.f32 %v4842_v19, %v4830_v46  ;;  %v14975_v19 = vld [vmem:[#allocation13 + $0x374] sm:$0xf0] }
 0x4b6   : > { %v11608_v23 = vld [vmem:[#allocation13 + $0x930] sm:$0xf0] }
 0x4b7   : > { %v15218_v34 = vld [vmem:[#allocation13 + $0xb14] sm:$0xf]  ;;  %v11611_v42 = vor.u32 %v15154_v22, %v11608_v23  ;;  %5107 = vmatpush.bf16.msra.mxu3 %v12443_v27  ;;  %v16961_v50 = vadd.f32 %v4855_v20, %v4843_v25  ;;  %v11166_v20 = vld [vmem:[#allocation13 + $0x598] sm:$0xf] }
 0x4b8   : > { %v11864_v35 = vld [vmem:[#allocation13 + $0xb30] sm:$0xf0] }
 0x4b9   : > { %v15290_v36 = vld [vmem:[#allocation13 + $0xd54] sm:$0xf]  ;;  %v11867_v43 = vor.u32 %v15218_v34, %v11864_v35  ;;  %5070 = vmatpush.bf16.msra.mxu0 %v11611_v42  ;;  %v14927_v42 = vld [vmem:[#allocation13 + $0x1f4] sm:$0xf0] }
 0x4ba   : > { %v12152_v40 = vld [vmem:[#allocation13 + $0xd70] sm:$0xf0] }
 0x4bb   : > { %v15354_v12 = vld [vmem:[#allocation13 + $0xf54] sm:$0xf]  ;;  %v12155_v47 = vor.u32 %v15290_v36, %v12152_v40  ;;  %5083 = vmatpush.bf16.msra.mxu1 %v11867_v43  ;;  %v10942_v43 = vld [vmem:[#allocation13 + $0x3d8] sm:$0xf] }
 0x4bc   : > { %v12408_v39 = vld [vmem:[#allocation13 + $0xf70] sm:$0xf0] }
 0x4bd   : > { %v15146_v44 = vld [vmem:[#allocation13 + $0x8d4] sm:$0xf]  ;;  %v12411_v48 = vor.u32 %v15354_v12, %v12408_v39  ;;  %5095 = vmatpush.bf16.msra.mxu2 %v12155_v47 }
 0x4be   : > { %v11576_v45 = vld [vmem:[#allocation13 + $0x8f0] sm:$0xf0] }
 0x4bf   : > { %v15210_v49 = vld [vmem:[#allocation13 + $0xad4] sm:$0xf]  ;;  %v11579_v54 = vor.u32 %v15146_v44, %v11576_v45  ;;  %5108 = vmatpush.bf16.msra.mxu3 %v12411_v48  ;;  %v14991_v44 = vld [vmem:[#allocation13 + $0x3f4] sm:$0xf0] }
 0x4c0   : > { %v11832_v38 = vld [vmem:[#allocation13 + $0xaf0] sm:$0xf0] }
 0x4c1   : > { %v15282_v51 = vld [vmem:[#allocation13 + $0xd14] sm:$0xf]  ;;  %v11835_v55 = vor.u32 %v15210_v49, %v11832_v38  ;;  %5071 = vmatpush.bf16.msra.mxu0 %v11579_v54  ;;  %v10910_v54 = vld [vmem:[#allocation13 + $0x398] sm:$0xf] }
 0x4c2   : > { %v12120_v28 = vld [vmem:[#allocation13 + $0xd30] sm:$0xf0] }
 0x4c3   : > { %v15346_v52 = vld [vmem:[#allocation13 + $0xf14] sm:$0xf]  ;;  %v12123_v60 = vor.u32 %v15282_v51, %v12120_v28  ;;  %5084 = vmatpush.bf16.msra.mxu1 %v11835_v55  ;;  %v10687_v51 = vor.u32 %v14927_v42, %v10686_v41  ;;  %v10943_v28 = vor.u32 %v14991_v44, %v10942_v43  ;;  %v4868_v41 = vpop.f32.mrf.mxu0  ;;  %v4881_v42 = vpop.f32.mrf.mxu1  ;;  %v15039_v43 = vld [vmem:[#allocation13 + $0x574] sm:$0xf0] }
 0x4c4   : > { %v12376_v53 = vld [vmem:[#allocation13 + $0xf30] sm:$0xf0]  ;;  %v11390_v44 = vld [vmem:[#allocation13 + $0x758] sm:$0xf] }
 0x4c5   : > { %v15138_v56 = vld [vmem:[#allocation13 + $0x894] sm:$0xf]  ;;  %v12379_v63 = vor.u32 %v15346_v52, %v12376_v53  ;;  %5096 = vmatpush.bf16.msra.mxu2 %v12123_v60  ;;  %v10654_v52 = vld [vmem:[#allocation13 + $0x198] sm:$0xf]  ;;  %v4857_v60 = vpop.f32.mrf.mxu3 }
 0x4c6   : > { %v11544_v59 = vld [vmem:[#allocation13 + $0x8b0] sm:$0xf0]  ;;  %v14919_v53 = vld [vmem:[#allocation13 + $0x1b4] sm:$0xf0] }
 0x4c7   : > { %v15202_v0 = vld [vmem:[#allocation13 + $0xa94] sm:$0xf]  ;;  %v11547_v6 = vor.u32 %v15138_v56, %v11544_v59  ;;  %5109 = vmatpush.bf16.msra.mxu3 %v12379_v63  ;;  %v4844_v59 = vpop.f32.mrf.mxu2  ;;  %v14983_v63 = vld [vmem:[#allocation13 + $0x3b4] sm:$0xf0] }
 0x4c8   : > { %v11800_v1 = vld [vmem:[#allocation13 + $0xab0] sm:$0xf0]  ;;  %v11358_v59 = vld [vmem:[#allocation13 + $0x718] sm:$0xf] }
 0x4c9   : > { %v15274_v13 = vld [vmem:[#allocation13 + $0xcd4] sm:$0xf]  ;;  %v11803_v7 = vor.u32 %v15202_v0, %v11800_v1  ;;  %5072 = vmatpush.bf16.msra.mxu0 %v11547_v6  ;;  %v10655_v6 = vor.u32 %v14919_v53, %v10654_v52  ;;  %v10814_v53 = vld [vmem:[#allocation13 + $0x2d8] sm:$0xf] }
 0x4ca   : > { %v12088_v3 = vld [vmem:[#allocation13 + $0xcf0] sm:$0xf0]  ;;  %v15095_v60 = vld [vmem:[#allocation13 + $0x734] sm:$0xf0] }
 0x4cb   : > { %v15338_v4 = vld [vmem:[#allocation13 + $0xed4] sm:$0xf]  ;;  %v12091_v10 = vor.u32 %v15274_v13, %v12088_v3  ;;  %5085 = vmatpush.bf16.msra.mxu1 %v11803_v7  ;;  %v15055_v3 = vld [vmem:[#allocation13 + $0x5f4] sm:$0xf0]  ;;  %v10911_v7 = vor.u32 %v14983_v63, %v10910_v54 }
 0x4cc   : > { %v12344_v5 = vld [vmem:[#allocation13 + $0xef0] sm:$0xf0]  ;;  %v14959_v54 = vld [vmem:[#allocation13 + $0x2f4] sm:$0xf0] }
 0x4cd   : > { %v15130_v8 = vld [vmem:[#allocation13 + $0x854] sm:$0xf]  ;;  %v12347_v11 = vor.u32 %v15338_v4, %v12344_v5  ;;  %5097 = vmatpush.bf16.msra.mxu2 %v12091_v10  ;;  %v11454_v4 = vld [vmem:[#allocation13 + $0x7d8] sm:$0xf]  ;;  %v10815_v63 = vor.u32 %v14959_v54, %v10814_v53 }
 0x4ce   : > { %v11512_v9 = vld [vmem:[#allocation13 + $0x870] sm:$0xf0]  ;;  %v15119_v5 = vld [vmem:[#allocation13 + $0x7f4] sm:$0xf0] }
 0x4cf   : > { %v15194_v15 = vld [vmem:[#allocation13 + $0xa54] sm:$0xf]  ;;  %v11515_v27 = vor.u32 %v15130_v8, %v11512_v9  ;;  %5110 = vmatpush.bf16.msra.mxu3 %v12347_v11  ;;  %v10622_v10 = vld [vmem:[#allocation13 + $0x158] sm:$0xf] }
 0x4d0   : > { %v11768_v16 = vld [vmem:[#allocation13 + $0xa70] sm:$0xf0]  ;;  %v14911_v11 = vld [vmem:[#allocation13 + $0x174] sm:$0xf0] }
 0x4d1   : > { %v15266_v17 = vld [vmem:[#allocation13 + $0xc94] sm:$0xf]  ;;  %v11771_v34 = vor.u32 %v15194_v15, %v11768_v16  ;;  %5073 = vmatpush.bf16.msra.mxu0 %v11515_v27  ;;  %v11199_v15 = vor.u32 %v15055_v3, %v11198_v2  ;;  %v11455_v16 = vor.u32 %v15119_v5, %v11454_v4  ;;  %v10623_v25 = vor.u32 %v14911_v11, %v10622_v10  ;;  %v10782_v2 = vld [vmem:[#allocation13 + $0x298] sm:$0xf]  ;;  %v4870_v5 = vpop.f32.mrf.mxu0 }
 0x4d2   : > { %v12056_v21 = vld [vmem:[#allocation13 + $0xcb0] sm:$0xf0]  ;;  %v14951_v3 = vld [vmem:[#allocation13 + $0x2b4] sm:$0xf0] }
 0x4d3   : > { %v15330_v22 = vld [vmem:[#allocation13 + $0xe94] sm:$0xf]  ;;  %v12059_v40 = vor.u32 %v15266_v17, %v12056_v21  ;;  %5086 = vmatpush.bf16.msra.mxu1 %v11771_v34  ;;  %v10878_v17 = vld [vmem:[#allocation13 + $0x358] sm:$0xf]  ;;  %v10783_v11 = vor.u32 %v14951_v3, %v10782_v2 }
 0x4d4   : > { %v12312_v23 = vld [vmem:[#allocation13 + $0xeb0] sm:$0xf0]  ;;  %v15047_v21 = vld [vmem:[#allocation13 + $0x5b4] sm:$0xf0]  ;;  %v10879_v27 = vor.u32 %v14975_v19, %v10878_v17 }
 0x4d5   : > { %v15122_v35 = vld [vmem:[#allocation13 + $0x814] sm:$0xf]  ;;  %v12315_v12 = vor.u32 %v15330_v22, %v12312_v23  ;;  %5098 = vmatpush.bf16.msra.mxu2 %v12059_v40  ;;  %v11422_v22 = vld [vmem:[#allocation13 + $0x798] sm:$0xf] }
 0x4d6   : > { %v11480_v36 = vld [vmem:[#allocation13 + $0x830] sm:$0xf0]  ;;  %v15111_v23 = vld [vmem:[#allocation13 + $0x7b4] sm:$0xf0] }
 0x4d7   : > { %v15186_v37 = vld [vmem:[#allocation13 + $0xa14] sm:$0xf]  ;;  %v11483_v49 = vor.u32 %v15122_v35, %v11480_v36  ;;  %5111 = vmatpush.bf16.msra.mxu3 %v12315_v12  ;;  %v10590_v34 = vld [vmem:[#allocation13 + $0x118] sm:$0xf]  ;;  %v11167_v36 = vor.u32 %v15047_v21, %v11166_v20 }
 0x4d8   : > { %v11736_v39 = vld [vmem:[#allocation13 + $0xa30] sm:$0xf0]  ;;  %v14903_v35 = vld [vmem:[#allocation13 + $0x134] sm:$0xf0] }
 0x4d9   : > { %v15258_v45 = vld [vmem:[#allocation13 + $0xc54] sm:$0xf]  ;;  %v11739_v38 = vor.u32 %v15186_v37, %v11736_v39  ;;  %5074 = vmatpush.bf16.msra.mxu0 %v11483_v49  ;;  %v11423_v37 = vor.u32 %v15111_v23, %v11422_v22  ;;  %v10846_v40 = vld [vmem:[#allocation13 + $0x318] sm:$0xf]  ;;  %v4894_v23 = vpop.f32.mrf.mxu2 }
 0x4da   : > { %v12024_v46 = vld [vmem:[#allocation13 + $0xc70] sm:$0xf0]  ;;  %v14967_v12 = vld [vmem:[#allocation13 + $0x334] sm:$0xf0] }
 0x4db   : > { %v15322_v47 = vld [vmem:[#allocation13 + $0xe54] sm:$0xf]  ;;  %v12027_v55 = vor.u32 %v15258_v45, %v12024_v46  ;;  %5087 = vmatpush.bf16.msra.mxu1 %v11739_v38  ;;  %v11134_v39 = vld [vmem:[#allocation13 + $0x558] sm:$0xf]  ;;  %v4869_v46 = vadd.f32 %v4868_v41, %v16961_v50 }
 0x4dc   : > { %v12280_v48 = vld [vmem:[#allocation13 + $0xe70] sm:$0xf0]  ;;  %5075 = vmatmul.bf16.vlgmr.msra.gmra.mxu0 %v16891_v29  ;;  %v15103_v45 = vld [vmem:[#allocation13 + $0x774] sm:$0xf0] }
 0x4dd   : > { %v12283_v56 = vor.u32 %v15322_v47, %v12280_v48  ;;  %v15250_v0 = vld [vmem:[#allocation13 + $0xc14] sm:$0xf]  ;;  %5119 = vmatpush.bf16.msrb.mxu0 %v10687_v51  ;;  %5099 = vmatpush.bf16.msra.mxu2 %v12027_v55  ;;  %v10591_v47 = vor.u32 %v14903_v35, %v10590_v34  ;;  %v10847_v48 = vor.u32 %v14967_v12, %v10846_v40  ;;  %v10558_v49 = vld [vmem:[#allocation13 + $0xd8] sm:$0xf] }
 0x4de   : > { %v11992_v1 = vld [vmem:[#allocation13 + $0xc30] sm:$0xf0]  ;;  %5088 = vmatmul.bf16.vlgmr.msra.gmra.mxu1 %v16893_v32  ;;  %v14895_v38 = vld [vmem:[#allocation13 + $0xf4] sm:$0xf0]  ;;  %v4882_v51 = vadd.f32 %v4881_v42, %v4869_v46  ;;  %v11391_v52 = vor.u32 %v15103_v45, %v11390_v44 }
 0x4df   : > { %v15314_v13 = vld [vmem:[#allocation13 + $0xe14] sm:$0xf]  ;;  %5132 = vmatpush.bf16.msrb.mxu1 %v10943_v28  ;;  %5112 = vmatpush.bf16.msra.mxu3 %v12283_v56  ;;  %v11995_v8 = vor.u32 %v15250_v0, %v11992_v1  ;;  %v11135_v28 = vor.u32 %v15039_v43, %v11134_v39  ;;  %v11102_v55 = vld [vmem:[#allocation13 + $0x518] sm:$0xf]  ;;  %v10559_v50 = vor.u32 %v14895_v38, %v10558_v49 }
 0x4e0   : > { %v12248_v14 = vld [vmem:[#allocation13 + $0xe30] sm:$0xf0]  ;;  %v15031_v56 = vld [vmem:[#allocation13 + $0x534] sm:$0xf0] }
 0x4e1   : > { %v12251_v9 = vor.u32 %v15314_v13, %v12248_v14  ;;  %5120 = vmatpush.bf16.msrb.mxu0 %v10655_v6  ;;  %5100 = vmatpush.bf16.msra.mxu2 %v11995_v8  ;;  %v10526_v0 = vld [vmem:[#allocation13 + $0x98] sm:$0xf]  ;;  %v11103_v13 = vor.u32 %v15031_v56, %v11102_v55  ;;  %v11359_v14 = vor.u32 %v15095_v60, %v11358_v59  ;;  %v4883_v6 = vpop.f32.mrf.mxu1 }
 0x4e2   : > { %v14887_v1 = vld [vmem:[#allocation13 + $0xb4] sm:$0xf0] }
 0x4e3   : > { %5133 = vmatpush.bf16.msrb.mxu1 %v10911_v7  ;;  %5113 = vmatpush.bf16.msra.mxu3 %v12251_v9  ;;  %v11070_v4 = vld [vmem:[#allocation13 + $0x4d8] sm:$0xf]  ;;  %v10527_v10 = vor.u32 %v14887_v1, %v10526_v0  ;;  %v4896_v1 = vpop.f32.mrf.mxu2 }
 0x4e4   : > { %5101 = vmatmul.bf16.vlgmr.msra.gmra.mxu2 %v16899_v61  ;;  %v15023_v7 = vld [vmem:[#allocation13 + $0x4f4] sm:$0xf0] }
 0x4e5   : > { %5145 = vmatpush.bf16.msrb.mxu2 %v11199_v15  ;;  %5121 = vmatpush.bf16.msrb.mxu0 %v10623_v25  ;;  %v11326_v8 = vld [vmem:[#allocation13 + $0x6d8] sm:$0xf]  ;;  %v11071_v17 = vor.u32 %v15023_v7, %v11070_v4  ;;  %v4907_v25 = vpop.f32.mrf.mxu3 }
 0x4e6   : > { %5114 = vmatmul.bf16.vlgmr.msra.gmra.mxu3 %v16901_v62  ;;  %v15087_v9 = vld [vmem:[#allocation13 + $0x6f4] sm:$0xf0] }
 0x4e7   : > { %5158 = vmatpush.bf16.msrb.mxu3 %v11455_v16  ;;  %5134 = vmatpush.bf16.msrb.mxu1 %v10879_v27  ;;  %v10494_v15 = vld [vmem:[#allocation13 + $0x58] sm:$0xf]  ;;  %v11327_v19 = vor.u32 %v15087_v9, %v11326_v8 }
 0x4e8   : > { %v14879_v16 = vld [vmem:[#allocation13 + $0x74] sm:$0xf0] }
 0x4e9   : > { %5146 = vmatpush.bf16.msrb.mxu2 %v11167_v36  ;;  %5122 = vmatpush.bf16.msrb.mxu0 %v10591_v47  ;;  %v10750_v20 = vld [vmem:[#allocation13 + $0x258] sm:$0xf]  ;;  %v4895_v36 = vadd.f32 %v4894_v23, %v4882_v51 }
 0x4ea   : > { %v14943_v21 = vld [vmem:[#allocation13 + $0x274] sm:$0xf0] }
 0x4eb   : > { %5159 = vmatpush.bf16.msrb.mxu3 %v11423_v37  ;;  %5135 = vmatpush.bf16.msrb.mxu1 %v10847_v48  ;;  %v11038_v22 = vld [vmem:[#allocation13 + $0x498] sm:$0xf]  ;;  %v10495_v37 = vor.u32 %v14879_v16, %v10494_v15  ;;  %v10751_v40 = vor.u32 %v14943_v21, %v10750_v20  ;;  %v16968_v42 = vadd.f32 %v4907_v25, %v4895_v36  ;;  %v1923_v36 = vperm.slane %v16956_v18, 4 }
 0x4ec   : > { %v15015_v27 = vld [vmem:[#allocation13 + $0x4b4] sm:$0xf0] }
 0x4ed   : > { %5147 = vmatpush.bf16.msrb.mxu2 %v11135_v28  ;;  %5123 = vmatpush.bf16.msrb.mxu0 %v10559_v50  ;;  %v11294_v34 = vld [vmem:[#allocation13 + $0x698] sm:$0xf]  ;;  %v11039_v43 = vor.u32 %v15015_v27, %v11038_v22 }
 0x4ee   : > { %v15079_v35 = vld [vmem:[#allocation13 + $0x6b4] sm:$0xf0] }
 0x4ef   : > { %5160 = vmatpush.bf16.msrb.mxu3 %v11391_v52  ;;  %5136 = vmatpush.bf16.msrb.mxu1 %v10815_v63  ;;  %v10462_v12 = vld [vmem:[#allocation13 + $0x18] sm:$0xf]  ;;  %v11295_v44 = vor.u32 %v15079_v35, %v11294_v34 }
 0x4f0   : > { %v14871_v39 = vld [vmem:[#allocation13 + $0x34] sm:$0xf0] }
 0x4f1   : > { %5148 = vmatpush.bf16.msrb.mxu2 %v11103_v13  ;;  %5124 = vmatpush.bf16.msrb.mxu0 %v10527_v10  ;;  %v10718_v41 = vld [vmem:[#allocation13 + $0x218] sm:$0xf]  ;;  %v10463_v53 = vor.u32 %v14871_v39, %v10462_v12  ;;  %v4909_v13 = vpop.f32.mrf.mxu3 }
 0x4f2   : > { %v14935_v45 = vld [vmem:[#allocation13 + $0x234] sm:$0xf0] }
 0x4f3   : > { %5161 = vmatpush.bf16.msrb.mxu3 %v11359_v14  ;;  %5137 = vmatpush.bf16.msrb.mxu1 %v10783_v11  ;;  %v11710_v46 = vld [vmem:[#allocation13 + $0x9d8] sm:$0xf]  ;;  %v10719_v54 = vor.u32 %v14935_v45, %v10718_v41 }
 0x4f4   : > { %v15183_v47 = vld [vmem:[#allocation13 + $0x9f4] sm:$0xf0] }
 0x4f5   : > { %5149 = vmatpush.bf16.msrb.mxu2 %v11071_v17  ;;  %v11966_v48 = vld [vmem:[#allocation13 + $0xbd8] sm:$0xf]  ;;  %5125 = vmatpush.bf16.msrb.mxu0 %v10495_v37  ;;  %v11711_v55 = vor.u32 %v15183_v47, %v11710_v46  ;;  %v4920_v47 = vpop.f32.mrf.mxu0 }
 0x4f6   : > { %v15247_v49 = vld [vmem:[#allocation13 + $0xbf4] sm:$0xf0]  ;;  %v4921_v18 = vadd.f32 %v4920_v47, %v1923_v36  ;;  %v4946_v36 = vpop.f32.mrf.mxu2 }
 0x4f7   : > { %5162 = vmatpush.bf16.msrb.mxu3 %v11327_v19  ;;  %v11006_v38 = vld [vmem:[#allocation13 + $0x458] sm:$0xf]  ;;  %5138 = vmatpush.bf16.msrb.mxu1 %v10751_v40  ;;  %v11967_v56 = vor.u32 %v15247_v49, %v11966_v48  ;;  %v4933_v48 = vpop.f32.mrf.mxu1 }
 0x4f8   : > { %v15007_v51 = vld [vmem:[#allocation13 + $0x474] sm:$0xf0] }
 0x4f9   : > { %v11262_v28 = vld [vmem:[#allocation13 + $0x658] sm:$0xf]  ;;  %5150 = vmatpush.bf16.msrb.mxu2 %v11039_v43  ;;  %v11007_v63 = vor.u32 %v15007_v51, %v11006_v38  ;;  %5126 = vmatpush.bf16.msrb.mxu0 %v10463_v53 }
 0x4fa   : > { %v15071_v52 = vld [vmem:[#allocation13 + $0x674] sm:$0xf0] }
 0x4fb   : > { %5163 = vmatpush.bf16.msrb.mxu3 %v11295_v44  ;;  %v11678_v59 = vld [vmem:[#allocation13 + $0x998] sm:$0xf]  ;;  %v11263_v0 = vor.u32 %v15071_v52, %v11262_v28  ;;  %5139 = vmatpush.bf16.msrb.mxu1 %v10719_v54 }
 0x4fc   : > { %v15175_v60 = vld [vmem:[#allocation13 + $0x9b4] sm:$0xf0]  ;;  %5127 = vmatmul.bf16.vlgmr.msrb.gmra.mxu0 %v16877_v30 }
 0x4fd   : > { %v11934_v50 = vld [vmem:[#allocation13 + $0xb98] sm:$0xf]  ;;  %5171 = vmatpush.bf16.msra.mxu0 %v11711_v55  ;;  %v11679_v10 = vor.u32 %v15175_v60, %v11678_v59  ;;  %5151 = vmatpush.bf16.msrb.mxu2 %v11007_v63  ;;  %v4934_v55 = vadd.f32 %v4933_v48, %v4921_v18  ;;  %v14923_v18 = vld [vmem:[#allocation13 + $0x1dc] sm:$0xf] }
 0x4fe   : > { %v15239_v14 = vld [vmem:[#allocation13 + $0xbb4] sm:$0xf0]  ;;  %5140 = vmatmul.bf16.vlgmr.msrb.gmra.mxu1 %v16879_v31 }
 0x4ff   : > { %v10974_v2 = vld [vmem:[#allocation13 + $0x418] sm:$0xf]  ;;  %5184 = vmatpush.bf16.msra.mxu1 %v11967_v56  ;;  %v11935_v11 = vor.u32 %v15239_v14, %v11934_v50  ;;  %5164 = vmatpush.bf16.msrb.mxu3 %v11263_v0 }
 0x500   : > { %v14999_v3 = vld [vmem:[#allocation13 + $0x434] sm:$0xf0] }
 0x501   : > { %v11230_v4 = vld [vmem:[#allocation13 + $0x618] sm:$0xf]  ;;  %v10975_v15 = vor.u32 %v14999_v3, %v10974_v2  ;;  %5172 = vmatpush.bf16.msra.mxu0 %v11679_v10  ;;  %v4922_v10 = vpop.f32.mrf.mxu0 }
 0x502   : > { %v15063_v5 = vld [vmem:[#allocation13 + $0x634] sm:$0xf0] }
 0x503   : > { %v12222_v6 = vld [vmem:[#allocation13 + $0xdd8] sm:$0xf]  ;;  %v11231_v16 = vor.u32 %v15063_v5, %v11230_v4  ;;  %5185 = vmatpush.bf16.msra.mxu1 %v11935_v11  ;;  %5152 = vmatpush.bf16.msrb.mxu2 %v10975_v15  ;;  %v4935_v11 = vpop.f32.mrf.mxu1 }
 0x504   : > { %v15311_v7 = vld [vmem:[#allocation13 + $0xdf4] sm:$0xf0]  ;;  %v15051_v11 = vld [vmem:[#allocation13 + $0x5dc] sm:$0xf] }
 0x505   : > { %v12478_v8 = vld [vmem:[#allocation13 + $0xfd8] sm:$0xf]  ;;  %v12223_v20 = vor.u32 %v15311_v7, %v12222_v6  ;;  %5165 = vmatpush.bf16.msrb.mxu3 %v11231_v16 }
 0x506   : > { %v15375_v9 = vld [vmem:[#allocation13 + $0xff4] sm:$0xf0]  ;;  %5153 = vmatmul.bf16.vlgmr.msrb.gmra.mxu2 %v16883_v57 }
 0x507   : > { %v11646_v17 = vld [vmem:[#allocation13 + $0x958] sm:$0xf]  ;;  %v12479_v21 = vor.u32 %v15375_v9, %v12478_v8  ;;  %5197 = vmatpush.bf16.msra.mxu2 %v12223_v20 }
 0x508   : > { %v15167_v19 = vld [vmem:[#allocation13 + $0x974] sm:$0xf0]  ;;  %5166 = vmatmul.bf16.vlgmr.msrb.gmra.mxu3 %v16885_v58 }
 0x509   : > { %v11902_v22 = vld [vmem:[#allocation13 + $0xb58] sm:$0xf]  ;;  %v11647_v37 = vor.u32 %v15167_v19, %v11646_v17  ;;  %5210 = vmatpush.bf16.msra.mxu3 %v12479_v21 }
 0x50a   : > { %v15231_v23 = vld [vmem:[#allocation13 + $0xb74] sm:$0xf0] }
 0x50b   : > { %v12190_v25 = vld [vmem:[#allocation13 + $0xd98] sm:$0xf]  ;;  %v11903_v40 = vor.u32 %v15231_v23, %v11902_v22  ;;  %5173 = vmatpush.bf16.msra.mxu0 %v11647_v37  ;;  %v4959_v37 = vpop.f32.mrf.mxu3 }
 0x50c   : > { %v15303_v27 = vld [vmem:[#allocation13 + $0xdb4] sm:$0xf0] }
 0x50d   : > { %v12446_v34 = vld [vmem:[#allocation13 + $0xf98] sm:$0xf]  ;;  %v12191_v41 = vor.u32 %v15303_v27, %v12190_v25  ;;  %5186 = vmatpush.bf16.msra.mxu1 %v11903_v40 }
 0x50e   : > { %v15367_v35 = vld [vmem:[#allocation13 + $0xfb4] sm:$0xf0] }
 0x50f   : > { %v11614_v12 = vld [vmem:[#allocation13 + $0x918] sm:$0xf]  ;;  %v12447_v43 = vor.u32 %v15367_v35, %v12446_v34  ;;  %5198 = vmatpush.bf16.msra.mxu2 %v12191_v41  ;;  %v4947_v41 = vadd.f32 %v4946_v36, %v4934_v55  ;;  %v10880_v36 = vld [vmem:[#allocation13 + $0x378] sm:$0xf0] }
 0x510   : > { %v15159_v39 = vld [vmem:[#allocation13 + $0x934] sm:$0xf0] }
 0x511   : > { %v11870_v44 = vld [vmem:[#allocation13 + $0xb18] sm:$0xf]  ;;  %v11615_v28 = vor.u32 %v15159_v39, %v11614_v12  ;;  %5211 = vmatpush.bf16.msra.mxu3 %v12447_v43  ;;  %v16975_v48 = vadd.f32 %v4959_v37, %v4947_v41  ;;  %v15043_v37 = vld [vmem:[#allocation13 + $0x59c] sm:$0xf] }
 0x512   : > { %v15223_v45 = vld [vmem:[#allocation13 + $0xb34] sm:$0xf0] }
 0x513   : > { %v12158_v46 = vld [vmem:[#allocation13 + $0xd58] sm:$0xf]  ;;  %v11871_v52 = vor.u32 %v15223_v45, %v11870_v44  ;;  %5174 = vmatpush.bf16.msra.mxu0 %v11615_v28  ;;  %v10688_v28 = vld [vmem:[#allocation13 + $0x1f8] sm:$0xf0] }
 0x514   : > { %v15295_v49 = vld [vmem:[#allocation13 + $0xd74] sm:$0xf0] }
 0x515   : > { %v12414_v38 = vld [vmem:[#allocation13 + $0xf58] sm:$0xf]  ;;  %v12159_v56 = vor.u32 %v15295_v49, %v12158_v46  ;;  %5187 = vmatpush.bf16.msra.mxu1 %v11871_v52  ;;  %v14987_v52 = vld [vmem:[#allocation13 + $0x3dc] sm:$0xf] }
 0x516   : > { %v15359_v51 = vld [vmem:[#allocation13 + $0xf74] sm:$0xf0] }
 0x517   : > { %v11582_v53 = vld [vmem:[#allocation13 + $0x8d8] sm:$0xf]  ;;  %v12415_v59 = vor.u32 %v15359_v51, %v12414_v38  ;;  %5199 = vmatpush.bf16.msra.mxu2 %v12159_v56 }
 0x518   : > { %v15151_v54 = vld [vmem:[#allocation13 + $0x8f4] sm:$0xf0] }
 0x519   : > { %v11838_v60 = vld [vmem:[#allocation13 + $0xad8] sm:$0xf]  ;;  %v11583_v14 = vor.u32 %v15151_v54, %v11582_v53  ;;  %5212 = vmatpush.bf16.msra.mxu3 %v12415_v59  ;;  %v10944_v53 = vld [vmem:[#allocation13 + $0x3f8] sm:$0xf0] }
 0x51a   : > { %v15215_v50 = vld [vmem:[#allocation13 + $0xaf4] sm:$0xf0] }
 0x51b   : > { %v12126_v63 = vld [vmem:[#allocation13 + $0xd18] sm:$0xf]  ;;  %v11839_v2 = vor.u32 %v15215_v50, %v11838_v60  ;;  %5175 = vmatpush.bf16.msra.mxu0 %v11583_v14  ;;  %v14979_v14 = vld [vmem:[#allocation13 + $0x39c] sm:$0xf] }
 0x51c   : > { %v15287_v0 = vld [vmem:[#allocation13 + $0xd34] sm:$0xf0] }
 0x51d   : > { %v12382_v1 = vld [vmem:[#allocation13 + $0xf18] sm:$0xf]  ;;  %v12127_v5 = vor.u32 %v15287_v0, %v12126_v63  ;;  %5188 = vmatpush.bf16.msra.mxu1 %v11839_v2  ;;  %v10691_v63 = vor.u32 %v14923_v18, %v10688_v28  ;;  %v10947_v0 = vor.u32 %v14987_v52, %v10944_v53  ;;  %v4972_v18 = vpop.f32.mrf.mxu0  ;;  %v4985_v28 = vpop.f32.mrf.mxu1  ;;  %v11136_v52 = vld [vmem:[#allocation13 + $0x578] sm:$0xf0] }
 0x51e   : > { %v15351_v13 = vld [vmem:[#allocation13 + $0xf34] sm:$0xf0]  ;;  %v15099_v53 = vld [vmem:[#allocation13 + $0x75c] sm:$0xf] }
 0x51f   : > { %v11550_v3 = vld [vmem:[#allocation13 + $0x898] sm:$0xf]  ;;  %v12383_v6 = vor.u32 %v15351_v13, %v12382_v1  ;;  %5200 = vmatpush.bf16.msra.mxu2 %v12127_v5  ;;  %v14915_v1 = vld [vmem:[#allocation13 + $0x19c] sm:$0xf]  ;;  %v4961_v5 = vpop.f32.mrf.mxu3 }
 0x520   : > { %v15143_v4 = vld [vmem:[#allocation13 + $0x8b4] sm:$0xf0]  ;;  %v10656_v13 = vld [vmem:[#allocation13 + $0x1b8] sm:$0xf0] }
 0x521   : > { %v11806_v7 = vld [vmem:[#allocation13 + $0xa98] sm:$0xf]  ;;  %v11551_v19 = vor.u32 %v15143_v4, %v11550_v3  ;;  %5213 = vmatpush.bf16.msra.mxu3 %v12383_v6  ;;  %v4948_v4 = vpop.f32.mrf.mxu2  ;;  %v10912_v6 = vld [vmem:[#allocation13 + $0x3b8] sm:$0xf0] }
 0x522   : > { %v15207_v8 = vld [vmem:[#allocation13 + $0xab4] sm:$0xf0]  ;;  %v15091_v4 = vld [vmem:[#allocation13 + $0x71c] sm:$0xf] }
 0x523   : > { %v12094_v9 = vld [vmem:[#allocation13 + $0xcd8] sm:$0xf]  ;;  %v11807_v20 = vor.u32 %v15207_v8, %v11806_v7  ;;  %5176 = vmatpush.bf16.msra.mxu0 %v11551_v19  ;;  %v10659_v19 = vor.u32 %v14915_v1, %v10656_v13  ;;  %v14955_v13 = vld [vmem:[#allocation13 + $0x2dc] sm:$0xf] }
 0x524   : > { %v15279_v15 = vld [vmem:[#allocation13 + $0xcf4] sm:$0xf0]  ;;  %v11360_v5 = vld [vmem:[#allocation13 + $0x738] sm:$0xf0] }
 0x525   : > { %v12350_v16 = vld [vmem:[#allocation13 + $0xed8] sm:$0xf]  ;;  %v12095_v23 = vor.u32 %v15279_v15, %v12094_v9  ;;  %5189 = vmatpush.bf16.msra.mxu1 %v11807_v20  ;;  %v11200_v15 = vld [vmem:[#allocation13 + $0x5f8] sm:$0xf0]  ;;  %v10915_v20 = vor.u32 %v14979_v14, %v10912_v6 }
 0x526   : > { %v15343_v17 = vld [vmem:[#allocation13 + $0xef4] sm:$0xf0]  ;;  %v10816_v14 = vld [vmem:[#allocation13 + $0x2f8] sm:$0xf0] }
 0x527   : > { %v11518_v21 = vld [vmem:[#allocation13 + $0x858] sm:$0xf]  ;;  %v12351_v25 = vor.u32 %v15343_v17, %v12350_v16  ;;  %5201 = vmatpush.bf16.msra.mxu2 %v12095_v23  ;;  %v15115_v16 = vld [vmem:[#allocation13 + $0x7dc] sm:$0xf]  ;;  %v10819_v6 = vor.u32 %v14955_v13, %v10816_v14 }
 0x528   : > { %v15135_v22 = vld [vmem:[#allocation13 + $0x874] sm:$0xf0]  ;;  %v11456_v17 = vld [vmem:[#allocation13 + $0x7f8] sm:$0xf0] }
 0x529   : > { %v11774_v27 = vld [vmem:[#allocation13 + $0xa58] sm:$0xf]  ;;  %v11519_v43 = vor.u32 %v15135_v22, %v11518_v21  ;;  %5214 = vmatpush.bf16.msra.mxu3 %v12351_v25  ;;  %v14907_v23 = vld [vmem:[#allocation13 + $0x15c] sm:$0xf] }
 0x52a   : > { %v15199_v34 = vld [vmem:[#allocation13 + $0xa74] sm:$0xf0]  ;;  %v10624_v25 = vld [vmem:[#allocation13 + $0x178] sm:$0xf0] }
 0x52b   : > { %v12062_v35 = vld [vmem:[#allocation13 + $0xc98] sm:$0xf]  ;;  %v11775_v44 = vor.u32 %v15199_v34, %v11774_v27  ;;  %5177 = vmatpush.bf16.msra.mxu0 %v11519_v43  ;;  %v11203_v27 = vor.u32 %v15051_v11, %v11200_v15  ;;  %v11459_v34 = vor.u32 %v15115_v16, %v11456_v17  ;;  %v10627_v41 = vor.u32 %v14907_v23, %v10624_v25  ;;  %v14947_v11 = vld [vmem:[#allocation13 + $0x29c] sm:$0xf]  ;;  %v4974_v17 = vpop.f32.mrf.mxu0 }
 0x52c   : > { %v15271_v40 = vld [vmem:[#allocation13 + $0xcb4] sm:$0xf0]  ;;  %v10784_v15 = vld [vmem:[#allocation13 + $0x2b8] sm:$0xf0] }
 0x52d   : > { %v12318_v12 = vld [vmem:[#allocation13 + $0xe98] sm:$0xf]  ;;  %v12063_v49 = vor.u32 %v15271_v40, %v12062_v35  ;;  %5190 = vmatpush.bf16.msra.mxu1 %v11775_v44  ;;  %v14971_v35 = vld [vmem:[#allocation13 + $0x35c] sm:$0xf]  ;;  %v10787_v25 = vor.u32 %v14947_v11, %v10784_v15 }
 0x52e   : > { %v15335_v39 = vld [vmem:[#allocation13 + $0xeb4] sm:$0xf0]  ;;  %v11168_v40 = vld [vmem:[#allocation13 + $0x5b8] sm:$0xf0]  ;;  %v10883_v43 = vor.u32 %v14971_v35, %v10880_v36 }
 0x52f   : > { %v11486_v45 = vld [vmem:[#allocation13 + $0x818] sm:$0xf]  ;;  %v12319_v38 = vor.u32 %v15335_v39, %v12318_v12  ;;  %5202 = vmatpush.bf16.msra.mxu2 %v12063_v49  ;;  %v15107_v12 = vld [vmem:[#allocation13 + $0x79c] sm:$0xf] }
 0x530   : > { %v15127_v46 = vld [vmem:[#allocation13 + $0x834] sm:$0xf0]  ;;  %v11424_v39 = vld [vmem:[#allocation13 + $0x7b8] sm:$0xf0] }
 0x531   : > { %v11742_v47 = vld [vmem:[#allocation13 + $0xa18] sm:$0xf]  ;;  %v11487_v60 = vor.u32 %v15127_v46, %v11486_v45  ;;  %5215 = vmatpush.bf16.msra.mxu3 %v12319_v38  ;;  %v14899_v44 = vld [vmem:[#allocation13 + $0x11c] sm:$0xf]  ;;  %v11171_v46 = vor.u32 %v15043_v37, %v11168_v40 }
 0x532   : > { %v15191_v51 = vld [vmem:[#allocation13 + $0xa34] sm:$0xf0]  ;;  %v10592_v45 = vld [vmem:[#allocation13 + $0x138] sm:$0xf0] }
 0x533   : > { %v12030_v54 = vld [vmem:[#allocation13 + $0xc58] sm:$0xf]  ;;  %v11743_v50 = vor.u32 %v15191_v51, %v11742_v47  ;;  %5178 = vmatpush.bf16.msra.mxu0 %v11487_v60  ;;  %v11427_v47 = vor.u32 %v15107_v12, %v11424_v39  ;;  %v14963_v49 = vld [vmem:[#allocation13 + $0x31c] sm:$0xf]  ;;  %v4998_v39 = vpop.f32.mrf.mxu2 }
 0x534   : > { %v15263_v55 = vld [vmem:[#allocation13 + $0xc74] sm:$0xf0]  ;;  %v10848_v38 = vld [vmem:[#allocation13 + $0x338] sm:$0xf0] }
 0x535   : > { %v12286_v56 = vld [vmem:[#allocation13 + $0xe58] sm:$0xf]  ;;  %v12031_v2 = vor.u32 %v15263_v55, %v12030_v54  ;;  %5191 = vmatpush.bf16.msra.mxu1 %v11743_v50  ;;  %v15035_v51 = vld [vmem:[#allocation13 + $0x55c] sm:$0xf]  ;;  %v4973_v55 = vadd.f32 %v4972_v18, %v16975_v48 }
 0x536   : > { %v15327_v59 = vld [vmem:[#allocation13 + $0xe74] sm:$0xf0]  ;;  %5179 = vmatmul.bf16.vlgmr.msra.gmra.mxu0 %v16891_v29  ;;  %v11392_v54 = vld [vmem:[#allocation13 + $0x778] sm:$0xf0] }
 0x537   : > { %v12287_v3 = vor.u32 %v15327_v59, %v12286_v56  ;;  %v11998_v7 = vld [vmem:[#allocation13 + $0xc18] sm:$0xf]  ;;  %5223 = vmatpush.bf16.msrb.mxu0 %v10691_v63  ;;  %5203 = vmatpush.bf16.msra.mxu2 %v12031_v2  ;;  %v10595_v56 = vor.u32 %v14899_v44, %v10592_v45  ;;  %v10851_v59 = vor.u32 %v14963_v49, %v10848_v38  ;;  %v14891_v60 = vld [vmem:[#allocation13 + $0xdc] sm:$0xf] }
 0x538   : > { %v15255_v8 = vld [vmem:[#allocation13 + $0xc34] sm:$0xf0]  ;;  %5192 = vmatmul.bf16.vlgmr.msra.gmra.mxu1 %v16893_v32  ;;  %v10560_v50 = vld [vmem:[#allocation13 + $0xf8] sm:$0xf0]  ;;  %v4986_v63 = vadd.f32 %v4985_v28, %v4973_v55  ;;  %v11395_v1 = vor.u32 %v15099_v53, %v11392_v54 }
 0x539   : > { %v12254_v9 = vld [vmem:[#allocation13 + $0xe18] sm:$0xf]  ;;  %5236 = vmatpush.bf16.msrb.mxu1 %v10947_v0  ;;  %5216 = vmatpush.bf16.msra.mxu3 %v12287_v3  ;;  %v11999_v21 = vor.u32 %v15255_v8, %v11998_v7  ;;  %v11139_v0 = vor.u32 %v15035_v51, %v11136_v52  ;;  %v15027_v2 = vld [vmem:[#allocation13 + $0x51c] sm:$0xf]  ;;  %v10563_v48 = vor.u32 %v14891_v60, %v10560_v50 }
 0x53a   : > { %v15319_v10 = vld [vmem:[#allocation13 + $0xe34] sm:$0xf0]  ;;  %v11104_v3 = vld [vmem:[#allocation13 + $0x538] sm:$0xf0] }
 0x53b   : > { %v12255_v22 = vor.u32 %v15319_v10, %v12254_v9  ;;  %5224 = vmatpush.bf16.msrb.mxu0 %v10659_v19  ;;  %5204 = vmatpush.bf16.msra.mxu2 %v11999_v21  ;;  %v14883_v7 = vld [vmem:[#allocation13 + $0x9c] sm:$0xf]  ;;  %v11107_v9 = vor.u32 %v15027_v2, %v11104_v3  ;;  %v11363_v10 = vor.u32 %v15091_v4, %v11360_v5  ;;  %v4987_v19 = vpop.f32.mrf.mxu1 }
 0x53c   : > { %v10528_v8 = vld [vmem:[#allocation13 + $0xb8] sm:$0xf0] }
 0x53d   : > { %5237 = vmatpush.bf16.msrb.mxu1 %v10915_v20  ;;  %5217 = vmatpush.bf16.msra.mxu3 %v12255_v22  ;;  %v15019_v16 = vld [vmem:[#allocation13 + $0x4dc] sm:$0xf]  ;;  %v10531_v23 = vor.u32 %v14883_v7, %v10528_v8  ;;  %v5000_v8 = vpop.f32.mrf.mxu2 }
 0x53e   : > { %5205 = vmatmul.bf16.vlgmr.msra.gmra.mxu2 %v16899_v61  ;;  %v11072_v20 = vld [vmem:[#allocation13 + $0x4f8] sm:$0xf0] }
 0x53f   : > { %5249 = vmatpush.bf16.msrb.mxu2 %v11203_v27  ;;  %5225 = vmatpush.bf16.msrb.mxu0 %v10627_v41  ;;  %v15083_v21 = vld [vmem:[#allocation13 + $0x6dc] sm:$0xf]  ;;  %v11075_v35 = vor.u32 %v15019_v16, %v11072_v20  ;;  %v5011_v41 = vpop.f32.mrf.mxu3 }
 0x540   : > { %5218 = vmatmul.bf16.vlgmr.msra.gmra.mxu3 %v16901_v62  ;;  %v11328_v22 = vld [vmem:[#allocation13 + $0x6f8] sm:$0xf0] }
 0x541   : > { %5262 = vmatpush.bf16.msrb.mxu3 %v11459_v34  ;;  %5238 = vmatpush.bf16.msrb.mxu1 %v10883_v43  ;;  %v14875_v27 = vld [vmem:[#allocation13 + $0x5c] sm:$0xf]  ;;  %v11331_v36 = vor.u32 %v15083_v21, %v11328_v22 }
 0x542   : > { %v10496_v34 = vld [vmem:[#allocation13 + $0x78] sm:$0xf0] }
 0x543   : > { %5250 = vmatpush.bf16.msrb.mxu2 %v11171_v46  ;;  %5226 = vmatpush.bf16.msrb.mxu0 %v10595_v56  ;;  %v14939_v37 = vld [vmem:[#allocation13 + $0x25c] sm:$0xf]  ;;  %v4999_v46 = vadd.f32 %v4998_v39, %v4986_v63 }
 0x544   : > { %v10752_v40 = vld [vmem:[#allocation13 + $0x278] sm:$0xf0] }
 0x545   : > { %5263 = vmatpush.bf16.msrb.mxu3 %v11427_v47  ;;  %5239 = vmatpush.bf16.msrb.mxu1 %v10851_v59  ;;  %v15011_v12 = vld [vmem:[#allocation13 + $0x49c] sm:$0xf]  ;;  %v10499_v47 = vor.u32 %v14875_v27, %v10496_v34  ;;  %v10755_v49 = vor.u32 %v14939_v37, %v10752_v40  ;;  %v16982_v28 = vadd.f32 %v5011_v41, %v4999_v46  ;;  %v16986_v46 = vld [vmem:[#allocation14] sm:$0xff] }
 0x546   : > { %v11040_v43 = vld [vmem:[#allocation13 + $0x4b8] sm:$0xf0] }
 0x547   : > { %5251 = vmatpush.bf16.msrb.mxu2 %v11139_v0  ;;  %5227 = vmatpush.bf16.msrb.mxu0 %v10563_v48  ;;  %v15075_v44 = vld [vmem:[#allocation13 + $0x69c] sm:$0xf]  ;;  %v11043_v52 = vor.u32 %v15011_v12, %v11040_v43 }
 0x548   : > { %v11296_v45 = vld [vmem:[#allocation13 + $0x6b8] sm:$0xf0] }
 0x549   : > { %5264 = vmatpush.bf16.msrb.mxu3 %v11395_v1  ;;  %5240 = vmatpush.bf16.msrb.mxu1 %v10819_v6  ;;  %v14867_v38 = vld [vmem:[#allocation13 + $0x1c] sm:$0xf]  ;;  %v11299_v53 = vor.u32 %v15075_v44, %v11296_v45 }
 0x54a   : > { %v10464_v51 = vld [vmem:[#allocation13 + $0x38] sm:$0xf0] }
 0x54b   : > { %5252 = vmatpush.bf16.msrb.mxu2 %v11107_v9  ;;  %5228 = vmatpush.bf16.msrb.mxu0 %v10531_v23  ;;  %v14931_v18 = vld [vmem:[#allocation13 + $0x21c] sm:$0xf]  ;;  %v10467_v13 = vor.u32 %v14867_v38, %v10464_v51  ;;  %v5013_v9 = vpop.f32.mrf.mxu3 }
 0x54c   : > { %v10720_v54 = vld [vmem:[#allocation13 + $0x238] sm:$0xf0] }
 0x54d   : > { %5265 = vmatpush.bf16.msrb.mxu3 %v11363_v10  ;;  %5241 = vmatpush.bf16.msrb.mxu1 %v10787_v25  ;;  %v15179_v55 = vld [vmem:[#allocation13 + $0x9dc] sm:$0xf]  ;;  %v10723_v14 = vor.u32 %v14931_v18, %v10720_v54 }
 0x54e   : > { %v11712_v56 = vld [vmem:[#allocation13 + $0x9f8] sm:$0xf0] }
 0x54f   : > { %5253 = vmatpush.bf16.msrb.mxu2 %v11075_v35  ;;  %v15243_v59 = vld [vmem:[#allocation13 + $0xbdc] sm:$0xf]  ;;  %5229 = vmatpush.bf16.msrb.mxu0 %v10499_v47  ;;  %v11715_v2 = vor.u32 %v15179_v55, %v11712_v56  ;;  %v1924_v47 = vperm.slane %v16986_v46, 5  ;;  %v5024_v55 = vpop.f32.mrf.mxu0  ;;  %v5037_v56 = vpop.f32.mrf.mxu1 }
 0x550   : > { %v11968_v60 = vld [vmem:[#allocation13 + $0xbf8] sm:$0xf0] }
 0x551   : > { %5266 = vmatpush.bf16.msrb.mxu3 %v11331_v36  ;;  %v15003_v50 = vld [vmem:[#allocation13 + $0x45c] sm:$0xf]  ;;  %5242 = vmatpush.bf16.msrb.mxu1 %v10755_v49  ;;  %v11971_v3 = vor.u32 %v15243_v59, %v11968_v60 }
 0x552   : > { %v11008_v63 = vld [vmem:[#allocation13 + $0x478] sm:$0xf0] }
 0x553   : > { %v15067_v0 = vld [vmem:[#allocation13 + $0x65c] sm:$0xf]  ;;  %5254 = vmatpush.bf16.msrb.mxu2 %v11043_v52  ;;  %v11011_v6 = vor.u32 %v15003_v50, %v11008_v63  ;;  %5230 = vmatpush.bf16.msrb.mxu0 %v10467_v13  ;;  %v5025_v63 = vadd.f32 %v5024_v55, %v1924_v47 }
 0x554   : > { %v11264_v1 = vld [vmem:[#allocation13 + $0x678] sm:$0xf0] }
 0x555   : > { %5267 = vmatpush.bf16.msrb.mxu3 %v11299_v53  ;;  %v15171_v4 = vld [vmem:[#allocation13 + $0x99c] sm:$0xf]  ;;  %v11267_v7 = vor.u32 %v15067_v0, %v11264_v1  ;;  %5243 = vmatpush.bf16.msrb.mxu1 %v10723_v14 }
 0x556   : > { %v11680_v5 = vld [vmem:[#allocation13 + $0x9b8] sm:$0xf0]  ;;  %5231 = vmatmul.bf16.vlgmr.msrb.gmra.mxu0 %v16877_v30 }
 0x557   : > { %v15235_v48 = vld [vmem:[#allocation13 + $0xb9c] sm:$0xf]  ;;  %5275 = vmatpush.bf16.msra.mxu0 %v11715_v2  ;;  %v11683_v23 = vor.u32 %v15171_v4, %v11680_v5  ;;  %5255 = vmatpush.bf16.msrb.mxu2 %v11011_v6  ;;  %v16991_v2 = vadd.f32 %v5037_v56, %v5025_v63  ;;  %v12710_v56 = vld [vmem:[#allocation16 + $0x1c0] sm:$0xf] }
 0x558   : > { %v11936_v10 = vld [vmem:[#allocation13 + $0xbb8] sm:$0xf0]  ;;  %5244 = vmatmul.bf16.vlgmr.msrb.gmra.mxu1 %v16879_v31 }
 0x559   : > { %v14995_v11 = vld [vmem:[#allocation13 + $0x41c] sm:$0xf]  ;;  %5288 = vmatpush.bf16.msra.mxu1 %v11971_v3  ;;  %v11939_v25 = vor.u32 %v15235_v48, %v11936_v10  ;;  %5268 = vmatpush.bf16.msrb.mxu3 %v11267_v7 }
 0x55a   : > { %v10976_v15 = vld [vmem:[#allocation13 + $0x438] sm:$0xf0] }
 0x55b   : > { %v15059_v16 = vld [vmem:[#allocation13 + $0x61c] sm:$0xf]  ;;  %v10979_v27 = vor.u32 %v14995_v11, %v10976_v15  ;;  %5276 = vmatpush.bf16.msra.mxu0 %v11683_v23 }
 0x55c   : > { %v11232_v17 = vld [vmem:[#allocation13 + $0x638] sm:$0xf0] }
 0x55d   : > { %v15307_v19 = vld [vmem:[#allocation13 + $0xddc] sm:$0xf]  ;;  %v11235_v34 = vor.u32 %v15059_v16, %v11232_v17  ;;  %5289 = vmatpush.bf16.msra.mxu1 %v11939_v25  ;;  %5256 = vmatpush.bf16.msrb.mxu2 %v10979_v27 }
 0x55e   : > { %v12224_v20 = vld [vmem:[#allocation13 + $0xdf8] sm:$0xf0] }
 0x55f   : > { %v15371_v21 = vld [vmem:[#allocation13 + $0xfdc] sm:$0xf]  ;;  %v12227_v37 = vor.u32 %v15307_v19, %v12224_v20  ;;  %5269 = vmatpush.bf16.msrb.mxu3 %v11235_v34 }
 0x560   : > { %v12480_v22 = vld [vmem:[#allocation13 + $0xff8] sm:$0xf0]  ;;  %5257 = vmatmul.bf16.vlgmr.msrb.gmra.mxu2 %v16883_v57 }
 0x561   : > { %v15163_v35 = vld [vmem:[#allocation13 + $0x95c] sm:$0xf]  ;;  %v12483_v40 = vor.u32 %v15371_v21, %v12480_v22  ;;  %5301 = vmatpush.bf16.msra.mxu2 %v12227_v37  ;;  %v5026_v21 = vpop.f32.mrf.mxu0  ;;  %v5039_v22 = vpop.f32.mrf.mxu1 }
 0x562   : > { %v11648_v36 = vld [vmem:[#allocation13 + $0x978] sm:$0xf0]  ;;  %5270 = vmatmul.bf16.vlgmr.msrb.gmra.mxu3 %v16885_v58  ;;  %v13478_v21 = vld [vmem:[#allocation16 + $0x7c0] sm:$0xf] }
 0x563   : > { %v15227_v12 = vld [vmem:[#allocation13 + $0xb5c] sm:$0xf]  ;;  %v11651_v49 = vor.u32 %v15163_v35, %v11648_v36  ;;  %5314 = vmatpush.bf16.msra.mxu3 %v12483_v40  ;;  %v15628_v22 = vld [vmem:[#allocation16 + $0x7dc] sm:$0xf0] }
 0x564   : > { %v11904_v39 = vld [vmem:[#allocation13 + $0xb78] sm:$0xf0] }
 0x565   : > { %v15299_v41 = vld [vmem:[#allocation13 + $0xd9c] sm:$0xf]  ;;  %v11907_v30 = vor.u32 %v15227_v12, %v11904_v39  ;;  %5277 = vmatpush.bf16.msra.mxu0 %v11651_v49 }
 0x566   : > { %v12192_v43 = vld [vmem:[#allocation13 + $0xdb8] sm:$0xf0] }
 0x567   : > { %v15363_v44 = vld [vmem:[#allocation13 + $0xf9c] sm:$0xf]  ;;  %v12195_v51 = vor.u32 %v15299_v41, %v12192_v43  ;;  %5290 = vmatpush.bf16.msra.mxu1 %v11907_v30 }
 0x568   : > { %v12448_v45 = vld [vmem:[#allocation13 + $0xfb8] sm:$0xf0] }
 0x569   : > { %v15155_v38 = vld [vmem:[#allocation13 + $0x91c] sm:$0xf]  ;;  %v12451_v18 = vor.u32 %v15363_v44, %v12448_v45  ;;  %5302 = vmatpush.bf16.msra.mxu2 %v12195_v51  ;;  %v16993_v44 = vpop.f32.mrf.mxu2  ;;  %v16995_v45 = vpop.f32.mrf.mxu3 }
 0x56a   : > { %v11616_v31 = vld [vmem:[#allocation13 + $0x938] sm:$0xf0] }
 0x56b   : > { %v15219_v52 = vld [vmem:[#allocation13 + $0xb1c] sm:$0xf]  ;;  %v11619_v0 = vor.u32 %v15155_v38, %v11616_v31  ;;  %5315 = vmatpush.bf16.msra.mxu3 %v12451_v18 }
 0x56c   : > { %v11872_v53 = vld [vmem:[#allocation13 + $0xb38] sm:$0xf0] }
 0x56d   : > { %v15291_v54 = vld [vmem:[#allocation13 + $0xd5c] sm:$0xf]  ;;  %v11875_v1 = vor.u32 %v15219_v52, %v11872_v53  ;;  %5278 = vmatpush.bf16.msra.mxu0 %v11619_v0 }
 0x56e   : > { %v12160_v59 = vld [vmem:[#allocation13 + $0xd78] sm:$0xf0] }
 0x56f   : > { %v15355_v60 = vld [vmem:[#allocation13 + $0xf5c] sm:$0xf]  ;;  %v12163_v3 = vor.u32 %v15291_v54, %v12160_v59  ;;  %5291 = vmatpush.bf16.msra.mxu1 %v11875_v1  ;;  %v15436_v59 = vld [vmem:[#allocation16 + $0x1dc] sm:$0xf0] }
 0x570   : > { %v12416_v50 = vld [vmem:[#allocation13 + $0xf78] sm:$0xf0] }
 0x571   : > { %v15147_v13 = vld [vmem:[#allocation13 + $0x8dc] sm:$0xf]  ;;  %v12419_v4 = vor.u32 %v15355_v60, %v12416_v50  ;;  %5303 = vmatpush.bf16.msra.mxu2 %v12163_v3  ;;  %v12966_v60 = vld [vmem:[#allocation16 + $0x3c0] sm:$0xf] }
 0x572   : > { %v11584_v14 = vld [vmem:[#allocation13 + $0x8f8] sm:$0xf0]  ;;  %v15500_v50 = vld [vmem:[#allocation16 + $0x3dc] sm:$0xf0] }
 0x573   : > { %v15211_v5 = vld [vmem:[#allocation13 + $0xadc] sm:$0xf]  ;;  %v11587_v58 = vor.u32 %v15147_v13, %v11584_v14  ;;  %5316 = vmatpush.bf16.msra.mxu3 %v12419_v4  ;;  %v12711_v4 = vor.u32 %v15436_v59, %v12710_v56  ;;  %v15548_v56 = vld [vmem:[#allocation16 + $0x55c] sm:$0xf0] }
 0x574   : > { %v11840_v48 = vld [vmem:[#allocation13 + $0xaf8] sm:$0xf0]  ;;  %v13414_v59 = vld [vmem:[#allocation16 + $0x740] sm:$0xf] }
 0x575   : > { %v15283_v6 = vld [vmem:[#allocation13 + $0xd1c] sm:$0xf]  ;;  %v11843_v9 = vor.u32 %v15211_v5, %v11840_v48  ;;  %5279 = vmatpush.bf16.msra.mxu0 %v11587_v58  ;;  %v12967_v5 = vor.u32 %v15500_v50, %v12966_v60  ;;  %v12678_v48 = vld [vmem:[#allocation16 + $0x180] sm:$0xf]  ;;  %v5052_v58 = vpop.f32.mrf.mxu2 }
 0x576   : > { %v12128_v7 = vld [vmem:[#allocation13 + $0xd38] sm:$0xf0]  ;;  %v15612_v60 = vld [vmem:[#allocation16 + $0x75c] sm:$0xf0] }
 0x577   : > { %v15347_v57 = vld [vmem:[#allocation13 + $0xf1c] sm:$0xf]  ;;  %v12131_v15 = vor.u32 %v15283_v6, %v12128_v7  ;;  %5292 = vmatpush.bf16.msra.mxu1 %v11843_v9  ;;  %v15428_v6 = vld [vmem:[#allocation16 + $0x19c] sm:$0xf0]  ;;  %v5065_v9 = vpop.f32.mrf.mxu3 }
 0x578   : > { %v12384_v8 = vld [vmem:[#allocation13 + $0xf38] sm:$0xf0]  ;;  %v12934_v7 = vld [vmem:[#allocation16 + $0x380] sm:$0xf] }
 0x579   : > { %v15139_v10 = vld [vmem:[#allocation13 + $0x89c] sm:$0xf]  ;;  %v12387_v16 = vor.u32 %v15347_v57, %v12384_v8  ;;  %5304 = vmatpush.bf16.msra.mxu2 %v12131_v15 }
 0x57a   : > { %v11552_v11 = vld [vmem:[#allocation13 + $0x8b8] sm:$0xf0] }
 0x57b   : > { %v15203_v17 = vld [vmem:[#allocation13 + $0xa9c] sm:$0xf]  ;;  %v11555_v34 = vor.u32 %v15139_v10, %v11552_v11  ;;  %5317 = vmatpush.bf16.msra.mxu3 %v12387_v16  ;;  %v15492_v10 = vld [vmem:[#allocation16 + $0x39c] sm:$0xf0] }
 0x57c   : > { %v11808_v19 = vld [vmem:[#allocation13 + $0xab8] sm:$0xf0] }
 0x57d   : > { %v15275_v20 = vld [vmem:[#allocation13 + $0xcdc] sm:$0xf]  ;;  %v11811_v35 = vor.u32 %v15203_v17, %v11808_v19  ;;  %5280 = vmatpush.bf16.msra.mxu0 %v11555_v34  ;;  %v13222_v19 = vld [vmem:[#allocation16 + $0x5c0] sm:$0xf] }
 0x57e   : > { %v12096_v23 = vld [vmem:[#allocation13 + $0xcf8] sm:$0xf0] }
 0x57f   : > { %v15339_v25 = vld [vmem:[#allocation13 + $0xedc] sm:$0xf]  ;;  %v12099_v40 = vor.u32 %v15275_v20, %v12096_v23  ;;  %5293 = vmatpush.bf16.msra.mxu1 %v11811_v35  ;;  %v15564_v20 = vld [vmem:[#allocation16 + $0x5dc] sm:$0xf0]  ;;  %v12679_v23 = vor.u32 %v15428_v6, %v12678_v48 }
 0x580   : > { %v12352_v27 = vld [vmem:[#allocation13 + $0xef8] sm:$0xf0]  ;;  %v12646_v35 = vld [vmem:[#allocation16 + $0x140] sm:$0xf] }
 0x581   : > { %v15131_v36 = vld [vmem:[#allocation13 + $0x85c] sm:$0xf]  ;;  %v12355_v12 = vor.u32 %v15339_v25, %v12352_v27  ;;  %5305 = vmatpush.bf16.msra.mxu2 %v12099_v40  ;;  %v12935_v25 = vor.u32 %v15492_v10, %v12934_v7  ;;  %v13479_v40 = vor.u32 %v15628_v22, %v13478_v21  ;;  %v15540_v48 = vld [vmem:[#allocation16 + $0x51c] sm:$0xf0] }
 0x582   : > { %v11520_v37 = vld [vmem:[#allocation13 + $0x878] sm:$0xf0]  ;;  %v13382_v6 = vld [vmem:[#allocation16 + $0x700] sm:$0xf] }
 0x583   : > { %v15195_v39 = vld [vmem:[#allocation13 + $0xa5c] sm:$0xf]  ;;  %v11523_v38 = vor.u32 %v15131_v36, %v11520_v37  ;;  %5318 = vmatpush.bf16.msra.mxu3 %v12355_v12  ;;  %v15420_v36 = vld [vmem:[#allocation16 + $0x15c] sm:$0xf0]  ;;  %v13223_v37 = vor.u32 %v15564_v20, %v13222_v19 }
 0x584   : > { %v11776_v41 = vld [vmem:[#allocation13 + $0xa78] sm:$0xf0]  ;;  %v12902_v12 = vld [vmem:[#allocation16 + $0x340] sm:$0xf] }
 0x585   : > { %v15267_v43 = vld [vmem:[#allocation13 + $0xc9c] sm:$0xf]  ;;  %v11779_v31 = vor.u32 %v15195_v39, %v11776_v41  ;;  %5281 = vmatpush.bf16.msra.mxu0 %v11523_v38  ;;  %v15484_v39 = vld [vmem:[#allocation16 + $0x35c] sm:$0xf0] }
 0x586   : > { %v12064_v47 = vld [vmem:[#allocation13 + $0xcb8] sm:$0xf0]  ;;  %v13190_v41 = vld [vmem:[#allocation16 + $0x580] sm:$0xf]  ;;  %v12903_v38 = vor.u32 %v15484_v39, %v12902_v12  ;;  %v17005_v12 = vpop.f32.mrf.mxu2  ;;  %v17007_v39 = vpop.f32.mrf.mxu3 }
 0x587   : > { %v15331_v49 = vld [vmem:[#allocation13 + $0xe9c] sm:$0xf]  ;;  %v12067_v53 = vor.u32 %v15267_v43, %v12064_v47  ;;  %5294 = vmatpush.bf16.msra.mxu1 %v11779_v31  ;;  %v15556_v43 = vld [vmem:[#allocation16 + $0x59c] sm:$0xf0] }
 0x588   : > { %v12320_v30 = vld [vmem:[#allocation13 + $0xeb8] sm:$0xf0]  ;;  %v13446_v47 = vld [vmem:[#allocation16 + $0x780] sm:$0xf] }
 0x589   : > { %v15123_v51 = vld [vmem:[#allocation13 + $0x81c] sm:$0xf]  ;;  %v12323_v54 = vor.u32 %v15331_v49, %v12320_v30  ;;  %5306 = vmatpush.bf16.msra.mxu2 %v12067_v53  ;;  %v15620_v49 = vld [vmem:[#allocation16 + $0x79c] sm:$0xf0]  ;;  %v12647_v30 = vor.u32 %v15420_v36, %v12646_v35 }
 0x58a   : > { %v11488_v18 = vld [vmem:[#allocation13 + $0x838] sm:$0xf0]  ;;  %v12614_v31 = vld [vmem:[#allocation16 + $0x100] sm:$0xf] }
 0x58b   : > { %v15187_v52 = vld [vmem:[#allocation13 + $0xa1c] sm:$0xf]  ;;  %v11491_v14 = vor.u32 %v15123_v51, %v11488_v18  ;;  %5319 = vmatpush.bf16.msra.mxu3 %v12323_v54  ;;  %v15412_v51 = vld [vmem:[#allocation16 + $0x11c] sm:$0xf0]  ;;  %v16999_v54 = vpop.f32.mrf.mxu0 }
 0x58c   : > { %v11744_v55 = vld [vmem:[#allocation13 + $0xa38] sm:$0xf0]  ;;  %v12870_v18 = vld [vmem:[#allocation16 + $0x300] sm:$0xf]  ;;  %v12615_v50 = vor.u32 %v15412_v51, %v12614_v31 }
 0x58d   : > { %v15259_v63 = vld [vmem:[#allocation13 + $0xc5c] sm:$0xf]  ;;  %v11747_v3 = vor.u32 %v15187_v52, %v11744_v55  ;;  %5282 = vmatpush.bf16.msra.mxu0 %v11491_v14  ;;  %v15476_v52 = vld [vmem:[#allocation16 + $0x31c] sm:$0xf0]  ;;  %v17001_v55 = vpop.f32.mrf.mxu1  ;;  %v13415_v14 = vor.u32 %v15612_v60, %v13414_v59 }
 0x58e   : > { %v12032_v0 = vld [vmem:[#allocation13 + $0xc78] sm:$0xf0]  ;;  %v13158_v53 = vld [vmem:[#allocation16 + $0x540] sm:$0xf] }
 0x58f   : > { %v15323_v1 = vld [vmem:[#allocation13 + $0xe5c] sm:$0xf]  ;;  %v12035_v57 = vor.u32 %v15259_v63, %v12032_v0  ;;  %5295 = vmatpush.bf16.msra.mxu1 %v11747_v3  ;;  %v12871_v63 = vor.u32 %v15476_v52, %v12870_v18  ;;  %v12582_v0 = vld [vmem:[#allocation16 + $0xc0] sm:$0xf] }
 0x590   : > { %v12288_v13 = vld [vmem:[#allocation13 + $0xe78] sm:$0xf0]  ;;  %5283 = vmatmul.bf16.vlgmr.msra.gmra.mxu0 %v16891_v29  ;;  %v13191_v29 = vor.u32 %v15556_v43, %v13190_v41  ;;  %v12838_v3 = vld [vmem:[#allocation16 + $0x2c0] sm:$0xf] }
 0x591   : > { %v12291_v8 = vor.u32 %v15323_v1, %v12288_v13  ;;  %v15251_v11 = vld [vmem:[#allocation13 + $0xc1c] sm:$0xf]  ;;  %8433 = vmatpush.bf16.msrb.mxu0 %v12711_v4  ;;  %5307 = vmatpush.bf16.msra.mxu2 %v12035_v57  ;;  %v15404_v1 = vld [vmem:[#allocation16 + $0xdc] sm:$0xf0]  ;;  %v13159_v13 = vor.u32 %v15548_v56, %v13158_v53 }
 0x592   : > { %v12000_v15 = vld [vmem:[#allocation13 + $0xc38] sm:$0xf0]  ;;  %5296 = vmatmul.bf16.vlgmr.msra.gmra.mxu1 %v16893_v32  ;;  %v13447_v32 = vor.u32 %v15620_v49, %v13446_v47  ;;  %v15468_v4 = vld [vmem:[#allocation16 + $0x2dc] sm:$0xf0] }
 0x593   : > { %v15315_v16 = vld [vmem:[#allocation13 + $0xe1c] sm:$0xf]  ;;  %8446 = vmatpush.bf16.msrb.mxu1 %v12967_v5  ;;  %5320 = vmatpush.bf16.msra.mxu3 %v12291_v8  ;;  %v12003_v27 = vor.u32 %v15251_v11, %v12000_v15  ;;  %v13126_v5 = vld [vmem:[#allocation16 + $0x500] sm:$0xf] }
 0x594   : > { %v12256_v17 = vld [vmem:[#allocation13 + $0xe38] sm:$0xf0]  ;;  %v15604_v7 = vld [vmem:[#allocation16 + $0x71c] sm:$0xf0]  ;;  %v13127_v58 = vor.u32 %v15540_v48, %v13126_v5 }
 0x595   : > { %v12259_v34 = vor.u32 %v15315_v16, %v12256_v17  ;;  %8434 = vmatpush.bf16.msrb.mxu0 %v12679_v23  ;;  %5308 = vmatpush.bf16.msra.mxu2 %v12003_v27  ;;  %v12550_v57 = vld [vmem:[#allocation16 + $0x80] sm:$0xf]  ;;  %v13383_v9 = vor.u32 %v15604_v7, %v13382_v6  ;;  %v5078_v16 = vpop.f32.mrf.mxu0  ;;  %v5091_v17 = vpop.f32.mrf.mxu1 }
 0x596   : > { %v15396_v8 = vld [vmem:[#allocation16 + $0x9c] sm:$0xf0] }
 0x597   : > { %8447 = vmatpush.bf16.msrb.mxu1 %v12935_v25  ;;  %5321 = vmatpush.bf16.msra.mxu3 %v12259_v34  ;;  %v12806_v10 = vld [vmem:[#allocation16 + $0x280] sm:$0xf]  ;;  %v12551_v22 = vor.u32 %v15396_v8, %v12550_v57  ;;  %v5117_v57 = vpop.f32.mrf.mxu3 }
 0x598   : > { %5309 = vmatmul.bf16.vlgmr.msra.gmra.mxu2 %v16899_v61  ;;  %v12583_v61 = vor.u32 %v15404_v1, %v12582_v0  ;;  %v15460_v11 = vld [vmem:[#allocation16 + $0x29c] sm:$0xf0]  ;;  %v5327_v1 = vmax.f32 %v16927_v24, 0.0 }
 0x599   : > { %8459 = vmatpush.bf16.msrb.mxu2 %v13223_v37  ;;  %8435 = vmatpush.bf16.msrb.mxu0 %v12647_v30  ;;  %v13094_v15 = vld [vmem:[#allocation16 + $0x4c0] sm:$0xf]  ;;  %v12807_v23 = vor.u32 %v15460_v11, %v12806_v10 }
 0x59a   : > { %5322 = vmatmul.bf16.vlgmr.msra.gmra.mxu3 %v16901_v62  ;;  %v12839_v62 = vor.u32 %v15468_v4, %v12838_v3  ;;  %v15532_v19 = vld [vmem:[#allocation16 + $0x4dc] sm:$0xf0]  ;;  %v5328_v3 = vmax.f32 %v16938_v26, 0.0 }
 0x59b   : > { %8472 = vmatpush.bf16.msrb.mxu3 %v13479_v40  ;;  %8448 = vmatpush.bf16.msrb.mxu1 %v12903_v38  ;;  %v13350_v20 = vld [vmem:[#allocation16 + $0x6c0] sm:$0xf]  ;;  %v13095_v34 = vor.u32 %v15532_v19, %v13094_v15  ;;  %v17011_v15 = vpack.c.bf16 %v5327_v1, %v5327_v1 }
 0x59c   : > { %v15596_v21 = vld [vmem:[#allocation16 + $0x6dc] sm:$0xf0]  ;;  %v17013_v17 = vpack.c.bf16 %v5328_v3, %v5328_v3 }
 0x59d   : > { %8460 = vmatpush.bf16.msrb.mxu2 %v13191_v29  ;;  %8436 = vmatpush.bf16.msrb.mxu0 %v12615_v50  ;;  %v12518_v25 = vld [vmem:[#allocation16 + $0x40] sm:$0xf]  ;;  %v13351_v35 = vor.u32 %v15596_v21, %v13350_v20  ;;  %v5329_v21 = vmax.f32 %v16952_v33, 0.0  ;;  %v5051_v33 = vadd.f32 %v16993_v44, %v16991_v2 }
 0x59e   : > { %v15388_v27 = vld [vmem:[#allocation16 + $0x5c] sm:$0xf0] }
 0x59f   : > { %8473 = vmatpush.bf16.msrb.mxu3 %v13447_v32  ;;  %8449 = vmatpush.bf16.msrb.mxu1 %v12871_v63  ;;  %v12774_v36 = vld [vmem:[#allocation16 + $0x240] sm:$0xf]  ;;  %v12519_v49 = vor.u32 %v15388_v27, %v12518_v25  ;;  %v5064_v44 = vadd.f32 %v16995_v45, %v5051_v33  ;;  %v15496_v33 = vld [vmem:[#allocation16 + $0x3c4] sm:$0xf] }
 0x5a0   : > { %v15452_v37 = vld [vmem:[#allocation16 + $0x25c] sm:$0xf0] }
 0x5a1   : > { %8461 = vmatpush.bf16.msrb.mxu2 %v13159_v13  ;;  %8437 = vmatpush.bf16.msrb.mxu0 %v12583_v61  ;;  %v13062_v40 = vld [vmem:[#allocation16 + $0x480] sm:$0xf]  ;;  %v12775_v30 = vor.u32 %v15452_v37, %v12774_v36  ;;  %v5077_v1 = vadd.f32 %v16999_v54, %v5064_v44  ;;  %v12680_v44 = vld [vmem:[#allocation16 + $0x1a0] sm:$0xf0] }
 0x5a2   : > { %v15524_v41 = vld [vmem:[#allocation16 + $0x49c] sm:$0xf0] }
 0x5a3   : > { %8474 = vmatpush.bf16.msrb.mxu3 %v13415_v14  ;;  %8450 = vmatpush.bf16.msrb.mxu1 %v12839_v62  ;;  %v13318_v43 = vld [vmem:[#allocation16 + $0x680] sm:$0xf]  ;;  %v13063_v29 = vor.u32 %v15524_v41, %v13062_v40  ;;  %v5104_v62 = vpop.f32.mrf.mxu2 }
 0x5a4   : > { %v15588_v47 = vld [vmem:[#allocation16 + $0x69c] sm:$0xf0] }
 0x5a5   : > { %8462 = vmatpush.bf16.msrb.mxu2 %v13127_v58  ;;  %8438 = vmatpush.bf16.msrb.mxu0 %v12551_v22  ;;  %v12486_v38 = vld [vmem:[#allocation16] sm:$0xf]  ;;  %v13319_v32 = vor.u32 %v15588_v47, %v13318_v43  ;;  %v5330_v22 = vmax.f32 %v16968_v42, 0.0 }
 0x5a6   : > { %v15380_v31 = vld [vmem:[#allocation16 + $0x1c] sm:$0xf0] }
 0x5a7   : > { %8475 = vmatpush.bf16.msrb.mxu3 %v13383_v9  ;;  %8451 = vmatpush.bf16.msrb.mxu1 %v12807_v23  ;;  %v12742_v51 = vld [vmem:[#allocation16 + $0x200] sm:$0xf]  ;;  %v12487_v13 = vor.u32 %v15380_v31, %v12486_v38 }
 0x5a8   : > { %v15444_v18 = vld [vmem:[#allocation16 + $0x21c] sm:$0xf0] }
 0x5a9   : > { %8463 = vmatpush.bf16.msrb.mxu2 %v13095_v34  ;;  %v13734_v52 = vld [vmem:[#allocation16 + $0x9c0] sm:$0xf]  ;;  %8439 = vmatpush.bf16.msrb.mxu0 %v12519_v49  ;;  %v12743_v14 = vor.u32 %v15444_v18, %v12742_v51  ;;  %v17021_v49 = vpack.c.bf16 %v5329_v21, %v5329_v21  ;;  %v17027_v18 = vpop.f32.mrf.mxu1  ;;  %v17037_v21 = vpop.f32.mrf.mxu3 }
 0x5aa   : > { %v15692_v53 = vld [vmem:[#allocation16 + $0x9dc] sm:$0xf0] }
 0x5ab   : > { %8476 = vmatpush.bf16.msrb.mxu3 %v13351_v35  ;;  %v13990_v56 = vld [vmem:[#allocation16 + $0xbc0] sm:$0xf]  ;;  %8452 = vmatpush.bf16.msrb.mxu1 %v12775_v30  ;;  %v13735_v4 = vor.u32 %v15692_v53, %v13734_v52  ;;  %v17023_v30 = vpack.c.bf16 %v5330_v22, %v5330_v22 }
 0x5ac   : > { %v15756_v59 = vld [vmem:[#allocation16 + $0xbdc] sm:$0xf0] }
 0x5ad   : > { %v13030_v60 = vld [vmem:[#allocation16 + $0x440] sm:$0xf]  ;;  %8464 = vmatpush.bf16.msrb.mxu2 %v13063_v29  ;;  %v13991_v5 = vor.u32 %v15756_v59, %v13990_v56  ;;  %8440 = vmatpush.bf16.msrb.mxu0 %v12487_v13 }
 0x5ae   : > { %v15516_v50 = vld [vmem:[#allocation16 + $0x45c] sm:$0xf0] }
 0x5af   : > { %v13286_v63 = vld [vmem:[#allocation16 + $0x640] sm:$0xf]  ;;  %8477 = vmatpush.bf16.msrb.mxu3 %v13319_v32  ;;  %v13031_v7 = vor.u32 %v15516_v50, %v13030_v60  ;;  %8453 = vmatpush.bf16.msrb.mxu1 %v12743_v14  ;;  %v17025_v32 = vpop.f32.mrf.mxu0 }
 0x5b0   : > { %v15580_v0 = vld [vmem:[#allocation16 + $0x65c] sm:$0xf0]  ;;  %8441 = vmatmul.bf16.vlgmr.msrb.gmra.mxu0 %v17011_v15 }
 0x5b1   : > { %v13702_v48 = vld [vmem:[#allocation16 + $0x980] sm:$0xf]  ;;  %v13287_v61 = vor.u32 %v15580_v0, %v13286_v63  ;;  %8485 = vmatpush.bf16.msra.mxu0 %v13735_v4  ;;  %8465 = vmatpush.bf16.msrb.mxu2 %v13031_v7  ;;  %v5143_v57 = vpop.f32.mrf.mxu1 }
 0x5b2   : > { %v15684_v6 = vld [vmem:[#allocation16 + $0x99c] sm:$0xf0]  ;;  %8454 = vmatmul.bf16.vlgmr.msrb.gmra.mxu1 %v17013_v17  ;;  %v12904_v57 = vld [vmem:[#allocation16 + $0x360] sm:$0xf0] }
 0x5b3   : > { %v13958_v8 = vld [vmem:[#allocation16 + $0xb80] sm:$0xf]  ;;  %8498 = vmatpush.bf16.msra.mxu1 %v13991_v5  ;;  %v13703_v19 = vor.u32 %v15684_v6, %v13702_v48  ;;  %8478 = vmatpush.bf16.msrb.mxu3 %v13287_v61  ;;  %v5090_v61 = vadd.f32 %v17001_v55, %v5077_v1  ;;  %v1925_v1 = vperm.slane %v16986_v46, 6 }
 0x5b4   : > { %v15748_v58 = vld [vmem:[#allocation16 + $0xb9c] sm:$0xf0] }
 0x5b5   : > { %v12998_v9 = vld [vmem:[#allocation16 + $0x400] sm:$0xf]  ;;  %v13959_v20 = vor.u32 %v15748_v58, %v13958_v8  ;;  %8486 = vmatpush.bf16.msra.mxu0 %v13703_v19  ;;  %v5103_v54 = vadd.f32 %v17005_v12, %v5090_v61  ;;  %v12648_v61 = vld [vmem:[#allocation16 + $0x160] sm:$0xf0] }
 0x5b6   : > { %v15508_v24 = vld [vmem:[#allocation16 + $0x41c] sm:$0xf0] }
 0x5b7   : > { %v13254_v10 = vld [vmem:[#allocation16 + $0x600] sm:$0xf]  ;;  %v12999_v23 = vor.u32 %v15508_v24, %v12998_v9  ;;  %8499 = vmatpush.bf16.msra.mxu1 %v13959_v20  ;;  %v5130_v62 = vpop.f32.mrf.mxu0  ;;  %v17035_v20 = vpop.f32.mrf.mxu2 }
 0x5b8   : > { %v15572_v11 = vld [vmem:[#allocation16 + $0x61c] sm:$0xf0]  ;;  %v15480_v62 = vld [vmem:[#allocation16 + $0x344] sm:$0xf] }
 0x5b9   : > { %v14246_v26 = vld [vmem:[#allocation16 + $0xdc0] sm:$0xf]  ;;  %v13255_v25 = vor.u32 %v15572_v11, %v13254_v10  ;;  %8466 = vmatpush.bf16.msrb.mxu2 %v12999_v23  ;;  %v5116_v23 = vadd.f32 %v17007_v39, %v5103_v54  ;;  %v5129_v54 = vadd.f32 %v17025_v32, %v1925_v1 }
 0x5ba   : > { %v15820_v16 = vld [vmem:[#allocation16 + $0xddc] sm:$0xf0] }
 0x5bb   : > { %v13670_v27 = vld [vmem:[#allocation16 + $0x940] sm:$0xf]  ;;  %v14247_v34 = vor.u32 %v15820_v16, %v14246_v26  ;;  %8479 = vmatpush.bf16.msrb.mxu3 %v13255_v25 }
 0x5bc   : > { %v15676_v35 = vld [vmem:[#allocation16 + $0x95c] sm:$0xf0]  ;;  %8467 = vmatmul.bf16.vlgmr.msrb.gmra.mxu2 %v17021_v49 }
 0x5bd   : > { %v13926_v36 = vld [vmem:[#allocation16 + $0xb40] sm:$0xf]  ;;  %v13671_v42 = vor.u32 %v15676_v35, %v13670_v27  ;;  %8511 = vmatpush.bf16.msra.mxu2 %v14247_v34 }
 0x5be   : > { %v15740_v37 = vld [vmem:[#allocation16 + $0xb5c] sm:$0xf0]  ;;  %8480 = vmatmul.bf16.vlgmr.msrb.gmra.mxu3 %v17023_v30 }
 0x5bf   : > { %v14214_v40 = vld [vmem:[#allocation16 + $0xd80] sm:$0xf]  ;;  %v13927_v43 = vor.u32 %v15740_v37, %v13926_v36  ;;  %8487 = vmatpush.bf16.msra.mxu0 %v13671_v42  ;;  %v12968_v42 = vld [vmem:[#allocation16 + $0x3e0] sm:$0xf0] }
 0x5c0   : > { %v15812_v41 = vld [vmem:[#allocation16 + $0xd9c] sm:$0xf0] }
 0x5c1   : > { %v13638_v47 = vld [vmem:[#allocation16 + $0x900] sm:$0xf]  ;;  %v14215_v38 = vor.u32 %v15812_v41, %v14214_v40  ;;  %8500 = vmatpush.bf16.msra.mxu1 %v13927_v43  ;;  %v15432_v40 = vld [vmem:[#allocation16 + $0x1c4] sm:$0xf] }
 0x5c2   : > { %v15668_v31 = vld [vmem:[#allocation16 + $0x91c] sm:$0xf0]  ;;  %v12712_v41 = vld [vmem:[#allocation16 + $0x1e0] sm:$0xf0] }
 0x5c3   : > { %v13894_v51 = vld [vmem:[#allocation16 + $0xb00] sm:$0xf]  ;;  %v13639_v53 = vor.u32 %v15668_v31, %v13638_v47  ;;  %8512 = vmatpush.bf16.msra.mxu2 %v14215_v38  ;;  %v5331_v38 = vmax.f32 %v16982_v28, 0.0  ;;  %v5332_v31 = vmax.f32 %v5116_v23, 0.0  ;;  %v12872_v23 = vld [vmem:[#allocation16 + $0x320] sm:$0xf0] }
 0x5c4   : > { %v15732_v29 = vld [vmem:[#allocation16 + $0xb1c] sm:$0xf0] }
 0x5c5   : > { %v14182_v52 = vld [vmem:[#allocation16 + $0xd40] sm:$0xf]  ;;  %v13895_v56 = vor.u32 %v15732_v29, %v13894_v51  ;;  %8488 = vmatpush.bf16.msra.mxu0 %v13639_v53  ;;  %v12715_v29 = vor.u32 %v15432_v40, %v12712_v41  ;;  %v15488_v53 = vld [vmem:[#allocation16 + $0x384] sm:$0xf] }
 0x5c6   : > { %v15804_v2 = vld [vmem:[#allocation16 + $0xd5c] sm:$0xf0]  ;;  %v13160_v40 = vld [vmem:[#allocation16 + $0x560] sm:$0xf0] }
 0x5c7   : > { %v13606_v59 = vld [vmem:[#allocation16 + $0x8c0] sm:$0xf]  ;;  %v14183_v60 = vor.u32 %v15804_v2, %v14182_v52  ;;  %8501 = vmatpush.bf16.msra.mxu1 %v13895_v56  ;;  %v12971_v52 = vor.u32 %v15496_v33, %v12968_v42  ;;  %v15424_v2 = vld [vmem:[#allocation16 + $0x184] sm:$0xf] }
 0x5c8   : > { %v15660_v50 = vld [vmem:[#allocation16 + $0x8dc] sm:$0xf0] }
 0x5c9   : > { %v13862_v63 = vld [vmem:[#allocation16 + $0xac0] sm:$0xf]  ;;  %v13607_v3 = vor.u32 %v15660_v50, %v13606_v59  ;;  %8513 = vmatpush.bf16.msra.mxu2 %v14183_v60  ;;  %v5156_v59 = vpop.f32.mrf.mxu2  ;;  %v5169_v60 = vpop.f32.mrf.mxu3  ;;  %v12936_v50 = vld [vmem:[#allocation16 + $0x3a0] sm:$0xf0] }
 0x5ca   : > { %v15724_v0 = vld [vmem:[#allocation16 + $0xadc] sm:$0xf0]  ;;  %v12552_v59 = vld [vmem:[#allocation16 + $0xa0] sm:$0xf0] }
 0x5cb   : > { %v14150_v13 = vld [vmem:[#allocation16 + $0xd00] sm:$0xf]  ;;  %v13863_v4 = vor.u32 %v15724_v0, %v13862_v63  ;;  %8489 = vmatpush.bf16.msra.mxu0 %v13607_v3  ;;  %v17042_v3 = vpack.c.bf16 %v5331_v38, %v5331_v38  ;;  %v15464_v38 = vld [vmem:[#allocation16 + $0x2c4] sm:$0xf] }
 0x5cc   : > { %v15796_v14 = vld [vmem:[#allocation16 + $0xd1c] sm:$0xf0]  ;;  %v15456_v60 = vld [vmem:[#allocation16 + $0x284] sm:$0xf] }
 0x5cd   : > { %v13574_v5 = vld [vmem:[#allocation16 + $0x880] sm:$0xf]  ;;  %v14151_v45 = vor.u32 %v15796_v14, %v14150_v13  ;;  %8502 = vmatpush.bf16.msra.mxu1 %v13863_v4  ;;  %v15560_v4 = vld [vmem:[#allocation16 + $0x5c4] sm:$0xf] }
 0x5ce   : > { %v15652_v48 = vld [vmem:[#allocation16 + $0x89c] sm:$0xf0] }
 0x5cf   : > { %v13830_v6 = vld [vmem:[#allocation16 + $0xa80] sm:$0xf]  ;;  %v13575_v9 = vor.u32 %v15652_v48, %v13574_v5  ;;  %8514 = vmatpush.bf16.msra.mxu2 %v14151_v45  ;;  %v13224_v5 = vld [vmem:[#allocation16 + $0x5e0] sm:$0xf0]  ;;  %v17044_v45 = vpack.c.bf16 %v5332_v31, %v5332_v31  ;;  %v12683_v48 = vor.u32 %v15424_v2, %v12680_v44 }
 0x5d0   : > { %v15716_v7 = vld [vmem:[#allocation16 + $0xa9c] sm:$0xf0]  ;;  %v12840_v31 = vld [vmem:[#allocation16 + $0x2e0] sm:$0xf0] }
 0x5d1   : > { %v14118_v8 = vld [vmem:[#allocation16 + $0xcc0] sm:$0xf]  ;;  %v13831_v24 = vor.u32 %v15716_v7, %v13830_v6  ;;  %8490 = vmatpush.bf16.msra.mxu0 %v13575_v9  ;;  %v12939_v6 = vor.u32 %v15488_v53, %v12936_v50  ;;  %v15416_v7 = vld [vmem:[#allocation16 + $0x144] sm:$0xf]  ;;  %v13227_v9 = vor.u32 %v15560_v4, %v13224_v5  ;;  %v12843_v53 = vor.u32 %v15464_v38, %v12840_v31 }
 0x5d2   : > { %v15788_v58 = vld [vmem:[#allocation16 + $0xcdc] sm:$0xf0]  ;;  %v13128_v2 = vld [vmem:[#allocation16 + $0x520] sm:$0xf0] }
 0x5d3   : > { %v13542_v10 = vld [vmem:[#allocation16 + $0x840] sm:$0xf]  ;;  %v14119_v11 = vor.u32 %v15788_v58, %v14118_v8  ;;  %8503 = vmatpush.bf16.msra.mxu1 %v13831_v24  ;;  %v12808_v50 = vld [vmem:[#allocation16 + $0x2a0] sm:$0xf0] }
 0x5d4   : > { %v15644_v26 = vld [vmem:[#allocation16 + $0x85c] sm:$0xf0]  ;;  %v15528_v5 = vld [vmem:[#allocation16 + $0x4c4] sm:$0xf] }
 0x5d5   : > { %v13798_v16 = vld [vmem:[#allocation16 + $0xa40] sm:$0xf]  ;;  %v13543_v12 = vor.u32 %v15644_v26, %v13542_v10  ;;  %8515 = vmatpush.bf16.msra.mxu2 %v14119_v11  ;;  %v15552_v10 = vld [vmem:[#allocation16 + $0x584] sm:$0xf]  ;;  %v12651_v26 = vor.u32 %v15416_v7, %v12648_v61 }
 0x5d6   : > { %v15708_v19 = vld [vmem:[#allocation16 + $0xa5c] sm:$0xf0]  ;;  %v13192_v11 = vld [vmem:[#allocation16 + $0x5a0] sm:$0xf0] }
 0x5d7   : > { %v14086_v55 = vld [vmem:[#allocation16 + $0xc80] sm:$0xf]  ;;  %v13799_v25 = vor.u32 %v15708_v19, %v13798_v16  ;;  %8491 = vmatpush.bf16.msra.mxu0 %v13543_v12  ;;  %v12907_v16 = vor.u32 %v15480_v62, %v12904_v57  ;;  %v15408_v19 = vld [vmem:[#allocation16 + $0x104] sm:$0xf] }
 0x5d8   : > { %v15780_v22 = vld [vmem:[#allocation16 + $0xc9c] sm:$0xf0]  ;;  %v15384_v7 = vld [vmem:[#allocation16 + $0x44] sm:$0xf] }
 0x5d9   : > { %v13510_v27 = vld [vmem:[#allocation16 + $0x800] sm:$0xf]  ;;  %v14087_v35 = vor.u32 %v15780_v22, %v14086_v55  ;;  %8504 = vmatpush.bf16.msra.mxu1 %v13799_v25  ;;  %v12616_v55 = vld [vmem:[#allocation16 + $0x120] sm:$0xf0]  ;;  %v5142_v25 = vadd.f32 %v17027_v18, %v5129_v54 }
 0x5da   : > { %v15636_v34 = vld [vmem:[#allocation16 + $0x81c] sm:$0xf0]  ;;  %v15472_v22 = vld [vmem:[#allocation16 + $0x304] sm:$0xf]  ;;  %v12619_v33 = vor.u32 %v15408_v19, %v12616_v55 }
 0x5db   : > { %v13766_v36 = vld [vmem:[#allocation16 + $0xa00] sm:$0xf]  ;;  %v13511_v39 = vor.u32 %v15636_v34, %v13510_v27  ;;  %8516 = vmatpush.bf16.msra.mxu2 %v14087_v35  ;;  %v13195_v27 = vor.u32 %v15552_v10, %v13192_v11  ;;  %v5180_v35 = vpop.f32.mrf.mxu0  ;;  %v5155_v41 = vadd.f32 %v17035_v20, %v5142_v25  ;;  %v12875_v42 = vor.u32 %v15472_v22, %v12872_v23  ;;  %v12520_v61 = vld [vmem:[#allocation16 + $0x60] sm:$0xf0]  ;;  %v5219_v10 = vpop.f32.mrf.mxu3 }
 0x5dc   : > { %v15700_v37 = vld [vmem:[#allocation16 + $0xa1c] sm:$0xf0]  ;;  %v15448_v62 = vld [vmem:[#allocation16 + $0x244] sm:$0xf]  ;;  %v12523_v55 = vor.u32 %v15384_v7, %v12520_v61 }
 0x5dd   : > { %v14054_v43 = vld [vmem:[#allocation16 + $0xc40] sm:$0xf]  ;;  %v13767_v51 = vor.u32 %v15700_v37, %v13766_v36  ;;  %8492 = vmatpush.bf16.msra.mxu0 %v13511_v39  ;;  %v5193_v36 = vpop.f32.mrf.mxu1  ;;  %v15544_v37 = vld [vmem:[#allocation16 + $0x544] sm:$0xf]  ;;  %v5168_v44 = vadd.f32 %v17037_v21, %v5155_v41 }
 0x5de   : > { %v15772_v47 = vld [vmem:[#allocation16 + $0xc5c] sm:$0xf0]  ;;  %v15520_v11 = vld [vmem:[#allocation16 + $0x484] sm:$0xf] }
 0x5df   : > { %v14055_v56 = vor.u32 %v15772_v47, %v14054_v43  ;;  %v14502_v63 = vld [vmem:[#allocation16 + $0xfc0] sm:$0xf]  ;;  %8505 = vmatpush.bf16.msra.mxu1 %v13767_v51  ;;  %v15400_v43 = vld [vmem:[#allocation16 + $0xc4] sm:$0xf]  ;;  %v13163_v51 = vor.u32 %v15544_v37, %v13160_v40  ;;  %v5181_v1 = vadd.f32 %v5180_v35, %v5168_v44 }
 0x5e0   : > { %v15884_v0 = vld [vmem:[#allocation16 + $0xfdc] sm:$0xf0]  ;;  %8493 = vmatmul.bf16.vlgmr.msra.gmra.mxu0 %v17042_v3  ;;  %v12584_v47 = vld [vmem:[#allocation16 + $0xe0] sm:$0xf0] }
 0x5e1   : > { %v14022_v28 = vld [vmem:[#allocation16 + $0xc00] sm:$0xf]  ;;  %v14503_v14 = vor.u32 %v15884_v0, %v14502_v63  ;;  %8537 = vmatpush.bf16.msrb.mxu0 %v12715_v29  ;;  %8517 = vmatpush.bf16.msra.mxu2 %v14055_v56  ;;  %v12587_v20 = vor.u32 %v15400_v43, %v12584_v47  ;;  %v15392_v56 = vld [vmem:[#allocation16 + $0x84] sm:$0xf] }
 0x5e2   : > { %v15764_v13 = vld [vmem:[#allocation16 + $0xc1c] sm:$0xf0]  ;;  %8506 = vmatmul.bf16.vlgmr.msra.gmra.mxu1 %v17044_v45  ;;  %v12555_v21 = vor.u32 %v15392_v56, %v12552_v59  ;;  %v12488_v23 = vld [vmem:[#allocation16 + $0x20] sm:$0xf0] }
 0x5e3   : > { %8550 = vmatpush.bf16.msrb.mxu1 %v12971_v52  ;;  %v14023_v46 = vor.u32 %v15764_v13, %v14022_v28  ;;  %8524 = vmatpush.bf16.msra.mxu3 %v14503_v14  ;;  %v14470_v8 = vld [vmem:[#allocation16 + $0xf80] sm:$0xf]  ;;  %v15536_v52 = vld [vmem:[#allocation16 + $0x504] sm:$0xf]  ;;  %v5182_v14 = vpop.f32.mrf.mxu0 }
 0x5e4   : > { %v15876_v58 = vld [vmem:[#allocation16 + $0xf9c] sm:$0xf0]  ;;  %v13131_v28 = vor.u32 %v15536_v52, %v13128_v2  ;;  %v15688_v25 = vld [vmem:[#allocation16 + $0x9c4] sm:$0xf] }
 0x5e5   : > { %v14471_v24 = vor.u32 %v15876_v58, %v14470_v8  ;;  %8538 = vmatpush.bf16.msrb.mxu0 %v12683_v48  ;;  %8518 = vmatpush.bf16.msra.mxu2 %v14023_v46  ;;  %v14438_v12 = vld [vmem:[#allocation16 + $0xf40] sm:$0xf]  ;;  %v5195_v4 = vpop.f32.mrf.mxu1  ;;  %v13096_v48 = vld [vmem:[#allocation16 + $0x4e0] sm:$0xf0]  ;;  %v5194_v58 = vadd.f32 %v5193_v36, %v5181_v1 }
 0x5e6   : > { %v15868_v32 = vld [vmem:[#allocation16 + $0xf5c] sm:$0xf0]  ;;  %v12776_v46 = vld [vmem:[#allocation16 + $0x260] sm:$0xf0]  ;;  %v13099_v54 = vor.u32 %v15528_v5, %v13096_v48 }
 0x5e7   : > { %8551 = vmatpush.bf16.msrb.mxu1 %v12939_v6  ;;  %8525 = vmatpush.bf16.msra.mxu3 %v14471_v24  ;;  %v14439_v34 = vor.u32 %v15868_v32, %v14438_v12  ;;  %v14406_v39 = vld [vmem:[#allocation16 + $0xf00] sm:$0xf]  ;;  %v12811_v6 = vor.u32 %v15456_v60, %v12808_v50  ;;  %v5206_v24 = vpop.f32.mrf.mxu2  ;;  %v12779_v22 = vor.u32 %v15448_v62, %v12776_v46  ;;  %v15440_v12 = vld [vmem:[#allocation16 + $0x204] sm:$0xf]  ;;  %v5221_v50 = vpop.f32.mrf.mxu3 }
 0x5e8   : > { %v15860_v18 = vld [vmem:[#allocation16 + $0xf1c] sm:$0xf0]  ;;  %v5207_v19 = vadd.f32 %v5206_v24, %v5194_v58  ;;  %v12744_v32 = vld [vmem:[#allocation16 + $0x220] sm:$0xf0] }
 0x5e9   : > { %8563 = vmatpush.bf16.msrb.mxu2 %v13227_v9  ;;  %8539 = vmatpush.bf16.msrb.mxu0 %v12651_v26  ;;  %v14407_v29 = vor.u32 %v15860_v18, %v14406_v39  ;;  %v14374_v63 = vld [vmem:[#allocation16 + $0xec0] sm:$0xf]  ;;  %v13064_v26 = vld [vmem:[#allocation16 + $0x4a0] sm:$0xf0]  ;;  %v12747_v31 = vor.u32 %v15440_v12, %v12744_v32 }
 0x5ea   : > { %v15852_v0 = vld [vmem:[#allocation16 + $0xedc] sm:$0xf0]  ;;  %v5220_v35 = vadd.f32 %v5219_v10, %v5207_v19  ;;  %v13067_v36 = vor.u32 %v15520_v11, %v13064_v26  ;;  %v13736_v37 = vld [vmem:[#allocation16 + $0x9e0] sm:$0xf0] }
 0x5eb   : > { %8552 = vmatpush.bf16.msrb.mxu1 %v12907_v16  ;;  %8526 = vmatpush.bf16.msra.mxu3 %v14439_v34  ;;  %v14375_v13 = vor.u32 %v15852_v0, %v14374_v63  ;;  %v14342_v57 = vld [vmem:[#allocation16 + $0xe80] sm:$0xf]  ;;  %v15376_v16 = vld [vmem:[#allocation16 + $0x4] sm:$0xf] }
 0x5ec   : > { %v15844_v8 = vld [vmem:[#allocation16 + $0xe9c] sm:$0xf0]  ;;  %v15752_v40 = vld [vmem:[#allocation16 + $0xbc4] sm:$0xf]  ;;  %v5333_v47 = vmax.f32 %v5220_v35, 0.0  ;;  %v12491_v38 = vor.u32 %v15376_v16, %v12488_v23 }
 0x5ed   : > { %8564 = vmatpush.bf16.msrb.mxu2 %v13195_v27  ;;  %8540 = vmatpush.bf16.msrb.mxu0 %v12619_v33  ;;  %v14343_v9 = vor.u32 %v15844_v8, %v14342_v57  ;;  %v14310_v27 = vld [vmem:[#allocation16 + $0xe40] sm:$0xf]  ;;  %v13992_v41 = vld [vmem:[#allocation16 + $0xbe0] sm:$0xf0] }
 0x5ee   : > { %v15836_v34 = vld [vmem:[#allocation16 + $0xe5c] sm:$0xf0]  ;;  %v13032_v43 = vld [vmem:[#allocation16 + $0x460] sm:$0xf0] }
 0x5ef   : > { %8553 = vmatpush.bf16.msrb.mxu1 %v12875_v42  ;;  %8527 = vmatpush.bf16.msra.mxu3 %v14407_v29  ;;  %v14311_v33 = vor.u32 %v15836_v34, %v14310_v27  ;;  %v15512_v42 = vld [vmem:[#allocation16 + $0x444] sm:$0xf]  ;;  %v13995_v29 = vor.u32 %v15752_v40, %v13992_v41  ;;  %v14278_v44 = vld [vmem:[#allocation16 + $0xe00] sm:$0xf]  ;;  %v5208_v60 = vpop.f32.mrf.mxu2  ;;  %v17057_v27 = vpop.f32.mrf.mxu0 }
 0x5f0   : > { %v15680_v39 = vld [vmem:[#allocation16 + $0x984] sm:$0xf]  ;;  %v17059_v34 = vpop.f32.mrf.mxu1 }
 0x5f1   : > { %8565 = vmatpush.bf16.msrb.mxu2 %v13163_v51  ;;  %8541 = vmatpush.bf16.msrb.mxu0 %v12587_v20  ;;  %v13704_v18 = vld [vmem:[#allocation16 + $0x9a0] sm:$0xf0]  ;;  %v13739_v51 = vor.u32 %v15688_v25, %v13736_v37  ;;  %v13035_v20 = vor.u32 %v15512_v42, %v13032_v43 }
 0x5f2   : > { %v15744_v52 = vld [vmem:[#allocation16 + $0xb84] sm:$0xf]  ;;  %v13707_v5 = vor.u32 %v15680_v39, %v13704_v18 }
 0x5f3   : > { %8554 = vmatpush.bf16.msrb.mxu1 %v12843_v53  ;;  %8528 = vmatpush.bf16.msra.mxu3 %v14375_v13  ;;  %v13960_v2 = vld [vmem:[#allocation16 + $0xba0] sm:$0xf0]  ;;  %v15828_v53 = vld [vmem:[#allocation16 + $0xe1c] sm:$0xf0] }
 0x5f4   : > { %v15624_v56 = vld [vmem:[#allocation16 + $0x7c4] sm:$0xf]  ;;  %v14279_v1 = vor.u32 %v15828_v53, %v14278_v44  ;;  %v13963_v48 = vor.u32 %v15744_v52, %v13960_v2 }
 0x5f5   : > { %8566 = vmatpush.bf16.msrb.mxu2 %v13131_v28  ;;  %8542 = vmatpush.bf16.msrb.mxu0 %v12555_v21  ;;  %v13480_v59 = vld [vmem:[#allocation16 + $0x7e0] sm:$0xf0]  ;;  %v17052_v28 = vpack.c.bf16 %v5333_v47, %v5333_v47 }
 0x5f6   : > { %v15504_v63 = vld [vmem:[#allocation16 + $0x404] sm:$0xf]  ;;  %v13483_v4 = vor.u32 %v15624_v56, %v13480_v59 }
 0x5f7   : > { %8555 = vmatpush.bf16.msrb.mxu1 %v12811_v6  ;;  %8529 = vmatpush.bf16.msra.mxu3 %v14343_v9  ;;  %v13000_v0 = vld [vmem:[#allocation16 + $0x420] sm:$0xf0] }
 0x5f8   : > { %v15816_v13 = vld [vmem:[#allocation16 + $0xdc4] sm:$0xf]  ;;  %v13003_v61 = vor.u32 %v15504_v63, %v13000_v0  ;;  %8519 = vmatmul.bf16.vlgmr.msra.gmra.mxu2 %v17052_v28  ;;  %v5234_v63 = vpop.f32.mrf.mxu0  ;;  %v5247_v0 = vpop.f32.mrf.mxu1 }
 0x5f9   : > { %8567 = vmatpush.bf16.msrb.mxu2 %v13099_v54  ;;  %8543 = vmatpush.bf16.msrb.mxu0 %v12523_v55  ;;  %v14248_v14 = vld [vmem:[#allocation16 + $0xde0] sm:$0xf0]  ;;  %v12654_v63 = vld [vmem:[#allocation16 + $0x148] sm:$0xf] }
 0x5fa   : > { %v15672_v21 = vld [vmem:[#allocation16 + $0x944] sm:$0xf]  ;;  %v14251_v8 = vor.u32 %v15816_v13, %v14248_v14  ;;  %v15421_v0 = vld [vmem:[#allocation16 + $0x164] sm:$0xf0] }
 0x5fb   : > { %8556 = vmatpush.bf16.msrb.mxu1 %v12779_v22  ;;  %8530 = vmatpush.bf16.msra.mxu3 %v14311_v33  ;;  %v13672_v6 = vld [vmem:[#allocation16 + $0x960] sm:$0xf0] }
 0x5fc   : > { %v15736_v7 = vld [vmem:[#allocation16 + $0xb44] sm:$0xf]  ;;  %v13675_v24 = vor.u32 %v15672_v21, %v13672_v6 }
 0x5fd   : > { %8568 = vmatpush.bf16.msrb.mxu2 %v13067_v36  ;;  %8544 = vmatpush.bf16.msrb.mxu0 %v12491_v38  ;;  %v13928_v62 = vld [vmem:[#allocation16 + $0xb60] sm:$0xf0] }
 0x5fe   : > { %v15616_v46 = vld [vmem:[#allocation16 + $0x784] sm:$0xf]  ;;  %v13931_v10 = vor.u32 %v15736_v7, %v13928_v62 }
 0x5ff   : > { %8557 = vmatpush.bf16.msrb.mxu1 %v12747_v31  ;;  %8531 = vmatpush.bf16.msra.mxu3 %v14279_v1  ;;  %v13448_v57 = vld [vmem:[#allocation16 + $0x7a0] sm:$0xf0] }
 0x600   : > { %8545 = vmatmul.bf16.vlgmr.msrb.gmra.mxu0 %v17011_v15  ;;  %v15808_v58 = vld [vmem:[#allocation16 + $0xd84] sm:$0xf]  ;;  %v13451_v9 = vor.u32 %v15616_v46, %v13448_v57 }
 0x601   : > { %8589 = vmatpush.bf16.msra.mxu0 %v13739_v51  ;;  %8569 = vmatpush.bf16.msrb.mxu2 %v13035_v20  ;;  %v14216_v54 = vld [vmem:[#allocation16 + $0xda0] sm:$0xf0] }
 0x602   : > { %8558 = vmatmul.bf16.vlgmr.msrb.gmra.mxu1 %v17013_v17  ;;  %v15664_v11 = vld [vmem:[#allocation16 + $0x904] sm:$0xf]  ;;  %v14219_v55 = vor.u32 %v15808_v58, %v14216_v54  ;;  %v17064_v58 = vpop.f32.mrf.mxu3 }
 0x603   : > { %8602 = vmatpush.bf16.msra.mxu1 %v13995_v29  ;;  %8576 = vmatpush.bf16.msrb.mxu3 %v13483_v4  ;;  %v13640_v26 = vld [vmem:[#allocation16 + $0x920] sm:$0xf0] }
 0x604   : > { %v15728_v16 = vld [vmem:[#allocation16 + $0xb04] sm:$0xf]  ;;  %v13643_v35 = vor.u32 %v15664_v11, %v13640_v26  ;;  %v12718_v26 = vld [vmem:[#allocation16 + $0x1c8] sm:$0xf] }
 0x605   : > { %8590 = vmatpush.bf16.msra.mxu0 %v13707_v5  ;;  %8570 = vmatpush.bf16.msrb.mxu2 %v13003_v61  ;;  %v13896_v19 = vld [vmem:[#allocation16 + $0xb20] sm:$0xf0] }
 0x606   : > { %v15608_v22 = vld [vmem:[#allocation16 + $0x744] sm:$0xf]  ;;  %v13899_v36 = vor.u32 %v15728_v16, %v13896_v19  ;;  %v15437_v16 = vld [vmem:[#allocation16 + $0x1e4] sm:$0xf0] }
 0x607   : > { %8603 = vmatpush.bf16.msra.mxu1 %v13963_v48  ;;  %v13416_v23 = vld [vmem:[#allocation16 + $0x760] sm:$0xf0]  ;;  %8577 = vmatpush.bf16.msrb.mxu3 %v13451_v9  ;;  %v12974_v19 = vld [vmem:[#allocation16 + $0x3c8] sm:$0xf] }
 0x608   : > { %v15800_v12 = vld [vmem:[#allocation16 + $0xd44] sm:$0xf]  ;;  %v13419_v25 = vor.u32 %v15608_v22, %v13416_v23  ;;  %8571 = vmatmul.bf16.vlgmr.msrb.gmra.mxu2 %v17021_v49  ;;  %v15501_v22 = vld [vmem:[#allocation16 + $0x3e4] sm:$0xf0] }
 0x609   : > { %8615 = vmatpush.bf16.msra.mxu2 %v14251_v8  ;;  %v14184_v32 = vld [vmem:[#allocation16 + $0xd60] sm:$0xf0]  ;;  %8591 = vmatpush.bf16.msra.mxu0 %v13675_v24  ;;  %v17062_v8 = vpop.f32.mrf.mxu2 }
 0x60a   : > { %v15656_v37 = vld [vmem:[#allocation16 + $0x8c4] sm:$0xf]  ;;  %v14187_v42 = vor.u32 %v15800_v12, %v14184_v32 }
 0x60b   : > { %8604 = vmatpush.bf16.msra.mxu1 %v13931_v10  ;;  %v13608_v40 = vld [vmem:[#allocation16 + $0x8e0] sm:$0xf0]  ;;  %8578 = vmatpush.bf16.msrb.mxu3 %v13419_v25 }
 0x60c   : > { %v15720_v41 = vld [vmem:[#allocation16 + $0xac4] sm:$0xf]  ;;  %v13611_v18 = vor.u32 %v15656_v37, %v13608_v40  ;;  %v12719_v40 = vor.u32 %v15437_v16, %v12718_v26  ;;  %v12590_v16 = vld [vmem:[#allocation16 + $0xc8] sm:$0xf] }
 0x60d   : > { %v13864_v33 = vld [vmem:[#allocation16 + $0xae0] sm:$0xf0]  ;;  %8616 = vmatpush.bf16.msra.mxu2 %v14219_v55  ;;  %8592 = vmatpush.bf16.msra.mxu0 %v13643_v35 }
 0x60e   : > { %v15600_v43 = vld [vmem:[#allocation16 + $0x704] sm:$0xf]  ;;  %v13867_v51 = vor.u32 %v15720_v41, %v13864_v33  ;;  %v12975_v41 = vor.u32 %v15501_v22, %v12974_v19  ;;  %v12686_v33 = vld [vmem:[#allocation16 + $0x188] sm:$0xf] }
 0x60f   : > { %v13384_v47 = vld [vmem:[#allocation16 + $0x720] sm:$0xf0]  ;;  %8605 = vmatpush.bf16.msra.mxu1 %v13899_v36  ;;  %v15405_v19 = vld [vmem:[#allocation16 + $0xe4] sm:$0xf0] }
 0x610   : > { %v15792_v38 = vld [vmem:[#allocation16 + $0xd04] sm:$0xf]  ;;  %v13387_v39 = vor.u32 %v15600_v43, %v13384_v47  ;;  %v12942_v43 = vld [vmem:[#allocation16 + $0x388] sm:$0xf] }
 0x611   : > { %v14152_v31 = vld [vmem:[#allocation16 + $0xd20] sm:$0xf0]  ;;  %8617 = vmatpush.bf16.msra.mxu2 %v14187_v42  ;;  %8593 = vmatpush.bf16.msra.mxu0 %v13611_v18  ;;  %v15429_v42 = vld [vmem:[#allocation16 + $0x1a4] sm:$0xf0] }
 0x612   : > { %v15648_v29 = vld [vmem:[#allocation16 + $0x884] sm:$0xf]  ;;  %v14155_v20 = vor.u32 %v15792_v38, %v14152_v31  ;;  %8579 = vmatpush.bf16.msrb.mxu3 %v13387_v39  ;;  %v15493_v38 = vld [vmem:[#allocation16 + $0x3a4] sm:$0xf0] }
 0x613   : > { %v13576_v52 = vld [vmem:[#allocation16 + $0x8a0] sm:$0xf0]  ;;  %8606 = vmatpush.bf16.msra.mxu1 %v13867_v51 }
 0x614   : > { %v15712_v2 = vld [vmem:[#allocation16 + $0xa84] sm:$0xf]  ;;  %v13579_v1 = vor.u32 %v15648_v29, %v13576_v52  ;;  %v5260_v29 = vpop.f32.mrf.mxu2  ;;  %v5273_v52 = vpop.f32.mrf.mxu3 }
 0x615   : > { %v13832_v44 = vld [vmem:[#allocation16 + $0xaa0] sm:$0xf0]  ;;  %8618 = vmatpush.bf16.msra.mxu2 %v14155_v20  ;;  %v15389_v29 = vld [vmem:[#allocation16 + $0x64] sm:$0xf0] }
 0x616   : > { %v15592_v53 = vld [vmem:[#allocation16 + $0x6c4] sm:$0xf]  ;;  %v13835_v13 = vor.u32 %v15712_v2, %v13832_v44  ;;  %8594 = vmatpush.bf16.msra.mxu0 %v13579_v1  ;;  %v13230_v2 = vld [vmem:[#allocation16 + $0x5c8] sm:$0xf] }
 0x617   : > { %v13352_v56 = vld [vmem:[#allocation16 + $0x6e0] sm:$0xf0]  ;;  %v15565_v44 = vld [vmem:[#allocation16 + $0x5e4] sm:$0xf0] }
 0x618   : > { %v15784_v59 = vld [vmem:[#allocation16 + $0xcc4] sm:$0xf]  ;;  %v13355_v50 = vor.u32 %v15592_v53, %v13352_v56  ;;  %8607 = vmatpush.bf16.msra.mxu1 %v13835_v13  ;;  %v16110_v53 = vld [vmem:[#allocation14] sm:$0xff]  ;;  %v13231_v1 = vor.u32 %v15565_v44, %v13230_v2  ;;  %v12910_v13 = vld [vmem:[#allocation16 + $0x348] sm:$0xf] }
 0x619   : > { %v14120_v60 = vld [vmem:[#allocation16 + $0xce0] sm:$0xf0]  ;;  %v1926_v56 = vperm.slane %v16110_v53, 7  ;;  %v12782_v2 = vld [vmem:[#allocation16 + $0x248] sm:$0xf] }
 0x61a   : > { %v15640_v14 = vld [vmem:[#allocation16 + $0x844] sm:$0xf]  ;;  %v14123_v21 = vor.u32 %v15784_v59, %v14120_v60  ;;  %8580 = vmatpush.bf16.msrb.mxu3 %v13355_v50  ;;  %v12687_v59 = vor.u32 %v15429_v42, %v12686_v33  ;;  %v12943_v60 = vor.u32 %v15493_v38, %v12942_v43  ;;  %v12814_v33 = vld [vmem:[#allocation16 + $0x288] sm:$0xf] }
 0x61b   : > { %v13544_v4 = vld [vmem:[#allocation16 + $0x860] sm:$0xf0]  ;;  %v15461_v42 = vld [vmem:[#allocation16 + $0x2a4] sm:$0xf0] }
 0x61c   : > { %v15704_v5 = vld [vmem:[#allocation16 + $0xa44] sm:$0xf]  ;;  %v13547_v54 = vor.u32 %v15640_v14, %v13544_v4  ;;  %8619 = vmatpush.bf16.msra.mxu2 %v14123_v21  ;;  %v15485_v14 = vld [vmem:[#allocation16 + $0x364] sm:$0xf0]  ;;  %v12655_v21 = vor.u32 %v15421_v0, %v12654_v63 }
 0x61d   : > { %v13800_v48 = vld [vmem:[#allocation16 + $0xa60] sm:$0xf0]  ;;  %v13198_v4 = vld [vmem:[#allocation16 + $0x588] sm:$0xf] }
 0x61e   : > { %v15584_v6 = vld [vmem:[#allocation16 + $0x684] sm:$0xf]  ;;  %v13803_v9 = vor.u32 %v15704_v5, %v13800_v48  ;;  %8595 = vmatpush.bf16.msra.mxu0 %v13547_v54  ;;  %v15557_v5 = vld [vmem:[#allocation16 + $0x5a4] sm:$0xf0]  ;;  %v5233_v48 = vadd.f32 %v17057_v27, %v1926_v56  ;;  %v5284_v27 = vpop.f32.mrf.mxu0 }
 0x61f   : > { %v13320_v7 = vld [vmem:[#allocation16 + $0x6a0] sm:$0xf0]  ;;  %v13166_v54 = vld [vmem:[#allocation16 + $0x548] sm:$0xf] }
 0x620   : > { %v15776_v61 = vld [vmem:[#allocation16 + $0xc84] sm:$0xf]  ;;  %v13323_v57 = vor.u32 %v15584_v6, %v13320_v7  ;;  %8608 = vmatpush.bf16.msra.mxu1 %v13803_v9  ;;  %v12911_v6 = vor.u32 %v15485_v14, %v12910_v13  ;;  %v12622_v7 = vld [vmem:[#allocation16 + $0x108] sm:$0xf] }
 0x621   : > { %v14088_v62 = vld [vmem:[#allocation16 + $0xca0] sm:$0xf0]  ;;  %v15549_v9 = vld [vmem:[#allocation16 + $0x564] sm:$0xf0] }
 0x622   : > { %v15632_v46 = vld [vmem:[#allocation16 + $0x804] sm:$0xf]  ;;  %v14091_v55 = vor.u32 %v15776_v61, %v14088_v62  ;;  %8581 = vmatpush.bf16.msrb.mxu3 %v13323_v57  ;;  %v15413_v61 = vld [vmem:[#allocation16 + $0x124] sm:$0xf0]  ;;  %v13199_v62 = vor.u32 %v15557_v5, %v13198_v4  ;;  %v13167_v22 = vor.u32 %v15549_v9, %v13166_v54 }
 0x623   : > { %v13512_v24 = vld [vmem:[#allocation16 + $0x820] sm:$0xf0]  ;;  %v15477_v57 = vld [vmem:[#allocation16 + $0x324] sm:$0xf0] }
 0x624   : > { %v15696_v10 = vld [vmem:[#allocation16 + $0xa04] sm:$0xf]  ;;  %v13515_v36 = vor.u32 %v15632_v46, %v13512_v24  ;;  %8620 = vmatpush.bf16.msra.mxu2 %v14091_v55  ;;  %v12878_v46 = vld [vmem:[#allocation16 + $0x308] sm:$0xf]  ;;  %v5246_v24 = vadd.f32 %v17059_v34, %v5233_v48  ;;  %v12591_v34 = vor.u32 %v15405_v19, %v12590_v16 }
 0x625   : > { %v13768_v11 = vld [vmem:[#allocation16 + $0xa20] sm:$0xf0]  ;;  %v12879_v26 = vor.u32 %v15477_v57, %v12878_v46  ;;  %v13102_v43 = vld [vmem:[#allocation16 + $0x4c8] sm:$0xf] }
 0x626   : > { %v15576_v23 = vld [vmem:[#allocation16 + $0x644] sm:$0xf]  ;;  %v13771_v37 = vor.u32 %v15696_v10, %v13768_v11  ;;  %8596 = vmatpush.bf16.msra.mxu0 %v13515_v36  ;;  %v12623_v10 = vor.u32 %v15413_v61, %v12622_v7  ;;  %v5297_v11 = vpop.f32.mrf.mxu1  ;;  %v5259_v55 = vadd.f32 %v17062_v8, %v5246_v24  ;;  %v12558_v36 = vld [vmem:[#allocation16 + $0x88] sm:$0xf] }
 0x627   : > { %v13288_v12 = vld [vmem:[#allocation16 + $0x660] sm:$0xf0]  ;;  %v15533_v8 = vld [vmem:[#allocation16 + $0x4e4] sm:$0xf0] }
 0x628   : > { %v15768_v32 = vld [vmem:[#allocation16 + $0xc44] sm:$0xf]  ;;  %v13291_v35 = vor.u32 %v15576_v23, %v13288_v12  ;;  %8609 = vmatpush.bf16.msra.mxu1 %v13771_v37  ;;  %v12846_v23 = vld [vmem:[#allocation16 + $0x2c8] sm:$0xf]  ;;  %v13103_v52 = vor.u32 %v15533_v8, %v13102_v43 }
 0x629   : > { %v14056_v25 = vld [vmem:[#allocation16 + $0xc60] sm:$0xf0]  ;;  %8597 = vmatmul.bf16.vlgmr.msra.gmra.mxu0 %v17042_v3  ;;  %v15469_v12 = vld [vmem:[#allocation16 + $0x2e4] sm:$0xf0] }
 0x62a   : > { %v14059_v47 = vor.u32 %v15768_v32, %v14056_v25  ;;  %v15568_v31 = vld [vmem:[#allocation16 + $0x604] sm:$0xf]  ;;  %8582 = vmatpush.bf16.msrb.mxu3 %v13291_v35  ;;  %8641 = vmatpush.bf16.msrb.mxu0 %v12719_v40  ;;  %v13134_v32 = vld [vmem:[#allocation16 + $0x508] sm:$0xf]  ;;  %v12847_v35 = vor.u32 %v15469_v12, %v12846_v23  ;;  %v5272_v40 = vadd.f32 %v17064_v58, %v5259_v55 }
 0x62b   : > { %v13256_v39 = vld [vmem:[#allocation16 + $0x620] sm:$0xf0]  ;;  %8610 = vmatmul.bf16.vlgmr.msra.gmra.mxu1 %v17044_v45  ;;  %v15541_v25 = vld [vmem:[#allocation16 + $0x524] sm:$0xf0] }
 0x62c   : > { %v15760_v18 = vld [vmem:[#allocation16 + $0xc04] sm:$0xf]  ;;  %v13259_v20 = vor.u32 %v15568_v31, %v13256_v39  ;;  %8654 = vmatpush.bf16.msrb.mxu1 %v12975_v41  ;;  %8621 = vmatpush.bf16.msra.mxu2 %v14059_v47  ;;  %v15397_v37 = vld [vmem:[#allocation16 + $0xa4] sm:$0xf0]  ;;  %v13135_v41 = vor.u32 %v15541_v25, %v13134_v32  ;;  %v5285_v47 = vadd.f32 %v5284_v27, %v5272_v40  ;;  %v5286_v31 = vpop.f32.mrf.mxu0 }
 0x62d   : > { %v14024_v51 = vld [vmem:[#allocation16 + $0xc20] sm:$0xf0]  ;;  %v12559_v38 = vor.u32 %v15397_v37, %v12558_v36  ;;  %v15453_v44 = vld [vmem:[#allocation16 + $0x264] sm:$0xf0] }
 0x62e   : > { %v14027_v50 = vor.u32 %v15760_v18, %v14024_v51  ;;  %8583 = vmatpush.bf16.msrb.mxu3 %v13259_v20  ;;  %8642 = vmatpush.bf16.msrb.mxu0 %v12687_v59  ;;  %v5299_v39 = vpop.f32.mrf.mxu1  ;;  %v12815_v18 = vor.u32 %v15461_v42, %v12814_v33  ;;  %v12526_v51 = vld [vmem:[#allocation16 + $0x48] sm:$0xf]  ;;  %v5298_v53 = vadd.f32 %v5297_v11, %v5285_v47  ;;  %v15880_v9 = vld [vmem:[#allocation16 + $0xfc4] sm:$0xf] }
 0x62f   : > { %v13070_v58 = vld [vmem:[#allocation16 + $0x488] sm:$0xf]  ;;  %v12527_v56 = vor.u32 %v15389_v29, %v12526_v51  ;;  %v12783_v63 = vor.u32 %v15453_v44, %v12782_v2  ;;  %v14504_v24 = vld [vmem:[#allocation16 + $0xfe0] sm:$0xf0] }
 0x630   : > { %8655 = vmatpush.bf16.msrb.mxu1 %v12943_v60  ;;  %8622 = vmatpush.bf16.msra.mxu2 %v14027_v50  ;;  %v15525_v20 = vld [vmem:[#allocation16 + $0x4a4] sm:$0xf0]  ;;  %v5310_v60 = vpop.f32.mrf.mxu2  ;;  %v5323_v50 = vpop.f32.mrf.mxu3  ;;  %v14507_v32 = vor.u32 %v15880_v9, %v14504_v24  ;;  %v15872_v40 = vld [vmem:[#allocation16 + $0xf84] sm:$0xf] }
 0x631   : > { %v12494_v59 = vld [vmem:[#allocation16 + $0x8] sm:$0xf]  ;;  %v5311_v14 = vadd.f32 %v5310_v60, %v5298_v53  ;;  %v13071_v4 = vor.u32 %v15525_v20, %v13070_v58  ;;  %v15864_v2 = vld [vmem:[#allocation16 + $0xf44] sm:$0xf] }
 0x632   : > { %8643 = vmatpush.bf16.msrb.mxu0 %v12655_v21  ;;  %v15381_v0 = vld [vmem:[#allocation16 + $0x24] sm:$0xf0]  ;;  %v14440_v44 = vld [vmem:[#allocation16 + $0xf60] sm:$0xf0] }
 0x633   : > { %8623 = vmatmul.bf16.vlgmr.msra.gmra.mxu2 %v17052_v28  ;;  %v15445_v13 = vld [vmem:[#allocation16 + $0x224] sm:$0xf0]  ;;  %v12495_v46 = vor.u32 %v15381_v0, %v12494_v59 }
 0x634   : > { %8667 = vmatpush.bf16.msrb.mxu2 %v13231_v1  ;;  %8656 = vmatpush.bf16.msrb.mxu1 %v12911_v6  ;;  %v12750_v1 = vld [vmem:[#allocation16 + $0x208] sm:$0xf] }
 0x635   : > { %v13742_v5 = vld [vmem:[#allocation16 + $0x9c8] sm:$0xf]  ;;  %v12751_v57 = vor.u32 %v15445_v13, %v12750_v1 }
 0x636   : > { %8644 = vmatpush.bf16.msrb.mxu0 %v12623_v10  ;;  %v15693_v48 = vld [vmem:[#allocation16 + $0x9e4] sm:$0xf0] }
 0x637   : > { %v13998_v21 = vld [vmem:[#allocation16 + $0xbc8] sm:$0xf]  ;;  %v13743_v54 = vor.u32 %v15693_v48, %v13742_v5 }
 0x638   : > { %8668 = vmatpush.bf16.msrb.mxu2 %v13199_v62  ;;  %8657 = vmatpush.bf16.msrb.mxu1 %v12879_v26  ;;  %v15757_v6 = vld [vmem:[#allocation16 + $0xbe4] sm:$0xf0]  ;;  %v5324_v62 = vadd.f32 %v5323_v50, %v5311_v14  ;;  %v5325_v36 = vpop.f32.mrf.mxu3  ;;  %v15856_v14 = vld [vmem:[#allocation16 + $0xf04] sm:$0xf] }
 0x639   : > { %v13038_v7 = vld [vmem:[#allocation16 + $0x448] sm:$0xf]  ;;  %v13999_v11 = vor.u32 %v15757_v6, %v13998_v21  ;;  %v8442_v6 = vpop.f32.mrf.mxu0 }
 0x63a   : > { %8645 = vmatpush.bf16.msrb.mxu0 %v12591_v34  ;;  %v15517_v61 = vld [vmem:[#allocation16 + $0x464] sm:$0xf0]  ;;  %v5334_v27 = vmax.f32 %v5324_v62, 0.0 }
 0x63b   : > { %v13710_v10 = vld [vmem:[#allocation16 + $0x988] sm:$0xf]  ;;  %v13039_v26 = vor.u32 %v15517_v61, %v13038_v7  ;;  %v8455_v7 = vpop.f32.mrf.mxu1 }
 0x63c   : > { %8669 = vmatpush.bf16.msrb.mxu2 %v13167_v22  ;;  %8658 = vmatpush.bf16.msrb.mxu1 %v12847_v35  ;;  %v15685_v16 = vld [vmem:[#allocation16 + $0x9a4] sm:$0xf0]  ;;  %v17073_v12 = vpack.c.bf16 %v5334_v27, %v5334_v27  ;;  %v5312_v35 = vpop.f32.mrf.mxu2  ;;  %v15848_v27 = vld [vmem:[#allocation16 + $0xec4] sm:$0xf] }
 0x63d   : > { %v13966_v19 = vld [vmem:[#allocation16 + $0xb88] sm:$0xf]  ;;  %v13711_v37 = vor.u32 %v15685_v16, %v13710_v10 }
 0x63e   : > { %8646 = vmatpush.bf16.msrb.mxu0 %v12559_v38  ;;  %v15749_v55 = vld [vmem:[#allocation16 + $0xba4] sm:$0xf0]  ;;  %8532 = vmatmul.bf16.vlgmr.msra.gmra.mxu3 %v17073_v12 }
 0x63f   : > { %v13006_v22 = vld [vmem:[#allocation16 + $0x408] sm:$0xf]  ;;  %v13967_v33 = vor.u32 %v15749_v55, %v13966_v19  ;;  %8628 = vmatpush.bf16.msra.mxu3 %v14507_v32 }
 0x640   : > { %8670 = vmatpush.bf16.msrb.mxu2 %v13135_v41  ;;  %8659 = vmatpush.bf16.msrb.mxu1 %v12815_v18  ;;  %v15509_v23 = vld [vmem:[#allocation16 + $0x424] sm:$0xf0]  ;;  %v14472_v41 = vld [vmem:[#allocation16 + $0xfa0] sm:$0xf0] }
 0x641   : > { %v14254_v25 = vld [vmem:[#allocation16 + $0xdc8] sm:$0xf]  ;;  %v13007_v42 = vor.u32 %v15509_v23, %v13006_v22  ;;  %v14475_v39 = vor.u32 %v15872_v40, %v14472_v41  ;;  %v14344_v40 = vld [vmem:[#allocation16 + $0xea0] sm:$0xf0] }
 0x642   : > { %8647 = vmatpush.bf16.msrb.mxu0 %v12527_v56  ;;  %v15821_v34 = vld [vmem:[#allocation16 + $0xde4] sm:$0xf0] }
 0x643   : > { %v13678_v43 = vld [vmem:[#allocation16 + $0x948] sm:$0xf]  ;;  %v14255_v47 = vor.u32 %v15821_v34, %v14254_v25  ;;  %8629 = vmatpush.bf16.msra.mxu3 %v14475_v39 }
 0x644   : > { %8671 = vmatpush.bf16.msrb.mxu2 %v13103_v52  ;;  %8660 = vmatpush.bf16.msrb.mxu1 %v12783_v63  ;;  %v15677_v8 = vld [vmem:[#allocation16 + $0x964] sm:$0xf0]  ;;  %v17078_v52 = vld [vmem:[#allocation17] sm:$0xff]  ;;  %v14443_v63 = vor.u32 %v15864_v2, %v14440_v44 }
 0x645   : > { %v13934_v38 = vld [vmem:[#allocation16 + $0xb48] sm:$0xf]  ;;  %v13679_v29 = vor.u32 %v15677_v8, %v13678_v43  ;;  %v5857_v50 = vperm.slane %v17078_v52, 0  ;;  %v8444_v43 = vpop.f32.mrf.mxu0  ;;  %v8457_v8 = vpop.f32.mrf.mxu1  ;;  %v15832_v2 = vld [vmem:[#allocation16 + $0xe44] sm:$0xf] }
 0x646   : > { %8648 = vmatpush.bf16.msrb.mxu0 %v12495_v46  ;;  %v15741_v31 = vld [vmem:[#allocation16 + $0xb64] sm:$0xf0]  ;;  %v14312_v44 = vld [vmem:[#allocation16 + $0xe60] sm:$0xf0]  ;;  %v12656_v43 = vld [vmem:[#allocation16 + $0x168] sm:$0xf0] }
 0x647   : > { %v14222_v18 = vld [vmem:[#allocation16 + $0xd88] sm:$0xf]  ;;  %v13935_v58 = vor.u32 %v15741_v31, %v13934_v38  ;;  %8630 = vmatpush.bf16.msra.mxu3 %v14443_v63 }
 0x648   : > { %8672 = vmatpush.bf16.msrb.mxu2 %v13071_v4  ;;  %8661 = vmatpush.bf16.msrb.mxu1 %v12751_v57  ;;  %v15813_v51 = vld [vmem:[#allocation16 + $0xda4] sm:$0xf0]  ;;  %v14408_v4 = vld [vmem:[#allocation16 + $0xf20] sm:$0xf0]  ;;  %v8443_v57 = vadd.f32 %v8442_v6, %v5857_v50  ;;  %v8481_v50 = vpop.f32.mrf.mxu3 }
 0x649   : > { %8649 = vmatmul.bf16.vlgmr.msrb.gmra.mxu0 %v17011_v15  ;;  %v13646_v20 = vld [vmem:[#allocation16 + $0x908] sm:$0xf]  ;;  %v14223_v56 = vor.u32 %v15813_v51, %v14222_v18 }
 0x64a   : > { %8693 = vmatpush.bf16.msra.mxu0 %v13743_v54  ;;  %v15669_v53 = vld [vmem:[#allocation16 + $0x924] sm:$0xf0]  ;;  %v14411_v54 = vor.u32 %v15856_v14, %v14408_v4  ;;  %v14315_v4 = vor.u32 %v15832_v2, %v14312_v44 }
 0x64b   : > { %8662 = vmatmul.bf16.vlgmr.msrb.gmra.mxu1 %v17013_v17  ;;  %v13902_v59 = vld [vmem:[#allocation16 + $0xb08] sm:$0xf]  ;;  %v13647_v13 = vor.u32 %v15669_v53, %v13646_v20 }
 0x64c   : > { %8706 = vmatpush.bf16.msra.mxu1 %v13999_v11  ;;  %8673 = vmatpush.bf16.msrb.mxu2 %v13039_v26  ;;  %v15733_v60 = vld [vmem:[#allocation16 + $0xb24] sm:$0xf0]  ;;  %v14376_v11 = vld [vmem:[#allocation16 + $0xee0] sm:$0xf0]  ;;  %v8456_v26 = vadd.f32 %v8455_v7, %v8443_v57 }
 0x64d   : > { %v14190_v0 = vld [vmem:[#allocation16 + $0xd48] sm:$0xf]  ;;  %v13903_v5 = vor.u32 %v15733_v60, %v13902_v59  ;;  %8631 = vmatpush.bf16.msra.mxu3 %v14411_v54  ;;  %v14379_v25 = vor.u32 %v15848_v27, %v14376_v11  ;;  %v8468_v60 = vpop.f32.mrf.mxu2  ;;  %v15824_v7 = vld [vmem:[#allocation16 + $0xe04] sm:$0xf]  ;;  %v15425_v27 = vld [vmem:[#allocation16 + $0x18c] sm:$0xf] }
 0x64e   : > { %8694 = vmatpush.bf16.msra.mxu0 %v13711_v37  ;;  %v15805_v1 = vld [vmem:[#allocation16 + $0xd64] sm:$0xf0]  ;;  %v15840_v37 = vld [vmem:[#allocation16 + $0xe84] sm:$0xf]  ;;  %8584 = vmatmul.bf16.vlgmr.msrb.gmra.mxu3 %v17023_v30  ;;  %v8469_v14 = vadd.f32 %v8468_v60, %v8456_v26  ;;  %v12688_v11 = vld [vmem:[#allocation16 + $0x1a8] sm:$0xf0] }
 0x64f   : > { %v13614_v48 = vld [vmem:[#allocation16 + $0x8c8] sm:$0xf]  ;;  %v14191_v61 = vor.u32 %v15805_v1, %v14190_v0  ;;  %v14347_v39 = vor.u32 %v15840_v37, %v14344_v40  ;;  %v15433_v0 = vld [vmem:[#allocation16 + $0x1cc] sm:$0xf] }
 0x650   : > { %8707 = vmatpush.bf16.msra.mxu1 %v13967_v33  ;;  %8674 = vmatpush.bf16.msrb.mxu2 %v13007_v42  ;;  %v15661_v21 = vld [vmem:[#allocation16 + $0x8e4] sm:$0xf0]  ;;  %v12720_v1 = vld [vmem:[#allocation16 + $0x1e8] sm:$0xf0]  ;;  %v8483_v40 = vpop.f32.mrf.mxu3 }
 0x651   : > { %v13870_v62 = vld [vmem:[#allocation16 + $0xac8] sm:$0xf]  ;;  %v13615_v10 = vor.u32 %v15661_v21, %v13614_v48  ;;  %8632 = vmatpush.bf16.msra.mxu3 %v14379_v25  ;;  %v12723_v57 = vor.u32 %v15433_v0, %v12720_v1  ;;  %v15489_v26 = vld [vmem:[#allocation16 + $0x38c] sm:$0xf] }
 0x652   : > { %8695 = vmatpush.bf16.msra.mxu0 %v13679_v29  ;;  %v15725_v46 = vld [vmem:[#allocation16 + $0xae4] sm:$0xf0]  ;;  %v13232_v25 = vld [vmem:[#allocation16 + $0x5e8] sm:$0xf0] }
 0x653   : > { %8675 = vmatmul.bf16.vlgmr.msrb.gmra.mxu2 %v17021_v49  ;;  %v14158_v9 = vld [vmem:[#allocation16 + $0xd08] sm:$0xf]  ;;  %v13871_v16 = vor.u32 %v15725_v46, %v13870_v62  ;;  %v17083_v62 = vadd.f32 %v8481_v50, %v8469_v14  ;;  %v15545_v50 = vld [vmem:[#allocation16 + $0x54c] sm:$0xf] }
 0x654   : > { %8719 = vmatpush.bf16.msra.mxu2 %v14255_v47  ;;  %8708 = vmatpush.bf16.msra.mxu1 %v13935_v58  ;;  %v15797_v24 = vld [vmem:[#allocation16 + $0xd24] sm:$0xf0]  ;;  %v15385_v40 = vld [vmem:[#allocation16 + $0x4c] sm:$0xf] }
 0x655   : > { %v13582_v19 = vld [vmem:[#allocation16 + $0x888] sm:$0xf]  ;;  %v14159_v22 = vor.u32 %v15797_v24, %v14158_v9  ;;  %8633 = vmatpush.bf16.msra.mxu3 %v14347_v39  ;;  %v8470_v37 = vpop.f32.mrf.mxu2  ;;  %v15553_v39 = vld [vmem:[#allocation16 + $0x58c] sm:$0xf] }
 0x656   : > { %8696 = vmatpush.bf16.msra.mxu0 %v13647_v13  ;;  %v15653_v55 = vld [vmem:[#allocation16 + $0x8a4] sm:$0xf0]  ;;  %v15497_v13 = vld [vmem:[#allocation16 + $0x3cc] sm:$0xf] }
 0x657   : > { %v13838_v23 = vld [vmem:[#allocation16 + $0xa88] sm:$0xf]  ;;  %v13583_v36 = vor.u32 %v15653_v55, %v13582_v19  ;;  %v12944_v19 = vld [vmem:[#allocation16 + $0x3a8] sm:$0xf0] }
 0x658   : > { %8720 = vmatpush.bf16.msra.mxu2 %v14223_v56  ;;  %8709 = vmatpush.bf16.msra.mxu1 %v13903_v5  ;;  %v15717_v32 = vld [vmem:[#allocation16 + $0xaa4] sm:$0xf0]  ;;  %v12976_v5 = vld [vmem:[#allocation16 + $0x3e8] sm:$0xf0] }
 0x659   : > { %v14126_v34 = vld [vmem:[#allocation16 + $0xcc8] sm:$0xf]  ;;  %v13839_v41 = vor.u32 %v15717_v32, %v13838_v23  ;;  %v12979_v24 = vor.u32 %v15497_v13, %v12976_v5  ;;  %8634 = vmatpush.bf16.msra.mxu3 %v14315_v4  ;;  %v15561_v32 = vld [vmem:[#allocation16 + $0x5cc] sm:$0xf] }
 0x65a   : > { %v15789_v35 = vld [vmem:[#allocation16 + $0xce4] sm:$0xf0]  ;;  %8697 = vmatpush.bf16.msra.mxu0 %v13615_v10  ;;  %v13235_v8 = vor.u32 %v15561_v32, %v13232_v25  ;;  %v15401_v4 = vld [vmem:[#allocation16 + $0xcc] sm:$0xf] }
 0x65b   : > { %v13550_v33 = vld [vmem:[#allocation16 + $0x848] sm:$0xf]  ;;  %v14127_v47 = vor.u32 %v15789_v35, %v14126_v34  ;;  %v12691_v34 = vor.u32 %v15425_v27, %v12688_v11  ;;  %v12592_v5 = vld [vmem:[#allocation16 + $0xe8] sm:$0xf0] }
 0x65c   : > { %8721 = vmatpush.bf16.msra.mxu2 %v14191_v61  ;;  %8710 = vmatpush.bf16.msra.mxu1 %v13871_v16  ;;  %v15645_v42 = vld [vmem:[#allocation16 + $0x864] sm:$0xf0]  ;;  %v14280_v61 = vld [vmem:[#allocation16 + $0xe20] sm:$0xf0]  ;;  %v15529_v25 = vld [vmem:[#allocation16 + $0x4cc] sm:$0xf] }
 0x65d   : > { %v13806_v38 = vld [vmem:[#allocation16 + $0xa48] sm:$0xf]  ;;  %v13551_v29 = vor.u32 %v15645_v42, %v13550_v33  ;;  %v14283_v16 = vor.u32 %v15824_v7, %v14280_v61  ;;  %v15417_v42 = vld [vmem:[#allocation16 + $0x14c] sm:$0xf]  ;;  %v8494_v7 = vpop.f32.mrf.mxu0 }
 0x65e   : > { %v15709_v31 = vld [vmem:[#allocation16 + $0xa64] sm:$0xf0]  ;;  %8698 = vmatpush.bf16.msra.mxu0 %v13583_v36 }
 0x65f   : > { %v14094_v18 = vld [vmem:[#allocation16 + $0xc88] sm:$0xf]  ;;  %v13807_v20 = vor.u32 %v15709_v31, %v13806_v38  ;;  %8635 = vmatpush.bf16.msra.mxu3 %v14283_v16  ;;  %v12912_v38 = vld [vmem:[#allocation16 + $0x368] sm:$0xf0]  ;;  %v8507_v61 = vpop.f32.mrf.mxu1 }
 0x660   : > { %8722 = vmatpush.bf16.msra.mxu2 %v14159_v22  ;;  %v15781_v51 = vld [vmem:[#allocation16 + $0xca4] sm:$0xf0]  ;;  %8711 = vmatpush.bf16.msra.mxu1 %v13839_v41  ;;  %v12947_v41 = vor.u32 %v15489_v26, %v12944_v19  ;;  %v15393_v26 = vld [vmem:[#allocation16 + $0x8c] sm:$0xf] }
 0x661   : > { %v13518_v58 = vld [vmem:[#allocation16 + $0x808] sm:$0xf]  ;;  %v14095_v63 = vor.u32 %v15781_v51, %v14094_v18  ;;  %v13200_v18 = vld [vmem:[#allocation16 + $0x5a8] sm:$0xf0]  ;;  %v12659_v51 = vor.u32 %v15417_v42, %v12656_v43 }
 0x662   : > { %v15637_v53 = vld [vmem:[#allocation16 + $0x824] sm:$0xf0]  ;;  %8699 = vmatpush.bf16.msra.mxu0 %v13551_v29  ;;  %8636 = vmatmul.bf16.vlgmr.msra.gmra.mxu3 %v17073_v12  ;;  %v12560_v16 = vld [vmem:[#allocation16 + $0xa8] sm:$0xf0] }
 0x663   : > { %v13774_v56 = vld [vmem:[#allocation16 + $0xa08] sm:$0xf]  ;;  %v13519_v6 = vor.u32 %v15637_v53, %v13518_v58  ;;  %v15409_v58 = vld [vmem:[#allocation16 + $0x10c] sm:$0xf]  ;;  %v13203_v53 = vor.u32 %v15553_v39, %v13200_v18 }
 0x664   : > { %v15701_v59 = vld [vmem:[#allocation16 + $0xa24] sm:$0xf0]  ;;  %8723 = vmatpush.bf16.msra.mxu2 %v14127_v47  ;;  %8712 = vmatpush.bf16.msra.mxu1 %v13807_v20  ;;  %v15481_v47 = vld [vmem:[#allocation16 + $0x34c] sm:$0xf] }
 0x665   : > { %v14062_v48 = vld [vmem:[#allocation16 + $0xc48] sm:$0xf]  ;;  %v13775_v46 = vor.u32 %v15701_v59, %v13774_v56  ;;  %v12915_v44 = vor.u32 %v15481_v47, %v12912_v38  ;;  %v12624_v20 = vld [vmem:[#allocation16 + $0x128] sm:$0xf0] }
 0x666   : > { %v15773_v21 = vld [vmem:[#allocation16 + $0xc64] sm:$0xf0]  ;;  %8700 = vmatpush.bf16.msra.mxu0 %v13519_v6  ;;  %v15473_v56 = vld [vmem:[#allocation16 + $0x30c] sm:$0xf]  ;;  %v12627_v0 = vor.u32 %v15409_v58, %v12624_v20 }
 0x667   : > { %v13486_v54 = vld [vmem:[#allocation16 + $0x7c8] sm:$0xf]  ;;  %v14063_v10 = vor.u32 %v15773_v21, %v14062_v48  ;;  %v12880_v59 = vld [vmem:[#allocation16 + $0x328] sm:$0xf0]  ;;  %v8509_v47 = vpop.f32.mrf.mxu1 }
 0x668   : > { %v15629_v9 = vld [vmem:[#allocation16 + $0x7e4] sm:$0xf0]  ;;  %8724 = vmatpush.bf16.msra.mxu2 %v14095_v63  ;;  %8713 = vmatpush.bf16.msra.mxu1 %v13775_v46  ;;  %v13168_v63 = vld [vmem:[#allocation16 + $0x568] sm:$0xf0]  ;;  %v12883_v14 = vor.u32 %v15473_v56, %v12880_v59 }
 0x669   : > { %v14030_v55 = vld [vmem:[#allocation16 + $0xc08] sm:$0xf]  ;;  %v13487_v23 = vor.u32 %v15629_v9, %v13486_v54  ;;  %8701 = vmatmul.bf16.vlgmr.msra.gmra.mxu0 %v17042_v3  ;;  %v13171_v48 = vor.u32 %v15545_v50, %v13168_v63  ;;  %v15465_v21 = vld [vmem:[#allocation16 + $0x2cc] sm:$0xf]  ;;  %v8495_v9 = vadd.f32 %v8494_v7, %v17083_v62  ;;  %v12563_v62 = vor.u32 %v15393_v26, %v12560_v16 }
 0x66a   : > { %v15765_v22 = vld [vmem:[#allocation16 + $0xc24] sm:$0xf0]  ;;  %8745 = vmatpush.bf16.msrb.mxu0 %v12723_v57  ;;  %v12848_v6 = vld [vmem:[#allocation16 + $0x2e8] sm:$0xf0] }
 0x66b   : > { %v13454_v35 = vld [vmem:[#allocation16 + $0x788] sm:$0xf]  ;;  %v14031_v33 = vor.u32 %v15765_v22, %v14030_v55  ;;  %8714 = vmatmul.bf16.vlgmr.msra.gmra.mxu1 %v17044_v45  ;;  %8680 = vmatpush.bf16.msrb.mxu3 %v13487_v23  ;;  %v15537_v57 = vld [vmem:[#allocation16 + $0x50c] sm:$0xf]  ;;  %v12851_v11 = vor.u32 %v15465_v21, %v12848_v6  ;;  %v17090_v19 = vadd.f32 %v8507_v61, %v8495_v9 }
 0x66c   : > { %v15621_v36 = vld [vmem:[#allocation16 + $0x7a4] sm:$0xf0]  ;;  %8758 = vmatpush.bf16.msrb.mxu1 %v12979_v24  ;;  %8725 = vmatpush.bf16.msra.mxu2 %v14063_v10  ;;  %v13136_v54 = vld [vmem:[#allocation16 + $0x528] sm:$0xf0]  ;;  %v12595_v24 = vor.u32 %v15401_v4, %v12592_v5 }
 0x66d   : > { %v13455_v31 = vor.u32 %v15621_v36, %v13454_v35  ;;  %v13422_v29 = vld [vmem:[#allocation16 + $0x748] sm:$0xf]  ;;  %v13139_v55 = vor.u32 %v15537_v57, %v13136_v54  ;;  %v15457_v22 = vld [vmem:[#allocation16 + $0x28c] sm:$0xf] }
 0x66e   : > { %8746 = vmatpush.bf16.msrb.mxu0 %v12691_v34  ;;  %v15613_v2 = vld [vmem:[#allocation16 + $0x764] sm:$0xf0]  ;;  %v12816_v23 = vld [vmem:[#allocation16 + $0x2a8] sm:$0xf0] }
 0x66f   : > { %8681 = vmatpush.bf16.msrb.mxu3 %v13455_v31  ;;  %v13423_v60 = vor.u32 %v15613_v2, %v13422_v29  ;;  %v13390_v1 = vld [vmem:[#allocation16 + $0x708] sm:$0xf]  ;;  %v13104_v34 = vld [vmem:[#allocation16 + $0x4e8] sm:$0xf0]  ;;  %v12819_v37 = vor.u32 %v15457_v22, %v12816_v23 }
 0x670   : > { %8759 = vmatpush.bf16.msrb.mxu1 %v12947_v41  ;;  %8726 = vmatpush.bf16.msra.mxu2 %v14031_v33  ;;  %v15605_v13 = vld [vmem:[#allocation16 + $0x724] sm:$0xf0]  ;;  %v12528_v41 = vld [vmem:[#allocation16 + $0x68] sm:$0xf0]  ;;  %v13107_v33 = vor.u32 %v15529_v25, %v13104_v34 }
 0x671   : > { %v13391_v46 = vor.u32 %v15605_v13, %v13390_v1  ;;  %v13358_v10 = vld [vmem:[#allocation16 + $0x6c8] sm:$0xf]  ;;  %v15449_v42 = vld [vmem:[#allocation16 + $0x24c] sm:$0xf]  ;;  %v12531_v18 = vor.u32 %v15385_v40, %v12528_v41 }
 0x672   : > { %8747 = vmatpush.bf16.msrb.mxu0 %v12659_v51  ;;  %v15597_v27 = vld [vmem:[#allocation16 + $0x6e4] sm:$0xf0]  ;;  %v12784_v43 = vld [vmem:[#allocation16 + $0x268] sm:$0xf0] }
 0x673   : > { %8727 = vmatmul.bf16.vlgmr.msra.gmra.mxu2 %v17052_v28  ;;  %8682 = vmatpush.bf16.msrb.mxu3 %v13423_v60  ;;  %v13359_v32 = vor.u32 %v15597_v27, %v13358_v10  ;;  %v13326_v35 = vld [vmem:[#allocation16 + $0x688] sm:$0xf]  ;;  %v15521_v31 = vld [vmem:[#allocation16 + $0x48c] sm:$0xf] }
 0x674   : > { %8771 = vmatpush.bf16.msrb.mxu2 %v13235_v8  ;;  %8760 = vmatpush.bf16.msrb.mxu1 %v12915_v44  ;;  %v15589_v36 = vld [vmem:[#allocation16 + $0x6a4] sm:$0xf0]  ;;  %v8496_v8 = vpop.f32.mrf.mxu0  ;;  %v13072_v39 = vld [vmem:[#allocation16 + $0x4a8] sm:$0xf0]  ;;  %v12787_v44 = vor.u32 %v15449_v42, %v12784_v43 }
 0x675   : > { %v13327_v38 = vor.u32 %v15589_v36, %v13326_v35  ;;  %v13294_v51 = vld [vmem:[#allocation16 + $0x648] sm:$0xf]  ;;  %v15377_v2 = vld [vmem:[#allocation16 + $0xc] sm:$0xf]  ;;  %v13075_v56 = vor.u32 %v15521_v31, %v13072_v39 }
 0x676   : > { %8748 = vmatpush.bf16.msrb.mxu0 %v12627_v0  ;;  %v15581_v29 = vld [vmem:[#allocation16 + $0x664] sm:$0xf0]  ;;  %v12496_v58 = vld [vmem:[#allocation16 + $0x28] sm:$0xf0] }
 0x677   : > { %8683 = vmatpush.bf16.msrb.mxu3 %v13391_v46  ;;  %v15441_v20 = vld [vmem:[#allocation16 + $0x20c] sm:$0xf]  ;;  %v13295_v63 = vor.u32 %v15581_v29, %v13294_v51  ;;  %v13262_v4 = vld [vmem:[#allocation16 + $0x608] sm:$0xf] }
 0x678   : > { %8772 = vmatpush.bf16.msrb.mxu2 %v13203_v53  ;;  %8761 = vmatpush.bf16.msrb.mxu1 %v12883_v14  ;;  %v12752_v53 = vld [vmem:[#allocation16 + $0x228] sm:$0xf0]  ;;  %v12499_v14 = vor.u32 %v15377_v2, %v12496_v58  ;;  %v15573_v5 = vld [vmem:[#allocation16 + $0x624] sm:$0xf0]  ;;  %v5858_v2 = vperm.slane %v17078_v52, 1 }
 0x679   : > { %v15689_v59 = vld [vmem:[#allocation16 + $0x9cc] sm:$0xf]  ;;  %v14510_v6 = vld [vmem:[#allocation16 + $0xfc8] sm:$0xf]  ;;  %v13263_v9 = vor.u32 %v15573_v5, %v13262_v4 }
 0x67a   : > { %8749 = vmatpush.bf16.msrb.mxu0 %v12595_v24  ;;  %v13744_v60 = vld [vmem:[#allocation16 + $0x9e8] sm:$0xf0]  ;;  %v15885_v7 = vld [vmem:[#allocation16 + $0xfe4] sm:$0xf0] }
 0x67b   : > { %8684 = vmatpush.bf16.msrb.mxu3 %v13359_v32  ;;  %v15753_v50 = vld [vmem:[#allocation16 + $0xbcc] sm:$0xf]  ;;  %v13747_v21 = vor.u32 %v15689_v59, %v13744_v60  ;;  %v14511_v27 = vor.u32 %v15885_v7, %v14510_v6  ;;  %v14478_v23 = vld [vmem:[#allocation16 + $0xf88] sm:$0xf] }
 0x67c   : > { %8773 = vmatpush.bf16.msrb.mxu2 %v13171_v48  ;;  %8762 = vmatpush.bf16.msrb.mxu1 %v12851_v11  ;;  %v14000_v0 = vld [vmem:[#allocation16 + $0xbe8] sm:$0xf0]  ;;  %v12755_v48 = vor.u32 %v15441_v20, %v12752_v53  ;;  %v15877_v32 = vld [vmem:[#allocation16 + $0xfa4] sm:$0xf0] }
 0x67d   : > { %v15513_v1 = vld [vmem:[#allocation16 + $0x44c] sm:$0xf]  ;;  %v14003_v61 = vor.u32 %v15753_v50, %v14000_v0  ;;  %v14479_v41 = vor.u32 %v15877_v32, %v14478_v23  ;;  %v14446_v8 = vld [vmem:[#allocation16 + $0xf48] sm:$0xf] }
 0x67e   : > { %8750 = vmatpush.bf16.msrb.mxu0 %v12563_v62  ;;  %v13040_v13 = vld [vmem:[#allocation16 + $0x468] sm:$0xf0]  ;;  %v15869_v47 = vld [vmem:[#allocation16 + $0xf64] sm:$0xf0] }
 0x67f   : > { %8685 = vmatpush.bf16.msrb.mxu3 %v13327_v38  ;;  %v13043_v46 = vor.u32 %v15513_v1, %v13040_v13  ;;  %v15681_v57 = vld [vmem:[#allocation16 + $0x98c] sm:$0xf]  ;;  %v15861_v59 = vld [vmem:[#allocation16 + $0xf24] sm:$0xf0]  ;;  %v8546_v13 = vpop.f32.mrf.mxu0 }
 0x680   : > { %8774 = vmatpush.bf16.msrb.mxu2 %v13139_v55  ;;  %8763 = vmatpush.bf16.msrb.mxu1 %v12819_v37  ;;  %v13712_v54 = vld [vmem:[#allocation16 + $0x9a8] sm:$0xf0]  ;;  %v14382_v7 = vld [vmem:[#allocation16 + $0xec8] sm:$0xf] }
 0x681   : > { %v15745_v24 = vld [vmem:[#allocation16 + $0xb8c] sm:$0xf]  ;;  %v13715_v55 = vor.u32 %v15681_v57, %v13712_v54  ;;  %v15845_v23 = vld [vmem:[#allocation16 + $0xea4] sm:$0xf0] }
 0x682   : > { %8751 = vmatpush.bf16.msrb.mxu0 %v12531_v18  ;;  %v13968_v10 = vld [vmem:[#allocation16 + $0xba8] sm:$0xf0] }
 0x683   : > { %8686 = vmatpush.bf16.msrb.mxu3 %v13295_v63  ;;  %v15505_v11 = vld [vmem:[#allocation16 + $0x40c] sm:$0xf]  ;;  %v13971_v25 = vor.u32 %v15745_v24, %v13968_v10 }
 0x684   : > { %8775 = vmatpush.bf16.msrb.mxu2 %v13107_v33  ;;  %8764 = vmatpush.bf16.msrb.mxu1 %v12787_v44  ;;  %v13008_v26 = vld [vmem:[#allocation16 + $0x428] sm:$0xf0]  ;;  %v14447_v44 = vor.u32 %v15869_v47, %v14446_v8 }
 0x685   : > { %v15817_v16 = vld [vmem:[#allocation16 + $0xdcc] sm:$0xf]  ;;  %v13011_v35 = vor.u32 %v15505_v11, %v13008_v26 }
 0x686   : > { %8752 = vmatpush.bf16.msrb.mxu0 %v12499_v14  ;;  %v14256_v22 = vld [vmem:[#allocation16 + $0xde8] sm:$0xf0]  ;;  %v8559_v14 = vpop.f32.mrf.mxu1 }
 0x687   : > { %v15673_v34 = vld [vmem:[#allocation16 + $0x94c] sm:$0xf]  ;;  %8687 = vmatpush.bf16.msrb.mxu3 %v13263_v9  ;;  %v14259_v40 = vor.u32 %v15817_v16, %v14256_v22  ;;  %v14350_v22 = vld [vmem:[#allocation16 + $0xe88] sm:$0xf] }
 0x688   : > { %8776 = vmatpush.bf16.msrb.mxu2 %v13075_v56  ;;  %8765 = vmatpush.bf16.msrb.mxu1 %v12755_v48  ;;  %v13680_v62 = vld [vmem:[#allocation16 + $0x968] sm:$0xf0]  ;;  %v14414_v56 = vld [vmem:[#allocation16 + $0xf08] sm:$0xf]  ;;  %v8547_v48 = vadd.f32 %v8546_v13, %v5858_v2 }
 0x689   : > { %8753 = vmatmul.bf16.vlgmr.msrb.gmra.mxu0 %v17011_v15  ;;  %v15737_v36 = vld [vmem:[#allocation16 + $0xb4c] sm:$0xf]  ;;  %v13683_v42 = vor.u32 %v15673_v34, %v13680_v62  ;;  %v14415_v4 = vor.u32 %v15861_v59, %v14414_v56  ;;  %v8520_v62 = vpop.f32.mrf.mxu2  ;;  %v15502_v56 = vld [vmem:[#allocation16 + $0x3ec] sm:$0xf0] }
 0x68a   : > { %8797 = vmatpush.bf16.msra.mxu0 %v13747_v21  ;;  %v13936_v37 = vld [vmem:[#allocation16 + $0xb68] sm:$0xf0]  ;;  %8688 = vmatmul.bf16.vlgmr.msrb.gmra.mxu3 %v17023_v30  ;;  %v17097_v9 = vadd.f32 %v8559_v14, %v8547_v48  ;;  %v12694_v48 = vld [vmem:[#allocation16 + $0x190] sm:$0xf] }
 0x68b   : > { %8766 = vmatmul.bf16.vlgmr.msrb.gmra.mxu1 %v17013_v17  ;;  %8732 = vmatpush.bf16.msra.mxu3 %v14511_v27  ;;  %v15809_v33 = vld [vmem:[#allocation16 + $0xd8c] sm:$0xf]  ;;  %v13939_v38 = vor.u32 %v15737_v36, %v13936_v37  ;;  %v17100_v37 = vadd.f32 %v8520_v62, %v17090_v19  ;;  %v12726_v19 = vld [vmem:[#allocation16 + $0x1d0] sm:$0xf] }
 0x68c   : > { %8810 = vmatpush.bf16.msra.mxu1 %v14003_v61  ;;  %8777 = vmatpush.bf16.msrb.mxu2 %v13043_v46  ;;  %v14224_v43 = vld [vmem:[#allocation16 + $0xda8] sm:$0xf0]  ;;  %v15853_v61 = vld [vmem:[#allocation16 + $0xee4] sm:$0xf0] }
 0x68d   : > { %v15665_v31 = vld [vmem:[#allocation16 + $0x90c] sm:$0xf]  ;;  %v14227_v29 = vor.u32 %v15809_v33, %v14224_v43  ;;  %v14383_v11 = vor.u32 %v15853_v61, %v14382_v7  ;;  %v12950_v61 = vld [vmem:[#allocation16 + $0x390] sm:$0xf] }
 0x68e   : > { %8798 = vmatpush.bf16.msra.mxu0 %v13715_v55  ;;  %v13648_v39 = vld [vmem:[#allocation16 + $0x928] sm:$0xf0] }
 0x68f   : > { %v15729_v18 = vld [vmem:[#allocation16 + $0xb0c] sm:$0xf]  ;;  %8733 = vmatpush.bf16.msra.mxu3 %v14479_v41  ;;  %v13651_v20 = vor.u32 %v15665_v31, %v13648_v39  ;;  %v8561_v41 = vpop.f32.mrf.mxu1  ;;  %v15837_v31 = vld [vmem:[#allocation16 + $0xe64] sm:$0xf0] }
 0x690   : > { %8811 = vmatpush.bf16.msra.mxu1 %v13971_v25  ;;  %8778 = vmatpush.bf16.msrb.mxu2 %v13011_v35  ;;  %v13904_v51 = vld [vmem:[#allocation16 + $0xb28] sm:$0xf0]  ;;  %v15558_v41 = vld [vmem:[#allocation16 + $0x5ac] sm:$0xf0] }
 0x691   : > { %v15801_v58 = vld [vmem:[#allocation16 + $0xd4c] sm:$0xf]  ;;  %v13907_v60 = vor.u32 %v15729_v18, %v13904_v51 }
 0x692   : > { %8799 = vmatpush.bf16.msra.mxu0 %v13683_v42  ;;  %v14192_v53 = vld [vmem:[#allocation16 + $0xd68] sm:$0xf0]  ;;  %v14351_v42 = vor.u32 %v15845_v23, %v14350_v22  ;;  %v12662_v22 = vld [vmem:[#allocation16 + $0x150] sm:$0xf] }
 0x693   : > { %8779 = vmatmul.bf16.vlgmr.msrb.gmra.mxu2 %v17021_v49  ;;  %v15657_v50 = vld [vmem:[#allocation16 + $0x8cc] sm:$0xf]  ;;  %8734 = vmatpush.bf16.msra.mxu3 %v14447_v44  ;;  %v14195_v52 = vor.u32 %v15801_v58, %v14192_v53  ;;  %v15438_v44 = vld [vmem:[#allocation16 + $0x1ec] sm:$0xf0] }
 0x694   : > { %8823 = vmatpush.bf16.msra.mxu2 %v14259_v40  ;;  %8812 = vmatpush.bf16.msra.mxu1 %v13939_v38  ;;  %v13616_v63 = vld [vmem:[#allocation16 + $0x8e8] sm:$0xf0]  ;;  %v8548_v40 = vpop.f32.mrf.mxu0  ;;  %v14318_v38 = vld [vmem:[#allocation16 + $0xe48] sm:$0xf]  ;;  %v12982_v53 = vld [vmem:[#allocation16 + $0x3d0] sm:$0xf]  ;;  %v12727_v13 = vor.u32 %v15438_v44, %v12726_v19 }
 0x695   : > { %v15721_v0 = vld [vmem:[#allocation16 + $0xacc] sm:$0xf]  ;;  %v13619_v21 = vor.u32 %v15657_v50, %v13616_v63  ;;  %v14286_v63 = vld [vmem:[#allocation16 + $0xe08] sm:$0xf]  ;;  %v15422_v23 = vld [vmem:[#allocation16 + $0x16c] sm:$0xf0] }
 0x696   : > { %v13872_v1 = vld [vmem:[#allocation16 + $0xae8] sm:$0xf0]  ;;  %8800 = vmatpush.bf16.msra.mxu0 %v13651_v20  ;;  %v14319_v20 = vor.u32 %v15837_v31, %v14318_v38  ;;  %v13206_v40 = vld [vmem:[#allocation16 + $0x590] sm:$0xf] }
 0x697   : > { %v15793_v5 = vld [vmem:[#allocation16 + $0xd0c] sm:$0xf]  ;;  %v13875_v46 = vor.u32 %v15721_v0, %v13872_v1  ;;  %8735 = vmatpush.bf16.msra.mxu3 %v14415_v4  ;;  %v15829_v0 = vld [vmem:[#allocation16 + $0xe24] sm:$0xf0]  ;;  %v12983_v4 = vor.u32 %v15502_v56, %v12982_v53  ;;  %v15414_v38 = vld [vmem:[#allocation16 + $0x12c] sm:$0xf0] }
 0x698   : > { %8824 = vmatpush.bf16.msra.mxu2 %v14227_v29  ;;  %v14160_v6 = vld [vmem:[#allocation16 + $0xd28] sm:$0xf0]  ;;  %8813 = vmatpush.bf16.msra.mxu1 %v13907_v60  ;;  %v14287_v7 = vor.u32 %v15829_v0, %v14286_v63  ;;  %v13174_v19 = vld [vmem:[#allocation16 + $0x550] sm:$0xf] }
 0x699   : > { %v15649_v57 = vld [vmem:[#allocation16 + $0x88c] sm:$0xf]  ;;  %v14163_v27 = vor.u32 %v15793_v5, %v14160_v6  ;;  %v15550_v44 = vld [vmem:[#allocation16 + $0x56c] sm:$0xf0] }
 0x69a   : > { %v13584_v54 = vld [vmem:[#allocation16 + $0x8a8] sm:$0xf0]  ;;  %8801 = vmatpush.bf16.msra.mxu0 %v13619_v21  ;;  %v15430_v21 = vld [vmem:[#allocation16 + $0x1ac] sm:$0xf0]  ;;  %v13175_v0 = vor.u32 %v15550_v44, %v13174_v19 }
 0x69b   : > { %v15713_v24 = vld [vmem:[#allocation16 + $0xa8c] sm:$0xf]  ;;  %v13587_v16 = vor.u32 %v15649_v57, %v13584_v54  ;;  %8736 = vmatpush.bf16.msra.mxu3 %v14383_v11  ;;  %v15566_v11 = vld [vmem:[#allocation16 + $0x5ec] sm:$0xf0] }
 0x69c   : > { %v13840_v10 = vld [vmem:[#allocation16 + $0xaa8] sm:$0xf0]  ;;  %8825 = vmatpush.bf16.msra.mxu2 %v14195_v52  ;;  %8814 = vmatpush.bf16.msra.mxu1 %v13875_v46  ;;  %v8522_v52 = vpop.f32.mrf.mxu2  ;;  %v15494_v46 = vld [vmem:[#allocation16 + $0x3ac] sm:$0xf0] }
 0x69d   : > { %v15785_v26 = vld [vmem:[#allocation16 + $0xccc] sm:$0xf]  ;;  %v13843_v32 = vor.u32 %v15713_v24, %v13840_v10  ;;  %v12695_v10 = vor.u32 %v15430_v21, %v12694_v48  ;;  %v12598_v56 = vld [vmem:[#allocation16 + $0xd0] sm:$0xf] }
 0x69e   : > { %v14128_v55 = vld [vmem:[#allocation16 + $0xce8] sm:$0xf0]  ;;  %8802 = vmatpush.bf16.msra.mxu0 %v13587_v16  ;;  %v12951_v16 = vor.u32 %v15494_v46, %v12950_v61  ;;  %v15542_v52 = vld [vmem:[#allocation16 + $0x52c] sm:$0xf0] }
 0x69f   : > { %v15641_v25 = vld [vmem:[#allocation16 + $0x84c] sm:$0xf]  ;;  %v14131_v33 = vor.u32 %v15785_v26, %v14128_v55  ;;  %8737 = vmatpush.bf16.msra.mxu3 %v14351_v42  ;;  %v12822_v61 = vld [vmem:[#allocation16 + $0x290] sm:$0xf] }
 0x6a0   : > { %v13552_v34 = vld [vmem:[#allocation16 + $0x868] sm:$0xf0]  ;;  %8826 = vmatpush.bf16.msra.mxu2 %v14163_v27  ;;  %8815 = vmatpush.bf16.msra.mxu1 %v13843_v32  ;;  %v13238_v27 = vld [vmem:[#allocation16 + $0x5d0] sm:$0xf] }
 0x6a1   : > { %v15705_v35 = vld [vmem:[#allocation16 + $0xa4c] sm:$0xf]  ;;  %v13555_v8 = vor.u32 %v15641_v25, %v13552_v34  ;;  %v12918_v25 = vld [vmem:[#allocation16 + $0x350] sm:$0xf]  ;;  %v13239_v62 = vor.u32 %v15566_v11, %v13238_v27 }
 0x6a2   : > { %v13808_v36 = vld [vmem:[#allocation16 + $0xa68] sm:$0xf0]  ;;  %v15486_v34 = vld [vmem:[#allocation16 + $0x36c] sm:$0xf0] }
 0x6a3   : > { %v15777_v43 = vld [vmem:[#allocation16 + $0xc8c] sm:$0xf]  ;;  %v13811_v39 = vor.u32 %v15705_v35, %v13808_v36  ;;  %8803 = vmatpush.bf16.msra.mxu0 %v13555_v8  ;;  %8738 = vmatpush.bf16.msra.mxu3 %v14319_v20  ;;  %v12663_v36 = vor.u32 %v15422_v23, %v12662_v22  ;;  %v15462_v46 = vld [vmem:[#allocation16 + $0x2ac] sm:$0xf0] }
 0x6a4   : > { %v14096_v47 = vld [vmem:[#allocation16 + $0xca8] sm:$0xf0]  ;;  %8827 = vmatpush.bf16.msra.mxu2 %v14131_v33  ;;  %v8572_v42 = vpop.f32.mrf.mxu2  ;;  %v15534_v27 = vld [vmem:[#allocation16 + $0x4ec] sm:$0xf0] }
 0x6a5   : > { %v15633_v18 = vld [vmem:[#allocation16 + $0x80c] sm:$0xf]  ;;  %v14099_v58 = vor.u32 %v15777_v43, %v14096_v47  ;;  %8816 = vmatpush.bf16.msra.mxu1 %v13811_v39  ;;  %v12919_v43 = vor.u32 %v15486_v34, %v12918_v25  ;;  %v12630_v47 = vld [vmem:[#allocation16 + $0x110] sm:$0xf]  ;;  %v17106_v31 = vadd.f32 %v8572_v42, %v17097_v9 }
 0x6a6   : > { %v13520_v51 = vld [vmem:[#allocation16 + $0x828] sm:$0xf0]  ;;  %v12886_v39 = vld [vmem:[#allocation16 + $0x310] sm:$0xf] }
 0x6a7   : > { %v15697_v29 = vld [vmem:[#allocation16 + $0xa0c] sm:$0xf]  ;;  %v13523_v60 = vor.u32 %v15633_v18, %v13520_v51  ;;  %8739 = vmatpush.bf16.msra.mxu3 %v14287_v7  ;;  %v15478_v18 = vld [vmem:[#allocation16 + $0x32c] sm:$0xf0]  ;;  %v13207_v51 = vor.u32 %v15558_v41, %v13206_v40 }
 0x6a8   : > { %v13776_v2 = vld [vmem:[#allocation16 + $0xa28] sm:$0xf0]  ;;  %8828 = vmatpush.bf16.msra.mxu2 %v14099_v58  ;;  %v12887_v20 = vor.u32 %v15478_v18, %v12886_v39  ;;  %v15406_v9 = vld [vmem:[#allocation16 + $0xec] sm:$0xf0]  ;;  %v17111_v63 = vpop.f32.mrf.mxu1 }
 0x6a9   : > { %v15769_v59 = vld [vmem:[#allocation16 + $0xc4c] sm:$0xf]  ;;  %v13779_v1 = vor.u32 %v15697_v29, %v13776_v2  ;;  %8804 = vmatpush.bf16.msra.mxu0 %v13523_v60  ;;  %v12631_v2 = vor.u32 %v15414_v38, %v12630_v47  ;;  %v15470_v60 = vld [vmem:[#allocation16 + $0x2ec] sm:$0xf0] }
 0x6aa   : > { %v14064_v50 = vld [vmem:[#allocation16 + $0xc68] sm:$0xf0]  ;;  %8740 = vmatmul.bf16.vlgmr.msra.gmra.mxu3 %v17073_v12  ;;  %v15398_v7 = vld [vmem:[#allocation16 + $0xac] sm:$0xf0] }
 0x6ab   : > { %v15625_v14 = vld [vmem:[#allocation16 + $0x7cc] sm:$0xf]  ;;  %v14067_v6 = vor.u32 %v15769_v59, %v14064_v50  ;;  %8817 = vmatpush.bf16.msra.mxu1 %v13779_v1  ;;  %v12854_v59 = vld [vmem:[#allocation16 + $0x2d0] sm:$0xf]  ;;  %v17109_v50 = vpop.f32.mrf.mxu0 }
 0x6ac   : > { %v13488_v5 = vld [vmem:[#allocation16 + $0x7e8] sm:$0xf0]  ;;  %8805 = vmatmul.bf16.vlgmr.msra.gmra.mxu0 %v17042_v3  ;;  %v12855_v48 = vor.u32 %v15470_v60, %v12854_v59  ;;  %v15390_v22 = vld [vmem:[#allocation16 + $0x6c] sm:$0xf0] }
 0x6ad   : > { %v15761_v57 = vld [vmem:[#allocation16 + $0xc0c] sm:$0xf]  ;;  %8849 = vmatpush.bf16.msrb.mxu0 %v12727_v13  ;;  %v13491_v24 = vor.u32 %v15625_v14, %v13488_v5  ;;  %8829 = vmatpush.bf16.msra.mxu2 %v14067_v6  ;;  %v12599_v13 = vor.u32 %v15406_v9, %v12598_v56  ;;  %v13142_v14 = vld [vmem:[#allocation16 + $0x510] sm:$0xf]  ;;  %v8574_v5 = vpop.f32.mrf.mxu2 }
 0x6ae   : > { %v14032_v54 = vld [vmem:[#allocation16 + $0xc28] sm:$0xf0]  ;;  %8818 = vmatmul.bf16.vlgmr.msra.gmra.mxu1 %v17044_v45  ;;  %v12566_v6 = vld [vmem:[#allocation16 + $0x90] sm:$0xf] }
 0x6af   : > { %v15617_v26 = vld [vmem:[#allocation16 + $0x78c] sm:$0xf]  ;;  %8862 = vmatpush.bf16.msrb.mxu1 %v12983_v4  ;;  %v14035_v32 = vor.u32 %v15761_v57, %v14032_v54  ;;  %8784 = vmatpush.bf16.msrb.mxu3 %v13491_v24  ;;  %v13143_v57 = vor.u32 %v15542_v52, %v13142_v14  ;;  %v12567_v24 = vor.u32 %v15398_v7, %v12566_v6  ;;  %v12790_v23 = vld [vmem:[#allocation16 + $0x250] sm:$0xf] }
 0x6b0   : > { %v13456_v55 = vld [vmem:[#allocation16 + $0x7a8] sm:$0xf0]  ;;  %v8613_v34 = vpop.f32.mrf.mxu1  ;;  %v15526_v41 = vld [vmem:[#allocation16 + $0x4ac] sm:$0xf0] }
 0x6b1   : > { %8850 = vmatpush.bf16.msrb.mxu0 %v12695_v10  ;;  %v13459_v35 = vor.u32 %v15617_v26, %v13456_v55  ;;  %v15609_v33 = vld [vmem:[#allocation16 + $0x74c] sm:$0xf]  ;;  %8830 = vmatpush.bf16.msra.mxu2 %v14035_v32  ;;  %v13110_v10 = vld [vmem:[#allocation16 + $0x4d0] sm:$0xf]  ;;  %v12823_v26 = vor.u32 %v15462_v46, %v12822_v61 }
 0x6b2   : > { %v13424_v8 = vld [vmem:[#allocation16 + $0x768] sm:$0xf0]  ;;  %v12534_v55 = vld [vmem:[#allocation16 + $0x50] sm:$0xf] }
 0x6b3   : > { %8863 = vmatpush.bf16.msrb.mxu1 %v12951_v16  ;;  %8785 = vmatpush.bf16.msrb.mxu3 %v13459_v35  ;;  %v13427_v29 = vor.u32 %v15609_v33, %v13424_v8  ;;  %v15601_v58 = vld [vmem:[#allocation16 + $0x70c] sm:$0xf]  ;;  %v15454_v32 = vld [vmem:[#allocation16 + $0x26c] sm:$0xf0]  ;;  %v8600_v25 = vpop.f32.mrf.mxu0  ;;  %v12535_v40 = vor.u32 %v15390_v22, %v12534_v55 }
 0x6b4   : > { %8831 = vmatmul.bf16.vlgmr.msra.gmra.mxu2 %v17052_v28  ;;  %v13392_v53 = vld [vmem:[#allocation16 + $0x728] sm:$0xf0]  ;;  %v13078_v35 = vld [vmem:[#allocation16 + $0x490] sm:$0xf] }
 0x6b5   : > { %8875 = vmatpush.bf16.msrb.mxu2 %v13239_v62  ;;  %8851 = vmatpush.bf16.msrb.mxu0 %v12663_v36  ;;  %v13395_v1 = vor.u32 %v15601_v58, %v13392_v53  ;;  %v15593_v4 = vld [vmem:[#allocation16 + $0x6cc] sm:$0xf]  ;;  %v13111_v62 = vor.u32 %v15534_v27, %v13110_v10  ;;  %v12502_v8 = vld [vmem:[#allocation16 + $0x10] sm:$0xf] }
 0x6b6   : > { %v13360_v21 = vld [vmem:[#allocation16 + $0x6e8] sm:$0xf0]  ;;  %v15382_v47 = vld [vmem:[#allocation16 + $0x2c] sm:$0xf0] }
 0x6b7   : > { %8864 = vmatpush.bf16.msrb.mxu1 %v12919_v43  ;;  %8786 = vmatpush.bf16.msrb.mxu3 %v13427_v29  ;;  %v13363_v54 = vor.u32 %v15593_v4, %v13360_v21  ;;  %v15585_v11 = vld [vmem:[#allocation16 + $0x68c] sm:$0xf]  ;;  %v12791_v43 = vor.u32 %v15454_v32, %v12790_v23  ;;  %v12758_v38 = vld [vmem:[#allocation16 + $0x210] sm:$0xf]  ;;  %v17113_v29 = vpop.f32.mrf.mxu2 }
 0x6b8   : > { %v13328_v16 = vld [vmem:[#allocation16 + $0x6a8] sm:$0xf0]  ;;  %v15446_v39 = vld [vmem:[#allocation16 + $0x22c] sm:$0xf0] }
 0x6b9   : > { %8876 = vmatpush.bf16.msrb.mxu2 %v13207_v51  ;;  %8852 = vmatpush.bf16.msrb.mxu0 %v12631_v2  ;;  %v13331_v36 = vor.u32 %v15585_v11, %v13328_v16  ;;  %v15577_v33 = vld [vmem:[#allocation16 + $0x64c] sm:$0xf]  ;;  %v13750_v18 = vld [vmem:[#allocation16 + $0x9d0] sm:$0xf]  ;;  %v13079_v2 = vor.u32 %v15526_v41, %v13078_v35  ;;  %v12759_v9 = vor.u32 %v15446_v39, %v12758_v38  ;;  %v17118_v39 = vld [vmem:[#allocation17] sm:$0xff] }
 0x6ba   : > { %v13296_v42 = vld [vmem:[#allocation16 + $0x668] sm:$0xf0]  ;;  %v15694_v51 = vld [vmem:[#allocation16 + $0x9ec] sm:$0xf0] }
 0x6bb   : > { %8865 = vmatpush.bf16.msrb.mxu1 %v12887_v20  ;;  %8787 = vmatpush.bf16.msrb.mxu3 %v13395_v1  ;;  %v14006_v19 = vld [vmem:[#allocation16 + $0xbd0] sm:$0xf]  ;;  %v13299_v58 = vor.u32 %v15577_v33, %v13296_v42  ;;  %v12503_v20 = vor.u32 %v15382_v47, %v12502_v8  ;;  %v13751_v59 = vor.u32 %v15694_v51, %v13750_v18  ;;  %v15569_v60 = vld [vmem:[#allocation16 + $0x60c] sm:$0xf]  ;;  %v5859_v18 = vperm.slane %v17118_v39, 2 }
 0x6bc   : > { %v15758_v44 = vld [vmem:[#allocation16 + $0xbec] sm:$0xf0]  ;;  %v15881_v1 = vld [vmem:[#allocation16 + $0xfcc] sm:$0xf] }
 0x6bd   : > { %8877 = vmatpush.bf16.msrb.mxu2 %v13175_v0  ;;  %8853 = vmatpush.bf16.msrb.mxu0 %v12599_v13  ;;  %v13046_v53 = vld [vmem:[#allocation16 + $0x450] sm:$0xf]  ;;  %v13264_v0 = vld [vmem:[#allocation16 + $0x628] sm:$0xf0]  ;;  %v14007_v13 = vor.u32 %v15758_v44, %v14006_v19 }
 0x6be   : > { %v15518_v56 = vld [vmem:[#allocation16 + $0x46c] sm:$0xf0]  ;;  %v14512_v14 = vld [vmem:[#allocation16 + $0xfe8] sm:$0xf0]  ;;  %v13267_v6 = vor.u32 %v15569_v60, %v13264_v0 }
 0x6bf   : > { %8866 = vmatpush.bf16.msrb.mxu1 %v12855_v48  ;;  %8788 = vmatpush.bf16.msrb.mxu3 %v13363_v54  ;;  %v13718_v52 = vld [vmem:[#allocation16 + $0x990] sm:$0xf]  ;;  %v13047_v5 = vor.u32 %v15518_v56, %v13046_v53  ;;  %v14515_v46 = vor.u32 %v15881_v1, %v14512_v14  ;;  %v15873_v10 = vld [vmem:[#allocation16 + $0xf8c] sm:$0xf]  ;;  %v8626_v55 = vpop.f32.mrf.mxu2 }
 0x6c0   : > { %v15686_v4 = vld [vmem:[#allocation16 + $0x9ac] sm:$0xf0]  ;;  %v14480_v11 = vld [vmem:[#allocation16 + $0xfa8] sm:$0xf0] }
 0x6c1   : > { %8878 = vmatpush.bf16.msrb.mxu2 %v13143_v57  ;;  %8854 = vmatpush.bf16.msrb.mxu0 %v12567_v24  ;;  %v13974_v48 = vld [vmem:[#allocation16 + $0xb90] sm:$0xf]  ;;  %v13719_v57 = vor.u32 %v15686_v4, %v13718_v52  ;;  %v14483_v34 = vor.u32 %v15873_v10, %v14480_v11  ;;  %v14448_v33 = vld [vmem:[#allocation16 + $0xf68] sm:$0xf0] }
 0x6c2   : > { %v15750_v21 = vld [vmem:[#allocation16 + $0xbac] sm:$0xf0]  ;;  %v14416_v53 = vld [vmem:[#allocation16 + $0xf28] sm:$0xf0] }
 0x6c3   : > { %8867 = vmatpush.bf16.msrb.mxu1 %v12823_v26  ;;  %8789 = vmatpush.bf16.msrb.mxu3 %v13331_v36  ;;  %v13014_v7 = vld [vmem:[#allocation16 + $0x410] sm:$0xf]  ;;  %v13975_v27 = vor.u32 %v15750_v21, %v13974_v48  ;;  %v15849_v21 = vld [vmem:[#allocation16 + $0xecc] sm:$0xf] }
 0x6c4   : > { %v15510_v61 = vld [vmem:[#allocation16 + $0x42c] sm:$0xf0]  ;;  %v15841_v55 = vld [vmem:[#allocation16 + $0xe8c] sm:$0xf] }
 0x6c5   : > { %8879 = vmatpush.bf16.msrb.mxu2 %v13111_v62  ;;  %8855 = vmatpush.bf16.msrb.mxu0 %v12535_v40  ;;  %v14262_v54 = vld [vmem:[#allocation16 + $0xdd0] sm:$0xf]  ;;  %v13015_v22 = vor.u32 %v15510_v61, %v13014_v7  ;;  %v15865_v40 = vld [vmem:[#allocation16 + $0xf4c] sm:$0xf] }
 0x6c6   : > { %v15822_v24 = vld [vmem:[#allocation16 + $0xdec] sm:$0xf0]  ;;  %v14451_v51 = vor.u32 %v15865_v40, %v14448_v33  ;;  %v8650_v0 = vpop.f32.mrf.mxu0  ;;  %v14384_v7 = vld [vmem:[#allocation16 + $0xee8] sm:$0xf0] }
 0x6c7   : > { %8868 = vmatpush.bf16.msrb.mxu1 %v12791_v43  ;;  %8790 = vmatpush.bf16.msrb.mxu3 %v13299_v58  ;;  %v13686_v26 = vld [vmem:[#allocation16 + $0x950] sm:$0xf]  ;;  %v14263_v25 = vor.u32 %v15822_v24, %v14262_v54  ;;  %v15857_v58 = vld [vmem:[#allocation16 + $0xf0c] sm:$0xf] }
 0x6c8   : > { %v15678_v16 = vld [vmem:[#allocation16 + $0x96c] sm:$0xf0]  ;;  %v8663_v14 = vpop.f32.mrf.mxu1  ;;  %v14419_v52 = vor.u32 %v15857_v58, %v14416_v53  ;;  %v15434_v58 = vld [vmem:[#allocation16 + $0x1d4] sm:$0xf] }
 0x6c9   : > { %8880 = vmatpush.bf16.msrb.mxu2 %v13079_v2  ;;  %8856 = vmatpush.bf16.msrb.mxu0 %v12503_v20  ;;  %v13942_v23 = vld [vmem:[#allocation16 + $0xb50] sm:$0xf]  ;;  %v13687_v62 = vor.u32 %v15678_v16, %v13686_v26 }
 0x6ca   : > { %v15742_v32 = vld [vmem:[#allocation16 + $0xb6c] sm:$0xf0] }
 0x6cb   : > { %8869 = vmatpush.bf16.msrb.mxu1 %v12759_v9  ;;  %8791 = vmatpush.bf16.msrb.mxu3 %v13267_v6  ;;  %v14230_v35 = vld [vmem:[#allocation16 + $0xd90] sm:$0xf]  ;;  %v13943_v41 = vor.u32 %v15742_v32, %v13942_v23  ;;  %v14352_v32 = vld [vmem:[#allocation16 + $0xea8] sm:$0xf0] }
 0x6cc   : > { %8857 = vmatmul.bf16.vlgmr.msrb.gmra.mxu0 %v17011_v15  ;;  %v15814_v36 = vld [vmem:[#allocation16 + $0xdac] sm:$0xf0] }
 0x6cd   : > { %8901 = vmatpush.bf16.msra.mxu0 %v13751_v59  ;;  %8881 = vmatpush.bf16.msrb.mxu2 %v13047_v5  ;;  %v13654_v42 = vld [vmem:[#allocation16 + $0x910] sm:$0xf]  ;;  %v14231_v38 = vor.u32 %v15814_v36, %v14230_v35 }
 0x6ce   : > { %8870 = vmatmul.bf16.vlgmr.msrb.gmra.mxu1 %v17013_v17  ;;  %v15670_v43 = vld [vmem:[#allocation16 + $0x92c] sm:$0xf0]  ;;  %8792 = vmatmul.bf16.vlgmr.msrb.gmra.mxu3 %v17023_v30  ;;  %v8652_v40 = vpop.f32.mrf.mxu0 }
 0x6cf   : > { %8914 = vmatpush.bf16.msra.mxu1 %v14007_v13  ;;  %8836 = vmatpush.bf16.msra.mxu3 %v14515_v46  ;;  %v13910_v8 = vld [vmem:[#allocation16 + $0xb10] sm:$0xf]  ;;  %v13655_v2 = vor.u32 %v15670_v43, %v13654_v42  ;;  %v8651_v13 = vadd.f32 %v8650_v0, %v5859_v18  ;;  %v14355_v43 = vor.u32 %v15841_v55, %v14352_v32  ;;  %v14320_v18 = vld [vmem:[#allocation16 + $0xe68] sm:$0xf0] }
 0x6d0   : > { %v15734_v47 = vld [vmem:[#allocation16 + $0xb2c] sm:$0xf0]  ;;  %v8665_v42 = vpop.f32.mrf.mxu1 }
 0x6d1   : > { %8902 = vmatpush.bf16.msra.mxu0 %v13719_v57  ;;  %8882 = vmatpush.bf16.msrb.mxu2 %v13015_v22  ;;  %v14198_v19 = vld [vmem:[#allocation16 + $0xd50] sm:$0xf]  ;;  %v13911_v20 = vor.u32 %v15734_v47, %v13910_v8  ;;  %v8664_v57 = vadd.f32 %v8663_v14, %v8651_v13  ;;  %v8533_v22 = vpop.f32.mrf.mxu3  ;;  %v12920_v42 = vld [vmem:[#allocation16 + $0x370] sm:$0xf0] }
 0x6d2   : > { %v15806_v44 = vld [vmem:[#allocation16 + $0xd6c] sm:$0xf0] }
 0x6d3   : > { %8915 = vmatpush.bf16.msra.mxu1 %v13975_v27  ;;  %8837 = vmatpush.bf16.msra.mxu3 %v14483_v34  ;;  %v13622_v56 = vld [vmem:[#allocation16 + $0x8d0] sm:$0xf]  ;;  %v14199_v1 = vor.u32 %v15806_v44, %v14198_v19  ;;  %v14387_v27 = vor.u32 %v15849_v21, %v14384_v7  ;;  %v14288_v21 = vld [vmem:[#allocation16 + $0xe28] sm:$0xf0] }
 0x6d4   : > { %8883 = vmatmul.bf16.vlgmr.msrb.gmra.mxu2 %v17021_v49  ;;  %v15662_v9 = vld [vmem:[#allocation16 + $0x8ec] sm:$0xf0] }
 0x6d5   : > { %8927 = vmatpush.bf16.msra.mxu2 %v14263_v25  ;;  %8903 = vmatpush.bf16.msra.mxu0 %v13687_v62  ;;  %v13878_v59 = vld [vmem:[#allocation16 + $0xad0] sm:$0xf]  ;;  %v13623_v4 = vor.u32 %v15662_v9, %v13622_v56  ;;  %v17123_v62 = vadd.f32 %v8533_v22, %v17100_v37  ;;  %v15498_v9 = vld [vmem:[#allocation16 + $0x3d4] sm:$0xf] }
 0x6d6   : > { %v15726_v60 = vld [vmem:[#allocation16 + $0xaec] sm:$0xf0]  ;;  %v8676_v53 = vpop.f32.mrf.mxu2  ;;  %v15562_v22 = vld [vmem:[#allocation16 + $0x5d4] sm:$0xf] }
 0x6d7   : > { %8916 = vmatpush.bf16.msra.mxu1 %v13943_v41  ;;  %8838 = vmatpush.bf16.msra.mxu3 %v14451_v51  ;;  %v14166_v5 = vld [vmem:[#allocation16 + $0xd10] sm:$0xf]  ;;  %v13879_v6 = vor.u32 %v15726_v60, %v13878_v59  ;;  %v12984_v59 = vld [vmem:[#allocation16 + $0x3f0] sm:$0xf0]  ;;  %v17125_v60 = vadd.f32 %v8676_v53, %v8664_v57 }
 0x6d8   : > { %v15798_v48 = vld [vmem:[#allocation16 + $0xd2c] sm:$0xf0]  ;;  %v12987_v7 = vor.u32 %v15498_v9, %v12984_v59  ;;  %v15474_v53 = vld [vmem:[#allocation16 + $0x314] sm:$0xf] }
 0x6d9   : > { %8928 = vmatpush.bf16.msra.mxu2 %v14231_v38  ;;  %8904 = vmatpush.bf16.msra.mxu0 %v13655_v2  ;;  %v13590_v61 = vld [vmem:[#allocation16 + $0x890] sm:$0xf]  ;;  %v14167_v10 = vor.u32 %v15798_v48, %v14166_v5  ;;  %v15833_v38 = vld [vmem:[#allocation16 + $0xe4c] sm:$0xf] }
 0x6da   : > { %v15654_v46 = vld [vmem:[#allocation16 + $0x8ac] sm:$0xf0]  ;;  %v14323_v0 = vor.u32 %v15833_v38, %v14320_v18  ;;  %v15825_v48 = vld [vmem:[#allocation16 + $0xe0c] sm:$0xf]  ;;  %v15554_v18 = vld [vmem:[#allocation16 + $0x594] sm:$0xf] }
 0x6db   : > { %8917 = vmatpush.bf16.msra.mxu1 %v13911_v20  ;;  %v13846_v54 = vld [vmem:[#allocation16 + $0xa90] sm:$0xf]  ;;  %8839 = vmatpush.bf16.msra.mxu3 %v14419_v52  ;;  %v13591_v11 = vor.u32 %v15654_v46, %v13590_v61  ;;  %v12728_v20 = vld [vmem:[#allocation16 + $0x1f0] sm:$0xf0]  ;;  %v8535_v52 = vpop.f32.mrf.mxu3 }
 0x6dc   : > { %v15718_v24 = vld [vmem:[#allocation16 + $0xaac] sm:$0xf0]  ;;  %v12731_v5 = vor.u32 %v15434_v58, %v12728_v20  ;;  %v15426_v46 = vld [vmem:[#allocation16 + $0x194] sm:$0xf] }
 0x6dd   : > { %8929 = vmatpush.bf16.msra.mxu2 %v14199_v1  ;;  %8905 = vmatpush.bf16.msra.mxu0 %v13623_v4  ;;  %v14134_v26 = vld [vmem:[#allocation16 + $0xcd0] sm:$0xf]  ;;  %v13847_v23 = vor.u32 %v15718_v24, %v13846_v54  ;;  %v12696_v54 = vld [vmem:[#allocation16 + $0x1b0] sm:$0xf0] }
 0x6de   : > { %v15790_v16 = vld [vmem:[#allocation16 + $0xcec] sm:$0xf0]  ;;  %v15490_v24 = vld [vmem:[#allocation16 + $0x394] sm:$0xf]  ;;  %v12699_v55 = vor.u32 %v15426_v46, %v12696_v54  ;;  %v8678_v40 = vpop.f32.mrf.mxu2 }
 0x6df   : > { %8918 = vmatpush.bf16.msra.mxu1 %v13879_v6  ;;  %v13558_v25 = vld [vmem:[#allocation16 + $0x850] sm:$0xf]  ;;  %v14135_v41 = vor.u32 %v15790_v16, %v14134_v26  ;;  %8840 = vmatpush.bf16.msra.mxu3 %v14387_v27  ;;  %v14291_v27 = vor.u32 %v15825_v48, %v14288_v21  ;;  %v15410_v58 = vld [vmem:[#allocation16 + $0x114] sm:$0xf] }
 0x6e0   : > { %v15646_v34 = vld [vmem:[#allocation16 + $0x86c] sm:$0xf0]  ;;  %v12632_v20 = vld [vmem:[#allocation16 + $0x130] sm:$0xf0] }
 0x6e1   : > { %v13814_v35 = vld [vmem:[#allocation16 + $0xa50] sm:$0xf]  ;;  %8930 = vmatpush.bf16.msra.mxu2 %v14167_v10  ;;  %8906 = vmatpush.bf16.msra.mxu0 %v13591_v11  ;;  %v13559_v8 = vor.u32 %v15646_v34, %v13558_v25  ;;  %v12952_v10 = vld [vmem:[#allocation16 + $0x3b0] sm:$0xf0] }
 0x6e2   : > { %v15710_v36 = vld [vmem:[#allocation16 + $0xa6c] sm:$0xf0]  ;;  %v12955_v25 = vor.u32 %v15490_v24, %v12952_v10  ;;  %v12600_v48 = vld [vmem:[#allocation16 + $0xf0] sm:$0xf0] }
 0x6e3   : > { %v14102_v33 = vld [vmem:[#allocation16 + $0xc90] sm:$0xf]  ;;  %8919 = vmatpush.bf16.msra.mxu1 %v13847_v23  ;;  %v13815_v51 = vor.u32 %v15710_v36, %v13814_v35  ;;  %8841 = vmatpush.bf16.msra.mxu3 %v14355_v43  ;;  %v13240_v23 = vld [vmem:[#allocation16 + $0x5f0] sm:$0xf0] }
 0x6e4   : > { %v15782_v47 = vld [vmem:[#allocation16 + $0xcac] sm:$0xf0]  ;;  %v15418_v35 = vld [vmem:[#allocation16 + $0x154] sm:$0xf]  ;;  %v13243_v43 = vor.u32 %v15562_v22, %v13240_v23 }
 0x6e5   : > { %v13526_v2 = vld [vmem:[#allocation16 + $0x810] sm:$0xf]  ;;  %8931 = vmatpush.bf16.msra.mxu2 %v14135_v41  ;;  %v14103_v56 = vor.u32 %v15782_v47, %v14102_v33  ;;  %8907 = vmatpush.bf16.msra.mxu0 %v13559_v8  ;;  %v12664_v36 = vld [vmem:[#allocation16 + $0x170] sm:$0xf0]  ;;  %v8585_v8 = vpop.f32.mrf.mxu3 }
 0x6e6   : > { %v15638_v19 = vld [vmem:[#allocation16 + $0x82c] sm:$0xf0]  ;;  %v15482_v33 = vld [vmem:[#allocation16 + $0x354] sm:$0xf]  ;;  %v12667_v38 = vor.u32 %v15418_v35, %v12664_v36 }
 0x6e7   : > { %v13782_v37 = vld [vmem:[#allocation16 + $0xa10] sm:$0xf]  ;;  %v13527_v1 = vor.u32 %v15638_v19, %v13526_v2  ;;  %8920 = vmatpush.bf16.msra.mxu1 %v13815_v51  ;;  %8842 = vmatpush.bf16.msra.mxu3 %v14323_v0  ;;  %v13208_v51 = vld [vmem:[#allocation16 + $0x5b0] sm:$0xf0]  ;;  %v8586_v19 = vadd.f32 %v8585_v8, %v17106_v31 }
 0x6e8   : > { %v15702_v44 = vld [vmem:[#allocation16 + $0xa2c] sm:$0xf0]  ;;  %v13211_v59 = vor.u32 %v15554_v18, %v13208_v51  ;;  %v17137_v54 = vpop.f32.mrf.mxu1  ;;  %v12568_v22 = vld [vmem:[#allocation16 + $0xb0] sm:$0xf0] }
 0x6e9   : > { %v14070_v13 = vld [vmem:[#allocation16 + $0xc50] sm:$0xf]  ;;  %v13783_v4 = vor.u32 %v15702_v44, %v13782_v37  ;;  %8932 = vmatpush.bf16.msra.mxu2 %v14103_v56  ;;  %8908 = vmatpush.bf16.msra.mxu0 %v13527_v1  ;;  %v12923_v37 = vor.u32 %v15482_v33, %v12920_v42  ;;  %v12888_v56 = vld [vmem:[#allocation16 + $0x330] sm:$0xf0]  ;;  %v8599_v9 = vadd.f32 %v17109_v50, %v8586_v19 }
 0x6ea   : > { %v15774_v14 = vld [vmem:[#allocation16 + $0xc6c] sm:$0xf0]  ;;  %v12635_v1 = vor.u32 %v15410_v58, %v12632_v20  ;;  %v12891_v52 = vor.u32 %v15474_v53, %v12888_v56  ;;  %v12856_v50 = vld [vmem:[#allocation16 + $0x2f0] sm:$0xf0] }
 0x6eb   : > { %v13494_v6 = vld [vmem:[#allocation16 + $0x7d0] sm:$0xf]  ;;  %v14071_v57 = vor.u32 %v15774_v14, %v14070_v13  ;;  %8921 = vmatpush.bf16.msra.mxu1 %v13783_v4  ;;  %8843 = vmatpush.bf16.msra.mxu3 %v14291_v27  ;;  %v15546_v13 = vld [vmem:[#allocation16 + $0x554] sm:$0xf]  ;;  %v8612_v21 = vadd.f32 %v17111_v63, %v8599_v9 }
 0x6ec   : > { %v15630_v61 = vld [vmem:[#allocation16 + $0x7ec] sm:$0xf0]  ;;  %8909 = vmatmul.bf16.vlgmr.msra.gmra.mxu0 %v17042_v3  ;;  %v13176_v14 = vld [vmem:[#allocation16 + $0x570] sm:$0xf0] }
 0x6ed   : > { %v14038_v11 = vld [vmem:[#allocation16 + $0xc10] sm:$0xf]  ;;  %8953 = vmatpush.bf16.msrb.mxu0 %v12731_v5  ;;  %v13495_v16 = vor.u32 %v15630_v61, %v13494_v6  ;;  %8933 = vmatpush.bf16.msra.mxu2 %v14071_v57  ;;  %v15402_v5 = vld [vmem:[#allocation16 + $0xd4] sm:$0xf]  ;;  %v13179_v61 = vor.u32 %v15546_v13, %v13176_v14  ;;  %v8625_v46 = vadd.f32 %v17113_v29, %v8612_v21  ;;  %v8587_v57 = vpop.f32.mrf.mxu3 }
 0x6ee   : > { %v15766_v26 = vld [vmem:[#allocation16 + $0xc2c] sm:$0xf0]  ;;  %8922 = vmatmul.bf16.vlgmr.msra.gmra.mxu1 %v17044_v45  ;;  %8844 = vmatmul.bf16.vlgmr.msra.gmra.mxu3 %v17073_v12  ;;  %v15466_v6 = vld [vmem:[#allocation16 + $0x2d4] sm:$0xf]  ;;  %v12603_v10 = vor.u32 %v15402_v5, %v12600_v48 }
 0x6ef   : > { %v13462_v32 = vld [vmem:[#allocation16 + $0x790] sm:$0xf]  ;;  %8966 = vmatpush.bf16.msrb.mxu1 %v12987_v7  ;;  %v14039_v41 = vor.u32 %v15766_v26, %v14038_v11  ;;  %8888 = vmatpush.bf16.msrb.mxu3 %v13495_v16  ;;  %v17134_v7 = vpop.f32.mrf.mxu0  ;;  %v15538_v27 = vld [vmem:[#allocation16 + $0x514] sm:$0xf]  ;;  %v12859_v63 = vor.u32 %v15466_v6, %v12856_v50 }
 0x6f0   : > { %v15622_v34 = vld [vmem:[#allocation16 + $0x7ac] sm:$0xf0]  ;;  %v13144_v11 = vld [vmem:[#allocation16 + $0x530] sm:$0xf0] }
 0x6f1   : > { %8954 = vmatpush.bf16.msrb.mxu0 %v12699_v55  ;;  %v13463_v47 = vor.u32 %v15622_v34, %v13462_v32  ;;  %v13430_v2 = vld [vmem:[#allocation16 + $0x750] sm:$0xf]  ;;  %8934 = vmatpush.bf16.msra.mxu2 %v14039_v41  ;;  %v15394_v55 = vld [vmem:[#allocation16 + $0x94] sm:$0xf] }
 0x6f2   : > { %v15614_v44 = vld [vmem:[#allocation16 + $0x76c] sm:$0xf0]  ;;  %v15458_v23 = vld [vmem:[#allocation16 + $0x294] sm:$0xf]  ;;  %v12571_v34 = vor.u32 %v15394_v55, %v12568_v22 }
 0x6f3   : > { %8967 = vmatpush.bf16.msrb.mxu1 %v12955_v25  ;;  %8889 = vmatpush.bf16.msrb.mxu3 %v13463_v47  ;;  %v13431_v0 = vor.u32 %v15614_v44, %v13430_v2  ;;  %v13398_v31 = vld [vmem:[#allocation16 + $0x710] sm:$0xf]  ;;  %v12824_v32 = vld [vmem:[#allocation16 + $0x2b0] sm:$0xf0]  ;;  %v13147_v25 = vor.u32 %v15538_v27, %v13144_v11  ;;  %v8717_v2 = vpop.f32.mrf.mxu1 }
 0x6f4   : > { %8935 = vmatmul.bf16.vlgmr.msra.gmra.mxu2 %v17052_v28  ;;  %v15606_v4 = vld [vmem:[#allocation16 + $0x72c] sm:$0xf0]  ;;  %v15530_v35 = vld [vmem:[#allocation16 + $0x4d4] sm:$0xf]  ;;  %v12827_v41 = vor.u32 %v15458_v23, %v12824_v32 }
 0x6f5   : > { %8979 = vmatpush.bf16.msrb.mxu2 %v13243_v43  ;;  %8955 = vmatpush.bf16.msrb.mxu0 %v12667_v38  ;;  %v13399_v24 = vor.u32 %v15606_v4, %v13398_v31  ;;  %v13366_v26 = vld [vmem:[#allocation16 + $0x6d0] sm:$0xf]  ;;  %v13112_v36 = vld [vmem:[#allocation16 + $0x4f0] sm:$0xf0]  ;;  %v8637_v53 = vpop.f32.mrf.mxu3 }
 0x6f6   : > { %v15598_v16 = vld [vmem:[#allocation16 + $0x6ec] sm:$0xf0]  ;;  %v15386_v42 = vld [vmem:[#allocation16 + $0x54] sm:$0xf]  ;;  %v13115_v18 = vor.u32 %v15530_v35, %v13112_v36 }
 0x6f7   : > { %8968 = vmatpush.bf16.msrb.mxu1 %v12923_v37  ;;  %8890 = vmatpush.bf16.msrb.mxu3 %v13431_v0  ;;  %v13367_v29 = vor.u32 %v15598_v16, %v13366_v26  ;;  %v13334_v40 = vld [vmem:[#allocation16 + $0x690] sm:$0xf]  ;;  %v12536_v43 = vld [vmem:[#allocation16 + $0x70] sm:$0xf0]  ;;  %v8704_v38 = vpop.f32.mrf.mxu0 }
 0x6f8   : > { %v15590_v33 = vld [vmem:[#allocation16 + $0x6ac] sm:$0xf0]  ;;  %v15450_v8 = vld [vmem:[#allocation16 + $0x254] sm:$0xf]  ;;  %v12539_v37 = vor.u32 %v15386_v42, %v12536_v43 }
 0x6f9   : > { %8980 = vmatpush.bf16.msrb.mxu2 %v13211_v59  ;;  %8956 = vmatpush.bf16.msrb.mxu0 %v12635_v1  ;;  %v12792_v47 = vld [vmem:[#allocation16 + $0x270] sm:$0xf0]  ;;  %v13335_v19 = vor.u32 %v15590_v33, %v13334_v40  ;;  %v13302_v58 = vld [vmem:[#allocation16 + $0x650] sm:$0xf]  ;;  %v17139_v1 = vadd.f32 %v8637_v53, %v8625_v46 }
 0x6fa   : > { %v15522_v51 = vld [vmem:[#allocation16 + $0x494] sm:$0xf]  ;;  %v15582_v20 = vld [vmem:[#allocation16 + $0x66c] sm:$0xf0]  ;;  %v12795_v56 = vor.u32 %v15450_v8, %v12792_v47 }
 0x6fb   : > { %8969 = vmatpush.bf16.msrb.mxu1 %v12891_v52  ;;  %8891 = vmatpush.bf16.msrb.mxu3 %v13399_v24  ;;  %v13080_v44 = vld [vmem:[#allocation16 + $0x4b0] sm:$0xf0]  ;;  %v17141_v52 = vpop.f32.mrf.mxu2  ;;  %v13303_v21 = vor.u32 %v15582_v20, %v13302_v58  ;;  %v13270_v46 = vld [vmem:[#allocation16 + $0x610] sm:$0xf] }
 0x6fc   : > { %v15378_v9 = vld [vmem:[#allocation16 + $0x14] sm:$0xf]  ;;  %v13083_v4 = vor.u32 %v15522_v51, %v13080_v44  ;;  %v14518_v27 = vld [vmem:[#allocation16 + $0xfd0] sm:$0xf] }
 0x6fd   : > { %8981 = vmatpush.bf16.msrb.mxu2 %v13179_v61  ;;  %8957 = vmatpush.bf16.msrb.mxu0 %v12603_v10  ;;  %v12504_v59 = vld [vmem:[#allocation16 + $0x30] sm:$0xf0]  ;;  %v15574_v10 = vld [vmem:[#allocation16 + $0x62c] sm:$0xf0] }
 0x6fe   : > { %v15442_v0 = vld [vmem:[#allocation16 + $0x214] sm:$0xf]  ;;  %v12507_v6 = vor.u32 %v15378_v9, %v12504_v59  ;;  %v15886_v26 = vld [vmem:[#allocation16 + $0xfec] sm:$0xf0]  ;;  %v13271_v32 = vor.u32 %v15574_v10, %v13270_v46 }
 0x6ff   : > { %8970 = vmatpush.bf16.msrb.mxu1 %v12859_v63  ;;  %8892 = vmatpush.bf16.msrb.mxu3 %v13367_v29  ;;  %v12760_v13 = vld [vmem:[#allocation16 + $0x230] sm:$0xf0]  ;;  %v14519_v35 = vor.u32 %v15886_v26, %v14518_v27  ;;  %v14486_v33 = vld [vmem:[#allocation16 + $0xf90] sm:$0xf] }
 0x700   : > { %v15690_v14 = vld [vmem:[#allocation16 + $0x9d4] sm:$0xf]  ;;  %v12763_v57 = vor.u32 %v15442_v0, %v12760_v13  ;;  %v15878_v43 = vld [vmem:[#allocation16 + $0xfac] sm:$0xf0] }
 0x701   : > { %8982 = vmatpush.bf16.msrb.mxu2 %v13147_v25  ;;  %8958 = vmatpush.bf16.msrb.mxu0 %v12571_v34  ;;  %v13752_v31 = vld [vmem:[#allocation16 + $0x9f0] sm:$0xf0]  ;;  %v8639_v34 = vpop.f32.mrf.mxu3  ;;  %v14454_v53 = vld [vmem:[#allocation16 + $0xf50] sm:$0xf] }
 0x702   : > { %v15754_v5 = vld [vmem:[#allocation16 + $0xbd4] sm:$0xf]  ;;  %v13755_v24 = vor.u32 %v15690_v14, %v13752_v31  ;;  %v15870_v9 = vld [vmem:[#allocation16 + $0xf6c] sm:$0xf0] }
 0x703   : > { %8971 = vmatpush.bf16.msrb.mxu1 %v12827_v41  ;;  %v14008_v48 = vld [vmem:[#allocation16 + $0xbf0] sm:$0xf0]  ;;  %8893 = vmatpush.bf16.msrb.mxu3 %v13335_v19  ;;  %v8730_v38 = vpop.f32.mrf.mxu2 }
 0x704   : > { %v15514_v50 = vld [vmem:[#allocation16 + $0x454] sm:$0xf]  ;;  %v14011_v11 = vor.u32 %v15754_v5, %v14008_v48  ;;  %v14455_v5 = vor.u32 %v15870_v9, %v14454_v53  ;;  %v14358_v38 = vld [vmem:[#allocation16 + $0xe90] sm:$0xf] }
 0x705   : > { %8983 = vmatpush.bf16.msrb.mxu2 %v13115_v18  ;;  %8959 = vmatpush.bf16.msrb.mxu0 %v12539_v37  ;;  %v13048_v61 = vld [vmem:[#allocation16 + $0x470] sm:$0xf0]  ;;  %v14487_v37 = vor.u32 %v15878_v43, %v14486_v33 }
 0x706   : > { %v15682_v63 = vld [vmem:[#allocation16 + $0x994] sm:$0xf]  ;;  %v13051_v55 = vor.u32 %v15514_v50, %v13048_v61  ;;  %v14422_v50 = vld [vmem:[#allocation16 + $0xf10] sm:$0xf] }
 0x707   : > { %8972 = vmatpush.bf16.msrb.mxu1 %v12795_v56  ;;  %v13720_v16 = vld [vmem:[#allocation16 + $0x9b0] sm:$0xf0]  ;;  %8894 = vmatpush.bf16.msrb.mxu3 %v13303_v21 }
 0x708   : > { %v15746_v22 = vld [vmem:[#allocation16 + $0xb94] sm:$0xf]  ;;  %v13723_v36 = vor.u32 %v15682_v63, %v13720_v16  ;;  %v8767_v63 = vpop.f32.mrf.mxu1 }
 0x709   : > { %8984 = vmatpush.bf16.msrb.mxu2 %v13083_v4  ;;  %v13976_v23 = vld [vmem:[#allocation16 + $0xbb0] sm:$0xf0]  ;;  %8960 = vmatpush.bf16.msrb.mxu0 %v12507_v6  ;;  %v5860_v4 = vperm.slane %v17118_v39, 3 }
 0x70a   : > { %v15506_v25 = vld [vmem:[#allocation16 + $0x414] sm:$0xf]  ;;  %v13979_v42 = vor.u32 %v15746_v22, %v13976_v23 }
 0x70b   : > { %v13016_v29 = vld [vmem:[#allocation16 + $0x430] sm:$0xf0]  ;;  %8973 = vmatpush.bf16.msrb.mxu1 %v12763_v57  ;;  %8895 = vmatpush.bf16.msrb.mxu3 %v13271_v32  ;;  %v15862_v57 = vld [vmem:[#allocation16 + $0xf2c] sm:$0xf0] }
 0x70c   : > { %v15818_v40 = vld [vmem:[#allocation16 + $0xdd4] sm:$0xf]  ;;  %8961 = vmatmul.bf16.vlgmr.msrb.gmra.mxu0 %v17011_v15  ;;  %v13019_v18 = vor.u32 %v15506_v25, %v13016_v29  ;;  %v14423_v16 = vor.u32 %v15862_v57, %v14422_v50  ;;  %v14390_v32 = vld [vmem:[#allocation16 + $0xed0] sm:$0xf]  ;;  %v15439_v57 = vld [vmem:[#allocation16 + $0x1f4] sm:$0xf0] }
 0x70d   : > { %9005 = vmatpush.bf16.msra.mxu0 %v13755_v24  ;;  %v14264_v41 = vld [vmem:[#allocation16 + $0xdf0] sm:$0xf0]  ;;  %8985 = vmatpush.bf16.msrb.mxu2 %v13051_v55  ;;  %v15854_v29 = vld [vmem:[#allocation16 + $0xeec] sm:$0xf0]  ;;  %v8689_v9 = vpop.f32.mrf.mxu3 }
 0x70e   : > { %v15674_v8 = vld [vmem:[#allocation16 + $0x954] sm:$0xf]  ;;  %8974 = vmatmul.bf16.vlgmr.msrb.gmra.mxu1 %v17013_v17  ;;  %v14267_v19 = vor.u32 %v15818_v40, %v14264_v41  ;;  %8896 = vmatmul.bf16.vlgmr.msrb.gmra.mxu3 %v17023_v30 }
 0x70f   : > { %9018 = vmatpush.bf16.msra.mxu1 %v14011_v11  ;;  %v13688_v47 = vld [vmem:[#allocation16 + $0x970] sm:$0xf0]  ;;  %8940 = vmatpush.bf16.msra.mxu3 %v14519_v35  ;;  %v8754_v11 = vpop.f32.mrf.mxu0 }
 0x710   : > { %v15738_v51 = vld [vmem:[#allocation16 + $0xb54] sm:$0xf]  ;;  %v13691_v44 = vor.u32 %v15674_v8, %v13688_v47  ;;  %v8755_v39 = vadd.f32 %v8754_v11, %v5860_v4  ;;  %v8690_v4 = vadd.f32 %v8689_v9, %v17125_v60 }
 0x711   : > { %v13944_v2 = vld [vmem:[#allocation16 + $0xb70] sm:$0xf0]  ;;  %9006 = vmatpush.bf16.msra.mxu0 %v13723_v36  ;;  %8986 = vmatpush.bf16.msrb.mxu2 %v13019_v18 }
 0x712   : > { %v15810_v58 = vld [vmem:[#allocation16 + $0xd94] sm:$0xf]  ;;  %v13947_v56 = vor.u32 %v15738_v51, %v13944_v2  ;;  %v8768_v36 = vadd.f32 %v8767_v63, %v8755_v39  ;;  %v15846_v51 = vld [vmem:[#allocation16 + $0xeac] sm:$0xf0] }
 0x713   : > { %v14232_v20 = vld [vmem:[#allocation16 + $0xdb0] sm:$0xf0]  ;;  %9019 = vmatpush.bf16.msra.mxu1 %v13979_v42  ;;  %8941 = vmatpush.bf16.msra.mxu3 %v14487_v37  ;;  %v14391_v42 = vor.u32 %v15854_v29, %v14390_v32  ;;  %v15830_v32 = vld [vmem:[#allocation16 + $0xe2c] sm:$0xf0] }
 0x714   : > { %v15666_v59 = vld [vmem:[#allocation16 + $0x914] sm:$0xf]  ;;  %v14235_v31 = vor.u32 %v15810_v58, %v14232_v20  ;;  %8987 = vmatmul.bf16.vlgmr.msrb.gmra.mxu2 %v17021_v49 }
 0x715   : > { %v13656_v0 = vld [vmem:[#allocation16 + $0x930] sm:$0xf0]  ;;  %9031 = vmatpush.bf16.msra.mxu2 %v14267_v19  ;;  %9007 = vmatpush.bf16.msra.mxu0 %v13691_v44 }
 0x716   : > { %v15730_v13 = vld [vmem:[#allocation16 + $0xb14] sm:$0xf]  ;;  %v13659_v48 = vor.u32 %v15666_v59, %v13656_v0  ;;  %v14359_v59 = vor.u32 %v15846_v51, %v14358_v38  ;;  %v8780_v11 = vpop.f32.mrf.mxu2  ;;  %v13246_v51 = vld [vmem:[#allocation16 + $0x5d8] sm:$0xf] }
 0x717   : > { %v13912_v14 = vld [vmem:[#allocation16 + $0xb30] sm:$0xf0]  ;;  %9020 = vmatpush.bf16.msra.mxu1 %v13947_v56  ;;  %8942 = vmatpush.bf16.msra.mxu3 %v14455_v5  ;;  %v8756_v58 = vpop.f32.mrf.mxu0  ;;  %v8769_v56 = vpop.f32.mrf.mxu1 }
 0x718   : > { %v15802_v21 = vld [vmem:[#allocation16 + $0xd54] sm:$0xf]  ;;  %v13915_v61 = vor.u32 %v15730_v13, %v13912_v14  ;;  %v14326_v14 = vld [vmem:[#allocation16 + $0xe50] sm:$0xf]  ;;  %v12670_v58 = vld [vmem:[#allocation16 + $0x158] sm:$0xf] }
 0x719   : > { %v14200_v6 = vld [vmem:[#allocation16 + $0xd70] sm:$0xf0]  ;;  %9032 = vmatpush.bf16.msra.mxu2 %v14235_v31  ;;  %9008 = vmatpush.bf16.msra.mxu0 %v13659_v48  ;;  %v15838_v31 = vld [vmem:[#allocation16 + $0xe6c] sm:$0xf0]  ;;  %v15487_v56 = vld [vmem:[#allocation16 + $0x374] sm:$0xf0] }
 0x71a   : > { %v15658_v24 = vld [vmem:[#allocation16 + $0x8d4] sm:$0xf]  ;;  %v14203_v26 = vor.u32 %v15802_v21, %v14200_v6 }
 0x71b   : > { %v13624_v46 = vld [vmem:[#allocation16 + $0x8f0] sm:$0xf0]  ;;  %9021 = vmatpush.bf16.msra.mxu1 %v13915_v61  ;;  %8943 = vmatpush.bf16.msra.mxu3 %v14423_v16  ;;  %v12734_v61 = vld [vmem:[#allocation16 + $0x1d8] sm:$0xf]  ;;  %v17150_v16 = vadd.f32 %v8780_v11, %v8768_v36  ;;  %v8691_v36 = vpop.f32.mrf.mxu3 }
 0x71c   : > { %v15722_v10 = vld [vmem:[#allocation16 + $0xad4] sm:$0xf]  ;;  %v13627_v55 = vor.u32 %v15658_v24, %v13624_v46  ;;  %v8703_v24 = vadd.f32 %v17134_v7, %v8690_v4  ;;  %v15399_v36 = vld [vmem:[#allocation16 + $0xb4] sm:$0xf0] }
 0x71d   : > { %v13880_v27 = vld [vmem:[#allocation16 + $0xaf0] sm:$0xf0]  ;;  %9033 = vmatpush.bf16.msra.mxu2 %v14203_v26  ;;  %v14327_v26 = vor.u32 %v15838_v31, %v14326_v14  ;;  %v13214_v14 = vld [vmem:[#allocation16 + $0x598] sm:$0xf] }
 0x71e   : > { %v15794_v22 = vld [vmem:[#allocation16 + $0xd14] sm:$0xf]  ;;  %v13883_v25 = vor.u32 %v15722_v10, %v13880_v27  ;;  %9009 = vmatpush.bf16.msra.mxu0 %v13627_v55  ;;  %v12990_v10 = vld [vmem:[#allocation16 + $0x3d8] sm:$0xf]  ;;  %v8716_v7 = vadd.f32 %v17137_v54, %v8703_v24  ;;  %v8782_v9 = vpop.f32.mrf.mxu2 }
 0x71f   : > { %v14168_v23 = vld [vmem:[#allocation16 + $0xd30] sm:$0xf0]  ;;  %8944 = vmatpush.bf16.msra.mxu3 %v14391_v42  ;;  %v15503_v27 = vld [vmem:[#allocation16 + $0x3f4] sm:$0xf0] }
 0x720   : > { %v15650_v34 = vld [vmem:[#allocation16 + $0x894] sm:$0xf]  ;;  %v14171_v33 = vor.u32 %v15794_v22, %v14168_v23  ;;  %9022 = vmatpush.bf16.msra.mxu1 %v13883_v25  ;;  %v12735_v22 = vor.u32 %v15439_v57, %v12734_v61  ;;  %v14294_v23 = vld [vmem:[#allocation16 + $0xe10] sm:$0xf]  ;;  %v12991_v29 = vor.u32 %v15503_v27, %v12990_v10  ;;  %v15495_v42 = vld [vmem:[#allocation16 + $0x3b4] sm:$0xf0] }
 0x721   : > { %v13592_v35 = vld [vmem:[#allocation16 + $0x8b0] sm:$0xf0]  ;;  %v15559_v31 = vld [vmem:[#allocation16 + $0x5b4] sm:$0xf0] }
 0x722   : > { %v15714_v40 = vld [vmem:[#allocation16 + $0xa94] sm:$0xf]  ;;  %v13595_v43 = vor.u32 %v15650_v34, %v13592_v35  ;;  %9034 = vmatpush.bf16.msra.mxu2 %v14171_v33  ;;  %v12702_v35 = vld [vmem:[#allocation16 + $0x198] sm:$0xf]  ;;  %v13215_v57 = vor.u32 %v15559_v31, %v13214_v14 }
 0x723   : > { %v13848_v41 = vld [vmem:[#allocation16 + $0xab0] sm:$0xf0]  ;;  %8945 = vmatpush.bf16.msra.mxu3 %v14359_v59  ;;  %v12958_v33 = vld [vmem:[#allocation16 + $0x398] sm:$0xf] }
 0x724   : > { %v15786_v8 = vld [vmem:[#allocation16 + $0xcd4] sm:$0xf]  ;;  %v13851_v18 = vor.u32 %v15714_v40, %v13848_v41  ;;  %9010 = vmatpush.bf16.msra.mxu0 %v13595_v43  ;;  %v15431_v40 = vld [vmem:[#allocation16 + $0x1b4] sm:$0xf0]  ;;  %v17154_v43 = vadd.f32 %v17141_v52, %v8716_v7 }
 0x725   : > { %v14136_v47 = vld [vmem:[#allocation16 + $0xcf0] sm:$0xf0]  ;;  %v15479_v61 = vld [vmem:[#allocation16 + $0x334] sm:$0xf0] }
 0x726   : > { %v15642_v2 = vld [vmem:[#allocation16 + $0x854] sm:$0xf]  ;;  %v14139_v20 = vor.u32 %v15786_v8, %v14136_v47  ;;  %9023 = vmatpush.bf16.msra.mxu1 %v13851_v18  ;;  %v14295_v8 = vor.u32 %v15830_v32, %v14294_v23  ;;  %v12703_v18 = vor.u32 %v15431_v40, %v12702_v35  ;;  %v13182_v10 = vld [vmem:[#allocation16 + $0x558] sm:$0xf] }
 0x727   : > { %v13560_v19 = vld [vmem:[#allocation16 + $0x870] sm:$0xf0]  ;;  %8946 = vmatpush.bf16.msra.mxu3 %v14327_v26  ;;  %v15551_v27 = vld [vmem:[#allocation16 + $0x574] sm:$0xf0] }
 0x728   : > { %v15706_v37 = vld [vmem:[#allocation16 + $0xa54] sm:$0xf]  ;;  %v13563_v0 = vor.u32 %v15642_v2, %v13560_v19  ;;  %9035 = vmatpush.bf16.msra.mxu2 %v14139_v20  ;;  %v15567_v2 = vld [vmem:[#allocation16 + $0x5f4] sm:$0xf0]  ;;  %v13183_v23 = vor.u32 %v15551_v27, %v13182_v10 }
 0x729   : > { %v13816_v44 = vld [vmem:[#allocation16 + $0xa70] sm:$0xf0]  ;;  %v15423_v20 = vld [vmem:[#allocation16 + $0x174] sm:$0xf0]  ;;  %v13247_v59 = vor.u32 %v15567_v2, %v13246_v51  ;;  %v17160_v32 = vpop.f32.mrf.mxu0 }
 0x72a   : > { %v15778_v53 = vld [vmem:[#allocation16 + $0xc94] sm:$0xf]  ;;  %v13819_v5 = vor.u32 %v15706_v37, %v13816_v44  ;;  %9011 = vmatpush.bf16.msra.mxu0 %v13563_v0  ;;  %v12959_v37 = vor.u32 %v15495_v42, %v12958_v33  ;;  %v15543_v35 = vld [vmem:[#allocation16 + $0x534] sm:$0xf0] }
 0x72b   : > { %v14104_v13 = vld [vmem:[#allocation16 + $0xcb0] sm:$0xf0]  ;;  %8947 = vmatpush.bf16.msra.mxu3 %v14295_v8  ;;  %v12574_v42 = vld [vmem:[#allocation16 + $0x98] sm:$0xf] }
 0x72c   : > { %v15634_v48 = vld [vmem:[#allocation16 + $0x814] sm:$0xf]  ;;  %v14107_v46 = vor.u32 %v15778_v53, %v14104_v13  ;;  %9024 = vmatpush.bf16.msra.mxu1 %v13819_v5  ;;  %v12926_v53 = vld [vmem:[#allocation16 + $0x358] sm:$0xf]  ;;  %v12671_v13 = vor.u32 %v15423_v20, %v12670_v58 }
 0x72d   : > { %v13528_v21 = vld [vmem:[#allocation16 + $0x830] sm:$0xf0]  ;;  %v12927_v5 = vor.u32 %v15487_v56, %v12926_v53  ;;  %v12830_v8 = vld [vmem:[#allocation16 + $0x298] sm:$0xf] }
 0x72e   : > { %v15698_v6 = vld [vmem:[#allocation16 + $0xa14] sm:$0xf]  ;;  %v13531_v39 = vor.u32 %v15634_v48, %v13528_v21  ;;  %9036 = vmatpush.bf16.msra.mxu2 %v14107_v46  ;;  %v12638_v21 = vld [vmem:[#allocation16 + $0x118] sm:$0xf]  ;;  %8948 = vmatmul.bf16.vlgmr.msra.gmra.mxu3 %v17073_v12 }
 0x72f   : > { %v13784_v50 = vld [vmem:[#allocation16 + $0xa30] sm:$0xf0]  ;;  %v13118_v51 = vld [vmem:[#allocation16 + $0x4d8] sm:$0xf] }
 0x730   : > { %v15770_v60 = vld [vmem:[#allocation16 + $0xc54] sm:$0xf]  ;;  %v13787_v55 = vor.u32 %v15698_v6, %v13784_v50  ;;  %9012 = vmatpush.bf16.msra.mxu0 %v13531_v39  ;;  %v15415_v6 = vld [vmem:[#allocation16 + $0x134] sm:$0xf0] }
 0x731   : > { %v14072_v63 = vld [vmem:[#allocation16 + $0xc70] sm:$0xf0]  ;;  %v12894_v50 = vld [vmem:[#allocation16 + $0x318] sm:$0xf]  ;;  %v12639_v46 = vor.u32 %v15415_v6, %v12638_v21 }
 0x732   : > { %v15626_v25 = vld [vmem:[#allocation16 + $0x7d4] sm:$0xf]  ;;  %v14075_v41 = vor.u32 %v15770_v60, %v14072_v63  ;;  %9025 = vmatpush.bf16.msra.mxu1 %v13787_v55  ;;  %v12895_v26 = vor.u32 %v15479_v61, %v12894_v50  ;;  %v12606_v60 = vld [vmem:[#allocation16 + $0xd8] sm:$0xf] }
 0x733   : > { %v13496_v34 = vld [vmem:[#allocation16 + $0x7f0] sm:$0xf0]  ;;  %9013 = vmatmul.bf16.vlgmr.msra.gmra.mxu0 %v17042_v3  ;;  %v15407_v63 = vld [vmem:[#allocation16 + $0xf4] sm:$0xf0] }
 0x734   : > { %v15762_v47 = vld [vmem:[#allocation16 + $0xc14] sm:$0xf]  ;;  %9057 = vmatpush.bf16.msrb.mxu0 %v12735_v22  ;;  %v13499_v54 = vor.u32 %v15626_v25, %v13496_v34  ;;  %9037 = vmatpush.bf16.msra.mxu2 %v14075_v41  ;;  %v12862_v55 = vld [vmem:[#allocation16 + $0x2d8] sm:$0xf]  ;;  %v17162_v25 = vpop.f32.mrf.mxu1 }
 0x735   : > { %v14040_v38 = vld [vmem:[#allocation16 + $0xc30] sm:$0xf0]  ;;  %9026 = vmatmul.bf16.vlgmr.msra.gmra.mxu1 %v17044_v45  ;;  %v15471_v22 = vld [vmem:[#allocation16 + $0x2f4] sm:$0xf0] }
 0x736   : > { %v15618_v19 = vld [vmem:[#allocation16 + $0x794] sm:$0xf]  ;;  %9070 = vmatpush.bf16.msrb.mxu1 %v12991_v29  ;;  %v14043_v52 = vor.u32 %v15762_v47, %v14040_v38  ;;  %8992 = vmatpush.bf16.msrb.mxu3 %v13499_v54  ;;  %v12607_v29 = vor.u32 %v15407_v63, %v12606_v60  ;;  %v13150_v34 = vld [vmem:[#allocation16 + $0x518] sm:$0xf]  ;;  %v12863_v41 = vor.u32 %v15471_v22, %v12862_v55 }
 0x737   : > { %v13464_v44 = vld [vmem:[#allocation16 + $0x7b0] sm:$0xf0]  ;;  %v15463_v47 = vld [vmem:[#allocation16 + $0x2b4] sm:$0xf0]  ;;  %v13151_v38 = vor.u32 %v15543_v35, %v13150_v34 }
 0x738   : > { %9058 = vmatpush.bf16.msrb.mxu0 %v12703_v18  ;;  %v13467_v0 = vor.u32 %v15618_v19, %v13464_v44  ;;  %v15610_v4 = vld [vmem:[#allocation16 + $0x754] sm:$0xf]  ;;  %9038 = vmatpush.bf16.msra.mxu2 %v14043_v52  ;;  %v12575_v18 = vor.u32 %v15399_v36, %v12574_v42  ;;  %v15535_v2 = vld [vmem:[#allocation16 + $0x4f4] sm:$0xf0] }
 0x739   : > { %v13432_v48 = vld [vmem:[#allocation16 + $0x770] sm:$0xf0]  ;;  %v12542_v58 = vld [vmem:[#allocation16 + $0x58] sm:$0xf]  ;;  %v13119_v56 = vor.u32 %v15535_v2, %v13118_v51 }
 0x73a   : > { %9071 = vmatpush.bf16.msrb.mxu1 %v12959_v37  ;;  %8993 = vmatpush.bf16.msrb.mxu3 %v13467_v0  ;;  %v13435_v24 = vor.u32 %v15610_v4, %v13432_v48  ;;  %v15602_v11 = vld [vmem:[#allocation16 + $0x714] sm:$0xf]  ;;  %v12831_v37 = vor.u32 %v15463_v47, %v12830_v8  ;;  %v15391_v20 = vld [vmem:[#allocation16 + $0x74] sm:$0xf0]  ;;  %v8741_v48 = vpop.f32.mrf.mxu3 }
 0x73b   : > { %9039 = vmatmul.bf16.vlgmr.msra.gmra.mxu2 %v17052_v28  ;;  %v13400_v39 = vld [vmem:[#allocation16 + $0x730] sm:$0xf0]  ;;  %v12798_v52 = vld [vmem:[#allocation16 + $0x258] sm:$0xf]  ;;  %v12543_v14 = vor.u32 %v15391_v20, %v12542_v58 }
 0x73c   : > { %9083 = vmatpush.bf16.msrb.mxu2 %v13247_v59  ;;  %9059 = vmatpush.bf16.msrb.mxu0 %v12671_v13  ;;  %v13403_v7 = vor.u32 %v15602_v11, %v13400_v39  ;;  %v15594_v40 = vld [vmem:[#allocation16 + $0x6d4] sm:$0xf]  ;;  %v15455_v53 = vld [vmem:[#allocation16 + $0x274] sm:$0xf0]  ;;  %v8808_v59 = vpop.f32.mrf.mxu0  ;;  %v8821_v0 = vpop.f32.mrf.mxu1 }
 0x73d   : > { %v13368_v33 = vld [vmem:[#allocation16 + $0x6f0] sm:$0xf0]  ;;  %v13086_v9 = vld [vmem:[#allocation16 + $0x498] sm:$0xf]  ;;  %v12799_v21 = vor.u32 %v15455_v53, %v12798_v52  ;;  %v17167_v39 = vpop.f32.mrf.mxu2 }
 0x73e   : > { %9072 = vmatpush.bf16.msrb.mxu1 %v12927_v5  ;;  %8994 = vmatpush.bf16.msrb.mxu3 %v13435_v24  ;;  %v13371_v54 = vor.u32 %v15594_v40, %v13368_v33  ;;  %v15586_v19 = vld [vmem:[#allocation16 + $0x694] sm:$0xf]  ;;  %v15527_v31 = vld [vmem:[#allocation16 + $0x4b4] sm:$0xf0] }
 0x73f   : > { %v13336_v44 = vld [vmem:[#allocation16 + $0x6b0] sm:$0xf0]  ;;  %v12510_v6 = vld [vmem:[#allocation16 + $0x18] sm:$0xf]  ;;  %v13087_v27 = vor.u32 %v15527_v31, %v13086_v9 }
 0x740   : > { %9084 = vmatpush.bf16.msrb.mxu2 %v13215_v57  ;;  %9060 = vmatpush.bf16.msrb.mxu0 %v12639_v46  ;;  %v13339_v13 = vor.u32 %v15586_v19, %v13336_v44  ;;  %v15578_v4 = vld [vmem:[#allocation16 + $0x654] sm:$0xf]  ;;  %v15383_v50 = vld [vmem:[#allocation16 + $0x34] sm:$0xf0]  ;;  %v17165_v57 = vadd.f32 %v8741_v48, %v17154_v43 }
 0x741   : > { %v13304_v5 = vld [vmem:[#allocation16 + $0x670] sm:$0xf0]  ;;  %v12766_v61 = vld [vmem:[#allocation16 + $0x218] sm:$0xf]  ;;  %v12511_v63 = vor.u32 %v15383_v50, %v12510_v6 }
 0x742   : > { %9073 = vmatpush.bf16.msrb.mxu1 %v12895_v26  ;;  %8995 = vmatpush.bf16.msrb.mxu3 %v13403_v7  ;;  %v15447_v24 = vld [vmem:[#allocation16 + $0x234] sm:$0xf0]  ;;  %v13307_v60 = vor.u32 %v15578_v4, %v13304_v5  ;;  %v15570_v43 = vld [vmem:[#allocation16 + $0x614] sm:$0xf] }
 0x743   : > { %v13758_v46 = vld [vmem:[#allocation16 + $0x9d8] sm:$0xf]  ;;  %v15882_v34 = vld [vmem:[#allocation16 + $0xfd4] sm:$0xf] }
 0x744   : > { %9085 = vmatpush.bf16.msrb.mxu2 %v13183_v23  ;;  %9061 = vmatpush.bf16.msrb.mxu0 %v12607_v29  ;;  %v15695_v10 = vld [vmem:[#allocation16 + $0x9f4] sm:$0xf0]  ;;  %v12767_v23 = vor.u32 %v15447_v24, %v12766_v61  ;;  %v13272_v29 = vld [vmem:[#allocation16 + $0x630] sm:$0xf0] }
 0x745   : > { %v14014_v11 = vld [vmem:[#allocation16 + $0xbd8] sm:$0xf]  ;;  %v13759_v7 = vor.u32 %v15695_v10, %v13758_v46  ;;  %v14520_v40 = vld [vmem:[#allocation16 + $0xff0] sm:$0xf0]  ;;  %v13275_v47 = vor.u32 %v15570_v43, %v13272_v29  ;;  %v8834_v0 = vpop.f32.mrf.mxu2 }
 0x746   : > { %9074 = vmatpush.bf16.msrb.mxu1 %v12863_v41  ;;  %8996 = vmatpush.bf16.msrb.mxu3 %v13371_v54  ;;  %v15759_v26 = vld [vmem:[#allocation16 + $0xbf4] sm:$0xf0]  ;;  %v14523_v51 = vor.u32 %v15882_v34, %v14520_v40  ;;  %v15874_v44 = vld [vmem:[#allocation16 + $0xf94] sm:$0xf] }
 0x747   : > { %v13054_v55 = vld [vmem:[#allocation16 + $0x458] sm:$0xf]  ;;  %v14015_v35 = vor.u32 %v15759_v26, %v14014_v11  ;;  %v14488_v20 = vld [vmem:[#allocation16 + $0xfb0] sm:$0xf0] }
 0x748   : > { %9086 = vmatpush.bf16.msrb.mxu2 %v13151_v38  ;;  %9062 = vmatpush.bf16.msrb.mxu0 %v12575_v18  ;;  %v15519_v22 = vld [vmem:[#allocation16 + $0x474] sm:$0xf0]  ;;  %v8743_v18 = vpop.f32.mrf.mxu3  ;;  %v15866_v48 = vld [vmem:[#allocation16 + $0xf54] sm:$0xf] }
 0x749   : > { %v13726_v41 = vld [vmem:[#allocation16 + $0x998] sm:$0xf]  ;;  %v13055_v42 = vor.u32 %v15519_v22, %v13054_v55  ;;  %v14456_v6 = vld [vmem:[#allocation16 + $0xf70] sm:$0xf0]  ;;  %v8858_v40 = vpop.f32.mrf.mxu0 }
 0x74a   : > { %9075 = vmatpush.bf16.msrb.mxu1 %v12831_v37  ;;  %8997 = vmatpush.bf16.msrb.mxu3 %v13339_v13  ;;  %v15687_v33 = vld [vmem:[#allocation16 + $0x9b4] sm:$0xf0]  ;;  %v14459_v26 = vor.u32 %v15866_v48, %v14456_v6  ;;  %v15858_v22 = vld [vmem:[#allocation16 + $0xf14] sm:$0xf] }
 0x74b   : > { %v13982_v36 = vld [vmem:[#allocation16 + $0xb98] sm:$0xf]  ;;  %v13727_v2 = vor.u32 %v15687_v33, %v13726_v41 }
 0x74c   : > { %9087 = vmatpush.bf16.msrb.mxu2 %v13119_v56  ;;  %9063 = vmatpush.bf16.msrb.mxu0 %v12543_v14  ;;  %v15751_v8 = vld [vmem:[#allocation16 + $0xbb4] sm:$0xf0]  ;;  %v14491_v14 = vor.u32 %v15874_v44, %v14488_v20 }
 0x74d   : > { %v13022_v38 = vld [vmem:[#allocation16 + $0x418] sm:$0xf]  ;;  %v13983_v58 = vor.u32 %v15751_v8, %v13982_v36 }
 0x74e   : > { %9076 = vmatpush.bf16.msrb.mxu1 %v12799_v21  ;;  %8998 = vmatpush.bf16.msrb.mxu3 %v13307_v60  ;;  %v15511_v54 = vld [vmem:[#allocation16 + $0x434] sm:$0xf0] }
 0x74f   : > { %v14270_v19 = vld [vmem:[#allocation16 + $0xdd8] sm:$0xf]  ;;  %v13023_v56 = vor.u32 %v15511_v54, %v13022_v38  ;;  %v15850_v54 = vld [vmem:[#allocation16 + $0xed4] sm:$0xf] }
 0x750   : > { %9088 = vmatpush.bf16.msrb.mxu2 %v13087_v27  ;;  %9064 = vmatpush.bf16.msrb.mxu0 %v12511_v63  ;;  %v15823_v37 = vld [vmem:[#allocation16 + $0xdf4] sm:$0xf0]  ;;  %v17172_v27 = vld [vmem:[#allocation17] sm:$0xff] }
 0x751   : > { %v13694_v52 = vld [vmem:[#allocation16 + $0x958] sm:$0xf]  ;;  %v14271_v13 = vor.u32 %v15823_v37, %v14270_v19  ;;  %v5861_v11 = vperm.slane %v17172_v27, 4  ;;  %v8860_v48 = vpop.f32.mrf.mxu0 }
 0x752   : > { %9077 = vmatpush.bf16.msrb.mxu1 %v12767_v23  ;;  %v15679_v53 = vld [vmem:[#allocation16 + $0x974] sm:$0xf0]  ;;  %8999 = vmatpush.bf16.msrb.mxu3 %v13275_v47 }
 0x753   : > { %9065 = vmatmul.bf16.vlgmr.msrb.gmra.mxu0 %v17011_v15  ;;  %v13950_v9 = vld [vmem:[#allocation16 + $0xb58] sm:$0xf]  ;;  %v13695_v31 = vor.u32 %v15679_v53, %v13694_v52  ;;  %v8859_v33 = vadd.f32 %v8858_v40, %v5861_v11  ;;  %v14328_v11 = vld [vmem:[#allocation16 + $0xe70] sm:$0xf0]  ;;  %v12992_v40 = vld [vmem:[#allocation16 + $0x3f8] sm:$0xf0] }
 0x754   : > { %9109 = vmatpush.bf16.msra.mxu0 %v13759_v7  ;;  %9089 = vmatpush.bf16.msrb.mxu2 %v13055_v42  ;;  %v15743_v59 = vld [vmem:[#allocation16 + $0xb74] sm:$0xf0]  ;;  %v14424_v7 = vld [vmem:[#allocation16 + $0xf30] sm:$0xf0]  ;;  %v8871_v42 = vpop.f32.mrf.mxu1 }
 0x755   : > { %9078 = vmatmul.bf16.vlgmr.msrb.gmra.mxu1 %v17013_v17  ;;  %v14238_v4 = vld [vmem:[#allocation16 + $0xd98] sm:$0xf]  ;;  %v13951_v21 = vor.u32 %v15743_v59, %v13950_v9  ;;  %9000 = vmatmul.bf16.vlgmr.msrb.gmra.mxu3 %v17023_v30  ;;  %v14427_v36 = vor.u32 %v15858_v22, %v14424_v7  ;;  %v8872_v37 = vadd.f32 %v8871_v42, %v8859_v33  ;;  %v15842_v59 = vld [vmem:[#allocation16 + $0xe94] sm:$0xf] }
 0x756   : > { %9122 = vmatpush.bf16.msra.mxu1 %v14015_v35  ;;  %9044 = vmatpush.bf16.msra.mxu3 %v14523_v51  ;;  %v15815_v5 = vld [vmem:[#allocation16 + $0xdb4] sm:$0xf0]  ;;  %v14392_v51 = vld [vmem:[#allocation16 + $0xef0] sm:$0xf0] }
 0x757   : > { %v13662_v50 = vld [vmem:[#allocation16 + $0x918] sm:$0xf]  ;;  %v14239_v10 = vor.u32 %v15815_v5, %v14238_v4  ;;  %v14395_v52 = vor.u32 %v15850_v54, %v14392_v51  ;;  %v8884_v33 = vpop.f32.mrf.mxu2  ;;  %v14296_v51 = vld [vmem:[#allocation16 + $0xe30] sm:$0xf0] }
 0x758   : > { %9110 = vmatpush.bf16.msra.mxu0 %v13727_v2  ;;  %v15671_v61 = vld [vmem:[#allocation16 + $0x934] sm:$0xf0]  ;;  %9090 = vmatpush.bf16.msrb.mxu2 %v13023_v56 }
 0x759   : > { %v13918_v24 = vld [vmem:[#allocation16 + $0xb18] sm:$0xf]  ;;  %v13663_v60 = vor.u32 %v15671_v61, %v13662_v50 }
 0x75a   : > { %9123 = vmatpush.bf16.msra.mxu1 %v13983_v58  ;;  %v15735_v46 = vld [vmem:[#allocation16 + $0xb34] sm:$0xf0]  ;;  %9045 = vmatpush.bf16.msra.mxu3 %v14491_v14 }
 0x75b   : > { %v14206_v63 = vld [vmem:[#allocation16 + $0xd58] sm:$0xf]  ;;  %9091 = vmatmul.bf16.vlgmr.msrb.gmra.mxu2 %v17021_v49  ;;  %v13919_v23 = vor.u32 %v15735_v46, %v13918_v24 }
 0x75c   : > { %9135 = vmatpush.bf16.msra.mxu2 %v14271_v13  ;;  %9111 = vmatpush.bf16.msra.mxu0 %v13695_v31  ;;  %v15807_v55 = vld [vmem:[#allocation16 + $0xd74] sm:$0xf0]  ;;  %v14360_v13 = vld [vmem:[#allocation16 + $0xeb0] sm:$0xf0]  ;;  %v8873_v50 = vpop.f32.mrf.mxu1 }
 0x75d   : > { %v13630_v43 = vld [vmem:[#allocation16 + $0x8d8] sm:$0xf]  ;;  %v14207_v41 = vor.u32 %v15807_v55, %v14206_v63  ;;  %v14363_v61 = vor.u32 %v15842_v59, %v14360_v13  ;;  %v12672_v50 = vld [vmem:[#allocation16 + $0x178] sm:$0xf0] }
 0x75e   : > { %9124 = vmatpush.bf16.msra.mxu1 %v13951_v21  ;;  %v15663_v29 = vld [vmem:[#allocation16 + $0x8f4] sm:$0xf0]  ;;  %9046 = vmatpush.bf16.msra.mxu3 %v14459_v26  ;;  %v8793_v26 = vpop.f32.mrf.mxu3 }
 0x75f   : > { %v13886_v34 = vld [vmem:[#allocation16 + $0xad8] sm:$0xf]  ;;  %v13631_v8 = vor.u32 %v15663_v29, %v13630_v43  ;;  %v15435_v43 = vld [vmem:[#allocation16 + $0x1dc] sm:$0xf] }
 0x760   : > { %v15727_v35 = vld [vmem:[#allocation16 + $0xaf4] sm:$0xf0]  ;;  %9136 = vmatpush.bf16.msra.mxu2 %v14239_v10  ;;  %9112 = vmatpush.bf16.msra.mxu0 %v13663_v60  ;;  %v15834_v10 = vld [vmem:[#allocation16 + $0xe54] sm:$0xf]  ;;  %v12736_v29 = vld [vmem:[#allocation16 + $0x1f8] sm:$0xf0] }
 0x761   : > { %v14174_v47 = vld [vmem:[#allocation16 + $0xd18] sm:$0xf]  ;;  %v13887_v18 = vor.u32 %v15727_v35, %v13886_v34  ;;  %v15499_v35 = vld [vmem:[#allocation16 + $0x3dc] sm:$0xf]  ;;  %v14331_v42 = vor.u32 %v15834_v10, %v14328_v11  ;;  %v12739_v54 = vor.u32 %v15435_v43, %v12736_v29 }
 0x762   : > { %v15799_v38 = vld [vmem:[#allocation16 + $0xd34] sm:$0xf0]  ;;  %9125 = vmatpush.bf16.msra.mxu1 %v13919_v23  ;;  %9047 = vmatpush.bf16.msra.mxu3 %v14427_v36  ;;  %v8794_v23 = vadd.f32 %v8793_v26, %v17150_v16  ;;  %v12640_v43 = vld [vmem:[#allocation16 + $0x138] sm:$0xf0] }
 0x763   : > { %v13598_v2 = vld [vmem:[#allocation16 + $0x898] sm:$0xf]  ;;  %v14175_v20 = vor.u32 %v15799_v38, %v14174_v47  ;;  %v17178_v38 = vadd.f32 %v8884_v33, %v8872_v37  ;;  %v15475_v29 = vld [vmem:[#allocation16 + $0x31c] sm:$0xf] }
 0x764   : > { %v15655_v19 = vld [vmem:[#allocation16 + $0x8b4] sm:$0xf0]  ;;  %9137 = vmatpush.bf16.msra.mxu2 %v14207_v41  ;;  %9113 = vmatpush.bf16.msra.mxu0 %v13631_v8  ;;  %v8807_v41 = vadd.f32 %v17160_v32, %v8794_v23  ;;  %v15547_v33 = vld [vmem:[#allocation16 + $0x55c] sm:$0xf] }
 0x765   : > { %v13854_v44 = vld [vmem:[#allocation16 + $0xa98] sm:$0xf]  ;;  %v13599_v53 = vor.u32 %v15655_v19, %v13598_v2  ;;  %v12995_v19 = vor.u32 %v15499_v35, %v12992_v40 }
 0x766   : > { %v15719_v58 = vld [vmem:[#allocation16 + $0xab4] sm:$0xf0]  ;;  %9126 = vmatpush.bf16.msra.mxu1 %v13887_v18  ;;  %9048 = vmatpush.bf16.msra.mxu3 %v14395_v52  ;;  %v15826_v18 = vld [vmem:[#allocation16 + $0xe14] sm:$0xf]  ;;  %v8820_v32 = vadd.f32 %v17162_v25, %v8807_v41  ;;  %v8795_v13 = vpop.f32.mrf.mxu3 }
 0x767   : > { %v14142_v56 = vld [vmem:[#allocation16 + $0xcd8] sm:$0xf]  ;;  %v13855_v0 = vor.u32 %v15719_v58, %v13854_v44  ;;  %v15427_v58 = vld [vmem:[#allocation16 + $0x19c] sm:$0xf]  ;;  %v14299_v37 = vor.u32 %v15826_v18, %v14296_v51 }
 0x768   : > { %v15791_v9 = vld [vmem:[#allocation16 + $0xcf4] sm:$0xf0]  ;;  %9138 = vmatpush.bf16.msra.mxu2 %v14175_v20  ;;  %9114 = vmatpush.bf16.msra.mxu0 %v13599_v53  ;;  %v12704_v20 = vld [vmem:[#allocation16 + $0x1b8] sm:$0xf0] }
 0x769   : > { %v13566_v14 = vld [vmem:[#allocation16 + $0x858] sm:$0xf]  ;;  %v14143_v21 = vor.u32 %v15791_v9, %v14142_v56  ;;  %v15491_v53 = vld [vmem:[#allocation16 + $0x39c] sm:$0xf] }
 0x76a   : > { %v15647_v31 = vld [vmem:[#allocation16 + $0x874] sm:$0xf0]  ;;  %9127 = vmatpush.bf16.msra.mxu1 %v13855_v0  ;;  %9049 = vmatpush.bf16.msra.mxu3 %v14363_v61  ;;  %v12960_v56 = vld [vmem:[#allocation16 + $0x3b8] sm:$0xf0]  ;;  %v17182_v0 = vadd.f32 %v17167_v39, %v8820_v32 }
 0x76b   : > { %v13822_v4 = vld [vmem:[#allocation16 + $0xa58] sm:$0xf]  ;;  %v13567_v24 = vor.u32 %v15647_v31, %v13566_v14  ;;  %v12707_v31 = vor.u32 %v15427_v58, %v12704_v20  ;;  %v12963_v48 = vor.u32 %v15491_v53, %v12960_v56  ;;  %v12928_v39 = vld [vmem:[#allocation16 + $0x378] sm:$0xf0] }
 0x76c   : > { %v15711_v5 = vld [vmem:[#allocation16 + $0xa74] sm:$0xf0]  ;;  %9139 = vmatpush.bf16.msra.mxu2 %v14143_v21  ;;  %v15467_v18 = vld [vmem:[#allocation16 + $0x2dc] sm:$0xf] }
 0x76d   : > { %v14110_v6 = vld [vmem:[#allocation16 + $0xc98] sm:$0xf]  ;;  %v13823_v60 = vor.u32 %v15711_v5, %v13822_v4  ;;  %9115 = vmatpush.bf16.msra.mxu0 %v13567_v24  ;;  %v15563_v4 = vld [vmem:[#allocation16 + $0x5dc] sm:$0xf] }
 0x76e   : > { %v15783_v46 = vld [vmem:[#allocation16 + $0xcb4] sm:$0xf0]  ;;  %9050 = vmatpush.bf16.msra.mxu3 %v14331_v42  ;;  %v13248_v5 = vld [vmem:[#allocation16 + $0x5f8] sm:$0xf0] }
 0x76f   : > { %v13534_v63 = vld [vmem:[#allocation16 + $0x818] sm:$0xf]  ;;  %v14111_v34 = vor.u32 %v15783_v46, %v14110_v6  ;;  %9128 = vmatpush.bf16.msra.mxu1 %v13823_v60  ;;  %v15419_v6 = vld [vmem:[#allocation16 + $0x15c] sm:$0xf]  ;;  %v8886_v46 = vpop.f32.mrf.mxu2  ;;  %v13251_v10 = vor.u32 %v15563_v4, %v13248_v5 }
 0x770   : > { %v15639_v55 = vld [vmem:[#allocation16 + $0x834] sm:$0xf0]  ;;  %v15483_v24 = vld [vmem:[#allocation16 + $0x35c] sm:$0xf]  ;;  %v12675_v26 = vor.u32 %v15419_v6, %v12672_v50 }
 0x771   : > { %v13790_v22 = vld [vmem:[#allocation16 + $0xa18] sm:$0xf]  ;;  %v13535_v36 = vor.u32 %v15639_v55, %v13534_v63  ;;  %9140 = vmatpush.bf16.msra.mxu2 %v14111_v34  ;;  %v15555_v60 = vld [vmem:[#allocation16 + $0x59c] sm:$0xf] }
 0x772   : > { %v15703_v7 = vld [vmem:[#allocation16 + $0xa34] sm:$0xf0]  ;;  %9051 = vmatpush.bf16.msra.mxu3 %v14299_v37  ;;  %v13216_v63 = vld [vmem:[#allocation16 + $0x5b8] sm:$0xf0] }
 0x773   : > { %v14078_v8 = vld [vmem:[#allocation16 + $0xc58] sm:$0xf]  ;;  %v13791_v16 = vor.u32 %v15703_v7, %v13790_v22  ;;  %9116 = vmatpush.bf16.msra.mxu0 %v13535_v36  ;;  %v12931_v22 = vor.u32 %v15483_v24, %v12928_v39  ;;  %v15411_v7 = vld [vmem:[#allocation16 + $0x11c] sm:$0xf]  ;;  %v13219_v35 = vor.u32 %v15555_v60, %v13216_v63 }
 0x774   : > { %v15775_v47 = vld [vmem:[#allocation16 + $0xc74] sm:$0xf0]  ;;  %v12896_v34 = vld [vmem:[#allocation16 + $0x338] sm:$0xf0]  ;;  %v12643_v41 = vor.u32 %v15411_v7, %v12640_v43  ;;  %v8845_v43 = vpop.f32.mrf.mxu3 }
 0x775   : > { %v13502_v2 = vld [vmem:[#allocation16 + $0x7d8] sm:$0xf]  ;;  %v14079_v52 = vor.u32 %v15775_v47, %v14078_v8  ;;  %9129 = vmatpush.bf16.msra.mxu1 %v13791_v16  ;;  %9052 = vmatmul.bf16.vlgmr.msra.gmra.mxu3 %v17073_v12  ;;  %v13184_v42 = vld [vmem:[#allocation16 + $0x578] sm:$0xf0]  ;;  %v12899_v8 = vor.u32 %v15475_v29, %v12896_v34 }
 0x776   : > { %v15631_v44 = vld [vmem:[#allocation16 + $0x7f4] sm:$0xf0]  ;;  %9117 = vmatmul.bf16.vlgmr.msra.gmra.mxu0 %v17042_v3  ;;  %v15403_v16 = vld [vmem:[#allocation16 + $0xdc] sm:$0xf] }
 0x777   : > { %v14046_v9 = vld [vmem:[#allocation16 + $0xc18] sm:$0xf]  ;;  %9161 = vmatpush.bf16.msrb.mxu0 %v12739_v54  ;;  %v13503_v14 = vor.u32 %v15631_v44, %v13502_v2  ;;  %9141 = vmatpush.bf16.msra.mxu2 %v14079_v52  ;;  %v12608_v54 = vld [vmem:[#allocation16 + $0xf8] sm:$0xf0]  ;;  %v17188_v2 = vpop.f32.mrf.mxu0  ;;  %v17190_v44 = vpop.f32.mrf.mxu1 }
 0x778   : > { %v15767_v59 = vld [vmem:[#allocation16 + $0xc34] sm:$0xf0]  ;;  %9130 = vmatmul.bf16.vlgmr.msra.gmra.mxu1 %v17044_v45  ;;  %v12864_v51 = vld [vmem:[#allocation16 + $0x2f8] sm:$0xf0]  ;;  %v12611_v20 = vor.u32 %v15403_v16, %v12608_v54  ;;  %v17195_v54 = vpop.f32.mrf.mxu2 }
 0x779   : > { %v13470_v25 = vld [vmem:[#allocation16 + $0x798] sm:$0xf]  ;;  %9174 = vmatpush.bf16.msrb.mxu1 %v12995_v19  ;;  %v14047_v61 = vor.u32 %v15767_v59, %v14046_v9  ;;  %9096 = vmatpush.bf16.msrb.mxu3 %v13503_v14  ;;  %v13187_v19 = vor.u32 %v15547_v33, %v13184_v42  ;;  %v15539_v32 = vld [vmem:[#allocation16 + $0x51c] sm:$0xf]  ;;  %v12867_v56 = vor.u32 %v15467_v18, %v12864_v51 }
 0x77a   : > { %v15623_v21 = vld [vmem:[#allocation16 + $0x7b4] sm:$0xf0]  ;;  %v13152_v52 = vld [vmem:[#allocation16 + $0x538] sm:$0xf0] }
 0x77b   : > { %9162 = vmatpush.bf16.msrb.mxu0 %v12707_v31  ;;  %v13471_v11 = vor.u32 %v15623_v21, %v13470_v25  ;;  %v13438_v55 = vld [vmem:[#allocation16 + $0x758] sm:$0xf]  ;;  %9142 = vmatpush.bf16.msra.mxu2 %v14047_v61  ;;  %v15395_v9 = vld [vmem:[#allocation16 + $0x9c] sm:$0xf]  ;;  %v13155_v31 = vor.u32 %v15539_v32, %v13152_v52 }
 0x77c   : > { %v15615_v23 = vld [vmem:[#allocation16 + $0x774] sm:$0xf0]  ;;  %v12576_v59 = vld [vmem:[#allocation16 + $0xb8] sm:$0xf0] }
 0x77d   : > { %9175 = vmatpush.bf16.msrb.mxu1 %v12963_v48  ;;  %9097 = vmatpush.bf16.msrb.mxu3 %v13471_v11  ;;  %v13439_v40 = vor.u32 %v15615_v23, %v13438_v55  ;;  %v13406_v36 = vld [vmem:[#allocation16 + $0x718] sm:$0xf]  ;;  %v15459_v13 = vld [vmem:[#allocation16 + $0x29c] sm:$0xf]  ;;  %v12579_v5 = vor.u32 %v15395_v9, %v12576_v59 }
 0x77e   : > { %9143 = vmatmul.bf16.vlgmr.msra.gmra.mxu2 %v17052_v28  ;;  %v15607_v47 = vld [vmem:[#allocation16 + $0x734] sm:$0xf0]  ;;  %v12832_v14 = vld [vmem:[#allocation16 + $0x2b8] sm:$0xf0] }
 0x77f   : > { %9187 = vmatpush.bf16.msrb.mxu2 %v13251_v10  ;;  %9163 = vmatpush.bf16.msrb.mxu0 %v12675_v26  ;;  %v13407_v58 = vor.u32 %v15607_v47, %v13406_v36  ;;  %v13374_v53 = vld [vmem:[#allocation16 + $0x6d8] sm:$0xf]  ;;  %v15531_v25 = vld [vmem:[#allocation16 + $0x4dc] sm:$0xf]  ;;  %v12835_v6 = vor.u32 %v15459_v13, %v12832_v14  ;;  %v8912_v10 = vpop.f32.mrf.mxu0  ;;  %v8925_v60 = vpop.f32.mrf.mxu1 }
 0x780   : > { %v15599_v37 = vld [vmem:[#allocation16 + $0x6f4] sm:$0xf0]  ;;  %v13120_v48 = vld [vmem:[#allocation16 + $0x4f8] sm:$0xf0] }
 0x781   : > { %9176 = vmatpush.bf16.msrb.mxu1 %v12931_v22  ;;  %9098 = vmatpush.bf16.msrb.mxu3 %v13439_v40  ;;  %v13375_v4 = vor.u32 %v15599_v37, %v13374_v53  ;;  %v13342_v21 = vld [vmem:[#allocation16 + $0x698] sm:$0xf]  ;;  %v15387_v61 = vld [vmem:[#allocation16 + $0x5c] sm:$0xf]  ;;  %v13123_v11 = vor.u32 %v15531_v25, %v13120_v48  ;;  %v8847_v48 = vpop.f32.mrf.mxu3 }
 0x782   : > { %v15591_v50 = vld [vmem:[#allocation16 + $0x6b4] sm:$0xf0]  ;;  %v12544_v24 = vld [vmem:[#allocation16 + $0x78] sm:$0xf0] }
 0x783   : > { %9188 = vmatpush.bf16.msrb.mxu2 %v13219_v35  ;;  %9164 = vmatpush.bf16.msrb.mxu0 %v12643_v41  ;;  %v15451_v39 = vld [vmem:[#allocation16 + $0x25c] sm:$0xf]  ;;  %v13343_v63 = vor.u32 %v15591_v50, %v13342_v21  ;;  %v12547_v55 = vor.u32 %v15387_v61, %v12544_v24  ;;  %v13310_v23 = vld [vmem:[#allocation16 + $0x658] sm:$0xf]  ;;  %v17193_v41 = vadd.f32 %v8845_v43, %v17182_v0 }
 0x784   : > { %v12800_v46 = vld [vmem:[#allocation16 + $0x278] sm:$0xf0]  ;;  %v15583_v7 = vld [vmem:[#allocation16 + $0x674] sm:$0xf0] }
 0x785   : > { %9177 = vmatpush.bf16.msrb.mxu1 %v12899_v8  ;;  %9099 = vmatpush.bf16.msrb.mxu3 %v13407_v58  ;;  %v15523_v26 = vld [vmem:[#allocation16 + $0x49c] sm:$0xf]  ;;  %v12803_v29 = vor.u32 %v15451_v39, %v12800_v46  ;;  %v13311_v18 = vor.u32 %v15583_v7, %v13310_v23  ;;  %v13278_v0 = vld [vmem:[#allocation16 + $0x618] sm:$0xf] }
 0x786   : > { %v13088_v22 = vld [vmem:[#allocation16 + $0x4b8] sm:$0xf0]  ;;  %v15575_v52 = vld [vmem:[#allocation16 + $0x634] sm:$0xf0] }
 0x787   : > { %9189 = vmatpush.bf16.msrb.mxu2 %v13187_v19  ;;  %9165 = vmatpush.bf16.msrb.mxu0 %v12611_v20  ;;  %v15379_v34 = vld [vmem:[#allocation16 + $0x1c] sm:$0xf]  ;;  %v13091_v8 = vor.u32 %v15523_v26, %v13088_v22  ;;  %v14526_v53 = vld [vmem:[#allocation16 + $0xfd8] sm:$0xf] }
 0x788   : > { %v12512_v35 = vld [vmem:[#allocation16 + $0x38] sm:$0xf0]  ;;  %v15887_v37 = vld [vmem:[#allocation16 + $0xff4] sm:$0xf0] }
 0x789   : > { %9178 = vmatpush.bf16.msrb.mxu1 %v12867_v56  ;;  %9100 = vmatpush.bf16.msrb.mxu3 %v13375_v4  ;;  %v15443_v40 = vld [vmem:[#allocation16 + $0x21c] sm:$0xf]  ;;  %v12515_v51 = vor.u32 %v15379_v34, %v12512_v35  ;;  %v13279_v4 = vor.u32 %v15575_v52, %v13278_v0  ;;  %v14527_v21 = vor.u32 %v15887_v37, %v14526_v53  ;;  %v14494_v24 = vld [vmem:[#allocation16 + $0xf98] sm:$0xf] }
 0x78a   : > { %v12768_v33 = vld [vmem:[#allocation16 + $0x238] sm:$0xf0]  ;;  %v15879_v46 = vld [vmem:[#allocation16 + $0xfb4] sm:$0xf0] }
 0x78b   : > { %9190 = vmatpush.bf16.msrb.mxu2 %v13155_v31  ;;  %9166 = vmatpush.bf16.msrb.mxu0 %v12579_v5  ;;  %v15691_v42 = vld [vmem:[#allocation16 + $0x9dc] sm:$0xf]  ;;  %v12771_v20 = vor.u32 %v15443_v40, %v12768_v33  ;;  %v14495_v23 = vor.u32 %v15879_v46, %v14494_v24  ;;  %v14462_v34 = vld [vmem:[#allocation16 + $0xf58] sm:$0xf] }
 0x78c   : > { %v13760_v36 = vld [vmem:[#allocation16 + $0x9f8] sm:$0xf0]  ;;  %v15871_v40 = vld [vmem:[#allocation16 + $0xf74] sm:$0xf0] }
 0x78d   : > { %9179 = vmatpush.bf16.msrb.mxu1 %v12835_v6  ;;  %v15755_v47 = vld [vmem:[#allocation16 + $0xbdc] sm:$0xf]  ;;  %9101 = vmatpush.bf16.msrb.mxu3 %v13343_v63  ;;  %v13763_v32 = vor.u32 %v15691_v42, %v13760_v36 }
 0x78e   : > { %v14016_v16 = vld [vmem:[#allocation16 + $0xbf8] sm:$0xf0] }
 0x78f   : > { %9191 = vmatpush.bf16.msrb.mxu2 %v13123_v11  ;;  %9167 = vmatpush.bf16.msrb.mxu0 %v12547_v55  ;;  %v15515_v19 = vld [vmem:[#allocation16 + $0x45c] sm:$0xf]  ;;  %v14019_v56 = vor.u32 %v15755_v47, %v14016_v16  ;;  %v8938_v55 = vpop.f32.mrf.mxu2  ;;  %v14463_v47 = vor.u32 %v15871_v40, %v14462_v34 }
 0x790   : > { %v13056_v58 = vld [vmem:[#allocation16 + $0x478] sm:$0xf0] }
 0x791   : > { %9180 = vmatpush.bf16.msrb.mxu1 %v12803_v29  ;;  %v15683_v9 = vld [vmem:[#allocation16 + $0x99c] sm:$0xf]  ;;  %v13059_v13 = vor.u32 %v15515_v19, %v13056_v58  ;;  %9102 = vmatpush.bf16.msrb.mxu3 %v13311_v18  ;;  %v14430_v19 = vld [vmem:[#allocation16 + $0xf18] sm:$0xf] }
 0x792   : > { %v13728_v59 = vld [vmem:[#allocation16 + $0x9b8] sm:$0xf0] }
 0x793   : > { %9192 = vmatpush.bf16.msrb.mxu2 %v13091_v8  ;;  %v15747_v14 = vld [vmem:[#allocation16 + $0xb9c] sm:$0xf]  ;;  %9168 = vmatpush.bf16.msrb.mxu0 %v12515_v51  ;;  %v13731_v6 = vor.u32 %v15683_v9, %v13728_v59  ;;  %v5862_v8 = vperm.slane %v17172_v27, 5  ;;  %v8975_v9 = vpop.f32.mrf.mxu1 }
 0x794   : > { %v13984_v31 = vld [vmem:[#allocation16 + $0xbb8] sm:$0xf0] }
 0x795   : > { %v15507_v5 = vld [vmem:[#allocation16 + $0x41c] sm:$0xf]  ;;  %9181 = vmatpush.bf16.msrb.mxu1 %v12771_v20  ;;  %v13987_v39 = vor.u32 %v15747_v14, %v13984_v31  ;;  %9103 = vmatpush.bf16.msrb.mxu3 %v13279_v4  ;;  %v15863_v20 = vld [vmem:[#allocation16 + $0xf34] sm:$0xf0] }
 0x796   : > { %v13024_v25 = vld [vmem:[#allocation16 + $0x438] sm:$0xf0]  ;;  %9169 = vmatmul.bf16.vlgmr.msrb.gmra.mxu0 %v17011_v15  ;;  %v14431_v59 = vor.u32 %v15863_v20, %v14430_v19  ;;  %v14398_v4 = vld [vmem:[#allocation16 + $0xed8] sm:$0xf] }
 0x797   : > { %9213 = vmatpush.bf16.msra.mxu0 %v13763_v32  ;;  %v15819_v50 = vld [vmem:[#allocation16 + $0xddc] sm:$0xf]  ;;  %9193 = vmatpush.bf16.msrb.mxu2 %v13059_v13  ;;  %v13027_v26 = vor.u32 %v15507_v5, %v13024_v25  ;;  %v15855_v5 = vld [vmem:[#allocation16 + $0xef4] sm:$0xf0]  ;;  %v8988_v20 = vpop.f32.mrf.mxu2 }
 0x798   : > { %v14272_v61 = vld [vmem:[#allocation16 + $0xdf8] sm:$0xf0]  ;;  %9182 = vmatmul.bf16.vlgmr.msrb.gmra.mxu1 %v17013_v17  ;;  %9104 = vmatmul.bf16.vlgmr.msrb.gmra.mxu3 %v17023_v30  ;;  %v14399_v24 = vor.u32 %v15855_v5, %v14398_v4 }
 0x799   : > { %9226 = vmatpush.bf16.msra.mxu1 %v14019_v56  ;;  %v15675_v10 = vld [vmem:[#allocation16 + $0x95c] sm:$0xf]  ;;  %v14275_v22 = vor.u32 %v15819_v50, %v14272_v61  ;;  %9148 = vmatpush.bf16.msra.mxu3 %v14527_v21  ;;  %v8962_v56 = vpop.f32.mrf.mxu0 }
 0x79a   : > { %v13696_v11 = vld [vmem:[#allocation16 + $0x978] sm:$0xf0]  ;;  %v8963_v27 = vadd.f32 %v8962_v56, %v5862_v8 }
 0x79b   : > { %v15739_v60 = vld [vmem:[#allocation16 + $0xb5c] sm:$0xf]  ;;  %9214 = vmatpush.bf16.msra.mxu0 %v13731_v6  ;;  %v13699_v7 = vor.u32 %v15675_v10, %v13696_v11  ;;  %9194 = vmatpush.bf16.msrb.mxu2 %v13027_v26  ;;  %v14366_v11 = vld [vmem:[#allocation16 + $0xe98] sm:$0xf] }
 0x79c   : > { %v13952_v63 = vld [vmem:[#allocation16 + $0xb78] sm:$0xf0]  ;;  %v8976_v21 = vadd.f32 %v8975_v9, %v8963_v27  ;;  %v14302_v27 = vld [vmem:[#allocation16 + $0xe18] sm:$0xf] }
 0x79d   : > { %v15811_v43 = vld [vmem:[#allocation16 + $0xd9c] sm:$0xf]  ;;  %9227 = vmatpush.bf16.msra.mxu1 %v13987_v39  ;;  %v13955_v35 = vor.u32 %v15739_v60, %v13952_v63  ;;  %9149 = vmatpush.bf16.msra.mxu3 %v14495_v23  ;;  %v15847_v60 = vld [vmem:[#allocation16 + $0xeb4] sm:$0xf0] }
 0x79e   : > { %v14240_v29 = vld [vmem:[#allocation16 + $0xdb8] sm:$0xf0]  ;;  %9195 = vmatmul.bf16.vlgmr.msrb.gmra.mxu2 %v17021_v49  ;;  %v14367_v34 = vor.u32 %v15847_v60, %v14366_v11  ;;  %v17204_v56 = vadd.f32 %v8988_v20, %v8976_v21  ;;  %v15831_v9 = vld [vmem:[#allocation16 + $0xe34] sm:$0xf0] }
 0x79f   : > { %v15667_v33 = vld [vmem:[#allocation16 + $0x91c] sm:$0xf]  ;;  %9239 = vmatpush.bf16.msra.mxu2 %v14275_v22  ;;  %v14243_v17 = vor.u32 %v15811_v43, %v14240_v29  ;;  %9215 = vmatpush.bf16.msra.mxu0 %v13699_v7  ;;  %v8977_v29 = vpop.f32.mrf.mxu1  ;;  %v14303_v4 = vor.u32 %v15831_v9, %v14302_v27 }
 0x7a0   : > { %v13664_v15 = vld [vmem:[#allocation16 + $0x938] sm:$0xf0] }
 0x7a1   : > { %v15731_v42 = vld [vmem:[#allocation16 + $0xb1c] sm:$0xf]  ;;  %v13667_v16 = vor.u32 %v15667_v33, %v13664_v15  ;;  %9228 = vmatpush.bf16.msra.mxu1 %v13955_v35  ;;  %9150 = vmatpush.bf16.msra.mxu3 %v14463_v47  ;;  %v8964_v7 = vpop.f32.mrf.mxu0  ;;  %v14334_v15 = vld [vmem:[#allocation16 + $0xe58] sm:$0xf] }
 0x7a2   : > { %v13920_v36 = vld [vmem:[#allocation16 + $0xb38] sm:$0xf0] }
 0x7a3   : > { %v15803_v18 = vld [vmem:[#allocation16 + $0xd5c] sm:$0xf]  ;;  %v13923_v58 = vor.u32 %v15731_v42, %v13920_v36  ;;  %9240 = vmatpush.bf16.msra.mxu2 %v14243_v17  ;;  %9216 = vmatpush.bf16.msra.mxu0 %v13667_v16  ;;  %v8897_v42 = vpop.f32.mrf.mxu3  ;;  %v15839_v17 = vld [vmem:[#allocation16 + $0xe74] sm:$0xf0] }
 0x7a4   : > { %v14208_v51 = vld [vmem:[#allocation16 + $0xd78] sm:$0xf0]  ;;  %v8898_v16 = vadd.f32 %v8897_v42, %v17178_v38  ;;  %v15895_v38 = vld [vmem:[%s17510_s2 + $0x38] sm:$0xff] }
 0x7a5   : > { %v15659_v32 = vld [vmem:[#allocation16 + $0x8dc] sm:$0xf]  ;;  %v14211_v37 = vor.u32 %v15803_v18, %v14208_v51  ;;  %9229 = vmatpush.bf16.msra.mxu1 %v13923_v58  ;;  %9151 = vmatpush.bf16.msra.mxu3 %v14431_v59 }
 0x7a6   : > { %v13632_v0 = vld [vmem:[#allocation16 + $0x8f8] sm:$0xf0]  ;;  %v8911_v58 = vadd.f32 %v17188_v2, %v8898_v16  ;;  %v15903_v2 = vld [vmem:[%s17510_s2 + $0x78] sm:$0xff] }
 0x7a7   : > { %v15723_v52 = vld [vmem:[#allocation16 + $0xadc] sm:$0xf]  ;;  %v13635_v13 = vor.u32 %v15659_v32, %v13632_v0  ;;  %9241 = vmatpush.bf16.msra.mxu2 %v14211_v37  ;;  %v14335_v32 = vor.u32 %v15839_v17, %v14334_v15  ;;  %v15898_v17 = vld [vmem:[%s17510_s2 + $0x50] sm:$0xff] }
 0x7a8   : > { %v13888_v53 = vld [vmem:[#allocation16 + $0xaf8] sm:$0xf0] }
 0x7a9   : > { %v15795_v14 = vld [vmem:[#allocation16 + $0xd1c] sm:$0xf]  ;;  %v13891_v49 = vor.u32 %v15723_v52, %v13888_v53  ;;  %9217 = vmatpush.bf16.msra.mxu0 %v13635_v13  ;;  %9152 = vmatpush.bf16.msra.mxu3 %v14399_v24  ;;  %v8990_v24 = vpop.f32.mrf.mxu2 }
 0x7aa   : > { %v14176_v31 = vld [vmem:[#allocation16 + $0xd38] sm:$0xf0]  ;;  %v15934_v24 = vld [vmem:[%s17510_s2 + $0x170] sm:$0xff] }
 0x7ab   : > { %v15651_v25 = vld [vmem:[#allocation16 + $0x89c] sm:$0xf]  ;;  %v14179_v61 = vor.u32 %v15795_v14, %v14176_v31  ;;  %9230 = vmatpush.bf16.msra.mxu1 %v13891_v49  ;;  %v8924_v14 = vadd.f32 %v17190_v44, %v8911_v58  ;;  %v15902_v44 = vld [vmem:[%s17510_s2 + $0x70] sm:$0xff] }
 0x7ac   : > { %v13600_v48 = vld [vmem:[#allocation16 + $0x8b8] sm:$0xf0] }
 0x7ad   : > { %v15715_v6 = vld [vmem:[#allocation16 + $0xa9c] sm:$0xf]  ;;  %v13603_v39 = vor.u32 %v15651_v25, %v13600_v48  ;;  %9242 = vmatpush.bf16.msra.mxu2 %v14179_v61  ;;  %9153 = vmatpush.bf16.msra.mxu3 %v14367_v34  ;;  %v17214_v25 = vadd.f32 %v17195_v54, %v8924_v14  ;;  %v8899_v48 = vpop.f32.mrf.mxu3 }
 0x7ae   : > { %v13856_v50 = vld [vmem:[#allocation16 + $0xab8] sm:$0xf0] }
 0x7af   : > { %v15787_v46 = vld [vmem:[#allocation16 + $0xcdc] sm:$0xf]  ;;  %v13859_v26 = vor.u32 %v15715_v6, %v13856_v50  ;;  %9218 = vmatpush.bf16.msra.mxu0 %v13603_v39  ;;  %v15894_v6 = vld [vmem:[%s17510_s2 + $0x30] sm:$0xff]  ;;  %v15911_v39 = vld [vmem:[%s17510_s2 + $0xb8] sm:$0xff] }
 0x7b0   : > { %v14144_v10 = vld [vmem:[#allocation16 + $0xcf8] sm:$0xf0]  ;;  %v17244_v7 = vpop.f32.mrf.mxu0 }
 0x7b1   : > { %v15643_v63 = vld [vmem:[#allocation16 + $0x85c] sm:$0xf]  ;;  %v14147_v43 = vor.u32 %v15787_v46, %v14144_v10  ;;  %9231 = vmatpush.bf16.msra.mxu1 %v13859_v26  ;;  %9154 = vmatpush.bf16.msra.mxu3 %v14335_v32 }
 0x7b2   : > { %v13568_v55 = vld [vmem:[#allocation16 + $0x878] sm:$0xf0]  ;;  %v17249_v29 = vpop.f32.mrf.mxu1 }
 0x7b3   : > { %v15707_v22 = vld [vmem:[#allocation16 + $0xa5c] sm:$0xf]  ;;  %v13571_v35 = vor.u32 %v15643_v63, %v13568_v55  ;;  %9243 = vmatpush.bf16.msra.mxu2 %v14147_v43 }
 0x7b4   : > { %v13824_v23 = vld [vmem:[#allocation16 + $0xa78] sm:$0xf0] }
 0x7b5   : > { %v15779_v40 = vld [vmem:[#allocation16 + $0xc9c] sm:$0xf]  ;;  %v13827_v36 = vor.u32 %v15707_v22, %v13824_v23  ;;  %9219 = vmatpush.bf16.msra.mxu0 %v13571_v35  ;;  %9155 = vmatpush.bf16.msra.mxu3 %v14303_v4  ;;  %v15899_v35 = vld [vmem:[%s17510_s2 + $0x58] sm:$0xff]  ;;  %v17272_v20 = vpop.f32.mrf.mxu3 }
 0x7b6   : > { %v14112_v33 = vld [vmem:[#allocation16 + $0xcb8] sm:$0xf0] }
 0x7b7   : > { %v15635_v8 = vld [vmem:[#allocation16 + $0x81c] sm:$0xf]  ;;  %v14115_v19 = vor.u32 %v15779_v40, %v14112_v33  ;;  %9232 = vmatpush.bf16.msra.mxu1 %v13827_v36  ;;  %v15890_v36 = vld [vmem:[%s17510_s2 + $0x10] sm:$0xff] }
 0x7b8   : > { %v13536_v47 = vld [vmem:[#allocation16 + $0x838] sm:$0xf0]  ;;  %9156 = vmatmul.bf16.vlgmr.msra.gmra.mxu3 %v17073_v12  ;;  %v9016_v16 = vpop.f32.mrf.mxu0 }
 0x7b9   : > { %v15699_v18 = vld [vmem:[#allocation16 + $0xa1c] sm:$0xf]  ;;  %v13539_v0 = vor.u32 %v15635_v8, %v13536_v47  ;;  %9244 = vmatpush.bf16.msra.mxu2 %v14115_v19  ;;  %v15922_v16 = vld [vmem:[%s17510_s2 + $0x110] sm:$0xff] }
 0x7ba   : > { %v13792_v51 = vld [vmem:[#allocation16 + $0xa38] sm:$0xf0] }
 0x7bb   : > { %v15771_v52 = vld [vmem:[#allocation16 + $0xc5c] sm:$0xf]  ;;  %v13795_v37 = vor.u32 %v15699_v18, %v13792_v51  ;;  %9220 = vmatpush.bf16.msra.mxu0 %v13539_v0  ;;  %v15907_v18 = vld [vmem:[%s17510_s2 + $0x98] sm:$0xff]  ;;  %v9029_v51 = vpop.f32.mrf.mxu1 }
 0x7bc   : > { %v14080_v53 = vld [vmem:[#allocation16 + $0xc78] sm:$0xf0] }
 0x7bd   : > { %v15627_v59 = vld [vmem:[#allocation16 + $0x7dc] sm:$0xf]  ;;  %v14083_v31 = vor.u32 %v15771_v52, %v14080_v53  ;;  %9233 = vmatpush.bf16.msra.mxu1 %v13795_v37  ;;  %v15906_v53 = vld [vmem:[%s17510_s2 + $0x90] sm:$0xff] }
 0x7be   : > { %v13504_v13 = vld [vmem:[#allocation16 + $0x7f8] sm:$0xf0]  ;;  %9221 = vmatmul.bf16.vlgmr.msra.gmra.mxu0 %v17042_v3  ;;  %v17280_v37 = vpop.f32.mrf.mxu2 }
 0x7bf   : > { %v15763_v49 = vld [vmem:[#allocation16 + $0xc1c] sm:$0xf]  ;;  %9797 = vmatpush.bf16.msrb.mxu0 %v15895_v38  ;;  %v13507_v21 = vor.u32 %v15627_v59, %v13504_v13  ;;  %9245 = vmatpush.bf16.msra.mxu2 %v14083_v31  ;;  %v15927_v59 = vld [vmem:[%s17510_s2 + $0x138] sm:$0xff]  ;;  %v9266_v31 = vmax.f32 %v17139_v1, 0.0  ;;  %v15926_v1 = vld [vmem:[%s17510_s2 + $0x130] sm:$0xff] }
 0x7c0   : > { %v14048_v5 = vld [vmem:[#allocation16 + $0xc38] sm:$0xf0]  ;;  %9234 = vmatmul.bf16.vlgmr.msra.gmra.mxu1 %v17044_v45  ;;  %v15910_v45 = vld [vmem:[%s17510_s2 + $0xb0] sm:$0xff] }
 0x7c1   : > { %9810 = vmatpush.bf16.msrb.mxu1 %v15903_v2  ;;  %v15619_v50 = vld [vmem:[#allocation16 + $0x79c] sm:$0xf]  ;;  %v14051_v54 = vor.u32 %v15763_v49, %v14048_v5  ;;  %9200 = vmatpush.bf16.msrb.mxu3 %v13507_v21  ;;  %v9265_v2 = vmax.f32 %v17123_v62, 0.0  ;;  %v15935_v5 = vld [vmem:[%s17510_s2 + $0x178] sm:$0xff] }
 0x7c2   : > { %v13472_v61 = vld [vmem:[#allocation16 + $0x7b8] sm:$0xf0] }
 0x7c3   : > { %9798 = vmatpush.bf16.msrb.mxu0 %v15894_v6  ;;  %v13475_v46 = vor.u32 %v15619_v50, %v13472_v61  ;;  %v15893_v10 = vld [vmem:[%s17510_s2 + $0x28] sm:$0xff]  ;;  %9246 = vmatpush.bf16.msra.mxu2 %v14051_v54  ;;  %v15892_v63 = vld [vmem:[%s17510_s2 + $0x20] sm:$0xff]  ;;  %v9401_v21 = vpack.c.bf16 %v9265_v2, %v9265_v2  ;;  %v8951_v6 = vpop.f32.mrf.mxu3  ;;  %v9402_v50 = vpack.c.bf16 %v9266_v31, %v9266_v31 }
 0x7c4   : > { %v15901_v3 = vld [vmem:[%s17510_s2 + $0x68] sm:$0xff]  ;;  %v15900_v55 = vld [vmem:[%s17510_s2 + $0x60] sm:$0xff] }
 0x7c5   : > { %9811 = vmatpush.bf16.msrb.mxu1 %v15902_v44  ;;  %v15611_v11 = vld [vmem:[#allocation16 + $0x75c] sm:$0xf]  ;;  %9201 = vmatpush.bf16.msrb.mxu3 %v13475_v46  ;;  %v9267_v46 = vmax.f32 %v17165_v57, 0.0 }
 0x7c6   : > { %v13440_v26 = vld [vmem:[#allocation16 + $0x778] sm:$0xf0]  ;;  %9247 = vmatmul.bf16.vlgmr.msra.gmra.mxu2 %v17052_v28  ;;  %v15891_v28 = vld [vmem:[%s17510_s2 + $0x18] sm:$0xff] }
 0x7c7   : > { %9823 = vmatpush.bf16.msrb.mxu2 %v15911_v39  ;;  %9799 = vmatpush.bf16.msrb.mxu0 %v15893_v10  ;;  %v13443_v60 = vor.u32 %v15611_v11, %v13440_v26  ;;  %v15603_v22 = vld [vmem:[#allocation16 + $0x71c] sm:$0xf]  ;;  %v9042_v10 = vpop.f32.mrf.mxu2  ;;  %v9403_v57 = vpack.c.bf16 %v9267_v46, %v9267_v46 }
 0x7c8   : > { %v13408_v23 = vld [vmem:[#allocation16 + $0x738] sm:$0xf0] }
 0x7c9   : > { %9812 = vmatpush.bf16.msrb.mxu1 %v15901_v3  ;;  %v15909_v43 = vld [vmem:[%s17510_s2 + $0xa8] sm:$0xff]  ;;  %9202 = vmatpush.bf16.msrb.mxu3 %v13443_v60  ;;  %v13411_v34 = vor.u32 %v15603_v22, %v13408_v23  ;;  %v15908_v15 = vld [vmem:[%s17510_s2 + $0xa0] sm:$0xff] }
 0x7ca   : > { %v15595_v40 = vld [vmem:[#allocation16 + $0x6dc] sm:$0xf] }
 0x7cb   : > { %9824 = vmatpush.bf16.msrb.mxu2 %v15910_v45  ;;  %9800 = vmatpush.bf16.msrb.mxu0 %v15892_v63  ;;  %v13376_v33 = vld [vmem:[#allocation16 + $0x6f8] sm:$0xf0]  ;;  %v17316_v63 = vld [vmem:[#allocation17] sm:$0xff] }
 0x7cc   : > { %v13379_v42 = vor.u32 %v15595_v40, %v13376_v33  ;;  %v15587_v8 = vld [vmem:[#allocation16 + $0x69c] sm:$0xf] }
 0x7cd   : > { %9813 = vmatpush.bf16.msrb.mxu1 %v15900_v55  ;;  %9203 = vmatpush.bf16.msrb.mxu3 %v13411_v34  ;;  %v13344_v47 = vld [vmem:[#allocation16 + $0x6b8] sm:$0xf0]  ;;  %v5863_v55 = vperm.slane %v17316_v63, 6 }
 0x7ce   : > { %v13347_v19 = vor.u32 %v15587_v8, %v13344_v47  ;;  %v15889_v58 = vld [vmem:[%s17510_s2 + $0x8] sm:$0xff]  ;;  %v15888_v27 = vld [vmem:[%s17510_s2] sm:$0xff] }
 0x7cf   : > { %9825 = vmatpush.bf16.msrb.mxu2 %v15909_v43  ;;  %9801 = vmatpush.bf16.msrb.mxu0 %v15891_v28  ;;  %v15897_v32 = vld [vmem:[%s17510_s2 + $0x48] sm:$0xff]  ;;  %v15896_v9 = vld [vmem:[%s17510_s2 + $0x40] sm:$0xff] }
 0x7d0   : > { %v15579_v0 = vld [vmem:[#allocation16 + $0x65c] sm:$0xf]  ;;  %v9066_v28 = vpop.f32.mrf.mxu0 }
 0x7d1   : > { %9814 = vmatpush.bf16.msrb.mxu1 %v15899_v35  ;;  %9204 = vmatpush.bf16.msrb.mxu3 %v13379_v42  ;;  %v13312_v52 = vld [vmem:[#allocation16 + $0x678] sm:$0xf0]  ;;  %v9067_v35 = vadd.f32 %v9066_v28, %v5863_v55 }
 0x7d2   : > { %v13315_v38 = vor.u32 %v15579_v0, %v13312_v52  ;;  %v15571_v13 = vld [vmem:[#allocation16 + $0x61c] sm:$0xf]  ;;  %v9079_v40 = vpop.f32.mrf.mxu1 }
 0x7d3   : > { %9826 = vmatpush.bf16.msrb.mxu2 %v15908_v15  ;;  %9802 = vmatpush.bf16.msrb.mxu0 %v15890_v36  ;;  %v13280_v14 = vld [vmem:[#allocation16 + $0x638] sm:$0xf0]  ;;  %v15923_v15 = vld [vmem:[%s17510_s2 + $0x118] sm:$0xff]  ;;  %v9080_v8 = vadd.f32 %v9079_v40, %v9067_v35  ;;  %v5864_v40 = vperm.slane %v17316_v63, 7 }
 0x7d4   : > { %v15883_v4 = vld [vmem:[#allocation16 + $0xfdc] sm:$0xf]  ;;  %v13283_v48 = vor.u32 %v15571_v13, %v13280_v14 }
 0x7d5   : > { %9815 = vmatpush.bf16.msrb.mxu1 %v15898_v17  ;;  %9205 = vmatpush.bf16.msrb.mxu3 %v13347_v19  ;;  %v14528_v49 = vld [vmem:[#allocation16 + $0xff8] sm:$0xf0]  ;;  %v15931_v17 = vld [vmem:[%s17510_s2 + $0x158] sm:$0xff]  ;;  %v15930_v19 = vld [vmem:[%s17510_s2 + $0x150] sm:$0xff] }
 0x7d6   : > { %v15905_v62 = vld [vmem:[%s17510_s2 + $0x88] sm:$0xff]  ;;  %v14531_v44 = vor.u32 %v15883_v4, %v14528_v49  ;;  %v15904_v39 = vld [vmem:[%s17510_s2 + $0x80] sm:$0xff] }
 0x7d7   : > { %9827 = vmatpush.bf16.msrb.mxu2 %v15907_v18  ;;  %9803 = vmatpush.bf16.msrb.mxu0 %v15889_v58  ;;  %v15875_v61 = vld [vmem:[#allocation16 + $0xf9c] sm:$0xf] }
 0x7d8   : > { %v14496_v54 = vld [vmem:[#allocation16 + $0xfb8] sm:$0xf0]  ;;  %v9068_v58 = vpop.f32.mrf.mxu0 }
 0x7d9   : > { %9816 = vmatpush.bf16.msrb.mxu1 %v15897_v32  ;;  %9206 = vmatpush.bf16.msrb.mxu3 %v13315_v38  ;;  %v14499_v3 = vor.u32 %v15875_v61, %v14496_v54  ;;  %v15925_v11 = vld [vmem:[%s17510_s2 + $0x128] sm:$0xff]  ;;  %v15924_v23 = vld [vmem:[%s17510_s2 + $0x120] sm:$0xff]  ;;  %v9001_v38 = vpop.f32.mrf.mxu3 }
 0x7da   : > { %v15867_v26 = vld [vmem:[#allocation16 + $0xf5c] sm:$0xf]  ;;  %v9081_v32 = vpop.f32.mrf.mxu1 }
 0x7db   : > { %9828 = vmatpush.bf16.msrb.mxu2 %v15906_v53  ;;  %9804 = vmatpush.bf16.msrb.mxu0 %v15888_v27  ;;  %v14464_v45 = vld [vmem:[#allocation16 + $0xf78] sm:$0xf0]  ;;  %v8950_v53 = vadd.f32 %v17272_v20, %v17214_v25 }
 0x7dc   : > { %v15933_v60 = vld [vmem:[%s17510_s2 + $0x168] sm:$0xff]  ;;  %v14467_v22 = vor.u32 %v15867_v26, %v14464_v45  ;;  %v15920_v14 = vld [vmem:[%s17510_s2 + $0x100] sm:$0xff]  ;;  %v15943_v26 = vld [vmem:[%s17510_s2 + $0x1b8] sm:$0xff] }
 0x7dd   : > { %9817 = vmatpush.bf16.msrb.mxu1 %v15896_v9  ;;  %9207 = vmatpush.bf16.msrb.mxu3 %v13283_v48  ;;  %v15859_v43 = vld [vmem:[#allocation16 + $0xf1c] sm:$0xf]  ;;  %v9269_v31 = vmax.f32 %v8950_v53, 0.0 }
 0x7de   : > { %9805 = vmatmul.bf16.vlgmr.msrb.gmra.mxu0 %v9401_v21  ;;  %v14432_v34 = vld [vmem:[#allocation16 + $0xf38] sm:$0xf0]  ;;  %v15919_v21 = vld [vmem:[%s17510_s2 + $0xf8] sm:$0xff] }
 0x7df   : > { %9849 = vmatpush.bf16.msra.mxu0 %v15927_v59  ;;  %9829 = vmatpush.bf16.msrb.mxu2 %v15905_v62  ;;  %v14435_v33 = vor.u32 %v15859_v43, %v14432_v34  ;;  %v15851_v42 = vld [vmem:[#allocation16 + $0xedc] sm:$0xf]  ;;  %v9092_v59 = vpop.f32.mrf.mxu2  ;;  %v9405_v62 = vpack.c.bf16 %v9269_v31, %v9269_v31 }
 0x7e0   : > { %9818 = vmatmul.bf16.vlgmr.msrb.gmra.mxu1 %v9402_v50  ;;  %9208 = vmatmul.bf16.vlgmr.msrb.gmra.mxu3 %v17023_v30  ;;  %v15932_v30 = vld [vmem:[%s17510_s2 + $0x160] sm:$0xff]  ;;  %v15921_v52 = vld [vmem:[%s17510_s2 + $0x108] sm:$0xff]  ;;  %v17348_v4 = vadd.f32 %v9092_v59, %v9080_v8 }
 0x7e1   : > { %9862 = vmatpush.bf16.msra.mxu1 %v15935_v5  ;;  %9252 = vmatpush.bf16.msra.mxu3 %v14531_v44  ;;  %v14400_v36 = vld [vmem:[#allocation16 + $0xef8] sm:$0xf0]  ;;  %v9003_v48 = vpop.f32.mrf.mxu3  ;;  %v15918_v44 = vld [vmem:[%s17510_s2 + $0xf0] sm:$0xff] }
 0x7e2   : > { %v14403_v47 = vor.u32 %v15851_v42, %v14400_v36  ;;  %v15843_v18 = vld [vmem:[#allocation16 + $0xe9c] sm:$0xf] }
 0x7e3   : > { %9850 = vmatpush.bf16.msra.mxu0 %v15926_v1  ;;  %9830 = vmatpush.bf16.msrb.mxu2 %v15904_v39  ;;  %v14368_v51 = vld [vmem:[#allocation16 + $0xeb8] sm:$0xf0]  ;;  %v9002_v1 = vadd.f32 %v9001_v38, %v17204_v56 }
 0x7e4   : > { %v14371_v0 = vor.u32 %v15843_v18, %v14368_v51  ;;  %v15835_v27 = vld [vmem:[#allocation16 + $0xe5c] sm:$0xf] }
 0x7e5   : > { %9863 = vmatpush.bf16.msra.mxu1 %v15934_v24  ;;  %9253 = vmatpush.bf16.msra.mxu3 %v14499_v3  ;;  %v14336_v9 = vld [vmem:[#allocation16 + $0xe78] sm:$0xf0]  ;;  %v9015_v54 = vadd.f32 %v17244_v7, %v9002_v1  ;;  %v15914_v7 = vld [vmem:[%s17510_s2 + $0xd0] sm:$0xff] }
 0x7e6   : > { %9831 = vmatmul.bf16.vlgmr.msrb.gmra.mxu2 %v9403_v57  ;;  %v15929_v2 = vld [vmem:[%s17510_s2 + $0x148] sm:$0xff]  ;;  %v14339_v13 = vor.u32 %v15835_v27, %v14336_v9  ;;  %v15928_v49 = vld [vmem:[%s17510_s2 + $0x140] sm:$0xff]  ;;  %v15946_v1 = vld [vmem:[%s17510_s2 + $0x1d0] sm:$0xff] }
 0x7e7   : > { %9851 = vmatpush.bf16.msra.mxu0 %v15925_v11  ;;  %v15827_v25 = vld [vmem:[#allocation16 + $0xe1c] sm:$0xf]  ;;  %v9094_v6 = vpop.f32.mrf.mxu2  ;;  %v9028_v56 = vadd.f32 %v17249_v29, %v9015_v54  ;;  %9875 = vmatpush.bf16.msra.mxu2 %v15943_v26 }
 0x7e8   : > { %v14304_v20 = vld [vmem:[#allocation16 + $0xe38] sm:$0xf0]  ;;  %v16103_v6 = vld [vmem:[#allocation19] ss:$0 sm:$0xff] }
 0x7e9   : > { %9864 = vmatpush.bf16.msra.mxu1 %v15933_v60  ;;  %9254 = vmatpush.bf16.msra.mxu3 %v14467_v22  ;;  %v14307_v5 = vor.u32 %v15827_v25, %v14304_v20  ;;  %v15917_v50 = vld [vmem:[%s17510_s2 + $0xe8] sm:$0xff]  ;;  %v15916_v39 = vld [vmem:[%s17510_s2 + $0xe0] sm:$0xff]  ;;  %v9041_v3 = vadd.f32 %v17280_v37, %v9028_v56  ;;  %v15942_v37 = vld [vmem:[%s17510_s2 + $0x1b0] sm:$0xff] }
 0x7ea   : > { %v15913_v29 = vld [vmem:[%s17510_s2 + $0xc8] sm:$0xff]  ;;  %v15912_v22 = vld [vmem:[%s17510_s2 + $0xc0] sm:$0xff] }
 0x7eb   : > { %9852 = vmatpush.bf16.msra.mxu0 %v15924_v23  ;;  %9876 = vmatpush.bf16.msra.mxu2 %v15942_v37  ;;  %v9268_v23 = vmax.f32 %v17193_v41, 0.0  ;;  %v15941_v34 = vld [vmem:[%s17510_s2 + $0x1a8] sm:$0xff]  ;;  %v15939_v41 = vld [vmem:[%s17510_s2 + $0x198] sm:$0xff]  ;;  %v15948_v48 = vld [vmem:[%s17510_s2 + $0x1e0] sm:$0xff] }
 0x7ec   : > { %v15937_v8 = vld [vmem:[%s17510_s2 + $0x188] sm:$0xff] }
 0x7ed   : > { %9865 = vmatpush.bf16.msra.mxu1 %v15932_v30  ;;  %9255 = vmatpush.bf16.msra.mxu3 %v14435_v33  ;;  %v15940_v30 = vld [vmem:[%s17510_s2 + $0x1a0] sm:$0xff]  ;;  %v9404_v35 = vpack.c.bf16 %v9268_v23, %v9268_v23  ;;  %v15938_v33 = vld [vmem:[%s17510_s2 + $0x190] sm:$0xff] }
 0x7ef   : > { %9853 = vmatpush.bf16.msra.mxu0 %v15923_v15  ;;  %9877 = vmatpush.bf16.msra.mxu2 %v15941_v34 }
 0x7f1   : > { %9866 = vmatpush.bf16.msra.mxu1 %v15931_v17  ;;  %9256 = vmatpush.bf16.msra.mxu3 %v14403_v47 }
 0x7f3   : > { %9854 = vmatpush.bf16.msra.mxu0 %v15922_v16  ;;  %v9118_v61 = vpop.f32.mrf.mxu0  ;;  %9878 = vmatpush.bf16.msra.mxu2 %v15940_v30  ;;  %v15936_v16 = vld [vmem:[%s17510_s2 + $0x180] sm:$0xff] }
 0x7f5   : > { %9867 = vmatpush.bf16.msra.mxu1 %v15930_v19  ;;  %9257 = vmatpush.bf16.msra.mxu3 %v14371_v0  ;;  %v9131_v24 = vpop.f32.mrf.mxu1 }
 0x7f7   : > { %9855 = vmatpush.bf16.msra.mxu0 %v15921_v52  ;;  %9879 = vmatpush.bf16.msra.mxu2 %v15939_v41 }
 0x7f8   : > { %v9053_v11 = vpop.f32.mrf.mxu3 }
 0x7f9   : > { %9868 = vmatpush.bf16.msra.mxu1 %v15929_v2  ;;  %9258 = vmatpush.bf16.msra.mxu3 %v14339_v13  ;;  %v9054_v45 = vadd.f32 %v9053_v11, %v9041_v3 }
 0x7fb   : > { %9856 = vmatpush.bf16.msra.mxu0 %v15920_v14  ;;  %v9120_v46 = vpop.f32.mrf.mxu0  ;;  %v9270_v60 = vmax.f32 %v9054_v45, 0.0  ;;  %9880 = vmatpush.bf16.msra.mxu2 %v15938_v33  ;;  %v15951_v14 = vld [vmem:[%s17510_s2 + $0x1f8] sm:$0xff] }
 0x7fc   : > { %v15944_v46 = vld [vmem:[%s17510_s2 + $0x1c0] sm:$0xff] }
 0x7fd   : > { %9869 = vmatpush.bf16.msra.mxu1 %v15928_v49  ;;  %9259 = vmatpush.bf16.msra.mxu3 %v14307_v5  ;;  %v9133_v10 = vpop.f32.mrf.mxu1  ;;  %v9406_v55 = vpack.c.bf16 %v9270_v60, %v9270_v60 }
 0x7fe   : > { %9857 = vmatmul.bf16.vlgmr.msra.gmra.mxu0 %v9405_v62  ;;  %v15949_v62 = vld [vmem:[%s17510_s2 + $0x1e8] sm:$0xff] }
 0x7ff   : > { %9881 = vmatpush.bf16.msra.mxu2 %v15937_v8 }
 0x800   : > { %9260 = vmatmul.bf16.vlgmr.msra.gmra.mxu3 %v17073_v12  ;;  %v15915_v12 = vld [vmem:[%s17510_s2 + $0xd8] sm:$0xff]  ;;  %9870 = vmatmul.bf16.vlgmr.msra.gmra.mxu1 %v9406_v55  ;;  %v9055_v43 = vpop.f32.mrf.mxu3 }
 0x801   : > { %9836 = vmatpush.bf16.msrb.mxu3 %v15919_v21  ;;  %v9144_v57 = vpop.f32.mrf.mxu2 }
 0x803   : > { %9882 = vmatpush.bf16.msra.mxu2 %v15936_v16 }
 0x805   : > { %9837 = vmatpush.bf16.msrb.mxu3 %v15918_v44  ;;  %v15947_v44 = vld [vmem:[%s17510_s2 + $0x1d8] sm:$0xff] }
 0x809   : > { %9838 = vmatpush.bf16.msrb.mxu3 %v15917_v50  ;;  %v9146_v28 = vpop.f32.mrf.mxu2 }
 0x80d   : > { %9839 = vmatpush.bf16.msrb.mxu3 %v15916_v39  ;;  %v15945_v39 = vld [vmem:[%s17510_s2 + $0x1c8] sm:$0xff] }
 0x811   : > { %9840 = vmatpush.bf16.msrb.mxu3 %v15915_v12 }
 0x813   : > { %v9170_v15 = vpop.f32.mrf.mxu0 }
 0x814   : > { %v9171_v42 = vadd.f32 %v9170_v15, %v5864_v40 }
 0x815   : > { %9841 = vmatpush.bf16.msrb.mxu3 %v15914_v7  ;;  %v9183_v36 = vpop.f32.mrf.mxu1 }
 0x816   : > { %v9184_v17 = vadd.f32 %v9183_v36, %v9171_v42 }
 0x819   : > { %9842 = vmatpush.bf16.msrb.mxu3 %v15913_v29 }
 0x81b   : > { %v9172_v63 = vpop.f32.mrf.mxu0  ;;  %v9105_v18 = vpop.f32.mrf.mxu3 }
 0x81c   : > { %v9106_v0 = vadd.f32 %v9105_v18, %v17348_v4  ;;  %v15950_v4 = vld [vmem:[%s17510_s2 + $0x1f0] sm:$0xff] }
 0x81d   : > { %9843 = vmatpush.bf16.msrb.mxu3 %v15912_v22  ;;  %v9185_v47 = vpop.f32.mrf.mxu1 }
 0x81e   : > { %v9119_v53 = vadd.f32 %v9118_v61, %v9106_v0 }
 0x820   : > { %9844 = vmatmul.bf16.vlgmr.msrb.gmra.mxu3 %v9404_v35  ;;  %v9132_v27 = vadd.f32 %v9131_v24, %v9119_v53 }
 0x821   : > { %v9196_v51 = vpop.f32.mrf.mxu2  ;;  %9888 = vmatpush.bf16.msra.mxu3 %v15951_v14 }
 0x822   : > { %v9197_v19 = vadd.f32 %v9196_v51, %v9184_v17  ;;  %v9145_v59 = vadd.f32 %v9144_v57, %v9132_v27 }
 0x823   : > { %v9107_v58 = vpop.f32.mrf.mxu3 }
 0x825   : > { %9889 = vmatpush.bf16.msra.mxu3 %v15950_v4 }
 0x829   : > { %v9198_v32 = vpop.f32.mrf.mxu2  ;;  %9890 = vmatpush.bf16.msra.mxu3 %v15949_v62 }
 0x82d   : > { %9891 = vmatpush.bf16.msra.mxu3 %v15948_v48 }
 0x831   : > { %9892 = vmatpush.bf16.msra.mxu3 %v15947_v44 }
 0x835   : > { %9893 = vmatpush.bf16.msra.mxu3 %v15946_v1 }
 0x839   : > { %9894 = vmatpush.bf16.msra.mxu3 %v15945_v39 }
 0x83b   : > { %v9222_v52 = vpop.f32.mrf.mxu0  ;;  %v9157_v13 = vpop.f32.mrf.mxu3 }
 0x83c   : > { %v9158_v31 = vadd.f32 %v9157_v13, %v9145_v59 }
 0x83d   : > { %v9235_v38 = vpop.f32.mrf.mxu1  ;;  %9895 = vmatpush.bf16.msra.mxu3 %v15944_v46 }
 0x83e   : > { %v9271_v25 = vmax.f32 %v9158_v31, 0.0 }
 0x840   : > { %v9407_v49 = vpack.c.bf16 %v9271_v25, %v9271_v25 }
 0x842   : > { %9883 = vmatmul.bf16.vlgmr.msra.gmra.mxu2 %v9407_v49 }
 0x843   : > { %v9224_v9 = vpop.f32.mrf.mxu0  ;;  %v9159_v5 = vpop.f32.mrf.mxu3 }
 0x845   : > { %v9237_v2 = vpop.f32.mrf.mxu1 }
 0x849   : > { %v9248_v20 = vpop.f32.mrf.mxu2 }
 0x851   : > { %v9250_v21 = vpop.f32.mrf.mxu2 }
 0x85b   : > { %v9806_v50 = vpop.f32.mrf.mxu0 }
 0x85c   : > { %v9807_v61 = vadd.f32 %v16103_v6, %v9806_v50 }
 0x85d   : > { %v9819_v54 = vpop.f32.mrf.mxu1 }
 0x85e   : > { %v9820_v24 = vadd.f32 %v9819_v54, %v9807_v61 }
 0x863   : > { %v9808_v12 = vpop.f32.mrf.mxu0  ;;  %v9209_v10 = vpop.f32.mrf.mxu3 }
 0x864   : > { %v9210_v45 = vadd.f32 %v9209_v10, %v9197_v19 }
 0x865   : > { %v9821_v56 = vpop.f32.mrf.mxu1 }
 0x866   : > { %v9223_v57 = vadd.f32 %v9222_v52, %v9210_v45 }
 0x868   : > { %v9236_v29 = vadd.f32 %v9235_v38, %v9223_v57 }
 0x869   : > { %v9832_v3 = vpop.f32.mrf.mxu2 }
 0x86a   : > { %v9833_v7 = vadd.f32 %v9832_v3, %v9820_v24  ;;  %v9249_v55 = vadd.f32 %v9248_v20, %v9236_v29 }
 0x86b   : > { %v9211_v11 = vpop.f32.mrf.mxu3 }
 0x871   : > { %v9834_v26 = vpop.f32.mrf.mxu2 }
 0x87b   : > { %v9858_v60 = vpop.f32.mrf.mxu0 }
 0x87d   : > { %v9871_v28 = vpop.f32.mrf.mxu1 }
 0x883   : > { %v9860_v37 = vpop.f32.mrf.mxu0  ;;  %v9261_v22 = vpop.f32.mrf.mxu3 }
 0x884   : > { %v9262_v23 = vadd.f32 %v9261_v22, %v9249_v55 }
 0x885   : > { %v9873_v35 = vpop.f32.mrf.mxu1 }
 0x886   : > { %v9272_v43 = vmax.f32 %v9262_v23, 0.0 }
 0x888   : > { %v9408_v34 = vpack.c.bf16 %v9272_v43, %v9272_v43 }
 0x88a   : > { %9896 = vmatmul.bf16.vlgmr.msra.gmra.mxu3 %v9408_v34 }
 0x88b   : > { %v9263_v30 = vpop.f32.mrf.mxu3 }
 0x8a3   : > { %v9845_v40 = vpop.f32.mrf.mxu3 }
 0x8a4   : > { %v9846_v41 = vadd.f32 %v9845_v40, %v9833_v7 }
 0x8a6   : > { %v9859_v33 = vadd.f32 %v9858_v60, %v9846_v41 }
 0x8a8   : > { %v9872_v15 = vadd.f32 %v9871_v28, %v9859_v33 }
 0x8ab   : > { %v9847_v42 = vpop.f32.mrf.mxu3 }
 0x8c5   : > { %v9884_v36 = vpop.f32.mrf.mxu2 }
 0x8c6   : > { %v9885_v8 = vadd.f32 %v9884_v36, %v9872_v15 }
 0x8cd   : > { %v9886_v17 = vpop.f32.mrf.mxu2 }
 0x90d   : > { %v9897_v63 = vpop.f32.mrf.mxu3 }
 0x90e   : > { %v9898_v47 = vadd.f32 %v9897_v63, %v9885_v8 }
 0x910   : > { %v9901_v16 = vmax.f32 %v9898_v47, 0.0 }
 0x912   : > { %9903 = vst.msk [vmem:[%s609_s4] sm:$0xff] %vm9902_vm6, %v9901_v16 }
 0x913   : > { %16471 = shalt.err (!%p16468_p10)
}
 0x914   : > { %15992 = dma.vmem_to_hbm [thread:$0]  (%p16739_p0), %s9918_s7, 128, %s9920_s5, %s9905_s14  }
 0x915   : > { %v9899_v18 = vpop.f32.mrf.mxu3 }
 0x916 PF: > { %s9931_s6 = sand.u32 1, %s16522_s21   ;;  %p17512_p12 = scmp.ge.s32.totalorder %s16534_s24, 2 }
 0x917   : > { %s9932_s13 = scalar_lea.sflag [#allocation4], %s9931_s6 }
 0x918   : > { %p16030_p5 = pnand %p17512_p12, %p16745_p6 }
 0x91a   : > { %p16031_p11 = pneg %p16030_p5 }
 0x91c   : > { %16517 = dma.done.wait (%p16031_p11), %s9932_s13, 128  }
 0x91d   : > { %16519 = vsyncadd (%p16031_p11), %s9932_s13, 4294967168  ;;  %p32_p2 = scmp.ge.s32.totalorder %s16715_s16, 4   ;;  %s17513_s21 = smov %s16526_s22 }
 0x91e   : > { %s17514_s22 = smov %s16530_s23  ;;  %s17515_s23 = smov %s16727_s10 }
 0x91f   : > { %s17516_s24 = smov %s16715_s16  ;;  %34 = sbr.rel (!%p32_p2) target bundleno = 22 (0x16), region = 162 }
 0x924   :  { %9938 = vsyncpa [#allocation3], 1 }
 0x925   :  { %9940 = vsyncpa [#allocation3 + $0x1], 1 }
 0x926   :  { %9941 = vsyncpa [#allocation6], 1 }
 0x927   :  { %9943 = vsyncpa [#allocation6 + $0x1], 1 }
 0x928   :  { %9944 = vsyncpa [#allocation9], 1 }
 0x929   :  { %9945 = vsyncpa [#allocation12], 1 }
 0x92a   :  { %9946 = vsyncpa [#allocation15], 1 }
 0x92b   :  { %9947 = vsyncpa [#allocation18], 1 }
 0x92c   :  { %9948 = vsyncpa [#allocation4], 1 }
 0x92d   :  { %9950 = vsyncpa [#allocation4 + $0x1], 1 }

</bundles_post_ra>
